<compile_context>
chip_gen: v7x
topology: tpu7x:2x2x1
jax: 0.10.0
libtpu: 0.0.40
codegen_flags: <defaults>
</compile_context>

<pallas_src>
import functools

import jax
import jax.numpy as jnp
from jax.experimental import pallas as pl
from jax.experimental.pallas import tpu as pltpu


def _ru(x, m):
    return (x + m - 1) // m * m


# ---------------------------------------------------------------------------
# Pallas kernel: out = [relu](A @ B + bias), single K step per output tile.
# ---------------------------------------------------------------------------
def _matmul_bias_act_kernel(a_ref, b_ref, bias_ref, o_ref, *, apply_relu):
    acc = jnp.dot(a_ref[...], b_ref[...], preferred_element_type=jnp.float32)
    out = acc + bias_ref[...]
    if apply_relu:
        out = jnp.maximum(out, 0.0)
    o_ref[...] = out.astype(o_ref.dtype)


def pallas_matmul_bias(a, b_p, bias_p, n_out, *, apply_relu):
    """y = a @ b + bias (optionally ReLU).

    a      : (M, K)   activations (cast to bf16 here).
    b_p    : (Kp, Np) weights, pre-padded & pre-cast to bf16 (Kp, Np % 128 == 0).
    bias_p : (1, Np)  f32 bias, pre-padded.
    n_out  : true N (<= Np). Returns (M, n_out) f32.
    """
    M, K = a.shape
    Kp, Np = b_p.shape
    assert K <= Kp and n_out <= Np

    tn = 256 if (Np >= 256 and Np % 256 == 0) else 128
    tm = 512 if M >= 512 else _ru(M, 16)
    Mp = _ru(M, tm)

    a_p = jnp.pad(a, ((0, Mp - M), (0, Kp - K))).astype(jnp.bfloat16)

    kernel = functools.partial(_matmul_bias_act_kernel, apply_relu=apply_relu)
    out = pl.pallas_call(
        kernel,
        out_shape=jax.ShapeDtypeStruct((Mp, Np), jnp.float32),
        grid_spec=pltpu.PrefetchScalarGridSpec(
            num_scalar_prefetch=0,
            grid=(Mp // tm, Np // tn),
            in_specs=[
                pl.BlockSpec((tm, Kp), lambda i, j: (i, 0)),   # whole K in VMEM
                pl.BlockSpec((Kp, tn), lambda i, j: (0, j)),
                pl.BlockSpec((1, tn), lambda i, j: (0, j)),
            ],
            out_specs=pl.BlockSpec((tm, tn), lambda i, j: (i, j)),
        ),
        compiler_params=pltpu.CompilerParams(
            dimension_semantics=("parallel", "parallel"),
            vmem_limit_bytes=40 * 1024 * 1024,
        ),
    )(a_p, b_p, bias_p)
    return out[:M, :n_out]


# ---------------------------------------------------------------------------
# Pallas max-pool kernel (window max over leading axis, lane-dense last dim)
# ---------------------------------------------------------------------------
def _maxpool_kernel(x_ref, o_ref):
    o_ref[...] = jnp.max(x_ref[...], axis=0)


def pallas_maxpool(x, pool=3, stride=2):
    """MaxPool2d(pool, stride) on NHWC input, no padding (PyTorch default)."""
    B, H, W, C = x.shape
    Ho = (H - pool) // stride + 1
    Wo = (W - pool) // stride + 1
    wins = []
    for dy in range(pool):
        for dx in range(pool):
            wins.append(x[:, dy:dy + stride * (Ho - 1) + 1:stride,
                          dx:dx + stride * (Wo - 1) + 1:stride, :])
    # (pool*pool, B*Ho, Wo*C): rows = batch*out-row, lanes = out-col*channels.
    # Lane-dense last dim avoids the old C -> 128 padding (8x lane waste).
    # TODO(synk): fuse the 3x3 window max into a single-read kernel (roll /
    # strided slices) to also avoid the pool*pool window materialization.
    w = jnp.stack(wins, axis=0).reshape(pool * pool, B * Ho, Wo * C)

    M, L = B * Ho, Wo * C
    tm = _ru(M, 8) if M <= 512 else 512
    Mp, Lp = _ru(M, tm), _ru(L, 128)
    w_p = jnp.pad(w, ((0, 0), (0, Mp - M), (0, Lp - L)))

    out = pl.pallas_call(
        _maxpool_kernel,
        out_shape=jax.ShapeDtypeStruct((Mp, Lp), x.dtype),
        grid_spec=pltpu.PrefetchScalarGridSpec(
            num_scalar_prefetch=0,
            grid=(Mp // tm,),
            in_specs=[pl.BlockSpec((pool * pool, tm, Lp), lambda i: (0, i, 0))],
            out_specs=pl.BlockSpec((tm, Lp), lambda i: (i, 0)),
        ),
        compiler_params=pltpu.CompilerParams(dimension_semantics=("parallel",)),
    )(w_p)
    return out[:M, :L].reshape(B, Ho, Wo, C)


# ---------------------------------------------------------------------------
# Conv via im2col + Pallas matmul (glue in plain JAX)
# ---------------------------------------------------------------------------
def _im2col(x, kh, kw, stride, pad):
    # x: (B, H, W, Cin) -> patches (B*Ho*Wo, kh*kw*Cin), ordered (kh, kw, cin)
    if pad > 0:
        x = jnp.pad(x, ((0, 0), (pad, pad), (pad, pad), (0, 0)))
    x = x.astype(jnp.bfloat16)          # MXU operand dtype; halves im2col HBM
    B, H, W, C = x.shape
    Ho = (H - kh) // stride + 1
    Wo = (W - kw) // stride + 1
    cols = []
    for dy in range(kh):
        for dx in range(kw):
            cols.append(x[:, dy:dy + stride * (Ho - 1) + 1:stride,
                          dx:dx + stride * (Wo - 1) + 1:stride, :])
    p = jnp.stack(cols, axis=3)                       # (B, Ho, Wo, kh*kw, Cin)
    # TODO(synk): fuse im2col into the matmul via scalar-prefetch / DMA gather.
    return p.reshape(B * Ho * Wo, kh * kw * C), Ho, Wo


def conv2d_relu(x, w_p, bias_p, cout, kh, kw, stride, pad):
    """x: NHWC; w_p: prepared (Kp, Np) bf16 weight; bias_p: (1, Np). ReLU fused."""
    B = x.shape[0]
    patches, Ho, Wo = _im2col(x, kh, kw, stride, pad)
    y = pallas_matmul_bias(patches, w_p, bias_p, cout, apply_relu=True)
    return y.reshape(B, Ho, Wo, cout)


# ---------------------------------------------------------------------------
# Parameters (deterministic, in-script)
# ---------------------------------------------------------------------------
_CONV_DEFS = [
    # name, (cout, cin, kh, kw), stride, pad
    ("c1", (16, 1, 11, 11), 4, 0),
    ("c2", (32, 16, 5, 5), 1, 2),
    ("c3", (64, 32, 3, 3), 1, 1),
    ("c4", (128, 64, 3, 3), 1, 1),
    ("c5", (64, 128, 3, 3), 1, 1),
]


def init_params(key, num_output):
    """Raw parameters, mirroring the PyTorch module's initialization."""
    def kaiming_fan_out(k, shape):        # relu gain, fan_out mode
        cout, _, kh, kw = shape
        std = (2.0 / (cout * kh * kw)) ** 0.5
        return std * jax.random.normal(k, shape, jnp.float32)

    def conv_bias(k, cout, cin, kh, kw):  # PyTorch default conv bias init
        bound = 1.0 / (cin * kh * kw) ** 0.5
        return jax.random.uniform(k, (cout,), jnp.float32, -bound, bound)

    ks = jax.random.split(key, 2 * len(_CONV_DEFS))
    params = {}
    for i, (name, shp, _, _) in enumerate(_CONV_DEFS):
        params[name + "_w"] = kaiming_fan_out(ks[2 * i], shp)
        params[name + "_b"] = conv_bias(ks[2 * i + 1], *shp)

    # Linear layers: weight = 1, bias = -100 (the module's constant init).
    params["fc1_w"] = jnp.ones((1000, 64 * 5 * 5), jnp.float32)
    params["fc1_b"] = jnp.full((1000,), -100.0, jnp.float32)
    params["fc2_w"] = jnp.ones((1000, 1000), jnp.float32)
    params["fc2_b"] = jnp.full((1000,), -100.0, jnp.float32)
    params["fc3_w"] = jnp.ones((num_output, 1000), jnp.float32)
    params["fc3_b"] = jnp.full((num_output,), -100.0, jnp.float32)
    return params


def _prep_matmul_weights(w_kn, bias_n, n_tile):
    K, N = w_kn.shape
    Kp, Np = _ru(K, 128), _ru(N, n_tile)
    w_p = jnp.pad(w_kn, ((0, Kp - K), (0, Np - N))).astype(jnp.bfloat16)
    b_p = jnp.pad(bias_n.reshape(1, N), ((0, 0), (0, Np - N))).astype(jnp.float32)
    return w_p, b_p


def prepare_params(params):
    """One-time weight prep: conv w -> (kh*kw*cin, cout), FC w -> (K, N); all
    padded to the kernel's tile grid and cast to bf16; biases padded to (1, Np)."""
    fast = {}
    for name, (cout, cin, kh, kw), _, _ in _CONV_DEFS:
        wm = jnp.transpose(params[name + "_w"], (2, 3, 1, 0)).reshape(kh * kw * cin, cout)
        fast[name + "_w"], fast[name + "_b"] = _prep_matmul_weights(
            wm, params[name + "_b"], 128)
    for name in ("fc1", "fc2", "fc3"):
        n = params[name + "_w"].shape[0]
        tile = 256 if n >= 256 else 128
        fast[name + "_w"], fast[name + "_b"] = _prep_matmul_weights(
            params[name + "_w"].T, params[name + "_b"], tile)
    return fast


# ---------------------------------------------------------------------------
# Forward
# ---------------------------------------------------------------------------
def alexnet_forward(fast_params, img, *, num_output):
    # img: (B, H, W); PyTorch does img.view((B, 1, H, W)) -> single channel.
    B = img.shape[0]
    x = img.reshape(B, img.shape[1], img.shape[2], 1)            # NHWC

    for name, (cout, cin, kh, kw), stride, pad in _CONV_DEFS:
        x = conv2d_relu(x, fast_params[name + "_w"], fast_params[name + "_b"],
                        cout, kh, kw, stride, pad)
        if name in ("c1", "c2", "c5"):
            x = pallas_maxpool(x, 3, 2)                          # -> (B, 5, 5, 64)

    # PyTorch flattens NCHW order -> transpose back before flatten.
    feat = jnp.transpose(x, (0, 3, 1, 2)).reshape(B, -1)         # (B, 1600)

    h = pallas_matmul_bias(feat, fast_params["fc1_w"], fast_params["fc1_b"],
                           1000, apply_relu=True)
    # TODO(synk): nn.Dropout(0.5) implemented as identity (inference semantics).
    h = pallas_matmul_bias(h, fast_params["fc2_w"], fast_params["fc2_b"],
                           1000, apply_relu=True)
    out = pallas_matmul_bias(h, fast_params["fc3_w"], fast_params["fc3_b"],
                             num_output, apply_relu=False)
    return out


if __name__ == "__main__":
    num_output = 10
    key = jax.random.PRNGKey(0)
    pkey, xkey = jax.random.split(key)
    raw_params = init_params(pkey, num_output)
    fast_params = prepare_params(raw_params)
    # Spatial size must be 224x224: the FC stack hard-codes 64*5*5 input features.
    img = jax.random.normal(xkey, (2, 224, 224), jnp.float32)

    fwd = jax.jit(functools.partial(alexnet_forward, num_output=num_output))
    out = fwd(fast_params, img)
    out = jax.block_until_ready(out)
    assert out.shape == (2, num_output)
    assert bool(jnp.all(jnp.isfinite(out)))
    print("KERNEL_OK")
</pallas_src>

<mosaic_0001>
module attributes {stable_mosaic.version = 11 : i64} {
  func.func @_matmul_bias_act_kernel(%arg0: i32, %arg1: i32, %arg2: memref<512x128xbf16, #tpu.memory_space<vmem>>, %arg3: memref<128x128xbf16, #tpu.memory_space<vmem>>, %arg4: memref<1x128xf32, #tpu.memory_space<vmem>>, %arg5: memref<512x128xf32, #tpu.memory_space<vmem>>) attributes {dimension_semantics = [#tpu.dimension_semantics<parallel>, #tpu.dimension_semantics<parallel>], iteration_bounds = array<i64: 12, 1>, scalar_prefetch = 0 : i64, scratch_operands = 0 : i64, tpu.core_type = #tpu.core_type<tc>, window_params = [{transform_indices = @transform_0, window_bounds = array<i64: 512, 128>}, {transform_indices = @transform_1, window_bounds = array<i64: 128, 128>}, {transform_indices = @transform_2, window_bounds = array<i64: 1, 128>}, {transform_indices = @transform_3, window_bounds = array<i64: 512, 128>}]} {
    %c0 = arith.constant 0 : index
    %c0_0 = arith.constant 0 : index
    %0 = vector.load %arg2[%c0, %c0_0] : memref<512x128xbf16, #tpu.memory_space<vmem>>, vector<512x128xbf16>
    %c0_1 = arith.constant 0 : index
    %c0_2 = arith.constant 0 : index
    %1 = vector.load %arg3[%c0_1, %c0_2] : memref<128x128xbf16, #tpu.memory_space<vmem>>, vector<128x128xbf16>
    %cst = arith.constant dense<0.000000e+00> : vector<512x128xf32>
    %2 = tpu.matmul %0, %1, %cst {dimension_numbers = #tpu.dot_dimension_numbers<[1], [0], [0], [1], [0, 0, 1, 1], [], []>} : vector<512x128xbf16>, vector<128x128xbf16>, vector<512x128xf32> -> vector<512x128xf32>
    %c0_3 = arith.constant 0 : index
    %c0_4 = arith.constant 0 : index
    %3 = vector.load %arg4[%c0_3, %c0_4] : memref<1x128xf32, #tpu.memory_space<vmem>>, vector<1x128xf32>
    %4 = vector.broadcast %3 : vector<1x128xf32> to vector<512x128xf32>
    %5 = arith.addf %2, %4 : vector<512x128xf32>
    %cst_5 = arith.constant 0.000000e+00 : f32
    %6 = vector.broadcast %cst_5 : f32 to vector<512x128xf32>
    %7 = arith.maximumf %5, %6 : vector<512x128xf32>
    %c0_6 = arith.constant 0 : index
    %c0_7 = arith.constant 0 : index
    %8 = vector.load %arg5[%c0_6, %c0_7] : memref<512x128xf32, #tpu.memory_space<vmem>>, vector<512x128xf32>
    tpu.vector_store %arg5[%c0_6, %c0_7], %7 {strides = array<i32>} : memref<512x128xf32, #tpu.memory_space<vmem>>, vector<512x128xf32>,
    return
  }
  func.func @transform_0(%arg0: i32, %arg1: i32) -> (i32, i32) {
    %c0_i32 = arith.constant 0 : i32
    %c0_i32_0 = arith.constant 0 : i32
    return %arg0, %c0_i32 : i32, i32
  }
  func.func @transform_1(%arg0: i32, %arg1: i32) -> (i32, i32) {
    %c0_i32 = arith.constant 0 : i32
    %c0_i32_0 = arith.constant 0 : i32
    return %c0_i32, %arg1 : i32, i32
  }
  func.func @transform_2(%arg0: i32, %arg1: i32) -> (i32, i32) {
    %c0_i32 = arith.constant 0 : i32
    %c0_i32_0 = arith.constant 0 : i32
    return %c0_i32, %arg1 : i32, i32
  }
  func.func @transform_3(%arg0: i32, %arg1: i32) -> (i32, i32) {
    %c0_i32 = arith.constant 0 : i32
    return %arg0, %arg1 : i32, i32
  }
}

module attributes {stable_mosaic.version = 11 : i64} {
  func.func @_maxpool_kernel(%arg0: i32, %arg1: memref<9x56x512xf32, #tpu.memory_space<vmem>>, %arg2: memref<56x512xf32, #tpu.memory_space<vmem>>) attributes {dimension_semantics = [#tpu.dimension_semantics<parallel>], iteration_bounds = array<i64: 1>, scalar_prefetch = 0 : i64, scratch_operands = 0 : i64, tpu.core_type = #tpu.core_type<tc>, window_params = [{transform_indices = @transform_0, window_bounds = array<i64: 9, 56, 512>}, {transform_indices = @transform_1, window_bounds = array<i64: 56, 512>}]} {
    %c0 = arith.constant 0 : index
    %c0_0 = arith.constant 0 : index
    %c0_1 = arith.constant 0 : index
    %0 = vector.load %arg1[%c0, %c0_0, %c0_1] : memref<9x56x512xf32, #tpu.memory_space<vmem>>, vector<9x56x512xf32>
    %cst = arith.constant dense<0xFF800000> : vector<56x512xf32>
    %1 = vector.multi_reduction <maximumf>, %0, %cst [0] : vector<9x56x512xf32> to vector<56x512xf32>
    %c0_2 = arith.constant 0 : index
    %c0_3 = arith.constant 0 : index
    %2 = vector.load %arg2[%c0_2, %c0_3] : memref<56x512xf32, #tpu.memory_space<vmem>>, vector<56x512xf32>
    tpu.vector_store %arg2[%c0_2, %c0_3], %1 {strides = array<i32>} : memref<56x512xf32, #tpu.memory_space<vmem>>, vector<56x512xf32>,
    return
  }
  func.func @transform_0(%arg0: i32) -> (i32, i32, i32) {
    %c0_i32 = arith.constant 0 : i32
    %c0_i32_0 = arith.constant 0 : i32
    %c0_i32_1 = arith.constant 0 : i32
    return %c0_i32, %arg0, %c0_i32_0 : i32, i32, i32
  }
  func.func @transform_1(%arg0: i32) -> (i32, i32) {
    %c0_i32 = arith.constant 0 : i32
    %c0_i32_0 = arith.constant 0 : i32
    return %arg0, %c0_i32 : i32, i32
  }
}

module attributes {stable_mosaic.version = 11 : i64} {
  func.func @_matmul_bias_act_kernel(%arg0: i32, %arg1: i32, %arg2: memref<512x512xbf16, #tpu.memory_space<vmem>>, %arg3: memref<512x128xbf16, #tpu.memory_space<vmem>>, %arg4: memref<1x128xf32, #tpu.memory_space<vmem>>, %arg5: memref<512x128xf32, #tpu.memory_space<vmem>>) attributes {dimension_semantics = [#tpu.dimension_semantics<parallel>, #tpu.dimension_semantics<parallel>], iteration_bounds = array<i64: 3, 1>, scalar_prefetch = 0 : i64, scratch_operands = 0 : i64, tpu.core_type = #tpu.core_type<tc>, window_params = [{transform_indices = @transform_0, window_bounds = array<i64: 512, 512>}, {transform_indices = @transform_1, window_bounds = array<i64: 512, 128>}, {transform_indices = @transform_2, window_bounds = array<i64: 1, 128>}, {transform_indices = @transform_3, window_bounds = array<i64: 512, 128>}]} {
    %c0 = arith.constant 0 : index
    %c0_0 = arith.constant 0 : index
    %0 = vector.load %arg2[%c0, %c0_0] : memref<512x512xbf16, #tpu.memory_space<vmem>>, vector<512x512xbf16>
    %c0_1 = arith.constant 0 : index
    %c0_2 = arith.constant 0 : index
    %1 = vector.load %arg3[%c0_1, %c0_2] : memref<512x128xbf16, #tpu.memory_space<vmem>>, vector<512x128xbf16>
    %cst = arith.constant dense<0.000000e+00> : vector<512x128xf32>
    %2 = tpu.matmul %0, %1, %cst {dimension_numbers = #tpu.dot_dimension_numbers<[1], [0], [0], [1], [0, 0, 1, 1], [], []>} : vector<512x512xbf16>, vector<512x128xbf16>, vector<512x128xf32> -> vector<512x128xf32>
    %c0_3 = arith.constant 0 : index
    %c0_4 = arith.constant 0 : index
    %3 = vector.load %arg4[%c0_3, %c0_4] : memref<1x128xf32, #tpu.memory_space<vmem>>, vector<1x128xf32>
    %4 = vector.broadcast %3 : vector<1x128xf32> to vector<512x128xf32>
    %5 = arith.addf %2, %4 : vector<512x128xf32>
    %cst_5 = arith.constant 0.000000e+00 : f32
    %6 = vector.broadcast %cst_5 : f32 to vector<512x128xf32>
    %7 = arith.maximumf %5, %6 : vector<512x128xf32>
    %c0_6 = arith.constant 0 : index
    %c0_7 = arith.constant 0 : index
    %8 = vector.load %arg5[%c0_6, %c0_7] : memref<512x128xf32, #tpu.memory_space<vmem>>, vector<512x128xf32>
    tpu.vector_store %arg5[%c0_6, %c0_7], %7 {strides = array<i32>} : memref<512x128xf32, #tpu.memory_space<vmem>>, vector<512x128xf32>,
    return
  }
  func.func @transform_0(%arg0: i32, %arg1: i32) -> (i32, i32) {
    %c0_i32 = arith.constant 0 : i32
    %c0_i32_0 = arith.constant 0 : i32
    return %arg0, %c0_i32 : i32, i32
  }
  func.func @transform_1(%arg0: i32, %arg1: i32) -> (i32, i32) {
    %c0_i32 = arith.constant 0 : i32
    %c0_i32_0 = arith.constant 0 : i32
    return %c0_i32, %arg1 : i32, i32
  }
  func.func @transform_2(%arg0: i32, %arg1: i32) -> (i32, i32) {
    %c0_i32 = arith.constant 0 : i32
    %c0_i32_0 = arith.constant 0 : i32
    return %c0_i32, %arg1 : i32, i32
  }
  func.func @transform_3(%arg0: i32, %arg1: i32) -> (i32, i32) {
    %c0_i32 = arith.constant 0 : i32
    return %arg0, %arg1 : i32, i32
  }
}

module attributes {stable_mosaic.version = 11 : i64} {
  func.func @_maxpool_kernel(%arg0: i32, %arg1: memref<9x24x384xf32, #tpu.memory_space<vmem>>, %arg2: memref<24x384xf32, #tpu.memory_space<vmem>>) attributes {dimension_semantics = [#tpu.dimension_semantics<parallel>], iteration_bounds = array<i64: 1>, scalar_prefetch = 0 : i64, scratch_operands = 0 : i64, tpu.core_type = #tpu.core_type<tc>, window_params = [{transform_indices = @transform_0, window_bounds = array<i64: 9, 24, 384>}, {transform_indices = @transform_1, window_bounds = array<i64: 24, 384>}]} {
    %c0 = arith.constant 0 : index
    %c0_0 = arith.constant 0 : index
    %c0_1 = arith.constant 0 : index
    %0 = vector.load %arg1[%c0, %c0_0, %c0_1] : memref<9x24x384xf32, #tpu.memory_space<vmem>>, vector<9x24x384xf32>
    %cst = arith.constant dense<0xFF800000> : vector<24x384xf32>
    %1 = vector.multi_reduction <maximumf>, %0, %cst [0] : vector<9x24x384xf32> to vector<24x384xf32>
    %c0_2 = arith.constant 0 : index
    %c0_3 = arith.constant 0 : index
    %2 = vector.load %arg2[%c0_2, %c0_3] : memref<24x384xf32, #tpu.memory_space<vmem>>, vector<24x384xf32>
    tpu.vector_store %arg2[%c0_2, %c0_3], %1 {strides = array<i32>} : memref<24x384xf32, #tpu.memory_space<vmem>>, vector<24x384xf32>,
    return
  }
  func.func @transform_0(%arg0: i32) -> (i32, i32, i32) {
    %c0_i32 = arith.constant 0 : i32
    %c0_i32_0 = arith.constant 0 : i32
    %c0_i32_1 = arith.constant 0 : i32
    return %c0_i32, %arg0, %c0_i32_0 : i32, i32, i32
  }
  func.func @transform_1(%arg0: i32) -> (i32, i32) {
    %c0_i32 = arith.constant 0 : i32
    %c0_i32_0 = arith.constant 0 : i32
    return %arg0, %c0_i32 : i32, i32
  }
}

module attributes {stable_mosaic.version = 11 : i64} {
  func.func @_matmul_bias_act_kernel(%arg0: i32, %arg1: i32, %arg2: memref<288x384xbf16, #tpu.memory_space<vmem>>, %arg3: memref<384x128xbf16, #tpu.memory_space<vmem>>, %arg4: memref<1x128xf32, #tpu.memory_space<vmem>>, %arg5: memref<288x128xf32, #tpu.memory_space<vmem>>) attributes {dimension_semantics = [#tpu.dimension_semantics<parallel>, #tpu.dimension_semantics<parallel>], iteration_bounds = array<i64: 1, 1>, scalar_prefetch = 0 : i64, scratch_operands = 0 : i64, tpu.core_type = #tpu.core_type<tc>, window_params = [{transform_indices = @transform_0, window_bounds = array<i64: 288, 384>}, {transform_indices = @transform_1, window_bounds = array<i64: 384, 128>}, {transform_indices = @transform_2, window_bounds = array<i64: 1, 128>}, {transform_indices = @transform_3, window_bounds = array<i64: 288, 128>}]} {
    %c0 = arith.constant 0 : index
    %c0_0 = arith.constant 0 : index
    %0 = vector.load %arg2[%c0, %c0_0] : memref<288x384xbf16, #tpu.memory_space<vmem>>, vector<288x384xbf16>
    %c0_1 = arith.constant 0 : index
    %c0_2 = arith.constant 0 : index
    %1 = vector.load %arg3[%c0_1, %c0_2] : memref<384x128xbf16, #tpu.memory_space<vmem>>, vector<384x128xbf16>
    %cst = arith.constant dense<0.000000e+00> : vector<288x128xf32>
    %2 = tpu.matmul %0, %1, %cst {dimension_numbers = #tpu.dot_dimension_numbers<[1], [0], [0], [1], [0, 0, 1, 1], [], []>} : vector<288x384xbf16>, vector<384x128xbf16>, vector<288x128xf32> -> vector<288x128xf32>
    %c0_3 = arith.constant 0 : index
    %c0_4 = arith.constant 0 : index
    %3 = vector.load %arg4[%c0_3, %c0_4] : memref<1x128xf32, #tpu.memory_space<vmem>>, vector<1x128xf32>
    %4 = vector.broadcast %3 : vector<1x128xf32> to vector<288x128xf32>
    %5 = arith.addf %2, %4 : vector<288x128xf32>
    %cst_5 = arith.constant 0.000000e+00 : f32
    %6 = vector.broadcast %cst_5 : f32 to vector<288x128xf32>
    %7 = arith.maximumf %5, %6 : vector<288x128xf32>
    %c0_6 = arith.constant 0 : index
    %c0_7 = arith.constant 0 : index
    %8 = vector.load %arg5[%c0_6, %c0_7] : memref<288x128xf32, #tpu.memory_space<vmem>>, vector<288x128xf32>
    tpu.vector_store %arg5[%c0_6, %c0_7], %7 {strides = array<i32>} : memref<288x128xf32, #tpu.memory_space<vmem>>, vector<288x128xf32>,
    return
  }
  func.func @transform_0(%arg0: i32, %arg1: i32) -> (i32, i32) {
    %c0_i32 = arith.constant 0 : i32
    %c0_i32_0 = arith.constant 0 : i32
    return %arg0, %c0_i32 : i32, i32
  }
  func.func @transform_1(%arg0: i32, %arg1: i32) -> (i32, i32) {
    %c0_i32 = arith.constant 0 : i32
    %c0_i32_0 = arith.constant 0 : i32
    return %c0_i32, %arg1 : i32, i32
  }
  func.func @transform_2(%arg0: i32, %arg1: i32) -> (i32, i32) {
    %c0_i32 = arith.constant 0 : i32
    %c0_i32_0 = arith.constant 0 : i32
    return %c0_i32, %arg1 : i32, i32
  }
  func.func @transform_3(%arg0: i32, %arg1: i32) -> (i32, i32) {
    %c0_i32 = arith.constant 0 : i32
    return %arg0, %arg1 : i32, i32
  }
}

module attributes {stable_mosaic.version = 11 : i64} {
  func.func @_matmul_bias_act_kernel(%arg0: i32, %arg1: i32, %arg2: memref<288x640xbf16, #tpu.memory_space<vmem>>, %arg3: memref<640x128xbf16, #tpu.memory_space<vmem>>, %arg4: memref<1x128xf32, #tpu.memory_space<vmem>>, %arg5: memref<288x128xf32, #tpu.memory_space<vmem>>) attributes {dimension_semantics = [#tpu.dimension_semantics<parallel>, #tpu.dimension_semantics<parallel>], iteration_bounds = array<i64: 1, 1>, scalar_prefetch = 0 : i64, scratch_operands = 0 : i64, tpu.core_type = #tpu.core_type<tc>, window_params = [{transform_indices = @transform_0, window_bounds = array<i64: 288, 640>}, {transform_indices = @transform_1, window_bounds = array<i64: 640, 128>}, {transform_indices = @transform_2, window_bounds = array<i64: 1, 128>}, {transform_indices = @transform_3, window_bounds = array<i64: 288, 128>}]} {
    %c0 = arith.constant 0 : index
    %c0_0 = arith.constant 0 : index
    %0 = vector.load %arg2[%c0, %c0_0] : memref<288x640xbf16, #tpu.memory_space<vmem>>, vector<288x640xbf16>
    %c0_1 = arith.constant 0 : index
    %c0_2 = arith.constant 0 : index
    %1 = vector.load %arg3[%c0_1, %c0_2] : memref<640x128xbf16, #tpu.memory_space<vmem>>, vector<640x128xbf16>
    %cst = arith.constant dense<0.000000e+00> : vector<288x128xf32>
    %2 = tpu.matmul %0, %1, %cst {dimension_numbers = #tpu.dot_dimension_numbers<[1], [0], [0], [1], [0, 0, 1, 1], [], []>} : vector<288x640xbf16>, vector<640x128xbf16>, vector<288x128xf32> -> vector<288x128xf32>
    %c0_3 = arith.constant 0 : index
    %c0_4 = arith.constant 0 : index
    %3 = vector.load %arg4[%c0_3, %c0_4] : memref<1x128xf32, #tpu.memory_space<vmem>>, vector<1x128xf32>
    %4 = vector.broadcast %3 : vector<1x128xf32> to vector<288x128xf32>
    %5 = arith.addf %2, %4 : vector<288x128xf32>
    %cst_5 = arith.constant 0.000000e+00 : f32
    %6 = vector.broadcast %cst_5 : f32 to vector<288x128xf32>
    %7 = arith.maximumf %5, %6 : vector<288x128xf32>
    %c0_6 = arith.constant 0 : index
    %c0_7 = arith.constant 0 : index
    %8 = vector.load %arg5[%c0_6, %c0_7] : memref<288x128xf32, #tpu.memory_space<vmem>>, vector<288x128xf32>
    tpu.vector_store %arg5[%c0_6, %c0_7], %7 {strides = array<i32>} : memref<288x128xf32, #tpu.memory_space<vmem>>, vector<288x128xf32>,
    return
  }
  func.func @transform_0(%arg0: i32, %arg1: i32) -> (i32, i32) {
    %c0_i32 = arith.constant 0 : i32
    %c0_i32_0 = arith.constant 0 : i32
    return %arg0, %c0_i32 : i32, i32
  }
  func.func @transform_1(%arg0: i32, %arg1: i32) -> (i32, i32) {
    %c0_i32 = arith.constant 0 : i32
    %c0_i32_0 = arith.constant 0 : i32
    return %c0_i32, %arg1 : i32, i32
  }
  func.func @transform_2(%arg0: i32, %arg1: i32) -> (i32, i32) {
    %c0_i32 = arith.constant 0 : i32
    %c0_i32_0 = arith.constant 0 : i32
    return %c0_i32, %arg1 : i32, i32
  }
  func.func @transform_3(%arg0: i32, %arg1: i32) -> (i32, i32) {
    %c0_i32 = arith.constant 0 : i32
    return %arg0, %arg1 : i32, i32
  }
}

module attributes {stable_mosaic.version = 11 : i64} {
  func.func @_matmul_bias_act_kernel(%arg0: i32, %arg1: i32, %arg2: memref<288x1152xbf16, #tpu.memory_space<vmem>>, %arg3: memref<1152x128xbf16, #tpu.memory_space<vmem>>, %arg4: memref<1x128xf32, #tpu.memory_space<vmem>>, %arg5: memref<288x128xf32, #tpu.memory_space<vmem>>) attributes {dimension_semantics = [#tpu.dimension_semantics<parallel>, #tpu.dimension_semantics<parallel>], iteration_bounds = array<i64: 1, 1>, scalar_prefetch = 0 : i64, scratch_operands = 0 : i64, tpu.core_type = #tpu.core_type<tc>, window_params = [{transform_indices = @transform_0, window_bounds = array<i64: 288, 1152>}, {transform_indices = @transform_1, window_bounds = array<i64: 1152, 128>}, {transform_indices = @transform_2, window_bounds = array<i64: 1, 128>}, {transform_indices = @transform_3, window_bounds = array<i64: 288, 128>}]} {
    %c0 = arith.constant 0 : index
    %c0_0 = arith.constant 0 : index
    %0 = vector.load %arg2[%c0, %c0_0] : memref<288x1152xbf16, #tpu.memory_space<vmem>>, vector<288x1152xbf16>
    %c0_1 = arith.constant 0 : index
    %c0_2 = arith.constant 0 : index
    %1 = vector.load %arg3[%c0_1, %c0_2] : memref<1152x128xbf16, #tpu.memory_space<vmem>>, vector<1152x128xbf16>
    %cst = arith.constant dense<0.000000e+00> : vector<288x128xf32>
    %2 = tpu.matmul %0, %1, %cst {dimension_numbers = #tpu.dot_dimension_numbers<[1], [0], [0], [1], [0, 0, 1, 1], [], []>} : vector<288x1152xbf16>, vector<1152x128xbf16>, vector<288x128xf32> -> vector<288x128xf32>
    %c0_3 = arith.constant 0 : index
    %c0_4 = arith.constant 0 : index
    %3 = vector.load %arg4[%c0_3, %c0_4] : memref<1x128xf32, #tpu.memory_space<vmem>>, vector<1x128xf32>
    %4 = vector.broadcast %3 : vector<1x128xf32> to vector<288x128xf32>
    %5 = arith.addf %2, %4 : vector<288x128xf32>
    %cst_5 = arith.constant 0.000000e+00 : f32
    %6 = vector.broadcast %cst_5 : f32 to vector<288x128xf32>
    %7 = arith.maximumf %5, %6 : vector<288x128xf32>
    %c0_6 = arith.constant 0 : index
    %c0_7 = arith.constant 0 : index
    %8 = vector.load %arg5[%c0_6, %c0_7] : memref<288x128xf32, #tpu.memory_space<vmem>>, vector<288x128xf32>
    tpu.vector_store %arg5[%c0_6, %c0_7], %7 {strides = array<i32>} : memref<288x128xf32, #tpu.memory_space<vmem>>, vector<288x128xf32>,
    return
  }
  func.func @transform_0(%arg0: i32, %arg1: i32) -> (i32, i32) {
    %c0_i32 = arith.constant 0 : i32
    %c0_i32_0 = arith.constant 0 : i32
    return %arg0, %c0_i32 : i32, i32
  }
  func.func @transform_1(%arg0: i32, %arg1: i32) -> (i32, i32) {
    %c0_i32 = arith.constant 0 : i32
    %c0_i32_0 = arith.constant 0 : i32
    return %c0_i32, %arg1 : i32, i32
  }
  func.func @transform_2(%arg0: i32, %arg1: i32) -> (i32, i32) {
    %c0_i32 = arith.constant 0 : i32
    %c0_i32_0 = arith.constant 0 : i32
    return %c0_i32, %arg1 : i32, i32
  }
  func.func @transform_3(%arg0: i32, %arg1: i32) -> (i32, i32) {
    %c0_i32 = arith.constant 0 : i32
    return %arg0, %arg1 : i32, i32
  }
}

module attributes {stable_mosaic.version = 11 : i64} {
  func.func @_maxpool_kernel(%arg0: i32, %arg1: memref<9x16x384xf32, #tpu.memory_space<vmem>>, %arg2: memref<16x384xf32, #tpu.memory_space<vmem>>) attributes {dimension_semantics = [#tpu.dimension_semantics<parallel>], iteration_bounds = array<i64: 1>, scalar_prefetch = 0 : i64, scratch_operands = 0 : i64, tpu.core_type = #tpu.core_type<tc>, window_params = [{transform_indices = @transform_0, window_bounds = array<i64: 9, 16, 384>}, {transform_indices = @transform_1, window_bounds = array<i64: 16, 384>}]} {
    %c0 = arith.constant 0 : index
    %c0_0 = arith.constant 0 : index
    %c0_1 = arith.constant 0 : index
    %0 = vector.load %arg1[%c0, %c0_0, %c0_1] : memref<9x16x384xf32, #tpu.memory_space<vmem>>, vector<9x16x384xf32>
    %cst = arith.constant dense<0xFF800000> : vector<16x384xf32>
    %1 = vector.multi_reduction <maximumf>, %0, %cst [0] : vector<9x16x384xf32> to vector<16x384xf32>
    %c0_2 = arith.constant 0 : index
    %c0_3 = arith.constant 0 : index
    %2 = vector.load %arg2[%c0_2, %c0_3] : memref<16x384xf32, #tpu.memory_space<vmem>>, vector<16x384xf32>
    tpu.vector_store %arg2[%c0_2, %c0_3], %1 {strides = array<i32>} : memref<16x384xf32, #tpu.memory_space<vmem>>, vector<16x384xf32>,
    return
  }
  func.func @transform_0(%arg0: i32) -> (i32, i32, i32) {
    %c0_i32 = arith.constant 0 : i32
    %c0_i32_0 = arith.constant 0 : i32
    %c0_i32_1 = arith.constant 0 : i32
    return %c0_i32, %arg0, %c0_i32_0 : i32, i32, i32
  }
  func.func @transform_1(%arg0: i32) -> (i32, i32) {
    %c0_i32 = arith.constant 0 : i32
    %c0_i32_0 = arith.constant 0 : i32
    return %arg0, %c0_i32 : i32, i32
  }
}

module attributes {stable_mosaic.version = 11 : i64} {
  func.func @_matmul_bias_act_kernel(%arg0: i32, %arg1: i32, %arg2: memref<16x1664xbf16, #tpu.memory_space<vmem>>, %arg3: memref<1664x256xbf16, #tpu.memory_space<vmem>>, %arg4: memref<1x256xf32, #tpu.memory_space<vmem>>, %arg5: memref<16x256xf32, #tpu.memory_space<vmem>>) attributes {dimension_semantics = [#tpu.dimension_semantics<parallel>, #tpu.dimension_semantics<parallel>], iteration_bounds = array<i64: 1, 4>, scalar_prefetch = 0 : i64, scratch_operands = 0 : i64, tpu.core_type = #tpu.core_type<tc>, window_params = [{transform_indices = @transform_0, window_bounds = array<i64: 16, 1664>}, {transform_indices = @transform_1, window_bounds = array<i64: 1664, 256>}, {transform_indices = @transform_2, window_bounds = array<i64: 1, 256>}, {transform_indices = @transform_3, window_bounds = array<i64: 16, 256>}]} {
    %c0 = arith.constant 0 : index
    %c0_0 = arith.constant 0 : index
    %0 = vector.load %arg2[%c0, %c0_0] : memref<16x1664xbf16, #tpu.memory_space<vmem>>, vector<16x1664xbf16>
    %c0_1 = arith.constant 0 : index
    %c0_2 = arith.constant 0 : index
    %1 = vector.load %arg3[%c0_1, %c0_2] : memref<1664x256xbf16, #tpu.memory_space<vmem>>, vector<1664x256xbf16>
    %cst = arith.constant dense<0.000000e+00> : vector<16x256xf32>
    %2 = tpu.matmul %0, %1, %cst {dimension_numbers = #tpu.dot_dimension_numbers<[1], [0], [0], [1], [0, 0, 1, 1], [], []>} : vector<16x1664xbf16>, vector<1664x256xbf16>, vector<16x256xf32> -> vector<16x256xf32>
    %c0_3 = arith.constant 0 : index
    %c0_4 = arith.constant 0 : index
    %3 = vector.load %arg4[%c0_3, %c0_4] : memref<1x256xf32, #tpu.memory_space<vmem>>, vector<1x256xf32>
    %4 = vector.broadcast %3 : vector<1x256xf32> to vector<16x256xf32>
    %5 = arith.addf %2, %4 : vector<16x256xf32>
    %cst_5 = arith.constant 0.000000e+00 : f32
    %6 = vector.broadcast %cst_5 : f32 to vector<16x256xf32>
    %7 = arith.maximumf %5, %6 : vector<16x256xf32>
    %c0_6 = arith.constant 0 : index
    %c0_7 = arith.constant 0 : index
    %8 = vector.load %arg5[%c0_6, %c0_7] : memref<16x256xf32, #tpu.memory_space<vmem>>, vector<16x256xf32>
    tpu.vector_store %arg5[%c0_6, %c0_7], %7 {strides = array<i32>} : memref<16x256xf32, #tpu.memory_space<vmem>>, vector<16x256xf32>,
    return
  }
  func.func @transform_0(%arg0: i32, %arg1: i32) -> (i32, i32) {
    %c0_i32 = arith.constant 0 : i32
    %c0_i32_0 = arith.constant 0 : i32
    return %arg0, %c0_i32 : i32, i32
  }
  func.func @transform_1(%arg0: i32, %arg1: i32) -> (i32, i32) {
    %c0_i32 = arith.constant 0 : i32
    %c0_i32_0 = arith.constant 0 : i32
    return %c0_i32, %arg1 : i32, i32
  }
  func.func @transform_2(%arg0: i32, %arg1: i32) -> (i32, i32) {
    %c0_i32 = arith.constant 0 : i32
    %c0_i32_0 = arith.constant 0 : i32
    return %c0_i32, %arg1 : i32, i32
  }
  func.func @transform_3(%arg0: i32, %arg1: i32) -> (i32, i32) {
    %c0_i32 = arith.constant 0 : i32
    return %arg0, %arg1 : i32, i32
  }
}

module attributes {stable_mosaic.version = 11 : i64} {
  func.func @_matmul_bias_act_kernel(%arg0: i32, %arg1: i32, %arg2: memref<16x1024xbf16, #tpu.memory_space<vmem>>, %arg3: memref<1024x256xbf16, #tpu.memory_space<vmem>>, %arg4: memref<1x256xf32, #tpu.memory_space<vmem>>, %arg5: memref<16x256xf32, #tpu.memory_space<vmem>>) attributes {dimension_semantics = [#tpu.dimension_semantics<parallel>, #tpu.dimension_semantics<parallel>], iteration_bounds = array<i64: 1, 4>, scalar_prefetch = 0 : i64, scratch_operands = 0 : i64, tpu.core_type = #tpu.core_type<tc>, window_params = [{transform_indices = @transform_0, window_bounds = array<i64: 16, 1024>}, {transform_indices = @transform_1, window_bounds = array<i64: 1024, 256>}, {transform_indices = @transform_2, window_bounds = array<i64: 1, 256>}, {transform_indices = @transform_3, window_bounds = array<i64: 16, 256>}]} {
    %c0 = arith.constant 0 : index
    %c0_0 = arith.constant 0 : index
    %0 = vector.load %arg2[%c0, %c0_0] : memref<16x1024xbf16, #tpu.memory_space<vmem>>, vector<16x1024xbf16>
    %c0_1 = arith.constant 0 : index
    %c0_2 = arith.constant 0 : index
    %1 = vector.load %arg3[%c0_1, %c0_2] : memref<1024x256xbf16, #tpu.memory_space<vmem>>, vector<1024x256xbf16>
    %cst = arith.constant dense<0.000000e+00> : vector<16x256xf32>
    %2 = tpu.matmul %0, %1, %cst {dimension_numbers = #tpu.dot_dimension_numbers<[1], [0], [0], [1], [0, 0, 1, 1], [], []>} : vector<16x1024xbf16>, vector<1024x256xbf16>, vector<16x256xf32> -> vector<16x256xf32>
    %c0_3 = arith.constant 0 : index
    %c0_4 = arith.constant 0 : index
    %3 = vector.load %arg4[%c0_3, %c0_4] : memref<1x256xf32, #tpu.memory_space<vmem>>, vector<1x256xf32>
    %4 = vector.broadcast %3 : vector<1x256xf32> to vector<16x256xf32>
    %5 = arith.addf %2, %4 : vector<16x256xf32>
    %cst_5 = arith.constant 0.000000e+00 : f32
    %6 = vector.broadcast %cst_5 : f32 to vector<16x256xf32>
    %7 = arith.maximumf %5, %6 : vector<16x256xf32>
    %c0_6 = arith.constant 0 : index
    %c0_7 = arith.constant 0 : index
    %8 = vector.load %arg5[%c0_6, %c0_7] : memref<16x256xf32, #tpu.memory_space<vmem>>, vector<16x256xf32>
    tpu.vector_store %arg5[%c0_6, %c0_7], %7 {strides = array<i32>} : memref<16x256xf32, #tpu.memory_space<vmem>>, vector<16x256xf32>,
    return
  }
  func.func @transform_0(%arg0: i32, %arg1: i32) -> (i32, i32) {
    %c0_i32 = arith.constant 0 : i32
    %c0_i32_0 = arith.constant 0 : i32
    return %arg0, %c0_i32 : i32, i32
  }
  func.func @transform_1(%arg0: i32, %arg1: i32) -> (i32, i32) {
    %c0_i32 = arith.constant 0 : i32
    %c0_i32_0 = arith.constant 0 : i32
    return %c0_i32, %arg1 : i32, i32
  }
  func.func @transform_2(%arg0: i32, %arg1: i32) -> (i32, i32) {
    %c0_i32 = arith.constant 0 : i32
    %c0_i32_0 = arith.constant 0 : i32
    return %c0_i32, %arg1 : i32, i32
  }
  func.func @transform_3(%arg0: i32, %arg1: i32) -> (i32, i32) {
    %c0_i32 = arith.constant 0 : i32
    return %arg0, %arg1 : i32, i32
  }
}

module attributes {stable_mosaic.version = 11 : i64} {
  func.func @_matmul_bias_act_kernel(%arg0: i32, %arg1: i32, %arg2: memref<16x1024xbf16, #tpu.memory_space<vmem>>, %arg3: memref<1024x128xbf16, #tpu.memory_space<vmem>>, %arg4: memref<1x128xf32, #tpu.memory_space<vmem>>, %arg5: memref<16x128xf32, #tpu.memory_space<vmem>>) attributes {dimension_semantics = [#tpu.dimension_semantics<parallel>, #tpu.dimension_semantics<parallel>], iteration_bounds = array<i64: 1, 1>, scalar_prefetch = 0 : i64, scratch_operands = 0 : i64, tpu.core_type = #tpu.core_type<tc>, window_params = [{transform_indices = @transform_0, window_bounds = array<i64: 16, 1024>}, {transform_indices = @transform_1, window_bounds = array<i64: 1024, 128>}, {transform_indices = @transform_2, window_bounds = array<i64: 1, 128>}, {transform_indices = @transform_3, window_bounds = array<i64: 16, 128>}]} {
    %c0 = arith.constant 0 : index
    %c0_0 = arith.constant 0 : index
    %0 = vector.load %arg2[%c0, %c0_0] : memref<16x1024xbf16, #tpu.memory_space<vmem>>, vector<16x1024xbf16>
    %c0_1 = arith.constant 0 : index
    %c0_2 = arith.constant 0 : index
    %1 = vector.load %arg3[%c0_1, %c0_2] : memref<1024x128xbf16, #tpu.memory_space<vmem>>, vector<1024x128xbf16>
    %cst = arith.constant dense<0.000000e+00> : vector<16x128xf32>
    %2 = tpu.matmul %0, %1, %cst {dimension_numbers = #tpu.dot_dimension_numbers<[1], [0], [0], [1], [0, 0, 1, 1], [], []>} : vector<16x1024xbf16>, vector<1024x128xbf16>, vector<16x128xf32> -> vector<16x128xf32>
    %c0_3 = arith.constant 0 : index
    %c0_4 = arith.constant 0 : index
    %3 = vector.load %arg4[%c0_3, %c0_4] : memref<1x128xf32, #tpu.memory_space<vmem>>, vector<1x128xf32>
    %4 = vector.broadcast %3 : vector<1x128xf32> to vector<16x128xf32>
    %5 = arith.addf %2, %4 : vector<16x128xf32>
    %c0_5 = arith.constant 0 : index
    %c0_6 = arith.constant 0 : index
    %6 = vector.load %arg5[%c0_5, %c0_6] : memref<16x128xf32, #tpu.memory_space<vmem>>, vector<16x128xf32>
    tpu.vector_store %arg5[%c0_5, %c0_6], %5 {strides = array<i32>} : memref<16x128xf32, #tpu.memory_space<vmem>>, vector<16x128xf32>,
    return
  }
  func.func @transform_0(%arg0: i32, %arg1: i32) -> (i32, i32) {
    %c0_i32 = arith.constant 0 : i32
    %c0_i32_0 = arith.constant 0 : i32
    return %arg0, %c0_i32 : i32, i32
  }
  func.func @transform_1(%arg0: i32, %arg1: i32) -> (i32, i32) {
    %c0_i32 = arith.constant 0 : i32
    %c0_i32_0 = arith.constant 0 : i32
    return %c0_i32, %arg1 : i32, i32
  }
  func.func @transform_2(%arg0: i32, %arg1: i32) -> (i32, i32) {
    %c0_i32 = arith.constant 0 : i32
    %c0_i32_0 = arith.constant 0 : i32
    return %c0_i32, %arg1 : i32, i32
  }
  func.func @transform_3(%arg0: i32, %arg1: i32) -> (i32, i32) {
    %c0_i32 = arith.constant 0 : i32
    return %arg0, %arg1 : i32, i32
  }
}

</mosaic_0001>

<bundles_post_ra>
// kernel: alexnet_forward.11
= control target key start
LH: loop header
LB: loop body
LE: loop exit
PB: predicated region body
PF: predicated region fallthrough
CT: control target
= control target key end

     0   :  { %s1370_s12 = smov 0   ;;  %s1372_s13 = smov 0   ;;  %s1600_s0 = inlined_call_operand.vmem [shape: bf16[6144,128], index: 0, kind: input, shape index: {}]   ;;  %s1601_s1 = inlined_call_operand.vmem [shape: bf16[128,128], index: 1, kind: input, shape index: {}]   ;;  %s1602_s2 = inlined_call_operand.vmem [shape: f32[1,128], index: 2, kind: input, shape index: {}]   ;;  %s1603_s3 = inlined_call_operand.vmem [shape: f32[6144,128], index: 3, kind: output, shape index: {}]  }
   0x1   :  { %s1374_s14 = smov 0  }
   0x2 LB: > { %s25_s15 = sadd.s32 1, %s1344_s13  ;;  %p1078_p0 = scmp.ge.s32.totalorder %s1348_s14, 1  ;;  %s1348_s14 = sphi %s1374_s14, %s13_s14   ;;  %s1344_s13 = sphi %s1372_s13, %s1605_s13   ;;  %s1340_s12 = sphi %s1370_s12, %s1604_s12  }
   0x3   : > { %p27_p1 = scmp.ge.s32.totalorder %s25_s15, 12  ;;  %p169_p2 = scmp.lt.s32.totalorder %s1348_s14, 13 }
   0x5   : > { %s1607_s15 = smov (%p27_p1, %s25_s15), 0  ;;  %p170_p3 = pnand %p1078_p0, %p169_p2 }
   0x6   : > { %v1286_v0 = vld [vmem:[%s1601_s1] sm:$0xff] (!%p170_p3)   ;;  %s1079_s18 = sshll.u32 (!%p170_p3), %s1340_s12, 6  ;;  %v1287_v1 = vld [vmem:[%s1601_s1 + $0x8] sm:$0xff] (!%p170_p3)   ;;  %v1288_v2 = vld [vmem:[%s1601_s1 + $0x10] sm:$0xff] (!%p170_p3)  }
   0x7   : > { %173 = sbr.rel (%p170_p3) target bundleno = 315 (0x13b), region = 32  ;;  %p204_p4 = scmp.lt.s32.totalorder (!%p170_p3), %s1079_s18, 767  ;;  %1166 = vmatprep.subr.bf16.mxu0 (!%p170_p3), %v1286_v0  ;;  %1246 = vmatprep.subr.bf16.mxu1 (!%p170_p3), %v1286_v0  ;;  %v1289_v3 = vld [vmem:[%s1601_s1 + $0x18] sm:$0xff] (!%p170_p3)   ;;  %v1290_v6 = vld [vmem:[%s1601_s1 + $0x20] sm:$0xff] (!%p170_p3)   ;;  %v1291_v7 = vld [vmem:[%s1601_s1 + $0x28] sm:$0xff] (!%p170_p3)  }
   0x8   : > { %1167 = vmatpush3.bf16.msra.mxu0 (!%p170_p3), %v1286_v0  ;;  %1254 = vmatpush3.bf16.msra.mxu1 (!%p170_p3), %v1286_v0  ;;  %v1292_v8 = vld [vmem:[%s1601_s1 + $0x30] sm:$0xff] (!%p170_p3)   ;;  %v1293_v9 = vld [vmem:[%s1601_s1 + $0x38] sm:$0xff] (!%p170_p3)   ;;  %v1455_v40 = vld [vmem:[%s1602_s2] ss:$0 sm:$0xff] (!%p170_p3) }
   0x9   : > { %1168 = vmatprep.subr.bf16.mxu0 (!%p170_p3), %v1287_v1  ;;  %1247 = vmatprep.subr.bf16.mxu1 (!%p170_p3), %v1287_v1 }
   0xc   : > { %1169 = vmatpush3.bf16.msra.mxu0 (!%p170_p3), %v1287_v1  ;;  %1255 = vmatpush3.bf16.msra.mxu1 (!%p170_p3), %v1287_v1 }
   0xd   : > { %1170 = vmatprep.subr.bf16.mxu0 (!%p170_p3), %v1288_v2  ;;  %1248 = vmatprep.subr.bf16.mxu1 (!%p170_p3), %v1288_v2 }
   0xe   : > { %s1609_s18 = smov (!%p204_p4, %s1079_s18), 767 }
   0xf   : > { %s1080_s23 = sshll.u32 %s1609_s18, 2  ;;  %s1082_s12 = sshll.u32 %s1609_s18, 3 }
  0x10   : > { %s1403_s26 = scalar_lea.vmem %s1600_s0, %s1080_s23  ;;  %1171 = vmatpush3.bf16.msra.mxu0 %v1288_v2  ;;  %1256 = vmatpush3.bf16.msra.mxu1 %v1288_v2  ;;  %s1463_s19 = scalar_lea.vmem %s1603_s3, %s1082_s12 }
  0x11   : > { %v1294_v4 = vld [vmem:[%s1403_s26] sm:$0xff]   ;;  %1172 = vmatprep.subr.bf16.mxu0 %v1289_v3  ;;  %1249 = vmatprep.subr.bf16.mxu1 %v1289_v3  ;;  %v1296_v10 = vld [vmem:[%s1403_s26 + $0x8] sm:$0xff]   ;;  %v1298_v12 = vld [vmem:[%s1403_s26 + $0x10] sm:$0xff]  }
  0x12   : > { %v1295_v5 = vld [vmem:[%s1403_s26 + $0x80] sm:$0xff]   ;;  %1182 = vmatprep.mubr.bf16.mxu0 %v1294_v4  ;;  %v1297_v11 = vld [vmem:[%s1403_s26 + $0x88] sm:$0xff]   ;;  %v1299_v13 = vld [vmem:[%s1403_s26 + $0x90] sm:$0xff]  }
  0x13   : > { %1214 = vmatprep.mubr.bf16.mxu1 %v1295_v5  ;;  %v1300_v14 = vld [vmem:[%s1403_s26 + $0x18] sm:$0xff]   ;;  %v1302_v16 = vld [vmem:[%s1403_s26 + $0x20] sm:$0xff]   ;;  %v1304_v18 = vld [vmem:[%s1403_s26 + $0x28] sm:$0xff]  }
  0x14   : > { %1173 = vmatpush3.bf16.msra.mxu0 %v1289_v3  ;;  %1257 = vmatpush3.bf16.msra.mxu1 %v1289_v3  ;;  %v1301_v15 = vld [vmem:[%s1403_s26 + $0x98] sm:$0xff]   ;;  %v1303_v17 = vld [vmem:[%s1403_s26 + $0xa0] sm:$0xff]   ;;  %v1305_v19 = vld [vmem:[%s1403_s26 + $0xa8] sm:$0xff]  }
  0x15   : > { %1174 = vmatprep.subr.bf16.mxu0 %v1290_v6  ;;  %1250 = vmatprep.subr.bf16.mxu1 %v1290_v6  ;;  %v1306_v20 = vld [vmem:[%s1403_s26 + $0x30] sm:$0xff]   ;;  %v1308_v22 = vld [vmem:[%s1403_s26 + $0x38] sm:$0xff]   ;;  %v1310_v24 = vld [vmem:[%s1403_s26 + $0x40] sm:$0xff]  }
  0x16   : > { %v1307_v21 = vld [vmem:[%s1403_s26 + $0xb0] sm:$0xff]   ;;  %v1309_v23 = vld [vmem:[%s1403_s26 + $0xb8] sm:$0xff]   ;;  %v1311_v25 = vld [vmem:[%s1403_s26 + $0xc0] sm:$0xff]  }
  0x17   : > { %v1312_v26 = vld [vmem:[%s1403_s26 + $0x48] sm:$0xff]   ;;  %v1314_v28 = vld [vmem:[%s1403_s26 + $0x50] sm:$0xff]   ;;  %v1316_v30 = vld [vmem:[%s1403_s26 + $0x58] sm:$0xff]  }
  0x18   : > { %1175 = vmatpush3.bf16.msra.mxu0 %v1290_v6  ;;  %1258 = vmatpush3.bf16.msra.mxu1 %v1290_v6  ;;  %v1313_v27 = vld [vmem:[%s1403_s26 + $0xc8] sm:$0xff]   ;;  %v1315_v29 = vld [vmem:[%s1403_s26 + $0xd0] sm:$0xff]   ;;  %v1317_v31 = vld [vmem:[%s1403_s26 + $0xd8] sm:$0xff]  }
  0x19   : > { %1176 = vmatprep.subr.bf16.mxu0 %v1291_v7  ;;  %1251 = vmatprep.subr.bf16.mxu1 %v1291_v7  ;;  %v1318_v32 = vld [vmem:[%s1403_s26 + $0x60] sm:$0xff]   ;;  %v1320_v34 = vld [vmem:[%s1403_s26 + $0x68] sm:$0xff]   ;;  %v1322_v36 = vld [vmem:[%s1403_s26 + $0x70] sm:$0xff]  }
  0x1a   : > { %v1319_v33 = vld [vmem:[%s1403_s26 + $0xe0] sm:$0xff]   ;;  %v1321_v35 = vld [vmem:[%s1403_s26 + $0xe8] sm:$0xff]   ;;  %v1323_v37 = vld [vmem:[%s1403_s26 + $0xf0] sm:$0xff]  }
  0x1b   : > { %v1324_v38 = vld [vmem:[%s1403_s26 + $0x78] sm:$0xff]  }
  0x1c   : > { %1177 = vmatpush3.bf16.msra.mxu0 %v1291_v7  ;;  %1259 = vmatpush3.bf16.msra.mxu1 %v1291_v7  ;;  %v1325_v39 = vld [vmem:[%s1403_s26 + $0xf8] sm:$0xff]  }
  0x1d   : > { %1178 = vmatprep.subr.bf16.mxu0 %v1292_v8  ;;  %1252 = vmatprep.subr.bf16.mxu1 %v1292_v8 }
  0x20   : > { %1179 = vmatpush3.bf16.msra.mxu0 %v1292_v8  ;;  %1260 = vmatpush3.bf16.msra.mxu1 %v1292_v8 }
  0x21   : > { %1180 = vmatprep.subr.bf16.mxu0 %v1293_v9  ;;  %1253 = vmatprep.subr.bf16.mxu1 %v1293_v9 }
  0x24   : > { %1181 = vmatpush3.bf16.msra.mxu0 %v1293_v9  ;;  %1261 = vmatpush3.bf16.msra.mxu1 %v1293_v9 }
  0x27   : > { %1183 = vmatmul.mubr.bf16.vlgmr.msra.gmra.mrb[0].mxu0 %v1296_v10  ;;  %1215 = vmatmul.mubr.bf16.vlgmr.msra.gmra.mrb[0].mxu1 %v1297_v11 }
  0x28   : > { %1186 = vmatprep.mubr.bf16.mxu0 %v1298_v12  ;;  %1218 = vmatprep.mubr.bf16.mxu1 %v1299_v13 }
  0x2f   : > { %1187 = vmatmul.mubr.bf16.gmra.mrb[4].mxu0 %v1300_v14  ;;  %1219 = vmatmul.mubr.bf16.gmra.mrb[4].mxu1 %v1301_v15 }
  0x30   : > { %1190 = vmatprep.mubr.bf16.mxu0 %v1302_v16  ;;  %1222 = vmatprep.mubr.bf16.mxu1 %v1303_v17 }
  0x37   : > { %1191 = vmatmul.mubr.bf16.gmra.mrb[8].mxu0 %v1304_v18  ;;  %1223 = vmatmul.mubr.bf16.gmra.mrb[8].mxu1 %v1305_v19 }
  0x38   : > { %1194 = vmatprep.mubr.bf16.mxu0 %v1306_v20  ;;  %1226 = vmatprep.mubr.bf16.mxu1 %v1307_v21 }
  0x3f   : > { %1195 = vmatmul.mubr.bf16.gmra.mrb[12].mxu0 %v1308_v22  ;;  %1227 = vmatmul.mubr.bf16.gmra.mrb[12].mxu1 %v1309_v23 }
  0x40   : > { %1198 = vmatprep.mubr.bf16.mxu0 %v1310_v24  ;;  %1230 = vmatprep.mubr.bf16.mxu1 %v1311_v25 }
  0x47   : > { %1199 = vmatmul.mubr.bf16.gmra.mrb[16].mxu0 %v1312_v26  ;;  %1231 = vmatmul.mubr.bf16.gmra.mrb[16].mxu1 %v1313_v27 }
  0x48   : > { %1202 = vmatprep.mubr.bf16.mxu0 %v1314_v28  ;;  %1234 = vmatprep.mubr.bf16.mxu1 %v1315_v29 }
  0x4f   : > { %1203 = vmatmul.mubr.bf16.gmra.mrb[20].mxu0 %v1316_v30  ;;  %1235 = vmatmul.mubr.bf16.gmra.mrb[20].mxu1 %v1317_v31 }
  0x50   : > { %1206 = vmatprep.mubr.bf16.mxu0 %v1318_v32  ;;  %1238 = vmatprep.mubr.bf16.mxu1 %v1319_v33 }
  0x57   : > { %1207 = vmatmul.mubr.bf16.gmra.mrb[24].mxu0 %v1320_v34  ;;  %1239 = vmatmul.mubr.bf16.gmra.mrb[24].mxu1 %v1321_v35 }
  0x58   : > { %1210 = vmatprep.mubr.bf16.mxu0 %v1322_v36  ;;  %1242 = vmatprep.mubr.bf16.mxu1 %v1323_v37 }
  0x5f   : > { %1211 = vmatmul.mubr.bf16.gmra.mrb[28].mxu0 %v1324_v38  ;;  %1243 = vmatmul.mubr.bf16.gmra.mrb[28].mxu1 %v1325_v39 }
  0xfa   : > { %v1184_v41 = vpop.f32.mrb[0].mxu0  ;;  %v1216_v42 = vpop.f32.mrb[0].mxu1 }
  0xfb   : > { %v596_v43 = vadd.f32 %v1184_v41, %v1455_v40  ;;  %v724_v44 = vadd.f32 %v1216_v42, %v1455_v40  ;;  %v587_v45 = vpop.f32.mrb[1].mxu0  ;;  %v715_v46 = vpop.f32.mrb[1].mxu1 }
  0xfc   : > { %v588_v47 = vadd.f32 %v1455_v40, %v587_v45  ;;  %v716_v48 = vadd.f32 %v1455_v40, %v715_v46  ;;  %v1185_v49 = vpop.f32.mrb[2].mxu0  ;;  %v1217_v50 = vpop.f32.mrb[2].mxu1 }
  0xfd   : > { %v844_v51 = vmax.f32 %v596_v43, 0.0  ;;  %v876_v52 = vmax.f32 %v724_v44, 0.0  ;;  %v599_v53 = vadd.f32 %v1185_v49, %v1455_v40  ;;  %v727_v54 = vadd.f32 %v1217_v50, %v1455_v40  ;;  %v590_v55 = vpop.f32.mrb[3].mxu0  ;;  %v718_v56 = vpop.f32.mrb[3].mxu1 }
  0xfe   : > { %v842_v57 = vmax.f32 %v588_v47, 0.0  ;;  %v874_v58 = vmax.f32 %v716_v48, 0.0  ;;  %v591_v59 = vadd.f32 %v1455_v40, %v590_v55  ;;  %v719_v60 = vadd.f32 %v1455_v40, %v718_v56 }
  0xff   : > { %908 = vst [vmem:[%s1463_s19 + $0x10] sm:$0xff] %v844_v51  ;;  %940 = vst [vmem:[%s1463_s19 + $0x110] sm:$0xff] %v876_v52  ;;  %v845_v61 = vmax.f32 %v599_v53, 0.0  ;;  %v877_v62 = vmax.f32 %v727_v54, 0.0 }
 0x100   : > { %906 = vst [vmem:[%s1463_s19] sm:$0xff] %v842_v57  ;;  %938 = vst [vmem:[%s1463_s19 + $0x100] sm:$0xff] %v874_v58  ;;  %v843_v63 = vmax.f32 %v591_v59, 0.0  ;;  %v875_v0 = vmax.f32 %v719_v60, 0.0 }
 0x101   : > { %909 = vst [vmem:[%s1463_s19 + $0x18] sm:$0xff] %v845_v61  ;;  %941 = vst [vmem:[%s1463_s19 + $0x118] sm:$0xff] %v877_v62 }
 0x102   : > { %907 = vst [vmem:[%s1463_s19 + $0x8] sm:$0xff] %v843_v63  ;;  %939 = vst [vmem:[%s1463_s19 + $0x108] sm:$0xff] %v875_v0  ;;  %v1188_v1 = vpop.f32.mrb[4].mxu0  ;;  %v1220_v2 = vpop.f32.mrb[4].mxu1 }
 0x103   : > { %v612_v3 = vadd.f32 %v1188_v1, %v1455_v40  ;;  %v740_v4 = vadd.f32 %v1220_v2, %v1455_v40  ;;  %v603_v5 = vpop.f32.mrb[5].mxu0  ;;  %v731_v6 = vpop.f32.mrb[5].mxu1 }
 0x104   : > { %v604_v7 = vadd.f32 %v1455_v40, %v603_v5  ;;  %v732_v8 = vadd.f32 %v1455_v40, %v731_v6  ;;  %v1189_v9 = vpop.f32.mrb[6].mxu0  ;;  %v1221_v10 = vpop.f32.mrb[6].mxu1 }
 0x105   : > { %v848_v11 = vmax.f32 %v612_v3, 0.0  ;;  %v880_v12 = vmax.f32 %v740_v4, 0.0  ;;  %v615_v13 = vadd.f32 %v1189_v9, %v1455_v40  ;;  %v743_v14 = vadd.f32 %v1221_v10, %v1455_v40  ;;  %v606_v15 = vpop.f32.mrb[7].mxu0  ;;  %v734_v16 = vpop.f32.mrb[7].mxu1 }
 0x106   : > { %v846_v17 = vmax.f32 %v604_v7, 0.0  ;;  %v878_v18 = vmax.f32 %v732_v8, 0.0  ;;  %v607_v19 = vadd.f32 %v1455_v40, %v606_v15  ;;  %v735_v20 = vadd.f32 %v1455_v40, %v734_v16 }
 0x107   : > { %912 = vst [vmem:[%s1463_s19 + $0x30] sm:$0xff] %v848_v11  ;;  %944 = vst [vmem:[%s1463_s19 + $0x130] sm:$0xff] %v880_v12  ;;  %v849_v21 = vmax.f32 %v615_v13, 0.0  ;;  %v881_v22 = vmax.f32 %v743_v14, 0.0 }
 0x108   : > { %910 = vst [vmem:[%s1463_s19 + $0x20] sm:$0xff] %v846_v17  ;;  %942 = vst [vmem:[%s1463_s19 + $0x120] sm:$0xff] %v878_v18  ;;  %v847_v23 = vmax.f32 %v607_v19, 0.0  ;;  %v879_v24 = vmax.f32 %v735_v20, 0.0 }
 0x109   : > { %913 = vst [vmem:[%s1463_s19 + $0x38] sm:$0xff] %v849_v21  ;;  %945 = vst [vmem:[%s1463_s19 + $0x138] sm:$0xff] %v881_v22 }
 0x10a   : > { %911 = vst [vmem:[%s1463_s19 + $0x28] sm:$0xff] %v847_v23  ;;  %943 = vst [vmem:[%s1463_s19 + $0x128] sm:$0xff] %v879_v24  ;;  %v1192_v25 = vpop.f32.mrb[8].mxu0  ;;  %v1224_v26 = vpop.f32.mrb[8].mxu1 }
 0x10b   : > { %v628_v27 = vadd.f32 %v1192_v25, %v1455_v40  ;;  %v756_v28 = vadd.f32 %v1224_v26, %v1455_v40  ;;  %v619_v29 = vpop.f32.mrb[9].mxu0  ;;  %v747_v30 = vpop.f32.mrb[9].mxu1 }
 0x10c   : > { %v620_v31 = vadd.f32 %v1455_v40, %v619_v29  ;;  %v748_v32 = vadd.f32 %v1455_v40, %v747_v30  ;;  %v1193_v33 = vpop.f32.mrb[10].mxu0  ;;  %v1225_v34 = vpop.f32.mrb[10].mxu1 }
 0x10d   : > { %v852_v35 = vmax.f32 %v628_v27, 0.0  ;;  %v884_v36 = vmax.f32 %v756_v28, 0.0  ;;  %v631_v37 = vadd.f32 %v1193_v33, %v1455_v40  ;;  %v759_v38 = vadd.f32 %v1225_v34, %v1455_v40  ;;  %v622_v39 = vpop.f32.mrb[11].mxu0  ;;  %v750_v41 = vpop.f32.mrb[11].mxu1 }
 0x10e   : > { %v850_v42 = vmax.f32 %v620_v31, 0.0  ;;  %v882_v43 = vmax.f32 %v748_v32, 0.0  ;;  %v623_v44 = vadd.f32 %v1455_v40, %v622_v39  ;;  %v751_v45 = vadd.f32 %v1455_v40, %v750_v41 }
 0x10f   : > { %916 = vst [vmem:[%s1463_s19 + $0x50] sm:$0xff] %v852_v35  ;;  %948 = vst [vmem:[%s1463_s19 + $0x150] sm:$0xff] %v884_v36  ;;  %v853_v46 = vmax.f32 %v631_v37, 0.0  ;;  %v885_v47 = vmax.f32 %v759_v38, 0.0 }
 0x110   : > { %914 = vst [vmem:[%s1463_s19 + $0x40] sm:$0xff] %v850_v42  ;;  %946 = vst [vmem:[%s1463_s19 + $0x140] sm:$0xff] %v882_v43  ;;  %v851_v48 = vmax.f32 %v623_v44, 0.0  ;;  %v883_v49 = vmax.f32 %v751_v45, 0.0 }
 0x111   : > { %917 = vst [vmem:[%s1463_s19 + $0x58] sm:$0xff] %v853_v46  ;;  %949 = vst [vmem:[%s1463_s19 + $0x158] sm:$0xff] %v885_v47 }
 0x112   : > { %915 = vst [vmem:[%s1463_s19 + $0x48] sm:$0xff] %v851_v48  ;;  %947 = vst [vmem:[%s1463_s19 + $0x148] sm:$0xff] %v883_v49  ;;  %v1196_v50 = vpop.f32.mrb[12].mxu0  ;;  %v1228_v51 = vpop.f32.mrb[12].mxu1 }
 0x113   : > { %v644_v52 = vadd.f32 %v1196_v50, %v1455_v40  ;;  %v772_v53 = vadd.f32 %v1228_v51, %v1455_v40  ;;  %v635_v54 = vpop.f32.mrb[13].mxu0  ;;  %v763_v55 = vpop.f32.mrb[13].mxu1 }
 0x114   : > { %v636_v56 = vadd.f32 %v1455_v40, %v635_v54  ;;  %v764_v57 = vadd.f32 %v1455_v40, %v763_v55  ;;  %v1197_v58 = vpop.f32.mrb[14].mxu0  ;;  %v1229_v59 = vpop.f32.mrb[14].mxu1 }
 0x115   : > { %v856_v60 = vmax.f32 %v644_v52, 0.0  ;;  %v888_v61 = vmax.f32 %v772_v53, 0.0  ;;  %v647_v62 = vadd.f32 %v1197_v58, %v1455_v40  ;;  %v775_v63 = vadd.f32 %v1229_v59, %v1455_v40  ;;  %v638_v0 = vpop.f32.mrb[15].mxu0  ;;  %v766_v1 = vpop.f32.mrb[15].mxu1 }
 0x116   : > { %v854_v2 = vmax.f32 %v636_v56, 0.0  ;;  %v886_v3 = vmax.f32 %v764_v57, 0.0  ;;  %v639_v4 = vadd.f32 %v1455_v40, %v638_v0  ;;  %v767_v5 = vadd.f32 %v1455_v40, %v766_v1 }
 0x117   : > { %920 = vst [vmem:[%s1463_s19 + $0x70] sm:$0xff] %v856_v60  ;;  %952 = vst [vmem:[%s1463_s19 + $0x170] sm:$0xff] %v888_v61  ;;  %v857_v6 = vmax.f32 %v647_v62, 0.0  ;;  %v889_v7 = vmax.f32 %v775_v63, 0.0 }
 0x118   : > { %918 = vst [vmem:[%s1463_s19 + $0x60] sm:$0xff] %v854_v2  ;;  %950 = vst [vmem:[%s1463_s19 + $0x160] sm:$0xff] %v886_v3  ;;  %v855_v8 = vmax.f32 %v639_v4, 0.0  ;;  %v887_v9 = vmax.f32 %v767_v5, 0.0 }
 0x119   : > { %921 = vst [vmem:[%s1463_s19 + $0x78] sm:$0xff] %v857_v6  ;;  %953 = vst [vmem:[%s1463_s19 + $0x178] sm:$0xff] %v889_v7 }
 0x11a   : > { %919 = vst [vmem:[%s1463_s19 + $0x68] sm:$0xff] %v855_v8  ;;  %951 = vst [vmem:[%s1463_s19 + $0x168] sm:$0xff] %v887_v9  ;;  %v1200_v10 = vpop.f32.mrb[16].mxu0  ;;  %v1232_v11 = vpop.f32.mrb[16].mxu1 }
 0x11b   : > { %v660_v12 = vadd.f32 %v1200_v10, %v1455_v40  ;;  %v788_v13 = vadd.f32 %v1232_v11, %v1455_v40  ;;  %v651_v14 = vpop.f32.mrb[17].mxu0  ;;  %v779_v15 = vpop.f32.mrb[17].mxu1 }
 0x11c   : > { %v652_v16 = vadd.f32 %v1455_v40, %v651_v14  ;;  %v780_v17 = vadd.f32 %v1455_v40, %v779_v15  ;;  %v1201_v18 = vpop.f32.mrb[18].mxu0  ;;  %v1233_v19 = vpop.f32.mrb[18].mxu1 }
 0x11d   : > { %v860_v20 = vmax.f32 %v660_v12, 0.0  ;;  %v892_v21 = vmax.f32 %v788_v13, 0.0  ;;  %v663_v22 = vadd.f32 %v1201_v18, %v1455_v40  ;;  %v791_v23 = vadd.f32 %v1233_v19, %v1455_v40  ;;  %v654_v24 = vpop.f32.mrb[19].mxu0  ;;  %v782_v25 = vpop.f32.mrb[19].mxu1 }
 0x11e   : > { %v858_v26 = vmax.f32 %v652_v16, 0.0  ;;  %v890_v27 = vmax.f32 %v780_v17, 0.0  ;;  %v655_v28 = vadd.f32 %v1455_v40, %v654_v24  ;;  %v783_v29 = vadd.f32 %v1455_v40, %v782_v25 }
 0x11f   : > { %924 = vst [vmem:[%s1463_s19 + $0x90] sm:$0xff] %v860_v20  ;;  %956 = vst [vmem:[%s1463_s19 + $0x190] sm:$0xff] %v892_v21  ;;  %v861_v30 = vmax.f32 %v663_v22, 0.0  ;;  %v893_v31 = vmax.f32 %v791_v23, 0.0 }
 0x120   : > { %922 = vst [vmem:[%s1463_s19 + $0x80] sm:$0xff] %v858_v26  ;;  %954 = vst [vmem:[%s1463_s19 + $0x180] sm:$0xff] %v890_v27  ;;  %v859_v32 = vmax.f32 %v655_v28, 0.0  ;;  %v891_v33 = vmax.f32 %v783_v29, 0.0 }
 0x121   : > { %925 = vst [vmem:[%s1463_s19 + $0x98] sm:$0xff] %v861_v30  ;;  %957 = vst [vmem:[%s1463_s19 + $0x198] sm:$0xff] %v893_v31 }
 0x122   : > { %923 = vst [vmem:[%s1463_s19 + $0x88] sm:$0xff] %v859_v32  ;;  %955 = vst [vmem:[%s1463_s19 + $0x188] sm:$0xff] %v891_v33  ;;  %v1204_v34 = vpop.f32.mrb[20].mxu0  ;;  %v1236_v35 = vpop.f32.mrb[20].mxu1 }
 0x123   : > { %v676_v36 = vadd.f32 %v1204_v34, %v1455_v40  ;;  %v804_v37 = vadd.f32 %v1236_v35, %v1455_v40  ;;  %v667_v38 = vpop.f32.mrb[21].mxu0  ;;  %v795_v39 = vpop.f32.mrb[21].mxu1 }
 0x124   : > { %v668_v41 = vadd.f32 %v1455_v40, %v667_v38  ;;  %v796_v42 = vadd.f32 %v1455_v40, %v795_v39  ;;  %v1205_v43 = vpop.f32.mrb[22].mxu0  ;;  %v1237_v44 = vpop.f32.mrb[22].mxu1 }
 0x125   : > { %v864_v45 = vmax.f32 %v676_v36, 0.0  ;;  %v896_v46 = vmax.f32 %v804_v37, 0.0  ;;  %v679_v47 = vadd.f32 %v1205_v43, %v1455_v40  ;;  %v807_v48 = vadd.f32 %v1237_v44, %v1455_v40  ;;  %v670_v49 = vpop.f32.mrb[23].mxu0  ;;  %v798_v50 = vpop.f32.mrb[23].mxu1 }
 0x126   : > { %v862_v51 = vmax.f32 %v668_v41, 0.0  ;;  %v894_v52 = vmax.f32 %v796_v42, 0.0  ;;  %v671_v53 = vadd.f32 %v1455_v40, %v670_v49  ;;  %v799_v54 = vadd.f32 %v1455_v40, %v798_v50 }
 0x127   : > { %928 = vst [vmem:[%s1463_s19 + $0xb0] sm:$0xff] %v864_v45  ;;  %960 = vst [vmem:[%s1463_s19 + $0x1b0] sm:$0xff] %v896_v46  ;;  %v865_v55 = vmax.f32 %v679_v47, 0.0  ;;  %v897_v56 = vmax.f32 %v807_v48, 0.0 }
 0x128   : > { %926 = vst [vmem:[%s1463_s19 + $0xa0] sm:$0xff] %v862_v51  ;;  %958 = vst [vmem:[%s1463_s19 + $0x1a0] sm:$0xff] %v894_v52  ;;  %v863_v57 = vmax.f32 %v671_v53, 0.0  ;;  %v895_v58 = vmax.f32 %v799_v54, 0.0 }
 0x129   : > { %929 = vst [vmem:[%s1463_s19 + $0xb8] sm:$0xff] %v865_v55  ;;  %961 = vst [vmem:[%s1463_s19 + $0x1b8] sm:$0xff] %v897_v56 }
 0x12a   : > { %927 = vst [vmem:[%s1463_s19 + $0xa8] sm:$0xff] %v863_v57  ;;  %959 = vst [vmem:[%s1463_s19 + $0x1a8] sm:$0xff] %v895_v58  ;;  %v1208_v59 = vpop.f32.mrb[24].mxu0  ;;  %v1240_v60 = vpop.f32.mrb[24].mxu1 }
 0x12b   : > { %v692_v61 = vadd.f32 %v1208_v59, %v1455_v40  ;;  %v820_v62 = vadd.f32 %v1240_v60, %v1455_v40  ;;  %v683_v63 = vpop.f32.mrb[25].mxu0  ;;  %v811_v0 = vpop.f32.mrb[25].mxu1 }
 0x12c   : > { %v684_v1 = vadd.f32 %v1455_v40, %v683_v63  ;;  %v812_v2 = vadd.f32 %v1455_v40, %v811_v0  ;;  %v1209_v3 = vpop.f32.mrb[26].mxu0  ;;  %v1241_v4 = vpop.f32.mrb[26].mxu1 }
 0x12d   : > { %v868_v5 = vmax.f32 %v692_v61, 0.0  ;;  %v900_v6 = vmax.f32 %v820_v62, 0.0  ;;  %v695_v7 = vadd.f32 %v1209_v3, %v1455_v40  ;;  %v823_v8 = vadd.f32 %v1241_v4, %v1455_v40  ;;  %v686_v9 = vpop.f32.mrb[27].mxu0  ;;  %v814_v10 = vpop.f32.mrb[27].mxu1 }
 0x12e   : > { %v866_v11 = vmax.f32 %v684_v1, 0.0  ;;  %v898_v12 = vmax.f32 %v812_v2, 0.0  ;;  %v687_v13 = vadd.f32 %v1455_v40, %v686_v9  ;;  %v815_v14 = vadd.f32 %v1455_v40, %v814_v10 }
 0x12f   : > { %932 = vst [vmem:[%s1463_s19 + $0xd0] sm:$0xff] %v868_v5  ;;  %964 = vst [vmem:[%s1463_s19 + $0x1d0] sm:$0xff] %v900_v6  ;;  %v869_v15 = vmax.f32 %v695_v7, 0.0  ;;  %v901_v16 = vmax.f32 %v823_v8, 0.0 }
 0x130   : > { %930 = vst [vmem:[%s1463_s19 + $0xc0] sm:$0xff] %v866_v11  ;;  %962 = vst [vmem:[%s1463_s19 + $0x1c0] sm:$0xff] %v898_v12  ;;  %v867_v17 = vmax.f32 %v687_v13, 0.0  ;;  %v899_v18 = vmax.f32 %v815_v14, 0.0 }
 0x131   : > { %933 = vst [vmem:[%s1463_s19 + $0xd8] sm:$0xff] %v869_v15  ;;  %965 = vst [vmem:[%s1463_s19 + $0x1d8] sm:$0xff] %v901_v16 }
 0x132   : > { %931 = vst [vmem:[%s1463_s19 + $0xc8] sm:$0xff] %v867_v17  ;;  %963 = vst [vmem:[%s1463_s19 + $0x1c8] sm:$0xff] %v899_v18  ;;  %v1212_v19 = vpop.f32.mrb[28].mxu0  ;;  %v1244_v20 = vpop.f32.mrb[28].mxu1 }
 0x133   : > { %v708_v21 = vadd.f32 %v1212_v19, %v1455_v40  ;;  %v836_v22 = vadd.f32 %v1244_v20, %v1455_v40  ;;  %v699_v23 = vpop.f32.mrb[29].mxu0  ;;  %v827_v24 = vpop.f32.mrb[29].mxu1 }
 0x134   : > { %v700_v25 = vadd.f32 %v1455_v40, %v699_v23  ;;  %v828_v26 = vadd.f32 %v1455_v40, %v827_v24  ;;  %v1213_v27 = vpop.f32.mrb[30].mxu0  ;;  %v1245_v28 = vpop.f32.mrb[30].mxu1 }
 0x135   : > { %v872_v29 = vmax.f32 %v708_v21, 0.0  ;;  %v904_v30 = vmax.f32 %v836_v22, 0.0  ;;  %v711_v31 = vadd.f32 %v1213_v27, %v1455_v40  ;;  %v839_v32 = vadd.f32 %v1245_v28, %v1455_v40  ;;  %v702_v33 = vpop.f32.mrb[31].mxu0  ;;  %v830_v34 = vpop.f32.mrb[31].mxu1 }
 0x136   : > { %v870_v35 = vmax.f32 %v700_v25, 0.0  ;;  %v902_v36 = vmax.f32 %v828_v26, 0.0  ;;  %v703_v37 = vadd.f32 %v1455_v40, %v702_v33  ;;  %v831_v38 = vadd.f32 %v1455_v40, %v830_v34 }
 0x137   : > { %936 = vst [vmem:[%s1463_s19 + $0xf0] sm:$0xff] %v872_v29  ;;  %968 = vst [vmem:[%s1463_s19 + $0x1f0] sm:$0xff] %v904_v30  ;;  %v873_v39 = vmax.f32 %v711_v31, 0.0  ;;  %v905_v41 = vmax.f32 %v839_v32, 0.0 }
 0x138   : > { %934 = vst [vmem:[%s1463_s19 + $0xe0] sm:$0xff] %v870_v35  ;;  %966 = vst [vmem:[%s1463_s19 + $0x1e0] sm:$0xff] %v902_v36  ;;  %v871_v42 = vmax.f32 %v703_v37, 0.0  ;;  %v903_v43 = vmax.f32 %v831_v38, 0.0 }
 0x139   : > { %937 = vst [vmem:[%s1463_s19 + $0xf8] sm:$0xff] %v873_v39  ;;  %969 = vst [vmem:[%s1463_s19 + $0x1f8] sm:$0xff] %v905_v41 }
 0x13a   : > { %935 = vst [vmem:[%s1463_s19 + $0xe8] sm:$0xff] %v871_v42  ;;  %967 = vst [vmem:[%s1463_s19 + $0x1e8] sm:$0xff] %v903_v43 }
 0x13b PF: > { %s13_s14 = sadd.s32 1, %s1348_s14   ;;  %s1604_s12 = smov %s1344_s13 }
 0x13c   : > { %p10_p5 = scmp.ge.s32.totalorder %s13_s14, 14   ;;  %s1605_s13 = smov %s1607_s15 }
 0x13e   :  { %12 = sbr.rel (!%p10_p5) target bundleno = 2 (0x2), region = 68 }

// kernel: alexnet_forward.12
= control target key start
LH: loop header
LB: loop body
LE: loop exit
PB: predicated region body
PF: predicated region fallthrough
CT: control target
= control target key end

     0   :  { %s1366_s0 = inlined_call_operand.vmem [shape: f32[9,56,512], index: 0, kind: input, shape index: {}]   ;;  %s1367_s1 = inlined_call_operand.vmem [shape: f32[56,512], index: 1, kind: output, shape index: {}]  }
   0x1   :  { %v8_v0 = vld [vmem:[%s1366_s0] sm:$0xff]  ;;  %v9_v6 = vld [vmem:[%s1366_s0 + $0x8] sm:$0xff]  ;;  %v10_v15 = vld [vmem:[%s1366_s0 + $0x10] sm:$0xff] }
   0x2   :  { %v36_v1 = vld [vmem:[%s1366_s0 + $0xe0] sm:$0xff]  ;;  %v37_v7 = vld [vmem:[%s1366_s0 + $0xe8] sm:$0xff]  ;;  %v38_v16 = vld [vmem:[%s1366_s0 + $0xf0] sm:$0xff] }
   0x3   :  { %v64_v2 = vld [vmem:[%s1366_s0 + $0x1c0] sm:$0xff]  ;;  %v260_v3 = vmax.f32 %v8_v0, %v36_v1  ;;  %v65_v8 = vld [vmem:[%s1366_s0 + $0x1c8] sm:$0xff]  ;;  %v268_v10 = vmax.f32 %v9_v6, %v37_v7  ;;  %v66_v17 = vld [vmem:[%s1366_s0 + $0x1d0] sm:$0xff]  ;;  %v276_v20 = vmax.f32 %v10_v15, %v38_v16 }
   0x4   :  { %v92_v4 = vld [vmem:[%s1366_s0 + $0x2a0] sm:$0xff]  ;;  %v93_v13 = vld [vmem:[%s1366_s0 + $0x2a8] sm:$0xff]  ;;  %v94_v24 = vld [vmem:[%s1366_s0 + $0x2b0] sm:$0xff] }
   0x5   :  { %v261_v5 = vmax.f32 %v260_v3, %v64_v2  ;;  %v120_v9 = vld [vmem:[%s1366_s0 + $0x380] sm:$0xff]  ;;  %v269_v14 = vmax.f32 %v268_v10, %v65_v8  ;;  %v121_v19 = vld [vmem:[%s1366_s0 + $0x388] sm:$0xff]  ;;  %v277_v26 = vmax.f32 %v276_v20, %v66_v17  ;;  %v11_v27 = vld [vmem:[%s1366_s0 + $0x18] sm:$0xff] }
   0x6   :  { %v148_v11 = vld [vmem:[%s1366_s0 + $0x460] sm:$0xff]  ;;  %v149_v22 = vld [vmem:[%s1366_s0 + $0x468] sm:$0xff]  ;;  %v39_v28 = vld [vmem:[%s1366_s0 + $0xf8] sm:$0xff] }
   0x7   :  { %v262_v12 = vmax.f32 %v261_v5, %v92_v4  ;;  %v176_v21 = vld [vmem:[%s1366_s0 + $0x540] sm:$0xff]  ;;  %v270_v23 = vmax.f32 %v269_v14, %v93_v13  ;;  %v67_v29 = vld [vmem:[%s1366_s0 + $0x1d8] sm:$0xff]  ;;  %v122_v33 = vld [vmem:[%s1366_s0 + $0x390] sm:$0xff]  ;;  %v284_v34 = vmax.f32 %v11_v27, %v39_v28  ;;  %v278_v38 = vmax.f32 %v277_v26, %v94_v24 }
   0x8   :  { %v204_v30 = vld [vmem:[%s1366_s0 + $0x620] sm:$0xff]  ;;  %v177_v36 = vld [vmem:[%s1366_s0 + $0x548] sm:$0xff]  ;;  %v150_v37 = vld [vmem:[%s1366_s0 + $0x470] sm:$0xff] }
   0x9   :  { %v263_v18 = vmax.f32 %v262_v12, %v120_v9  ;;  %v232_v31 = vld [vmem:[%s1366_s0 + $0x700] sm:$0xff]  ;;  %v271_v32 = vmax.f32 %v270_v23, %v121_v19  ;;  %v95_v39 = vld [vmem:[%s1366_s0 + $0x2b8] sm:$0xff]  ;;  %v285_v41 = vmax.f32 %v284_v34, %v67_v29  ;;  %v205_v46 = vld [vmem:[%s1366_s0 + $0x628] sm:$0xff]  ;;  %v279_v48 = vmax.f32 %v278_v38, %v122_v33 }
   0xa   :  { %v12_v42 = vld [vmem:[%s1366_s0 + $0x20] sm:$0xff]  ;;  %v233_v47 = vld [vmem:[%s1366_s0 + $0x708] sm:$0xff]  ;;  %v123_v49 = vld [vmem:[%s1366_s0 + $0x398] sm:$0xff] }
   0xb   :  { %v264_v25 = vmax.f32 %v263_v18, %v148_v11  ;;  %v272_v40 = vmax.f32 %v271_v32, %v149_v22  ;;  %v40_v43 = vld [vmem:[%s1366_s0 + $0x100] sm:$0xff]  ;;  %v178_v52 = vld [vmem:[%s1366_s0 + $0x550] sm:$0xff]  ;;  %v151_v53 = vld [vmem:[%s1366_s0 + $0x478] sm:$0xff]  ;;  %v286_v54 = vmax.f32 %v285_v41, %v95_v39  ;;  %v280_v57 = vmax.f32 %v279_v48, %v150_v37 }
   0xc   :  { %v68_v44 = vld [vmem:[%s1366_s0 + $0x1e0] sm:$0xff]  ;;  %v292_v50 = vmax.f32 %v12_v42, %v40_v43  ;;  %v13_v59 = vld [vmem:[%s1366_s0 + $0x28] sm:$0xff]  ;;  %v206_v63 = vld [vmem:[%s1366_s0 + $0x630] sm:$0xff] }
   0xd   :  { %v265_v35 = vmax.f32 %v264_v25, %v176_v21  ;;  %v273_v51 = vmax.f32 %v272_v40, %v177_v36  ;;  %v96_v55 = vld [vmem:[%s1366_s0 + $0x2c0] sm:$0xff]  ;;  %v41_v60 = vld [vmem:[%s1366_s0 + $0x108] sm:$0xff]  ;;  %v234_v0 = vld [vmem:[%s1366_s0 + $0x710] sm:$0xff]  ;;  %v287_v1 = vmax.f32 %v286_v54, %v123_v49  ;;  %v281_v4 = vmax.f32 %v280_v57, %v178_v52 }
   0xe   :  { %v293_v58 = vmax.f32 %v292_v50, %v68_v44  ;;  %v69_v61 = vld [vmem:[%s1366_s0 + $0x1e8] sm:$0xff]  ;;  %v124_v2 = vld [vmem:[%s1366_s0 + $0x3a0] sm:$0xff]  ;;  %v300_v3 = vmax.f32 %v13_v59, %v41_v60  ;;  %v179_v5 = vld [vmem:[%s1366_s0 + $0x558] sm:$0xff] }
   0xf   :  { %v266_v45 = vmax.f32 %v265_v35, %v204_v30  ;;  %v274_v62 = vmax.f32 %v273_v51, %v205_v46  ;;  %v152_v6 = vld [vmem:[%s1366_s0 + $0x480] sm:$0xff]  ;;  %v97_v8 = vld [vmem:[%s1366_s0 + $0x2c8] sm:$0xff]  ;;  %v288_v10 = vmax.f32 %v287_v1, %v151_v53  ;;  %v14_v12 = vld [vmem:[%s1366_s0 + $0x30] sm:$0xff]  ;;  %v282_v15 = vmax.f32 %v281_v4, %v206_v63 }
  0x10   :  { %v294_v7 = vmax.f32 %v293_v58, %v96_v55  ;;  %v301_v11 = vmax.f32 %v300_v3, %v69_v61  ;;  %v42_v13 = vld [vmem:[%s1366_s0 + $0x110] sm:$0xff]  ;;  %v207_v16 = vld [vmem:[%s1366_s0 + $0x638] sm:$0xff]  ;;  %v125_v19 = vld [vmem:[%s1366_s0 + $0x3a8] sm:$0xff] }
  0x11   :  { %v267_v56 = vmax.f32 %v266_v45, %v232_v31  ;;  %v275_v9 = vmax.f32 %v274_v62, %v233_v47  ;;  %v70_v14 = vld [vmem:[%s1366_s0 + $0x1f0] sm:$0xff]  ;;  %v235_v17 = vld [vmem:[%s1366_s0 + $0x718] sm:$0xff]  ;;  %v308_v20 = vmax.f32 %v14_v12, %v42_v13  ;;  %v289_v21 = vmax.f32 %v288_v10, %v179_v5  ;;  %v180_v22 = vld [vmem:[%s1366_s0 + $0x560] sm:$0xff] }
  0x12   :  { %v295_v18 = vmax.f32 %v294_v7, %v124_v2  ;;  %v153_v23 = vld [vmem:[%s1366_s0 + $0x488] sm:$0xff]  ;;  %v302_v24 = vmax.f32 %v301_v11, %v97_v8  ;;  %v98_v25 = vld [vmem:[%s1366_s0 + $0x2d0] sm:$0xff]  ;;  %v283_v26 = vmax.f32 %v282_v15, %v234_v0  ;;  %v15_v29 = vld [vmem:[%s1366_s0 + $0x38] sm:$0xff] }
  0x13   :  { %484 = vst [vmem:[%s1367_s1] sm:$0xff] %v267_v56  ;;  %485 = vst [vmem:[%s1367_s1 + $0x8] sm:$0xff] %v275_v9  ;;  %v309_v28 = vmax.f32 %v308_v20, %v70_v14  ;;  %v43_v30 = vld [vmem:[%s1366_s0 + $0x118] sm:$0xff]  ;;  %v290_v32 = vmax.f32 %v289_v21, %v207_v16  ;;  %v208_v33 = vld [vmem:[%s1366_s0 + $0x640] sm:$0xff] }
  0x14   :  { %v296_v27 = vmax.f32 %v295_v18, %v152_v6  ;;  %v71_v31 = vld [vmem:[%s1366_s0 + $0x1f8] sm:$0xff]  ;;  %v236_v34 = vld [vmem:[%s1366_s0 + $0x720] sm:$0xff]  ;;  %v303_v35 = vmax.f32 %v302_v24, %v125_v19  ;;  %v126_v36 = vld [vmem:[%s1366_s0 + $0x3b0] sm:$0xff]  ;;  %v316_v37 = vmax.f32 %v15_v29, %v43_v30  ;;  %486 = vst [vmem:[%s1367_s1 + $0x10] sm:$0xff] %v283_v26 }
  0x15   :  { %v181_v39 = vld [vmem:[%s1366_s0 + $0x568] sm:$0xff]  ;;  %v154_v40 = vld [vmem:[%s1366_s0 + $0x490] sm:$0xff]  ;;  %v310_v41 = vmax.f32 %v309_v28, %v98_v25  ;;  %v99_v42 = vld [vmem:[%s1366_s0 + $0x2d8] sm:$0xff]  ;;  %v291_v43 = vmax.f32 %v290_v32, %v235_v17 }
  0x16   :  { %v297_v38 = vmax.f32 %v296_v27, %v180_v22  ;;  %v304_v44 = vmax.f32 %v303_v35, %v153_v23  ;;  %v317_v45 = vmax.f32 %v316_v37, %v71_v31  ;;  %v16_v46 = vld [vmem:[%s1366_s0 + $0x40] sm:$0xff]  ;;  %v209_v50 = vld [vmem:[%s1366_s0 + $0x648] sm:$0xff]  ;;  %v127_v53 = vld [vmem:[%s1366_s0 + $0x3b8] sm:$0xff] }
  0x17   :  { %v44_v47 = vld [vmem:[%s1366_s0 + $0x120] sm:$0xff]  ;;  %v237_v51 = vld [vmem:[%s1366_s0 + $0x728] sm:$0xff]  ;;  %v311_v52 = vmax.f32 %v310_v41, %v126_v36  ;;  %487 = vst [vmem:[%s1367_s1 + $0x18] sm:$0xff] %v291_v43  ;;  %v182_v56 = vld [vmem:[%s1366_s0 + $0x570] sm:$0xff] }
  0x18   :  { %v72_v48 = vld [vmem:[%s1366_s0 + $0x200] sm:$0xff]  ;;  %v298_v49 = vmax.f32 %v297_v38, %v208_v33  ;;  %v324_v54 = vmax.f32 %v16_v46, %v44_v47  ;;  %v305_v55 = vmax.f32 %v304_v44, %v181_v39  ;;  %v155_v57 = vld [vmem:[%s1366_s0 + $0x498] sm:$0xff]  ;;  %v318_v58 = vmax.f32 %v317_v45, %v99_v42  ;;  %v17_v63 = vld [vmem:[%s1366_s0 + $0x48] sm:$0xff] }
  0x19   :  { %v100_v59 = vld [vmem:[%s1366_s0 + $0x2e0] sm:$0xff]  ;;  %v312_v61 = vmax.f32 %v311_v52, %v154_v40  ;;  %v45_v0 = vld [vmem:[%s1366_s0 + $0x128] sm:$0xff]  ;;  %v210_v3 = vld [vmem:[%s1366_s0 + $0x650] sm:$0xff] }
  0x1a   :  { %v299_v60 = vmax.f32 %v298_v49, %v236_v34  ;;  %v325_v62 = vmax.f32 %v324_v54, %v72_v48  ;;  %v73_v1 = vld [vmem:[%s1366_s0 + $0x208] sm:$0xff]  ;;  %v306_v2 = vmax.f32 %v305_v55, %v209_v50  ;;  %v238_v4 = vld [vmem:[%s1366_s0 + $0x730] sm:$0xff]  ;;  %v319_v5 = vmax.f32 %v318_v58, %v127_v53  ;;  %v128_v6 = vld [vmem:[%s1366_s0 + $0x3c0] sm:$0xff] }
  0x1b   :  { %v332_v7 = vmax.f32 %v17_v63, %v45_v0  ;;  %v313_v8 = vmax.f32 %v312_v61, %v182_v56  ;;  %v183_v9 = vld [vmem:[%s1366_s0 + $0x578] sm:$0xff]  ;;  %v156_v10 = vld [vmem:[%s1366_s0 + $0x4a0] sm:$0xff]  ;;  %v101_v12 = vld [vmem:[%s1366_s0 + $0x2e8] sm:$0xff] }
  0x1c   :  { %488 = vst [vmem:[%s1367_s1 + $0x20] sm:$0xff] %v299_v60  ;;  %v326_v11 = vmax.f32 %v325_v62, %v100_v59  ;;  %v307_v13 = vmax.f32 %v306_v2, %v237_v51  ;;  %v320_v14 = vmax.f32 %v319_v5, %v155_v57  ;;  %v18_v16 = vld [vmem:[%s1366_s0 + $0x50] sm:$0xff]  ;;  %v211_v20 = vld [vmem:[%s1366_s0 + $0x658] sm:$0xff]  ;;  %v129_v23 = vld [vmem:[%s1366_s0 + $0x3c8] sm:$0xff] }
  0x1d   :  { %v333_v15 = vmax.f32 %v332_v7, %v73_v1  ;;  %v46_v17 = vld [vmem:[%s1366_s0 + $0x130] sm:$0xff]  ;;  %v314_v19 = vmax.f32 %v313_v8, %v210_v3  ;;  %v239_v21 = vld [vmem:[%s1366_s0 + $0x738] sm:$0xff]  ;;  %v184_v26 = vld [vmem:[%s1366_s0 + $0x580] sm:$0xff] }
  0x1e   :  { %v74_v18 = vld [vmem:[%s1366_s0 + $0x210] sm:$0xff]  ;;  %v327_v22 = vmax.f32 %v326_v11, %v128_v6  ;;  %v340_v24 = vmax.f32 %v18_v16, %v46_v17  ;;  %489 = vst [vmem:[%s1367_s1 + $0x28] sm:$0xff] %v307_v13  ;;  %v321_v25 = vmax.f32 %v320_v14, %v183_v9  ;;  %v157_v27 = vld [vmem:[%s1366_s0 + $0x4a8] sm:$0xff]  ;;  %v19_v33 = vld [vmem:[%s1366_s0 + $0x58] sm:$0xff] }
  0x1f   :  { %v334_v28 = vmax.f32 %v333_v15, %v101_v12  ;;  %v102_v29 = vld [vmem:[%s1366_s0 + $0x2f0] sm:$0xff]  ;;  %v315_v30 = vmax.f32 %v314_v19, %v238_v4  ;;  %v47_v34 = vld [vmem:[%s1366_s0 + $0x138] sm:$0xff]  ;;  %v212_v37 = vld [vmem:[%s1366_s0 + $0x660] sm:$0xff] }
  0x20   :  { %v328_v31 = vmax.f32 %v327_v22, %v156_v10  ;;  %v341_v32 = vmax.f32 %v340_v24, %v74_v18  ;;  %v75_v35 = vld [vmem:[%s1366_s0 + $0x218] sm:$0xff]  ;;  %v322_v36 = vmax.f32 %v321_v25, %v211_v20  ;;  %v240_v38 = vld [vmem:[%s1366_s0 + $0x740] sm:$0xff]  ;;  %v130_v40 = vld [vmem:[%s1366_s0 + $0x3d0] sm:$0xff]  ;;  %v348_v41 = vmax.f32 %v19_v33, %v47_v34 }
  0x21   :  { %v335_v39 = vmax.f32 %v334_v28, %v129_v23  ;;  %490 = vst [vmem:[%s1367_s1 + $0x30] sm:$0xff] %v315_v30  ;;  %v185_v43 = vld [vmem:[%s1366_s0 + $0x588] sm:$0xff]  ;;  %v158_v44 = vld [vmem:[%s1366_s0 + $0x4b0] sm:$0xff]  ;;  %v103_v46 = vld [vmem:[%s1366_s0 + $0x2f8] sm:$0xff] }
  0x22   :  { %v329_v42 = vmax.f32 %v328_v31, %v184_v26  ;;  %v342_v45 = vmax.f32 %v341_v32, %v102_v29  ;;  %v323_v47 = vmax.f32 %v322_v36, %v239_v21  ;;  %v349_v49 = vmax.f32 %v348_v41, %v75_v35  ;;  %v20_v50 = vld [vmem:[%s1366_s0 + $0x60] sm:$0xff]  ;;  %v213_v54 = vld [vmem:[%s1366_s0 + $0x668] sm:$0xff]  ;;  %v131_v57 = vld [vmem:[%s1366_s0 + $0x3d8] sm:$0xff] }
  0x23   :  { %v336_v48 = vmax.f32 %v335_v39, %v157_v27  ;;  %v48_v51 = vld [vmem:[%s1366_s0 + $0x140] sm:$0xff]  ;;  %v241_v55 = vld [vmem:[%s1366_s0 + $0x748] sm:$0xff]  ;;  %v186_v60 = vld [vmem:[%s1366_s0 + $0x590] sm:$0xff] }
  0x24   :  { %v76_v52 = vld [vmem:[%s1366_s0 + $0x220] sm:$0xff]  ;;  %v330_v53 = vmax.f32 %v329_v42, %v212_v37  ;;  %v343_v56 = vmax.f32 %v342_v45, %v130_v40  ;;  %v356_v58 = vmax.f32 %v20_v50, %v48_v51  ;;  %491 = vst [vmem:[%s1367_s1 + $0x38] sm:$0xff] %v323_v47  ;;  %v159_v61 = vld [vmem:[%s1366_s0 + $0x4b8] sm:$0xff]  ;;  %v350_v62 = vmax.f32 %v349_v49, %v103_v46  ;;  %v21_v3 = vld [vmem:[%s1366_s0 + $0x68] sm:$0xff] }
  0x25   :  { %v337_v59 = vmax.f32 %v336_v48, %v185_v43  ;;  %v104_v63 = vld [vmem:[%s1366_s0 + $0x300] sm:$0xff]  ;;  %v49_v4 = vld [vmem:[%s1366_s0 + $0x148] sm:$0xff]  ;;  %v214_v7 = vld [vmem:[%s1366_s0 + $0x670] sm:$0xff] }
  0x26   :  { %v331_v0 = vmax.f32 %v330_v53, %v240_v38  ;;  %v344_v1 = vmax.f32 %v343_v56, %v158_v44  ;;  %v357_v2 = vmax.f32 %v356_v58, %v76_v52  ;;  %v77_v5 = vld [vmem:[%s1366_s0 + $0x228] sm:$0xff]  ;;  %v242_v8 = vld [vmem:[%s1366_s0 + $0x750] sm:$0xff]  ;;  %v351_v9 = vmax.f32 %v350_v62, %v131_v57  ;;  %v132_v10 = vld [vmem:[%s1366_s0 + $0x3e0] sm:$0xff] }
  0x27   :  { %v338_v6 = vmax.f32 %v337_v59, %v213_v54  ;;  %v364_v11 = vmax.f32 %v21_v3, %v49_v4  ;;  %v187_v13 = vld [vmem:[%s1366_s0 + $0x598] sm:$0xff]  ;;  %v160_v14 = vld [vmem:[%s1366_s0 + $0x4c0] sm:$0xff]  ;;  %v105_v16 = vld [vmem:[%s1366_s0 + $0x308] sm:$0xff] }
  0x28   :  { %492 = vst [vmem:[%s1367_s1 + $0x40] sm:$0xff] %v331_v0  ;;  %v345_v12 = vmax.f32 %v344_v1, %v186_v60  ;;  %v358_v15 = vmax.f32 %v357_v2, %v104_v63  ;;  %v352_v18 = vmax.f32 %v351_v9, %v159_v61  ;;  %v22_v20 = vld [vmem:[%s1366_s0 + $0x70] sm:$0xff]  ;;  %v215_v24 = vld [vmem:[%s1366_s0 + $0x678] sm:$0xff]  ;;  %v133_v27 = vld [vmem:[%s1366_s0 + $0x3e8] sm:$0xff] }
  0x29   :  { %v339_v17 = vmax.f32 %v338_v6, %v241_v55  ;;  %v365_v19 = vmax.f32 %v364_v11, %v77_v5  ;;  %v50_v21 = vld [vmem:[%s1366_s0 + $0x150] sm:$0xff]  ;;  %v243_v25 = vld [vmem:[%s1366_s0 + $0x758] sm:$0xff]  ;;  %v188_v30 = vld [vmem:[%s1366_s0 + $0x5a0] sm:$0xff] }
  0x2a   :  { %v78_v22 = vld [vmem:[%s1366_s0 + $0x230] sm:$0xff]  ;;  %v346_v23 = vmax.f32 %v345_v12, %v214_v7  ;;  %v359_v26 = vmax.f32 %v358_v15, %v132_v10  ;;  %v372_v28 = vmax.f32 %v22_v20, %v50_v21  ;;  %v353_v29 = vmax.f32 %v352_v18, %v187_v13  ;;  %v161_v31 = vld [vmem:[%s1366_s0 + $0x4c8] sm:$0xff]  ;;  %v23_v37 = vld [vmem:[%s1366_s0 + $0x78] sm:$0xff] }
  0x2b   :  { %493 = vst [vmem:[%s1367_s1 + $0x48] sm:$0xff] %v339_v17  ;;  %v366_v32 = vmax.f32 %v365_v19, %v105_v16  ;;  %v106_v33 = vld [vmem:[%s1366_s0 + $0x310] sm:$0xff]  ;;  %v51_v38 = vld [vmem:[%s1366_s0 + $0x158] sm:$0xff]  ;;  %v216_v41 = vld [vmem:[%s1366_s0 + $0x680] sm:$0xff] }
  0x2c   :  { %v347_v34 = vmax.f32 %v346_v23, %v242_v8  ;;  %v360_v35 = vmax.f32 %v359_v26, %v160_v14  ;;  %v373_v36 = vmax.f32 %v372_v28, %v78_v22  ;;  %v79_v39 = vld [vmem:[%s1366_s0 + $0x238] sm:$0xff]  ;;  %v354_v40 = vmax.f32 %v353_v29, %v215_v24  ;;  %v244_v42 = vld [vmem:[%s1366_s0 + $0x760] sm:$0xff]  ;;  %v134_v44 = vld [vmem:[%s1366_s0 + $0x3f0] sm:$0xff] }
  0x2d   :  { %v367_v43 = vmax.f32 %v366_v32, %v133_v27  ;;  %v380_v45 = vmax.f32 %v23_v37, %v51_v38  ;;  %v189_v47 = vld [vmem:[%s1366_s0 + $0x5a8] sm:$0xff]  ;;  %v162_v48 = vld [vmem:[%s1366_s0 + $0x4d0] sm:$0xff]  ;;  %v107_v50 = vld [vmem:[%s1366_s0 + $0x318] sm:$0xff] }
  0x2e   :  { %494 = vst [vmem:[%s1367_s1 + $0x50] sm:$0xff] %v347_v34  ;;  %v361_v46 = vmax.f32 %v360_v35, %v188_v30  ;;  %v374_v49 = vmax.f32 %v373_v36, %v106_v33  ;;  %v355_v51 = vmax.f32 %v354_v40, %v243_v25  ;;  %v24_v54 = vld [vmem:[%s1366_s0 + $0x80] sm:$0xff]  ;;  %v217_v58 = vld [vmem:[%s1366_s0 + $0x688] sm:$0xff]  ;;  %v135_v61 = vld [vmem:[%s1366_s0 + $0x3f8] sm:$0xff] }
  0x2f   :  { %v368_v52 = vmax.f32 %v367_v43, %v161_v31  ;;  %v381_v53 = vmax.f32 %v380_v45, %v79_v39  ;;  %v52_v55 = vld [vmem:[%s1366_s0 + $0x160] sm:$0xff]  ;;  %v245_v59 = vld [vmem:[%s1366_s0 + $0x768] sm:$0xff]  ;;  %v190_v0 = vld [vmem:[%s1366_s0 + $0x5b0] sm:$0xff] }
  0x30   :  { %v80_v56 = vld [vmem:[%s1366_s0 + $0x240] sm:$0xff]  ;;  %v362_v57 = vmax.f32 %v361_v46, %v216_v41  ;;  %v375_v60 = vmax.f32 %v374_v49, %v134_v44  ;;  %v388_v62 = vmax.f32 %v24_v54, %v52_v55  ;;  %495 = vst [vmem:[%s1367_s1 + $0x58] sm:$0xff] %v355_v51  ;;  %v163_v1 = vld [vmem:[%s1366_s0 + $0x4d8] sm:$0xff]  ;;  %v25_v7 = vld [vmem:[%s1366_s0 + $0x88] sm:$0xff] }
  0x31   :  { %v369_v63 = vmax.f32 %v368_v52, %v189_v47  ;;  %v382_v2 = vmax.f32 %v381_v53, %v107_v50  ;;  %v108_v3 = vld [vmem:[%s1366_s0 + $0x320] sm:$0xff]  ;;  %v53_v8 = vld [vmem:[%s1366_s0 + $0x168] sm:$0xff]  ;;  %v218_v11 = vld [vmem:[%s1366_s0 + $0x690] sm:$0xff] }
  0x32   :  { %v363_v4 = vmax.f32 %v362_v57, %v244_v42  ;;  %v376_v5 = vmax.f32 %v375_v60, %v162_v48  ;;  %v389_v6 = vmax.f32 %v388_v62, %v80_v56  ;;  %v81_v9 = vld [vmem:[%s1366_s0 + $0x248] sm:$0xff]  ;;  %v246_v12 = vld [vmem:[%s1366_s0 + $0x770] sm:$0xff]  ;;  %v136_v14 = vld [vmem:[%s1366_s0 + $0x400] sm:$0xff]  ;;  %v396_v15 = vmax.f32 %v25_v7, %v53_v8 }
  0x33   :  { %v370_v10 = vmax.f32 %v369_v63, %v217_v58  ;;  %v383_v13 = vmax.f32 %v382_v2, %v135_v61  ;;  %v191_v17 = vld [vmem:[%s1366_s0 + $0x5b8] sm:$0xff]  ;;  %v164_v18 = vld [vmem:[%s1366_s0 + $0x4e0] sm:$0xff]  ;;  %v109_v20 = vld [vmem:[%s1366_s0 + $0x328] sm:$0xff] }
  0x34   :  { %496 = vst [vmem:[%s1367_s1 + $0x60] sm:$0xff] %v363_v4  ;;  %v377_v16 = vmax.f32 %v376_v5, %v190_v0  ;;  %v390_v19 = vmax.f32 %v389_v6, %v108_v3  ;;  %v397_v23 = vmax.f32 %v396_v15, %v81_v9  ;;  %v26_v24 = vld [vmem:[%s1366_s0 + $0x90] sm:$0xff]  ;;  %v219_v28 = vld [vmem:[%s1366_s0 + $0x698] sm:$0xff]  ;;  %v137_v31 = vld [vmem:[%s1366_s0 + $0x408] sm:$0xff] }
  0x35   :  { %v371_v21 = vmax.f32 %v370_v10, %v245_v59  ;;  %v384_v22 = vmax.f32 %v383_v13, %v163_v1  ;;  %v54_v25 = vld [vmem:[%s1366_s0 + $0x170] sm:$0xff]  ;;  %v247_v29 = vld [vmem:[%s1366_s0 + $0x778] sm:$0xff]  ;;  %v192_v34 = vld [vmem:[%s1366_s0 + $0x5c0] sm:$0xff] }
  0x36   :  { %v82_v26 = vld [vmem:[%s1366_s0 + $0x250] sm:$0xff]  ;;  %v378_v27 = vmax.f32 %v377_v16, %v218_v11  ;;  %v391_v30 = vmax.f32 %v390_v19, %v136_v14  ;;  %v404_v32 = vmax.f32 %v26_v24, %v54_v25  ;;  %v165_v35 = vld [vmem:[%s1366_s0 + $0x4e8] sm:$0xff]  ;;  %v398_v36 = vmax.f32 %v397_v23, %v109_v20  ;;  %v27_v41 = vld [vmem:[%s1366_s0 + $0x98] sm:$0xff] }
  0x37   :  { %497 = vst [vmem:[%s1367_s1 + $0x68] sm:$0xff] %v371_v21  ;;  %v385_v33 = vmax.f32 %v384_v22, %v191_v17  ;;  %v110_v37 = vld [vmem:[%s1366_s0 + $0x330] sm:$0xff]  ;;  %v55_v42 = vld [vmem:[%s1366_s0 + $0x178] sm:$0xff]  ;;  %v220_v45 = vld [vmem:[%s1366_s0 + $0x6a0] sm:$0xff] }
  0x38   :  { %v379_v38 = vmax.f32 %v378_v27, %v246_v12  ;;  %v392_v39 = vmax.f32 %v391_v30, %v164_v18  ;;  %v405_v40 = vmax.f32 %v404_v32, %v82_v26  ;;  %v83_v43 = vld [vmem:[%s1366_s0 + $0x258] sm:$0xff]  ;;  %v248_v46 = vld [vmem:[%s1366_s0 + $0x780] sm:$0xff]  ;;  %v399_v47 = vmax.f32 %v398_v36, %v137_v31  ;;  %v138_v48 = vld [vmem:[%s1366_s0 + $0x410] sm:$0xff] }
  0x39   :  { %v386_v44 = vmax.f32 %v385_v33, %v219_v28  ;;  %v412_v49 = vmax.f32 %v27_v41, %v55_v42  ;;  %v193_v51 = vld [vmem:[%s1366_s0 + $0x5c8] sm:$0xff]  ;;  %v166_v52 = vld [vmem:[%s1366_s0 + $0x4f0] sm:$0xff]  ;;  %v111_v54 = vld [vmem:[%s1366_s0 + $0x338] sm:$0xff] }
  0x3a   :  { %498 = vst [vmem:[%s1367_s1 + $0x70] sm:$0xff] %v379_v38  ;;  %v393_v50 = vmax.f32 %v392_v39, %v192_v34  ;;  %v406_v53 = vmax.f32 %v405_v40, %v110_v37  ;;  %v400_v56 = vmax.f32 %v399_v47, %v165_v35  ;;  %v28_v58 = vld [vmem:[%s1366_s0 + $0xa0] sm:$0xff]  ;;  %v221_v62 = vld [vmem:[%s1366_s0 + $0x6a8] sm:$0xff]  ;;  %v139_v1 = vld [vmem:[%s1366_s0 + $0x418] sm:$0xff] }
  0x3b   :  { %v387_v55 = vmax.f32 %v386_v44, %v247_v29  ;;  %v413_v57 = vmax.f32 %v412_v49, %v83_v43  ;;  %v56_v59 = vld [vmem:[%s1366_s0 + $0x180] sm:$0xff]  ;;  %v249_v63 = vld [vmem:[%s1366_s0 + $0x788] sm:$0xff]  ;;  %v194_v4 = vld [vmem:[%s1366_s0 + $0x5d0] sm:$0xff] }
  0x3c   :  { %v84_v60 = vld [vmem:[%s1366_s0 + $0x260] sm:$0xff]  ;;  %v394_v61 = vmax.f32 %v393_v50, %v220_v45  ;;  %v407_v0 = vmax.f32 %v406_v53, %v138_v48  ;;  %v420_v2 = vmax.f32 %v28_v58, %v56_v59  ;;  %v401_v3 = vmax.f32 %v400_v56, %v193_v51  ;;  %v167_v5 = vld [vmem:[%s1366_s0 + $0x4f8] sm:$0xff]  ;;  %v29_v11 = vld [vmem:[%s1366_s0 + $0xa8] sm:$0xff] }
  0x3d   :  { %499 = vst [vmem:[%s1367_s1 + $0x78] sm:$0xff] %v387_v55  ;;  %v414_v6 = vmax.f32 %v413_v57, %v111_v54  ;;  %v112_v7 = vld [vmem:[%s1366_s0 + $0x340] sm:$0xff]  ;;  %v57_v12 = vld [vmem:[%s1366_s0 + $0x188] sm:$0xff]  ;;  %v222_v15 = vld [vmem:[%s1366_s0 + $0x6b0] sm:$0xff] }
  0x3e   :  { %v395_v8 = vmax.f32 %v394_v61, %v248_v46  ;;  %v408_v9 = vmax.f32 %v407_v0, %v166_v52  ;;  %v421_v10 = vmax.f32 %v420_v2, %v84_v60  ;;  %v85_v13 = vld [vmem:[%s1366_s0 + $0x268] sm:$0xff]  ;;  %v402_v14 = vmax.f32 %v401_v3, %v221_v62  ;;  %v250_v16 = vld [vmem:[%s1366_s0 + $0x790] sm:$0xff]  ;;  %v140_v18 = vld [vmem:[%s1366_s0 + $0x420] sm:$0xff] }
  0x3f   :  { %v415_v17 = vmax.f32 %v414_v6, %v139_v1  ;;  %v428_v19 = vmax.f32 %v29_v11, %v57_v12  ;;  %v195_v21 = vld [vmem:[%s1366_s0 + $0x5d8] sm:$0xff]  ;;  %v168_v22 = vld [vmem:[%s1366_s0 + $0x500] sm:$0xff]  ;;  %v113_v24 = vld [vmem:[%s1366_s0 + $0x348] sm:$0xff] }
  0x40   :  { %500 = vst [vmem:[%s1367_s1 + $0x80] sm:$0xff] %v395_v8  ;;  %v409_v20 = vmax.f32 %v408_v9, %v194_v4  ;;  %v422_v23 = vmax.f32 %v421_v10, %v112_v7  ;;  %v403_v25 = vmax.f32 %v402_v14, %v249_v63  ;;  %v30_v28 = vld [vmem:[%s1366_s0 + $0xb0] sm:$0xff]  ;;  %v223_v32 = vld [vmem:[%s1366_s0 + $0x6b8] sm:$0xff]  ;;  %v141_v35 = vld [vmem:[%s1366_s0 + $0x428] sm:$0xff] }
  0x41   :  { %v416_v26 = vmax.f32 %v415_v17, %v167_v5  ;;  %v429_v27 = vmax.f32 %v428_v19, %v85_v13  ;;  %v58_v29 = vld [vmem:[%s1366_s0 + $0x190] sm:$0xff]  ;;  %v251_v33 = vld [vmem:[%s1366_s0 + $0x798] sm:$0xff]  ;;  %v196_v38 = vld [vmem:[%s1366_s0 + $0x5e0] sm:$0xff] }
  0x42   :  { %v86_v30 = vld [vmem:[%s1366_s0 + $0x270] sm:$0xff]  ;;  %v410_v31 = vmax.f32 %v409_v20, %v222_v15  ;;  %v423_v34 = vmax.f32 %v422_v23, %v140_v18  ;;  %v436_v36 = vmax.f32 %v30_v28, %v58_v29  ;;  %501 = vst [vmem:[%s1367_s1 + $0x88] sm:$0xff] %v403_v25  ;;  %v169_v39 = vld [vmem:[%s1366_s0 + $0x508] sm:$0xff]  ;;  %v31_v45 = vld [vmem:[%s1366_s0 + $0xb8] sm:$0xff] }
  0x43   :  { %v417_v37 = vmax.f32 %v416_v26, %v195_v21  ;;  %v430_v40 = vmax.f32 %v429_v27, %v113_v24  ;;  %v114_v41 = vld [vmem:[%s1366_s0 + $0x350] sm:$0xff]  ;;  %v59_v46 = vld [vmem:[%s1366_s0 + $0x198] sm:$0xff]  ;;  %v224_v49 = vld [vmem:[%s1366_s0 + $0x6c0] sm:$0xff] }
  0x44   :  { %v411_v42 = vmax.f32 %v410_v31, %v250_v16  ;;  %v424_v43 = vmax.f32 %v423_v34, %v168_v22  ;;  %v437_v44 = vmax.f32 %v436_v36, %v86_v30  ;;  %v87_v47 = vld [vmem:[%s1366_s0 + $0x278] sm:$0xff]  ;;  %v252_v50 = vld [vmem:[%s1366_s0 + $0x7a0] sm:$0xff]  ;;  %v142_v52 = vld [vmem:[%s1366_s0 + $0x430] sm:$0xff]  ;;  %v444_v53 = vmax.f32 %v31_v45, %v59_v46 }
  0x45   :  { %v418_v48 = vmax.f32 %v417_v37, %v223_v32  ;;  %v431_v51 = vmax.f32 %v430_v40, %v141_v35  ;;  %v197_v55 = vld [vmem:[%s1366_s0 + $0x5e8] sm:$0xff]  ;;  %v170_v56 = vld [vmem:[%s1366_s0 + $0x510] sm:$0xff]  ;;  %v115_v58 = vld [vmem:[%s1366_s0 + $0x358] sm:$0xff] }
  0x46   :  { %502 = vst [vmem:[%s1367_s1 + $0x90] sm:$0xff] %v411_v42  ;;  %v425_v54 = vmax.f32 %v424_v43, %v196_v38  ;;  %v438_v57 = vmax.f32 %v437_v44, %v114_v41  ;;  %v445_v61 = vmax.f32 %v444_v53, %v87_v47  ;;  %v32_v62 = vld [vmem:[%s1366_s0 + $0xc0] sm:$0xff]  ;;  %v225_v2 = vld [vmem:[%s1366_s0 + $0x6c8] sm:$0xff]  ;;  %v143_v5 = vld [vmem:[%s1366_s0 + $0x438] sm:$0xff] }
  0x47   :  { %v419_v59 = vmax.f32 %v418_v48, %v251_v33  ;;  %v432_v60 = vmax.f32 %v431_v51, %v169_v39  ;;  %v60_v63 = vld [vmem:[%s1366_s0 + $0x1a0] sm:$0xff]  ;;  %v253_v3 = vld [vmem:[%s1366_s0 + $0x7a8] sm:$0xff]  ;;  %v198_v8 = vld [vmem:[%s1366_s0 + $0x5f0] sm:$0xff] }
  0x48   :  { %v88_v0 = vld [vmem:[%s1366_s0 + $0x280] sm:$0xff]  ;;  %v426_v1 = vmax.f32 %v425_v54, %v224_v49  ;;  %v439_v4 = vmax.f32 %v438_v57, %v142_v52  ;;  %v452_v6 = vmax.f32 %v32_v62, %v60_v63  ;;  %v171_v9 = vld [vmem:[%s1366_s0 + $0x518] sm:$0xff]  ;;  %v446_v10 = vmax.f32 %v445_v61, %v115_v58  ;;  %v33_v15 = vld [vmem:[%s1366_s0 + $0xc8] sm:$0xff] }
  0x49   :  { %503 = vst [vmem:[%s1367_s1 + $0x98] sm:$0xff] %v419_v59  ;;  %v433_v7 = vmax.f32 %v432_v60, %v197_v55  ;;  %v116_v11 = vld [vmem:[%s1366_s0 + $0x360] sm:$0xff]  ;;  %v61_v16 = vld [vmem:[%s1366_s0 + $0x1a8] sm:$0xff]  ;;  %v226_v19 = vld [vmem:[%s1366_s0 + $0x6d0] sm:$0xff] }
  0x4a   :  { %v427_v12 = vmax.f32 %v426_v1, %v252_v50  ;;  %v440_v13 = vmax.f32 %v439_v4, %v170_v56  ;;  %v453_v14 = vmax.f32 %v452_v6, %v88_v0  ;;  %v89_v17 = vld [vmem:[%s1366_s0 + $0x288] sm:$0xff]  ;;  %v254_v20 = vld [vmem:[%s1366_s0 + $0x7b0] sm:$0xff]  ;;  %v447_v21 = vmax.f32 %v446_v10, %v143_v5  ;;  %v144_v22 = vld [vmem:[%s1366_s0 + $0x440] sm:$0xff] }
  0x4b   :  { %v434_v18 = vmax.f32 %v433_v7, %v225_v2  ;;  %v460_v23 = vmax.f32 %v33_v15, %v61_v16  ;;  %v199_v25 = vld [vmem:[%s1366_s0 + $0x5f8] sm:$0xff]  ;;  %v172_v26 = vld [vmem:[%s1366_s0 + $0x520] sm:$0xff]  ;;  %v117_v28 = vld [vmem:[%s1366_s0 + $0x368] sm:$0xff] }
  0x4c   :  { %504 = vst [vmem:[%s1367_s1 + $0xa0] sm:$0xff] %v427_v12  ;;  %v441_v24 = vmax.f32 %v440_v13, %v198_v8  ;;  %v454_v27 = vmax.f32 %v453_v14, %v116_v11  ;;  %v448_v30 = vmax.f32 %v447_v21, %v171_v9  ;;  %v34_v32 = vld [vmem:[%s1366_s0 + $0xd0] sm:$0xff]  ;;  %v227_v36 = vld [vmem:[%s1366_s0 + $0x6d8] sm:$0xff]  ;;  %v145_v39 = vld [vmem:[%s1366_s0 + $0x448] sm:$0xff] }
  0x4d   :  { %v435_v29 = vmax.f32 %v434_v18, %v253_v3  ;;  %v461_v31 = vmax.f32 %v460_v23, %v89_v17  ;;  %v62_v33 = vld [vmem:[%s1366_s0 + $0x1b0] sm:$0xff]  ;;  %v255_v37 = vld [vmem:[%s1366_s0 + $0x7b8] sm:$0xff]  ;;  %v200_v42 = vld [vmem:[%s1366_s0 + $0x600] sm:$0xff] }
  0x4e   :  { %v90_v34 = vld [vmem:[%s1366_s0 + $0x290] sm:$0xff]  ;;  %v442_v35 = vmax.f32 %v441_v24, %v226_v19  ;;  %v455_v38 = vmax.f32 %v454_v27, %v144_v22  ;;  %v468_v40 = vmax.f32 %v34_v32, %v62_v33  ;;  %v449_v41 = vmax.f32 %v448_v30, %v199_v25  ;;  %v173_v43 = vld [vmem:[%s1366_s0 + $0x528] sm:$0xff]  ;;  %v35_v49 = vld [vmem:[%s1366_s0 + $0xd8] sm:$0xff] }
  0x4f   :  { %505 = vst [vmem:[%s1367_s1 + $0xa8] sm:$0xff] %v435_v29  ;;  %v462_v44 = vmax.f32 %v461_v31, %v117_v28  ;;  %v118_v45 = vld [vmem:[%s1366_s0 + $0x370] sm:$0xff]  ;;  %v63_v50 = vld [vmem:[%s1366_s0 + $0x1b8] sm:$0xff]  ;;  %v228_v53 = vld [vmem:[%s1366_s0 + $0x6e0] sm:$0xff] }
  0x50   :  { %v443_v46 = vmax.f32 %v442_v35, %v254_v20  ;;  %v456_v47 = vmax.f32 %v455_v38, %v172_v26  ;;  %v469_v48 = vmax.f32 %v468_v40, %v90_v34  ;;  %v91_v51 = vld [vmem:[%s1366_s0 + $0x298] sm:$0xff]  ;;  %v450_v52 = vmax.f32 %v449_v41, %v227_v36  ;;  %v146_v55 = vld [vmem:[%s1366_s0 + $0x450] sm:$0xff]  ;;  %v201_v58 = vld [vmem:[%s1366_s0 + $0x608] sm:$0xff] }
  0x51   :  { %v463_v54 = vmax.f32 %v462_v44, %v145_v39  ;;  %v476_v56 = vmax.f32 %v35_v49, %v63_v50  ;;  %v119_v60 = vld [vmem:[%s1366_s0 + $0x378] sm:$0xff]  ;;  %v256_v62 = vld [vmem:[%s1366_s0 + $0x7c0] sm:$0xff]  ;;  %v174_v0 = vld [vmem:[%s1366_s0 + $0x530] sm:$0xff] }
  0x52   :  { %506 = vst [vmem:[%s1367_s1 + $0xb0] sm:$0xff] %v443_v46  ;;  %v457_v57 = vmax.f32 %v456_v47, %v200_v42  ;;  %v470_v59 = vmax.f32 %v469_v48, %v118_v45  ;;  %v451_v61 = vmax.f32 %v450_v52, %v255_v37  ;;  %v229_v3 = vld [vmem:[%s1366_s0 + $0x6e8] sm:$0xff]  ;;  %v147_v5 = vld [vmem:[%s1366_s0 + $0x458] sm:$0xff]  ;;  %v202_v7 = vld [vmem:[%s1366_s0 + $0x610] sm:$0xff] }
  0x53   :  { %v464_v63 = vmax.f32 %v463_v54, %v173_v43  ;;  %v477_v1 = vmax.f32 %v476_v56, %v91_v51  ;;  %v257_v10 = vld [vmem:[%s1366_s0 + $0x7c8] sm:$0xff]  ;;  %v175_v12 = vld [vmem:[%s1366_s0 + $0x538] sm:$0xff]  ;;  %v230_v14 = vld [vmem:[%s1366_s0 + $0x6f0] sm:$0xff] }
  0x54   :  { %v458_v2 = vmax.f32 %v457_v57, %v228_v53  ;;  %v471_v4 = vmax.f32 %v470_v59, %v146_v55  ;;  %507 = vst [vmem:[%s1367_s1 + $0xb8] sm:$0xff] %v451_v61  ;;  %v203_v17 = vld [vmem:[%s1366_s0 + $0x618] sm:$0xff]  ;;  %v258_v19 = vld [vmem:[%s1366_s0 + $0x7d0] sm:$0xff] }
  0x55   :  { %v465_v6 = vmax.f32 %v464_v63, %v201_v58  ;;  %v478_v8 = vmax.f32 %v477_v1, %v119_v60  ;;  %v231_v22 = vld [vmem:[%s1366_s0 + $0x6f8] sm:$0xff] }
  0x56   :  { %v459_v9 = vmax.f32 %v458_v2, %v256_v62  ;;  %v472_v11 = vmax.f32 %v471_v4, %v174_v0  ;;  %v259_v25 = vld [vmem:[%s1366_s0 + $0x7d8] sm:$0xff] }
  0x57   :  { %v466_v13 = vmax.f32 %v465_v6, %v229_v3  ;;  %v479_v15 = vmax.f32 %v478_v8, %v147_v5 }
  0x58   :  { %508 = vst [vmem:[%s1367_s1 + $0xc0] sm:$0xff] %v459_v9  ;;  %v473_v16 = vmax.f32 %v472_v11, %v202_v7 }
  0x59   :  { %v467_v18 = vmax.f32 %v466_v13, %v257_v10  ;;  %v480_v20 = vmax.f32 %v479_v15, %v175_v12 }
  0x5a   :  { %v474_v21 = vmax.f32 %v473_v16, %v230_v14 }
  0x5b   :  { %509 = vst [vmem:[%s1367_s1 + $0xc8] sm:$0xff] %v467_v18  ;;  %v481_v23 = vmax.f32 %v480_v20, %v203_v17 }
  0x5c   :  { %v475_v24 = vmax.f32 %v474_v21, %v258_v19 }
  0x5d   :  { %v482_v26 = vmax.f32 %v481_v23, %v231_v22 }
  0x5e   :  { %510 = vst [vmem:[%s1367_s1 + $0xd0] sm:$0xff] %v475_v24 }
  0x5f   :  { %v483_v27 = vmax.f32 %v482_v26, %v259_v25 }
  0x61   :  { %511 = vst [vmem:[%s1367_s1 + $0xd8] sm:$0xff] %v483_v27 }

// kernel: alexnet_forward.13
= control target key start
LH: loop header
LB: loop body
LE: loop exit
PB: predicated region body
PF: predicated region fallthrough
CT: control target
= control target key end

     0   :  { %s2667_s12 = smov 0   ;;  %s2669_s13 = smov 0   ;;  %s3098_s0 = inlined_call_operand.vmem [shape: bf16[1536,512], index: 0, kind: input, shape index: {}]   ;;  %s3099_s1 = inlined_call_operand.vmem [shape: bf16[512,128], index: 1, kind: input, shape index: {}]   ;;  %s3100_s2 = inlined_call_operand.vmem [shape: f32[1,128], index: 2, kind: input, shape index: {}]   ;;  %s3101_s3 = inlined_call_operand.vmem [shape: f32[1536,128], index: 3, kind: output, shape index: {}]  }
   0x1   :  { %s2671_s14 = smov 0  }
   0x2 LB: > { %s25_s15 = sadd.s32 1, %s2640_s13  ;;  %p2074_p0 = scmp.ge.s32.totalorder %s2644_s14, 1  ;;  %s2644_s14 = sphi %s2671_s14, %s13_s14   ;;  %s2640_s13 = sphi %s2669_s13, %s3103_s13   ;;  %s2636_s12 = sphi %s2667_s12, %s3102_s12  }
   0x3   : > { %p27_p1 = scmp.ge.s32.totalorder %s25_s15, 3  ;;  %p170_p2 = scmp.lt.s32.totalorder %s2644_s14, 4 }
   0x5   : > { %s3105_s15 = smov (%p27_p1, %s25_s15), 0  ;;  %p171_p3 = pnand %p2074_p0, %p170_p2 }
   0x6   : > { %v2397_v0 = vld [vmem:[%s3099_s1] sm:$0xff] (!%p171_p3)   ;;  %v2646_v1 = vmov (!%p171_p3), 0   ;;  %v2399_v3 = vld [vmem:[%s3099_s1 + $0x8] sm:$0xff] (!%p171_p3)   ;;  %v2401_v5 = vld [vmem:[%s3099_s1 + $0x10] sm:$0xff] (!%p171_p3)   ;;  %s2075_s9 = sshll.u32 (!%p171_p3), %s2636_s12, 6 }
   0x7   : > { %174 = sbr.rel (%p171_p3) target bundleno = 540 (0x21c), region = 32  ;;  %1260 = vmatprep.subr.bf16.mxu1 (!%p171_p3), %v2646_v1  ;;  %1549 = vmatprep.subr.bf16.mxu0 (!%p171_p3), %v2646_v1  ;;  %v2398_v2 = vld [vmem:[%s3099_s1 + $0x80] sm:$0xff] (!%p171_p3)   ;;  %v2400_v4 = vld [vmem:[%s3099_s1 + $0x88] sm:$0xff] (!%p171_p3)   ;;  %v2402_v6 = vld [vmem:[%s3099_s1 + $0x90] sm:$0xff] (!%p171_p3)   ;;  %p206_p4 = scmp.lt.s32.totalorder (!%p171_p3), %s2075_s9, 191 }
   0x8   : > { %1261 = vmatpush1.bf16.msra.mxu1 (!%p171_p3), %v2397_v0  ;;  %1550 = vmatpush1.bf16.msra.mxu0 (!%p171_p3), %v2398_v2  ;;  %v2403_v7 = vld [vmem:[%s3099_s1 + $0x18] sm:$0xff] (!%p171_p3)   ;;  %v2405_v9 = vld [vmem:[%s3099_s1 + $0x20] sm:$0xff] (!%p171_p3)   ;;  %v2407_v11 = vld [vmem:[%s3099_s1 + $0x28] sm:$0xff] (!%p171_p3)  }
   0x9   : > { %1262 = vmatprep.subr.bf16.mxu1 (!%p171_p3), %v2646_v1  ;;  %1551 = vmatprep.subr.bf16.mxu0 (!%p171_p3), %v2646_v1  ;;  %v2404_v8 = vld [vmem:[%s3099_s1 + $0x98] sm:$0xff] (!%p171_p3)   ;;  %v2406_v10 = vld [vmem:[%s3099_s1 + $0xa0] sm:$0xff] (!%p171_p3)   ;;  %v2408_v12 = vld [vmem:[%s3099_s1 + $0xa8] sm:$0xff] (!%p171_p3)  }
   0xa   : > { %v2409_v13 = vld [vmem:[%s3099_s1 + $0x30] sm:$0xff] (!%p171_p3)   ;;  %v2411_v15 = vld [vmem:[%s3099_s1 + $0x38] sm:$0xff] (!%p171_p3)   ;;  %v2413_v17 = vld [vmem:[%s3099_s1 + $0x40] sm:$0xff] (!%p171_p3)  }
   0xb   : > { %v2410_v14 = vld [vmem:[%s3099_s1 + $0xb0] sm:$0xff] (!%p171_p3)   ;;  %v2412_v16 = vld [vmem:[%s3099_s1 + $0xb8] sm:$0xff] (!%p171_p3)   ;;  %v2414_v18 = vld [vmem:[%s3099_s1 + $0xc0] sm:$0xff] (!%p171_p3)  }
   0xc   : > { %1263 = vmatpush1.bf16.msra.mxu1 (!%p171_p3), %v2399_v3  ;;  %1552 = vmatpush1.bf16.msra.mxu0 (!%p171_p3), %v2400_v4  ;;  %v2415_v20 = vld [vmem:[%s3099_s1 + $0x48] sm:$0xff] (!%p171_p3)   ;;  %v2417_v23 = vld [vmem:[%s3099_s1 + $0x50] sm:$0xff] (!%p171_p3)   ;;  %v2419_v25 = vld [vmem:[%s3099_s1 + $0x58] sm:$0xff] (!%p171_p3)  }
   0xd   : > { %1264 = vmatprep.subr.bf16.mxu1 (!%p171_p3), %v2646_v1  ;;  %1553 = vmatprep.subr.bf16.mxu0 (!%p171_p3), %v2646_v1  ;;  %v2416_v22 = vld [vmem:[%s3099_s1 + $0xc8] sm:$0xff] (!%p171_p3)   ;;  %v2418_v24 = vld [vmem:[%s3099_s1 + $0xd0] sm:$0xff] (!%p171_p3)   ;;  %v2420_v26 = vld [vmem:[%s3099_s1 + $0xd8] sm:$0xff] (!%p171_p3)  }
   0xe   : > { %s3107_s9 = smov (!%p206_p4, %s2075_s9), 191  ;;  %v2421_v27 = vld [vmem:[%s3099_s1 + $0x60] sm:$0xff]   ;;  %v2423_v29 = vld [vmem:[%s3099_s1 + $0x68] sm:$0xff]   ;;  %v2425_v31 = vld [vmem:[%s3099_s1 + $0x70] sm:$0xff]  }
   0xf   : > { %s2243_s25 = sshll.u32 %s3107_s9, 4  ;;  %v2422_v28 = vld [vmem:[%s3099_s1 + $0xe0] sm:$0xff]   ;;  %v2424_v30 = vld [vmem:[%s3099_s1 + $0xe8] sm:$0xff]   ;;  %v2426_v32 = vld [vmem:[%s3099_s1 + $0xf0] sm:$0xff]   ;;  %s2079_s19 = sshll.u32 %s3107_s9, 3 }
  0x10   : > { %1265 = vmatpush1.bf16.msra.mxu1 %v2401_v5  ;;  %1554 = vmatpush1.bf16.msra.mxu0 %v2402_v6  ;;  %s2761_s30 = scalar_lea.vmem %s3098_s0, %s2243_s25  ;;  %v2427_v33 = vld [vmem:[%s3099_s1 + $0x78] sm:$0xff]   ;;  %s2949_s21 = scalar_lea.vmem %s3101_s3, %s2079_s19 }
  0x11   : > { %1266 = vmatprep.subr.bf16.mxu1 %v2646_v1  ;;  %1555 = vmatprep.subr.bf16.mxu0 %v2646_v1  ;;  %v2431_v19 = vld [vmem:[%s2761_s30 + $0x4] ss:$16 sps:$4 sm:$0xff]   ;;  %v2434_v21 = vld [vmem:[%s2761_s30 + $0xc] ss:$16 sps:$4 sm:$0xff]   ;;  %v2429_v35 = vld [vmem:[%s2761_s30] ss:$16 sps:$4 sm:$0xff]  }
  0x12   : > { %1292 = vmatprep.mubr.bf16.mxu1 %v2431_v19  ;;  %1581 = vmatprep.mubr.bf16.mxu0 %v2434_v21  ;;  %v2428_v34 = vld [vmem:[%s3099_s1 + $0xf8] sm:$0xff]   ;;  %v2435_v37 = vld [vmem:[%s2761_s30 + $0x24] ss:$16 sps:$4 sm:$0xff]   ;;  %v2439_v39 = vld [vmem:[%s2761_s30 + $0x20] ss:$16 sps:$4 sm:$0xff]  }
  0x13   : > { %v2432_v36 = vld [vmem:[%s2761_s30 + $0x8] ss:$16 sps:$4 sm:$0xff]   ;;  %v2437_v38 = vld [vmem:[%s2761_s30 + $0x2c] ss:$16 sps:$4 sm:$0xff]   ;;  %v2441_v41 = vld [vmem:[%s2761_s30 + $0x44] ss:$16 sps:$4 sm:$0xff]  }
  0x14   : > { %1267 = vmatpush1.bf16.msra.mxu1 %v2403_v7  ;;  %1556 = vmatpush1.bf16.msra.mxu0 %v2404_v8  ;;  %v2440_v40 = vld [vmem:[%s2761_s30 + $0x28] ss:$16 sps:$4 sm:$0xff]   ;;  %v2443_v42 = vld [vmem:[%s2761_s30 + $0x4c] ss:$16 sps:$4 sm:$0xff]   ;;  %v2445_v43 = vld [vmem:[%s2761_s30 + $0x40] ss:$16 sps:$4 sm:$0xff]  }
  0x15   : > { %1268 = vmatprep.subr.bf16.mxu1 %v2646_v1  ;;  %1557 = vmatprep.subr.bf16.mxu0 %v2646_v1  ;;  %v2446_v44 = vld [vmem:[%s2761_s30 + $0x48] ss:$16 sps:$4 sm:$0xff]   ;;  %v2447_v45 = vld [vmem:[%s2761_s30 + $0x64] ss:$16 sps:$4 sm:$0xff]   ;;  %v2449_v46 = vld [vmem:[%s2761_s30 + $0x6c] ss:$16 sps:$4 sm:$0xff]  }
  0x16   : > { %v2451_v47 = vld [vmem:[%s2761_s30 + $0x60] ss:$16 sps:$4 sm:$0xff]   ;;  %v2452_v48 = vld [vmem:[%s2761_s30 + $0x68] ss:$16 sps:$4 sm:$0xff]   ;;  %v2453_v49 = vld [vmem:[%s2761_s30 + $0x84] ss:$16 sps:$4 sm:$0xff]  }
  0x17   : > { %v2455_v50 = vld [vmem:[%s2761_s30 + $0x8c] ss:$16 sps:$4 sm:$0xff]   ;;  %v2457_v51 = vld [vmem:[%s2761_s30 + $0x80] ss:$16 sps:$4 sm:$0xff]   ;;  %v2458_v52 = vld [vmem:[%s2761_s30 + $0x88] ss:$16 sps:$4 sm:$0xff]  }
  0x18   : > { %1269 = vmatpush1.bf16.msra.mxu1 %v2405_v9  ;;  %1558 = vmatpush1.bf16.msra.mxu0 %v2406_v10  ;;  %v2459_v53 = vld [vmem:[%s2761_s30 + $0xa4] ss:$16 sps:$4 sm:$0xff]   ;;  %v2461_v54 = vld [vmem:[%s2761_s30 + $0xac] ss:$16 sps:$4 sm:$0xff]   ;;  %v2463_v55 = vld [vmem:[%s2761_s30 + $0xa0] ss:$16 sps:$4 sm:$0xff]  }
  0x19   : > { %1270 = vmatprep.subr.bf16.mxu1 %v2646_v1  ;;  %1559 = vmatprep.subr.bf16.mxu0 %v2646_v1  ;;  %v2464_v56 = vld [vmem:[%s2761_s30 + $0xa8] ss:$16 sps:$4 sm:$0xff]   ;;  %v2465_v57 = vld [vmem:[%s2761_s30 + $0xc4] ss:$16 sps:$4 sm:$0xff]   ;;  %v2467_v58 = vld [vmem:[%s2761_s30 + $0xcc] ss:$16 sps:$4 sm:$0xff]  }
  0x1a   : > { %v2469_v59 = vld [vmem:[%s2761_s30 + $0xc0] ss:$16 sps:$4 sm:$0xff]   ;;  %v2470_v60 = vld [vmem:[%s2761_s30 + $0xc8] ss:$16 sps:$4 sm:$0xff]   ;;  %v2471_v61 = vld [vmem:[%s2761_s30 + $0xe4] ss:$16 sps:$4 sm:$0xff]  }
  0x1b   : > { %v2473_v62 = vld [vmem:[%s2761_s30 + $0xec] ss:$16 sps:$4 sm:$0xff]   ;;  %v2475_v63 = vld [vmem:[%s2761_s30 + $0xe0] ss:$16 sps:$4 sm:$0xff]   ;;  %v2476_v0 = vld [vmem:[%s2761_s30 + $0xe8] ss:$16 sps:$4 sm:$0xff]  }
  0x1c   : > { %1271 = vmatpush1.bf16.msra.mxu1 %v2407_v11  ;;  %1560 = vmatpush1.bf16.msra.mxu0 %v2408_v12  ;;  %v2479_v2 = vld [vmem:[%s2761_s30 + $0x10c] ss:$16 sps:$4 sm:$0xff]   ;;  %v2481_v3 = vld [vmem:[%s2761_s30 + $0x100] ss:$16 sps:$4 sm:$0xff]   ;;  %v2482_v4 = vld [vmem:[%s2761_s30 + $0x108] ss:$16 sps:$4 sm:$0xff]  }
  0x1d   : > { %1272 = vmatprep.subr.bf16.mxu1 %v2646_v1  ;;  %1561 = vmatprep.subr.bf16.mxu0 %v2646_v1  ;;  %v2483_v5 = vld [vmem:[%s2761_s30 + $0x124] ss:$16 sps:$4 sm:$0xff]   ;;  %v2485_v6 = vld [vmem:[%s2761_s30 + $0x12c] ss:$16 sps:$4 sm:$0xff]   ;;  %v2487_v7 = vld [vmem:[%s2761_s30 + $0x120] ss:$16 sps:$4 sm:$0xff]  }
  0x1e   : > { %v2488_v8 = vld [vmem:[%s2761_s30 + $0x128] ss:$16 sps:$4 sm:$0xff]   ;;  %v2489_v9 = vld [vmem:[%s2761_s30 + $0x144] ss:$16 sps:$4 sm:$0xff]   ;;  %v2491_v10 = vld [vmem:[%s2761_s30 + $0x14c] ss:$16 sps:$4 sm:$0xff]  }
  0x1f   : > { %v2493_v11 = vld [vmem:[%s2761_s30 + $0x140] ss:$16 sps:$4 sm:$0xff]   ;;  %v2494_v12 = vld [vmem:[%s2761_s30 + $0x148] ss:$16 sps:$4 sm:$0xff]   ;;  %v2507_v21 = vld [vmem:[%s2761_s30 + $0x1a4] ss:$16 sps:$4 sm:$0xff]  }
  0x20   : > { %1273 = vmatpush1.bf16.msra.mxu1 %v2409_v13  ;;  %1562 = vmatpush1.bf16.msra.mxu0 %v2410_v14  ;;  %v2495_v13 = vld [vmem:[%s2761_s30 + $0x164] ss:$16 sps:$4 sm:$0xff]   ;;  %v2497_v14 = vld [vmem:[%s2761_s30 + $0x16c] ss:$16 sps:$4 sm:$0xff]   ;;  %v2505_v19 = vld [vmem:[%s2761_s30 + $0x180] ss:$16 sps:$4 sm:$0xff]  }
  0x21   : > { %1274 = vmatprep.subr.bf16.mxu1 %v2646_v1  ;;  %1563 = vmatprep.subr.bf16.mxu0 %v2646_v1 }
  0x24   : > { %1275 = vmatpush1.bf16.msra.mxu1 %v2411_v15  ;;  %1564 = vmatpush1.bf16.msra.mxu0 %v2412_v16  ;;  %v2499_v15 = vld [vmem:[%s2761_s30 + $0x160] ss:$16 sps:$4 sm:$0xff]   ;;  %v2500_v16 = vld [vmem:[%s2761_s30 + $0x168] ss:$16 sps:$4 sm:$0xff]  }
  0x25   : > { %1276 = vmatprep.subr.bf16.mxu1 %v2646_v1  ;;  %1565 = vmatprep.subr.bf16.mxu0 %v2646_v1 }
  0x28   : > { %1277 = vmatpush1.bf16.msra.mxu1 %v2413_v17  ;;  %1566 = vmatpush1.bf16.msra.mxu0 %v2414_v18  ;;  %v2501_v17 = vld [vmem:[%s2761_s30 + $0x184] ss:$16 sps:$4 sm:$0xff]   ;;  %v2503_v18 = vld [vmem:[%s2761_s30 + $0x18c] ss:$16 sps:$4 sm:$0xff]  }
  0x29   : > { %1278 = vmatprep.subr.bf16.mxu1 %v2646_v1  ;;  %1567 = vmatprep.subr.bf16.mxu0 %v2646_v1 }
  0x2c   : > { %1279 = vmatpush1.bf16.msra.mxu1 %v2415_v20  ;;  %1568 = vmatpush1.bf16.msra.mxu0 %v2416_v22  ;;  %v2506_v20 = vld [vmem:[%s2761_s30 + $0x188] ss:$16 sps:$4 sm:$0xff]   ;;  %v2509_v22 = vld [vmem:[%s2761_s30 + $0x1ac] ss:$16 sps:$4 sm:$0xff]  }
  0x2d   : > { %1280 = vmatprep.subr.bf16.mxu1 %v2646_v1  ;;  %1569 = vmatprep.subr.bf16.mxu0 %v2646_v1 }
  0x30   : > { %1281 = vmatpush1.bf16.msra.mxu1 %v2417_v23  ;;  %1570 = vmatpush1.bf16.msra.mxu0 %v2418_v24  ;;  %v2511_v23 = vld [vmem:[%s2761_s30 + $0x1a0] ss:$16 sps:$4 sm:$0xff]   ;;  %v2512_v24 = vld [vmem:[%s2761_s30 + $0x1a8] ss:$16 sps:$4 sm:$0xff]  }
  0x31   : > { %1282 = vmatprep.subr.bf16.mxu1 %v2646_v1  ;;  %1571 = vmatprep.subr.bf16.mxu0 %v2646_v1 }
  0x34   : > { %1283 = vmatpush1.bf16.msra.mxu1 %v2419_v25  ;;  %1572 = vmatpush1.bf16.msra.mxu0 %v2420_v26  ;;  %v2513_v25 = vld [vmem:[%s2761_s30 + $0x1c4] ss:$16 sps:$4 sm:$0xff]   ;;  %v2515_v26 = vld [vmem:[%s2761_s30 + $0x1cc] ss:$16 sps:$4 sm:$0xff]  }
  0x35   : > { %1284 = vmatprep.subr.bf16.mxu1 %v2646_v1  ;;  %1573 = vmatprep.subr.bf16.mxu0 %v2646_v1 }
  0x38   : > { %1285 = vmatpush1.bf16.msra.mxu1 %v2421_v27  ;;  %1574 = vmatpush1.bf16.msra.mxu0 %v2422_v28  ;;  %v2517_v27 = vld [vmem:[%s2761_s30 + $0x1c0] ss:$16 sps:$4 sm:$0xff]   ;;  %v2518_v28 = vld [vmem:[%s2761_s30 + $0x1c8] ss:$16 sps:$4 sm:$0xff]  }
  0x39   : > { %1286 = vmatprep.subr.bf16.mxu1 %v2646_v1  ;;  %1575 = vmatprep.subr.bf16.mxu0 %v2646_v1 }
  0x3c   : > { %1287 = vmatpush1.bf16.msra.mxu1 %v2423_v29  ;;  %1576 = vmatpush1.bf16.msra.mxu0 %v2424_v30  ;;  %v2519_v29 = vld [vmem:[%s2761_s30 + $0x1e4] ss:$16 sps:$4 sm:$0xff]   ;;  %v2521_v30 = vld [vmem:[%s2761_s30 + $0x1ec] ss:$16 sps:$4 sm:$0xff]  }
  0x3d   : > { %1288 = vmatprep.subr.bf16.mxu1 %v2646_v1  ;;  %1577 = vmatprep.subr.bf16.mxu0 %v2646_v1 }
  0x40   : > { %1289 = vmatpush1.bf16.msra.mxu1 %v2425_v31  ;;  %1578 = vmatpush1.bf16.msra.mxu0 %v2426_v32  ;;  %v2523_v31 = vld [vmem:[%s2761_s30 + $0x1e0] ss:$16 sps:$4 sm:$0xff]   ;;  %v2524_v32 = vld [vmem:[%s2761_s30 + $0x1e8] ss:$16 sps:$4 sm:$0xff]  }
  0x41   : > { %1290 = vmatprep.subr.bf16.mxu1 %v2646_v1  ;;  %1579 = vmatprep.subr.bf16.mxu0 %v2646_v1  ;;  %v2477_v1 = vld [vmem:[%s2761_s30 + $0x104] ss:$16 sps:$4 sm:$0xff]  }
  0x44   : > { %1291 = vmatpush1.bf16.msra.mxu1 %v2427_v33  ;;  %1580 = vmatpush1.bf16.msra.mxu0 %v2428_v34  ;;  %v2525_v33 = vld [vmem:[%s2761_s30 + $0x204] ss:$16 sps:$4 sm:$0xff]   ;;  %v2527_v34 = vld [vmem:[%s2761_s30 + $0x20c] ss:$16 sps:$4 sm:$0xff]  }
  0x47   : > { %1293 = vmatmul.mubr.bf16.vlgmr.msra.gmra.mrb[0].mxu1 %v2429_v35  ;;  %1582 = vmatmul.mubr.bf16.vlgmr.msra.gmra.mrb[0].mxu0 %v2432_v36  ;;  %v2529_v35 = vld [vmem:[%s2761_s30 + $0x200] ss:$16 sps:$4 sm:$0xff]   ;;  %v2530_v36 = vld [vmem:[%s2761_s30 + $0x208] ss:$16 sps:$4 sm:$0xff]  }
  0x48   : > { %1300 = vmatprep.mubr.bf16.mxu1 %v2435_v37  ;;  %1589 = vmatprep.mubr.bf16.mxu0 %v2437_v38  ;;  %v2531_v37 = vld [vmem:[%s2761_s30 + $0x224] ss:$16 sps:$4 sm:$0xff]   ;;  %v2533_v38 = vld [vmem:[%s2761_s30 + $0x22c] ss:$16 sps:$4 sm:$0xff]  }
  0x4f   : > { %1301 = vmatmul.mubr.bf16.gmra.mrb[4].mxu1 %v2439_v39  ;;  %1590 = vmatmul.mubr.bf16.gmra.mrb[4].mxu0 %v2440_v40  ;;  %v2535_v39 = vld [vmem:[%s2761_s30 + $0x220] ss:$16 sps:$4 sm:$0xff]   ;;  %v2536_v40 = vld [vmem:[%s2761_s30 + $0x228] ss:$16 sps:$4 sm:$0xff]  }
  0x50   : > { %1308 = vmatprep.mubr.bf16.mxu1 %v2441_v41  ;;  %1597 = vmatprep.mubr.bf16.mxu0 %v2443_v42  ;;  %v2537_v41 = vld [vmem:[%s2761_s30 + $0x244] ss:$16 sps:$4 sm:$0xff]   ;;  %v2539_v42 = vld [vmem:[%s2761_s30 + $0x24c] ss:$16 sps:$4 sm:$0xff]  }
  0x57   : > { %1309 = vmatmul.mubr.bf16.gmra.mrb[8].mxu1 %v2445_v43  ;;  %1598 = vmatmul.mubr.bf16.gmra.mrb[8].mxu0 %v2446_v44  ;;  %v2541_v43 = vld [vmem:[%s2761_s30 + $0x240] ss:$16 sps:$4 sm:$0xff]   ;;  %v2542_v44 = vld [vmem:[%s2761_s30 + $0x248] ss:$16 sps:$4 sm:$0xff]  }
  0x58   : > { %1316 = vmatprep.mubr.bf16.mxu1 %v2447_v45  ;;  %1605 = vmatprep.mubr.bf16.mxu0 %v2449_v46  ;;  %v2543_v45 = vld [vmem:[%s2761_s30 + $0x264] ss:$16 sps:$4 sm:$0xff]   ;;  %v2545_v46 = vld [vmem:[%s2761_s30 + $0x26c] ss:$16 sps:$4 sm:$0xff]  }
  0x5f   : > { %1317 = vmatmul.mubr.bf16.gmra.mrb[12].mxu1 %v2451_v47  ;;  %1606 = vmatmul.mubr.bf16.gmra.mrb[12].mxu0 %v2452_v48  ;;  %v2547_v47 = vld [vmem:[%s2761_s30 + $0x260] ss:$16 sps:$4 sm:$0xff]   ;;  %v2548_v48 = vld [vmem:[%s2761_s30 + $0x268] ss:$16 sps:$4 sm:$0xff]  }
  0x60   : > { %1324 = vmatprep.mubr.bf16.mxu1 %v2453_v49  ;;  %1613 = vmatprep.mubr.bf16.mxu0 %v2455_v50  ;;  %v2549_v49 = vld [vmem:[%s2761_s30 + $0x284] ss:$16 sps:$4 sm:$0xff]   ;;  %v2551_v50 = vld [vmem:[%s2761_s30 + $0x28c] ss:$16 sps:$4 sm:$0xff]  }
  0x67   : > { %1325 = vmatmul.mubr.bf16.gmra.mrb[16].mxu1 %v2457_v51  ;;  %1614 = vmatmul.mubr.bf16.gmra.mrb[16].mxu0 %v2458_v52  ;;  %v2553_v51 = vld [vmem:[%s2761_s30 + $0x280] ss:$16 sps:$4 sm:$0xff]   ;;  %v2554_v52 = vld [vmem:[%s2761_s30 + $0x288] ss:$16 sps:$4 sm:$0xff]  }
  0x68   : > { %1332 = vmatprep.mubr.bf16.mxu1 %v2459_v53  ;;  %1621 = vmatprep.mubr.bf16.mxu0 %v2461_v54  ;;  %v2555_v53 = vld [vmem:[%s2761_s30 + $0x2a4] ss:$16 sps:$4 sm:$0xff]   ;;  %v2557_v54 = vld [vmem:[%s2761_s30 + $0x2ac] ss:$16 sps:$4 sm:$0xff]  }
  0x6f   : > { %1333 = vmatmul.mubr.bf16.gmra.mrb[20].mxu1 %v2463_v55  ;;  %1622 = vmatmul.mubr.bf16.gmra.mrb[20].mxu0 %v2464_v56  ;;  %v2559_v55 = vld [vmem:[%s2761_s30 + $0x2a0] ss:$16 sps:$4 sm:$0xff]   ;;  %v2560_v56 = vld [vmem:[%s2761_s30 + $0x2a8] ss:$16 sps:$4 sm:$0xff]  }
  0x70   : > { %1340 = vmatprep.mubr.bf16.mxu1 %v2465_v57  ;;  %1629 = vmatprep.mubr.bf16.mxu0 %v2467_v58  ;;  %v2561_v57 = vld [vmem:[%s2761_s30 + $0x2c4] ss:$16 sps:$4 sm:$0xff]   ;;  %v2563_v58 = vld [vmem:[%s2761_s30 + $0x2cc] ss:$16 sps:$4 sm:$0xff]  }
  0x77   : > { %1341 = vmatmul.mubr.bf16.gmra.mrb[24].mxu1 %v2469_v59  ;;  %1630 = vmatmul.mubr.bf16.gmra.mrb[24].mxu0 %v2470_v60  ;;  %v2565_v59 = vld [vmem:[%s2761_s30 + $0x2c0] ss:$16 sps:$4 sm:$0xff]   ;;  %v2566_v60 = vld [vmem:[%s2761_s30 + $0x2c8] ss:$16 sps:$4 sm:$0xff]  }
  0x78   : > { %1348 = vmatprep.mubr.bf16.mxu1 %v2471_v61  ;;  %1637 = vmatprep.mubr.bf16.mxu0 %v2473_v62  ;;  %v2567_v61 = vld [vmem:[%s2761_s30 + $0x2e4] ss:$16 sps:$4 sm:$0xff]   ;;  %v2569_v62 = vld [vmem:[%s2761_s30 + $0x2ec] ss:$16 sps:$4 sm:$0xff]  }
  0x7f   : > { %1349 = vmatmul.mubr.bf16.gmra.mrb[28].mxu1 %v2475_v63  ;;  %1638 = vmatmul.mubr.bf16.gmra.mrb[28].mxu0 %v2476_v0  ;;  %v2571_v63 = vld [vmem:[%s2761_s30 + $0x2e0] ss:$16 sps:$4 sm:$0xff]   ;;  %v2572_v0 = vld [vmem:[%s2761_s30 + $0x2e8] ss:$16 sps:$4 sm:$0xff]  }
  0x80   : > { %1356 = vmatprep.mubr.bf16.mxu1 %v2477_v1  ;;  %1645 = vmatprep.mubr.bf16.mxu0 %v2479_v2  ;;  %v2573_v1 = vld [vmem:[%s2761_s30 + $0x304] ss:$16 sps:$4 sm:$0xff]   ;;  %v2575_v2 = vld [vmem:[%s2761_s30 + $0x30c] ss:$16 sps:$4 sm:$0xff]  }
  0x87   : > { %1357 = vmatmul.mubr.bf16.gmra.mrb[32].mxu1 %v2481_v3  ;;  %1646 = vmatmul.mubr.bf16.gmra.mrb[32].mxu0 %v2482_v4  ;;  %v2577_v3 = vld [vmem:[%s2761_s30 + $0x300] ss:$16 sps:$4 sm:$0xff]   ;;  %v2578_v4 = vld [vmem:[%s2761_s30 + $0x308] ss:$16 sps:$4 sm:$0xff]  }
  0x88   : > { %1364 = vmatprep.mubr.bf16.mxu1 %v2483_v5  ;;  %1653 = vmatprep.mubr.bf16.mxu0 %v2485_v6  ;;  %v2579_v5 = vld [vmem:[%s2761_s30 + $0x324] ss:$16 sps:$4 sm:$0xff]   ;;  %v2581_v6 = vld [vmem:[%s2761_s30 + $0x32c] ss:$16 sps:$4 sm:$0xff]  }
  0x8f   : > { %1365 = vmatmul.mubr.bf16.gmra.mrb[36].mxu1 %v2487_v7  ;;  %1654 = vmatmul.mubr.bf16.gmra.mrb[36].mxu0 %v2488_v8  ;;  %v2583_v7 = vld [vmem:[%s2761_s30 + $0x320] ss:$16 sps:$4 sm:$0xff]   ;;  %v2584_v8 = vld [vmem:[%s2761_s30 + $0x328] ss:$16 sps:$4 sm:$0xff]  }
  0x90   : > { %1372 = vmatprep.mubr.bf16.mxu1 %v2489_v9  ;;  %1661 = vmatprep.mubr.bf16.mxu0 %v2491_v10  ;;  %v2585_v9 = vld [vmem:[%s2761_s30 + $0x344] ss:$16 sps:$4 sm:$0xff]   ;;  %v2587_v10 = vld [vmem:[%s2761_s30 + $0x34c] ss:$16 sps:$4 sm:$0xff]  }
  0x97   : > { %1373 = vmatmul.mubr.bf16.gmra.mrb[40].mxu1 %v2493_v11  ;;  %1662 = vmatmul.mubr.bf16.gmra.mrb[40].mxu0 %v2494_v12  ;;  %v2589_v11 = vld [vmem:[%s2761_s30 + $0x340] ss:$16 sps:$4 sm:$0xff]   ;;  %v2590_v12 = vld [vmem:[%s2761_s30 + $0x348] ss:$16 sps:$4 sm:$0xff]  }
  0x98   : > { %1380 = vmatprep.mubr.bf16.mxu1 %v2495_v13  ;;  %1669 = vmatprep.mubr.bf16.mxu0 %v2497_v14  ;;  %v2591_v13 = vld [vmem:[%s2761_s30 + $0x364] ss:$16 sps:$4 sm:$0xff]   ;;  %v2593_v14 = vld [vmem:[%s2761_s30 + $0x36c] ss:$16 sps:$4 sm:$0xff]  }
  0x9f   : > { %1381 = vmatmul.mubr.bf16.gmra.mrb[44].mxu1 %v2499_v15  ;;  %1670 = vmatmul.mubr.bf16.gmra.mrb[44].mxu0 %v2500_v16  ;;  %v2937_v15 = vld [vmem:[%s3100_s2] ss:$0 sm:$0xff] }
  0xa0   : > { %1388 = vmatprep.mubr.bf16.mxu1 %v2501_v17  ;;  %1677 = vmatprep.mubr.bf16.mxu0 %v2503_v18 }
  0xa7   : > { %1389 = vmatmul.mubr.bf16.gmra.mrb[48].mxu1 %v2505_v19  ;;  %1678 = vmatmul.mubr.bf16.gmra.mrb[48].mxu0 %v2506_v20  ;;  %v2595_v20 = vld [vmem:[%s2761_s30 + $0x360] ss:$16 sps:$4 sm:$0xff]  }
  0xa8   : > { %1396 = vmatprep.mubr.bf16.mxu1 %v2507_v21  ;;  %1685 = vmatprep.mubr.bf16.mxu0 %v2509_v22 }
  0xaf   : > { %1397 = vmatmul.mubr.bf16.gmra.mrb[52].mxu1 %v2511_v23  ;;  %1686 = vmatmul.mubr.bf16.gmra.mrb[52].mxu0 %v2512_v24  ;;  %v2596_v23 = vld [vmem:[%s2761_s30 + $0x368] ss:$16 sps:$4 sm:$0xff]   ;;  %v2597_v24 = vld [vmem:[%s2761_s30 + $0x384] ss:$16 sps:$4 sm:$0xff]  }
  0xb0   : > { %1404 = vmatprep.mubr.bf16.mxu1 %v2513_v25  ;;  %1693 = vmatprep.mubr.bf16.mxu0 %v2515_v26 }
  0xb7   : > { %1405 = vmatmul.mubr.bf16.gmra.mrb[56].mxu1 %v2517_v27  ;;  %1694 = vmatmul.mubr.bf16.gmra.mrb[56].mxu0 %v2518_v28 }
  0xb8   : > { %1412 = vmatprep.mubr.bf16.mxu1 %v2519_v29  ;;  %1701 = vmatprep.mubr.bf16.mxu0 %v2521_v30  ;;  %v2599_v29 = vld [vmem:[%s2761_s30 + $0x38c] ss:$16 sps:$4 sm:$0xff]  }
  0xbf   : > { %1413 = vmatmul.mubr.bf16.gmra.mrb[60].mxu1 %v2523_v31  ;;  %1702 = vmatmul.mubr.bf16.gmra.mrb[60].mxu0 %v2524_v32 }
  0xc0   : > { %1420 = vmatprep.mubr.bf16.mxu1 %v2525_v33  ;;  %1709 = vmatprep.mubr.bf16.mxu0 %v2527_v34 }
  0xc7   : > { %1421 = vmatmul.mubr.bf16.gmra.mrb[64].mxu1 %v2529_v35  ;;  %1710 = vmatmul.mubr.bf16.gmra.mrb[64].mxu0 %v2530_v36 }
  0xc8   : > { %1428 = vmatprep.mubr.bf16.mxu1 %v2531_v37  ;;  %1717 = vmatprep.mubr.bf16.mxu0 %v2533_v38  ;;  %v2601_v38 = vld [vmem:[%s2761_s30 + $0x380] ss:$16 sps:$4 sm:$0xff]  }
  0xcf   : > { %1429 = vmatmul.mubr.bf16.gmra.mrb[68].mxu1 %v2535_v39  ;;  %1718 = vmatmul.mubr.bf16.gmra.mrb[68].mxu0 %v2536_v40 }
  0xd0   : > { %1436 = vmatprep.mubr.bf16.mxu1 %v2537_v41  ;;  %1725 = vmatprep.mubr.bf16.mxu0 %v2539_v42  ;;  %v2602_v41 = vld [vmem:[%s2761_s30 + $0x388] ss:$16 sps:$4 sm:$0xff]   ;;  %v2603_v42 = vld [vmem:[%s2761_s30 + $0x3a4] ss:$16 sps:$4 sm:$0xff]  }
  0xd7   : > { %1437 = vmatmul.mubr.bf16.gmra.mrb[72].mxu1 %v2541_v43  ;;  %1726 = vmatmul.mubr.bf16.gmra.mrb[72].mxu0 %v2542_v44 }
  0xd8   : > { %1444 = vmatprep.mubr.bf16.mxu1 %v2543_v45  ;;  %1733 = vmatprep.mubr.bf16.mxu0 %v2545_v46 }
  0xdf   : > { %1445 = vmatmul.mubr.bf16.gmra.mrb[76].mxu1 %v2547_v47  ;;  %1734 = vmatmul.mubr.bf16.gmra.mrb[76].mxu0 %v2548_v48  ;;  %v2605_v47 = vld [vmem:[%s2761_s30 + $0x3ac] ss:$16 sps:$4 sm:$0xff]  }
  0xe0   : > { %1452 = vmatprep.mubr.bf16.mxu1 %v2549_v49  ;;  %1741 = vmatprep.mubr.bf16.mxu0 %v2551_v50 }
  0xe7   : > { %1453 = vmatmul.mubr.bf16.gmra.mrb[80].mxu1 %v2553_v51  ;;  %1742 = vmatmul.mubr.bf16.gmra.mrb[80].mxu0 %v2554_v52 }
  0xe8   : > { %1460 = vmatprep.mubr.bf16.mxu1 %v2555_v53  ;;  %1749 = vmatprep.mubr.bf16.mxu0 %v2557_v54 }
  0xef   : > { %1461 = vmatmul.mubr.bf16.gmra.mrb[84].mxu1 %v2559_v55  ;;  %1750 = vmatmul.mubr.bf16.gmra.mrb[84].mxu0 %v2560_v56  ;;  %v2607_v56 = vld [vmem:[%s2761_s30 + $0x3a0] ss:$16 sps:$4 sm:$0xff]  }
  0xf0   : > { %1468 = vmatprep.mubr.bf16.mxu1 %v2561_v57  ;;  %1757 = vmatprep.mubr.bf16.mxu0 %v2563_v58 }
  0xf7   : > { %1469 = vmatmul.mubr.bf16.gmra.mrb[88].mxu1 %v2565_v59  ;;  %1758 = vmatmul.mubr.bf16.gmra.mrb[88].mxu0 %v2566_v60  ;;  %v2608_v59 = vld [vmem:[%s2761_s30 + $0x3a8] ss:$16 sps:$4 sm:$0xff]   ;;  %v2609_v60 = vld [vmem:[%s2761_s30 + $0x3c4] ss:$16 sps:$4 sm:$0xff]  }
  0xf8   : > { %1476 = vmatprep.mubr.bf16.mxu1 %v2567_v61  ;;  %1765 = vmatprep.mubr.bf16.mxu0 %v2569_v62 }
  0xff   : > { %1477 = vmatmul.mubr.bf16.gmra.mrb[92].mxu1 %v2571_v63  ;;  %1766 = vmatmul.mubr.bf16.gmra.mrb[92].mxu0 %v2572_v0 }
 0x100   : > { %1484 = vmatprep.mubr.bf16.mxu1 %v2573_v1  ;;  %1773 = vmatprep.mubr.bf16.mxu0 %v2575_v2  ;;  %v2611_v1 = vld [vmem:[%s2761_s30 + $0x3cc] ss:$16 sps:$4 sm:$0xff]  }
 0x107   : > { %1485 = vmatmul.mubr.bf16.gmra.mrb[96].mxu1 %v2577_v3  ;;  %1774 = vmatmul.mubr.bf16.gmra.mrb[96].mxu0 %v2578_v4 }
 0x108   : > { %1492 = vmatprep.mubr.bf16.mxu1 %v2579_v5  ;;  %1781 = vmatprep.mubr.bf16.mxu0 %v2581_v6 }
 0x10f   : > { %1493 = vmatmul.mubr.bf16.gmra.mrb[100].mxu1 %v2583_v7  ;;  %1782 = vmatmul.mubr.bf16.gmra.mrb[100].mxu0 %v2584_v8 }
 0x110   : > { %1500 = vmatprep.mubr.bf16.mxu1 %v2585_v9  ;;  %1789 = vmatprep.mubr.bf16.mxu0 %v2587_v10  ;;  %v2613_v10 = vld [vmem:[%s2761_s30 + $0x3c0] ss:$16 sps:$4 sm:$0xff]  }
 0x117   : > { %1501 = vmatmul.mubr.bf16.gmra.mrb[104].mxu1 %v2589_v11  ;;  %1790 = vmatmul.mubr.bf16.gmra.mrb[104].mxu0 %v2590_v12 }
 0x118   : > { %1508 = vmatprep.mubr.bf16.mxu1 %v2591_v13  ;;  %1797 = vmatprep.mubr.bf16.mxu0 %v2593_v14  ;;  %v2614_v13 = vld [vmem:[%s2761_s30 + $0x3c8] ss:$16 sps:$4 sm:$0xff]   ;;  %v2615_v14 = vld [vmem:[%s2761_s30 + $0x3e4] ss:$16 sps:$4 sm:$0xff]  }
 0x11a   : > { %v1294_v16 = vpop.f32.mrb[0].mxu1  ;;  %v1583_v18 = vpop.f32.mrb[0].mxu0 }
 0x11b   : > { %v1295_v17 = vadd.f32 %v2937_v15, %v1294_v16  ;;  %v1296_v19 = vpop.f32.mrb[1].mxu1  ;;  %v1585_v21 = vpop.f32.mrb[1].mxu0 }
 0x11c   : > { %v1297_v22 = vpop.f32.mrb[2].mxu1  ;;  %v1586_v27 = vpop.f32.mrb[2].mxu0 }
 0x11d   : > { %v1584_v25 = vadd.f32 %v1583_v18, %v1295_v17  ;;  %v1298_v26 = vadd.f32 %v2937_v15, %v1297_v22  ;;  %v1299_v28 = vpop.f32.mrb[3].mxu1  ;;  %v1588_v30 = vpop.f32.mrb[3].mxu0 }
 0x11f   : > { %v1838_v31 = vmax.f32 %v1584_v25, 0.0  ;;  %v1587_v32 = vadd.f32 %v1586_v27, %v1298_v26  ;;  %1509 = vmatmul.mubr.bf16.gmra.mrb[108].mxu1 %v2595_v20  ;;  %1798 = vmatmul.mubr.bf16.gmra.mrb[108].mxu0 %v2596_v23  ;;  %v2617_v20 = vld [vmem:[%s2761_s30 + $0x3ec] ss:$16 sps:$4 sm:$0xff]  }
 0x120   : > { %1516 = vmatprep.mubr.bf16.mxu1 %v2597_v24  ;;  %1805 = vmatprep.mubr.bf16.mxu0 %v2599_v29  ;;  %v2619_v29 = vld [vmem:[%s2761_s30 + $0x3e0] ss:$16 sps:$4 sm:$0xff]  }
 0x121   : > { %1902 = vst [vmem:[%s2949_s21] sm:$0xff] %v1838_v31  ;;  %v1839_v33 = vmax.f32 %v1587_v32, 0.0  ;;  %v2620_v32 = vld [vmem:[%s2761_s30 + $0x3e8] ss:$16 sps:$4 sm:$0xff]  }
 0x122   : > { %v1302_v34 = vpop.f32.mrb[4].mxu1  ;;  %v1591_v36 = vpop.f32.mrb[4].mxu0 }
 0x123   : > { %1903 = vst [vmem:[%s2949_s21 + $0x8] sm:$0xff] %v1839_v33  ;;  %v1303_v35 = vadd.f32 %v2937_v15, %v1302_v34  ;;  %v1304_v37 = vpop.f32.mrb[5].mxu1  ;;  %v1593_v39 = vpop.f32.mrb[5].mxu0 }
 0x124   : > { %v1305_v40 = vpop.f32.mrb[6].mxu1  ;;  %v1594_v45 = vpop.f32.mrb[6].mxu0 }
 0x125   : > { %v1592_v43 = vadd.f32 %v1591_v36, %v1303_v35  ;;  %v1306_v44 = vadd.f32 %v2937_v15, %v1305_v40  ;;  %v1307_v46 = vpop.f32.mrb[7].mxu1  ;;  %v1596_v48 = vpop.f32.mrb[7].mxu0 }
 0x127   : > { %v1840_v49 = vmax.f32 %v1592_v43, 0.0  ;;  %v1595_v50 = vadd.f32 %v1594_v45, %v1306_v44  ;;  %1517 = vmatmul.mubr.bf16.gmra.mrb[112].mxu1 %v2601_v38  ;;  %1806 = vmatmul.mubr.bf16.gmra.mrb[112].mxu0 %v2602_v41 }
 0x128   : > { %1524 = vmatprep.mubr.bf16.mxu1 %v2603_v42  ;;  %1813 = vmatprep.mubr.bf16.mxu0 %v2605_v47 }
 0x129   : > { %1904 = vst [vmem:[%s2949_s21 + $0x10] sm:$0xff] %v1840_v49  ;;  %v1841_v51 = vmax.f32 %v1595_v50, 0.0 }
 0x12a   : > { %v1310_v52 = vpop.f32.mrb[8].mxu1  ;;  %v1599_v54 = vpop.f32.mrb[8].mxu0 }
 0x12b   : > { %1905 = vst [vmem:[%s2949_s21 + $0x18] sm:$0xff] %v1841_v51  ;;  %v1311_v53 = vadd.f32 %v2937_v15, %v1310_v52  ;;  %v1312_v55 = vpop.f32.mrb[9].mxu1  ;;  %v1601_v57 = vpop.f32.mrb[9].mxu0 }
 0x12c   : > { %v1313_v58 = vpop.f32.mrb[10].mxu1  ;;  %v1602_v63 = vpop.f32.mrb[10].mxu0 }
 0x12d   : > { %v1600_v61 = vadd.f32 %v1599_v54, %v1311_v53  ;;  %v1314_v62 = vadd.f32 %v2937_v15, %v1313_v58  ;;  %v1315_v0 = vpop.f32.mrb[11].mxu1  ;;  %v1604_v2 = vpop.f32.mrb[11].mxu0 }
 0x12f   : > { %v1842_v3 = vmax.f32 %v1600_v61, 0.0  ;;  %v1603_v4 = vadd.f32 %v1602_v63, %v1314_v62  ;;  %1525 = vmatmul.mubr.bf16.gmra.mrb[116].mxu1 %v2607_v56  ;;  %1814 = vmatmul.mubr.bf16.gmra.mrb[116].mxu0 %v2608_v59 }
 0x130   : > { %1532 = vmatprep.mubr.bf16.mxu1 %v2609_v60  ;;  %1821 = vmatprep.mubr.bf16.mxu0 %v2611_v1 }
 0x131   : > { %1906 = vst [vmem:[%s2949_s21 + $0x20] sm:$0xff] %v1842_v3  ;;  %v1843_v5 = vmax.f32 %v1603_v4, 0.0 }
 0x132   : > { %v1318_v6 = vpop.f32.mrb[12].mxu1  ;;  %v1607_v8 = vpop.f32.mrb[12].mxu0 }
 0x133   : > { %1907 = vst [vmem:[%s2949_s21 + $0x28] sm:$0xff] %v1843_v5  ;;  %v1319_v7 = vadd.f32 %v2937_v15, %v1318_v6  ;;  %v1320_v9 = vpop.f32.mrb[13].mxu1  ;;  %v1609_v11 = vpop.f32.mrb[13].mxu0 }
 0x134   : > { %v1321_v12 = vpop.f32.mrb[14].mxu1  ;;  %v1610_v18 = vpop.f32.mrb[14].mxu0 }
 0x135   : > { %v1608_v16 = vadd.f32 %v1607_v8, %v1319_v7  ;;  %v1322_v17 = vadd.f32 %v2937_v15, %v1321_v12  ;;  %v1323_v19 = vpop.f32.mrb[15].mxu1  ;;  %v1612_v21 = vpop.f32.mrb[15].mxu0 }
 0x137   : > { %v1844_v22 = vmax.f32 %v1608_v16, 0.0  ;;  %v1611_v23 = vadd.f32 %v1610_v18, %v1322_v17  ;;  %1533 = vmatmul.mubr.bf16.gmra.mrb[120].mxu1 %v2613_v10  ;;  %1822 = vmatmul.mubr.bf16.gmra.mrb[120].mxu0 %v2614_v13 }
 0x138   : > { %1540 = vmatprep.mubr.bf16.mxu1 %v2615_v14  ;;  %1829 = vmatprep.mubr.bf16.mxu0 %v2617_v20 }
 0x139   : > { %1908 = vst [vmem:[%s2949_s21 + $0x30] sm:$0xff] %v1844_v22  ;;  %v1845_v24 = vmax.f32 %v1611_v23, 0.0 }
 0x13a   : > { %v1326_v25 = vpop.f32.mrb[16].mxu1  ;;  %v1615_v27 = vpop.f32.mrb[16].mxu0 }
 0x13b   : > { %1909 = vst [vmem:[%s2949_s21 + $0x38] sm:$0xff] %v1845_v24  ;;  %v1327_v26 = vadd.f32 %v2937_v15, %v1326_v25  ;;  %v1328_v28 = vpop.f32.mrb[17].mxu1  ;;  %v1617_v30 = vpop.f32.mrb[17].mxu0 }
 0x13c   : > { %v1329_v31 = vpop.f32.mrb[18].mxu1  ;;  %v1618_v35 = vpop.f32.mrb[18].mxu0 }
 0x13d   : > { %v1616_v33 = vadd.f32 %v1615_v27, %v1327_v26  ;;  %v1330_v34 = vadd.f32 %v2937_v15, %v1329_v31  ;;  %v1331_v36 = vpop.f32.mrb[19].mxu1  ;;  %v1620_v37 = vpop.f32.mrb[19].mxu0 }
 0x13f   : > { %v1846_v38 = vmax.f32 %v1616_v33, 0.0  ;;  %v1619_v39 = vadd.f32 %v1618_v35, %v1330_v34  ;;  %1541 = vmatmul.mubr.bf16.gmra.mrb[124].mxu1 %v2619_v29  ;;  %1830 = vmatmul.mubr.bf16.gmra.mrb[124].mxu0 %v2620_v32 }
 0x141   : > { %1910 = vst [vmem:[%s2949_s21 + $0x40] sm:$0xff] %v1846_v38  ;;  %v1847_v40 = vmax.f32 %v1619_v39, 0.0 }
 0x142   : > { %v1334_v41 = vpop.f32.mrb[20].mxu1  ;;  %v1623_v43 = vpop.f32.mrb[20].mxu0 }
 0x143   : > { %1911 = vst [vmem:[%s2949_s21 + $0x48] sm:$0xff] %v1847_v40  ;;  %v1335_v42 = vadd.f32 %v2937_v15, %v1334_v41  ;;  %v1336_v44 = vpop.f32.mrb[21].mxu1  ;;  %v1625_v45 = vpop.f32.mrb[21].mxu0 }
 0x144   : > { %v1337_v46 = vpop.f32.mrb[22].mxu1  ;;  %v1626_v49 = vpop.f32.mrb[22].mxu0 }
 0x145   : > { %v1624_v47 = vadd.f32 %v1623_v43, %v1335_v42  ;;  %v1338_v48 = vadd.f32 %v2937_v15, %v1337_v46  ;;  %v1339_v50 = vpop.f32.mrb[23].mxu1  ;;  %v1628_v51 = vpop.f32.mrb[23].mxu0 }
 0x147   : > { %v1848_v52 = vmax.f32 %v1624_v47, 0.0  ;;  %v1627_v53 = vadd.f32 %v1626_v49, %v1338_v48 }
 0x149   : > { %1912 = vst [vmem:[%s2949_s21 + $0x50] sm:$0xff] %v1848_v52  ;;  %v1849_v54 = vmax.f32 %v1627_v53, 0.0 }
 0x14a   : > { %v1342_v55 = vpop.f32.mrb[24].mxu1  ;;  %v1631_v57 = vpop.f32.mrb[24].mxu0 }
 0x14b   : > { %1913 = vst [vmem:[%s2949_s21 + $0x58] sm:$0xff] %v1849_v54  ;;  %v1343_v56 = vadd.f32 %v2937_v15, %v1342_v55  ;;  %v1344_v58 = vpop.f32.mrb[25].mxu1  ;;  %v1633_v59 = vpop.f32.mrb[25].mxu0 }
 0x14c   : > { %v1345_v60 = vpop.f32.mrb[26].mxu1  ;;  %v1634_v63 = vpop.f32.mrb[26].mxu0 }
 0x14d   : > { %v1632_v61 = vadd.f32 %v1631_v57, %v1343_v56  ;;  %v1346_v62 = vadd.f32 %v2937_v15, %v1345_v60  ;;  %v1347_v0 = vpop.f32.mrb[27].mxu1  ;;  %v1636_v1 = vpop.f32.mrb[27].mxu0 }
 0x14f   : > { %v1850_v2 = vmax.f32 %v1632_v61, 0.0  ;;  %v1635_v3 = vadd.f32 %v1634_v63, %v1346_v62 }
 0x151   : > { %1914 = vst [vmem:[%s2949_s21 + $0x60] sm:$0xff] %v1850_v2  ;;  %v1851_v4 = vmax.f32 %v1635_v3, 0.0 }
 0x152   : > { %v1350_v5 = vpop.f32.mrb[28].mxu1  ;;  %v1639_v7 = vpop.f32.mrb[28].mxu0 }
 0x153   : > { %1915 = vst [vmem:[%s2949_s21 + $0x68] sm:$0xff] %v1851_v4  ;;  %v1351_v6 = vadd.f32 %v2937_v15, %v1350_v5  ;;  %v1352_v8 = vpop.f32.mrb[29].mxu1  ;;  %v1641_v9 = vpop.f32.mrb[29].mxu0 }
 0x154   : > { %v1353_v10 = vpop.f32.mrb[30].mxu1  ;;  %v1642_v13 = vpop.f32.mrb[30].mxu0 }
 0x155   : > { %v1640_v11 = vadd.f32 %v1639_v7, %v1351_v6  ;;  %v1354_v12 = vadd.f32 %v2937_v15, %v1353_v10  ;;  %v1355_v14 = vpop.f32.mrb[31].mxu1  ;;  %v1644_v16 = vpop.f32.mrb[31].mxu0 }
 0x157   : > { %v1852_v17 = vmax.f32 %v1640_v11, 0.0  ;;  %v1643_v18 = vadd.f32 %v1642_v13, %v1354_v12 }
 0x159   : > { %1916 = vst [vmem:[%s2949_s21 + $0x70] sm:$0xff] %v1852_v17  ;;  %v1853_v19 = vmax.f32 %v1643_v18, 0.0 }
 0x15a   : > { %v1358_v20 = vpop.f32.mrb[32].mxu1  ;;  %v1647_v22 = vpop.f32.mrb[32].mxu0 }
 0x15b   : > { %1917 = vst [vmem:[%s2949_s21 + $0x78] sm:$0xff] %v1853_v19  ;;  %v1359_v21 = vadd.f32 %v2937_v15, %v1358_v20  ;;  %v1360_v23 = vpop.f32.mrb[33].mxu1  ;;  %v1649_v24 = vpop.f32.mrb[33].mxu0 }
 0x15c   : > { %v1361_v25 = vpop.f32.mrb[34].mxu1  ;;  %v1650_v28 = vpop.f32.mrb[34].mxu0 }
 0x15d   : > { %v1648_v26 = vadd.f32 %v1647_v22, %v1359_v21  ;;  %v1362_v27 = vadd.f32 %v2937_v15, %v1361_v25  ;;  %v1363_v29 = vpop.f32.mrb[35].mxu1  ;;  %v1652_v30 = vpop.f32.mrb[35].mxu0 }
 0x15f   : > { %v1854_v31 = vmax.f32 %v1648_v26, 0.0  ;;  %v1651_v32 = vadd.f32 %v1650_v28, %v1362_v27 }
 0x161   : > { %1918 = vst [vmem:[%s2949_s21 + $0x80] sm:$0xff] %v1854_v31  ;;  %v1855_v33 = vmax.f32 %v1651_v32, 0.0 }
 0x162   : > { %v1366_v34 = vpop.f32.mrb[36].mxu1  ;;  %v1655_v36 = vpop.f32.mrb[36].mxu0 }
 0x163   : > { %1919 = vst [vmem:[%s2949_s21 + $0x88] sm:$0xff] %v1855_v33  ;;  %v1367_v35 = vadd.f32 %v2937_v15, %v1366_v34  ;;  %v1368_v37 = vpop.f32.mrb[37].mxu1  ;;  %v1657_v38 = vpop.f32.mrb[37].mxu0 }
 0x164   : > { %v1369_v39 = vpop.f32.mrb[38].mxu1  ;;  %v1658_v42 = vpop.f32.mrb[38].mxu0 }
 0x165   : > { %v1656_v40 = vadd.f32 %v1655_v36, %v1367_v35  ;;  %v1370_v41 = vadd.f32 %v2937_v15, %v1369_v39  ;;  %v1371_v43 = vpop.f32.mrb[39].mxu1  ;;  %v1660_v44 = vpop.f32.mrb[39].mxu0 }
 0x167   : > { %v1856_v45 = vmax.f32 %v1656_v40, 0.0  ;;  %v1659_v46 = vadd.f32 %v1658_v42, %v1370_v41 }
 0x169   : > { %1920 = vst [vmem:[%s2949_s21 + $0x90] sm:$0xff] %v1856_v45  ;;  %v1857_v47 = vmax.f32 %v1659_v46, 0.0 }
 0x16a   : > { %v1374_v48 = vpop.f32.mrb[40].mxu1  ;;  %v1663_v50 = vpop.f32.mrb[40].mxu0 }
 0x16b   : > { %1921 = vst [vmem:[%s2949_s21 + $0x98] sm:$0xff] %v1857_v47  ;;  %v1375_v49 = vadd.f32 %v2937_v15, %v1374_v48  ;;  %v1376_v51 = vpop.f32.mrb[41].mxu1  ;;  %v1665_v52 = vpop.f32.mrb[41].mxu0 }
 0x16c   : > { %v1377_v53 = vpop.f32.mrb[42].mxu1  ;;  %v1666_v56 = vpop.f32.mrb[42].mxu0 }
 0x16d   : > { %v1664_v54 = vadd.f32 %v1663_v50, %v1375_v49  ;;  %v1378_v55 = vadd.f32 %v2937_v15, %v1377_v53  ;;  %v1379_v57 = vpop.f32.mrb[43].mxu1  ;;  %v1668_v58 = vpop.f32.mrb[43].mxu0 }
 0x16f   : > { %v1858_v59 = vmax.f32 %v1664_v54, 0.0  ;;  %v1667_v60 = vadd.f32 %v1666_v56, %v1378_v55 }
 0x171   : > { %1922 = vst [vmem:[%s2949_s21 + $0xa0] sm:$0xff] %v1858_v59  ;;  %v1859_v61 = vmax.f32 %v1667_v60, 0.0 }
 0x172   : > { %v1382_v62 = vpop.f32.mrb[44].mxu1  ;;  %v1671_v0 = vpop.f32.mrb[44].mxu0 }
 0x173   : > { %1923 = vst [vmem:[%s2949_s21 + $0xa8] sm:$0xff] %v1859_v61  ;;  %v1383_v63 = vadd.f32 %v2937_v15, %v1382_v62  ;;  %v1384_v1 = vpop.f32.mrb[45].mxu1  ;;  %v1673_v2 = vpop.f32.mrb[45].mxu0 }
 0x174   : > { %v1385_v3 = vpop.f32.mrb[46].mxu1  ;;  %v1674_v6 = vpop.f32.mrb[46].mxu0 }
 0x175   : > { %v1672_v4 = vadd.f32 %v1671_v0, %v1383_v63  ;;  %v1386_v5 = vadd.f32 %v2937_v15, %v1385_v3  ;;  %v1387_v7 = vpop.f32.mrb[47].mxu1  ;;  %v1676_v8 = vpop.f32.mrb[47].mxu0 }
 0x177   : > { %v1860_v9 = vmax.f32 %v1672_v4, 0.0  ;;  %v1675_v10 = vadd.f32 %v1674_v6, %v1386_v5 }
 0x179   : > { %1924 = vst [vmem:[%s2949_s21 + $0xb0] sm:$0xff] %v1860_v9  ;;  %v1861_v11 = vmax.f32 %v1675_v10, 0.0 }
 0x17a   : > { %v1390_v12 = vpop.f32.mrb[48].mxu1  ;;  %v1679_v14 = vpop.f32.mrb[48].mxu0 }
 0x17b   : > { %1925 = vst [vmem:[%s2949_s21 + $0xb8] sm:$0xff] %v1861_v11  ;;  %v1391_v13 = vadd.f32 %v2937_v15, %v1390_v12  ;;  %v1392_v16 = vpop.f32.mrb[49].mxu1  ;;  %v1681_v17 = vpop.f32.mrb[49].mxu0 }
 0x17c   : > { %v1393_v18 = vpop.f32.mrb[50].mxu1  ;;  %v1682_v21 = vpop.f32.mrb[50].mxu0 }
 0x17d   : > { %v1680_v19 = vadd.f32 %v1679_v14, %v1391_v13  ;;  %v1394_v20 = vadd.f32 %v2937_v15, %v1393_v18  ;;  %v1395_v22 = vpop.f32.mrb[51].mxu1  ;;  %v1684_v23 = vpop.f32.mrb[51].mxu0 }
 0x17f   : > { %v1862_v24 = vmax.f32 %v1680_v19, 0.0  ;;  %v1683_v25 = vadd.f32 %v1682_v21, %v1394_v20 }
 0x181   : > { %1926 = vst [vmem:[%s2949_s21 + $0xc0] sm:$0xff] %v1862_v24  ;;  %v1863_v26 = vmax.f32 %v1683_v25, 0.0 }
 0x182   : > { %v1398_v27 = vpop.f32.mrb[52].mxu1  ;;  %v1687_v29 = vpop.f32.mrb[52].mxu0 }
 0x183   : > { %1927 = vst [vmem:[%s2949_s21 + $0xc8] sm:$0xff] %v1863_v26  ;;  %v1399_v28 = vadd.f32 %v2937_v15, %v1398_v27  ;;  %v1400_v30 = vpop.f32.mrb[53].mxu1  ;;  %v1689_v31 = vpop.f32.mrb[53].mxu0 }
 0x184   : > { %v1401_v32 = vpop.f32.mrb[54].mxu1  ;;  %v1690_v35 = vpop.f32.mrb[54].mxu0 }
 0x185   : > { %v1688_v33 = vadd.f32 %v1687_v29, %v1399_v28  ;;  %v1402_v34 = vadd.f32 %v2937_v15, %v1401_v32  ;;  %v1403_v36 = vpop.f32.mrb[55].mxu1  ;;  %v1692_v37 = vpop.f32.mrb[55].mxu0 }
 0x187   : > { %v1864_v38 = vmax.f32 %v1688_v33, 0.0  ;;  %v1691_v39 = vadd.f32 %v1690_v35, %v1402_v34 }
 0x189   : > { %1928 = vst [vmem:[%s2949_s21 + $0xd0] sm:$0xff] %v1864_v38  ;;  %v1865_v40 = vmax.f32 %v1691_v39, 0.0 }
 0x18a   : > { %v1406_v41 = vpop.f32.mrb[56].mxu1  ;;  %v1695_v43 = vpop.f32.mrb[56].mxu0 }
 0x18b   : > { %1929 = vst [vmem:[%s2949_s21 + $0xd8] sm:$0xff] %v1865_v40  ;;  %v1407_v42 = vadd.f32 %v2937_v15, %v1406_v41  ;;  %v1408_v44 = vpop.f32.mrb[57].mxu1  ;;  %v1697_v45 = vpop.f32.mrb[57].mxu0 }
 0x18c   : > { %v1409_v46 = vpop.f32.mrb[58].mxu1  ;;  %v1698_v49 = vpop.f32.mrb[58].mxu0 }
 0x18d   : > { %v1696_v47 = vadd.f32 %v1695_v43, %v1407_v42  ;;  %v1410_v48 = vadd.f32 %v2937_v15, %v1409_v46  ;;  %v1411_v50 = vpop.f32.mrb[59].mxu1  ;;  %v1700_v51 = vpop.f32.mrb[59].mxu0 }
 0x18f   : > { %v1866_v52 = vmax.f32 %v1696_v47, 0.0  ;;  %v1699_v53 = vadd.f32 %v1698_v49, %v1410_v48 }
 0x191   : > { %1930 = vst [vmem:[%s2949_s21 + $0xe0] sm:$0xff] %v1866_v52  ;;  %v1867_v54 = vmax.f32 %v1699_v53, 0.0 }
 0x192   : > { %v1414_v55 = vpop.f32.mrb[60].mxu1  ;;  %v1703_v57 = vpop.f32.mrb[60].mxu0 }
 0x193   : > { %1931 = vst [vmem:[%s2949_s21 + $0xe8] sm:$0xff] %v1867_v54  ;;  %v1415_v56 = vadd.f32 %v2937_v15, %v1414_v55  ;;  %v1416_v58 = vpop.f32.mrb[61].mxu1  ;;  %v1705_v59 = vpop.f32.mrb[61].mxu0 }
 0x194   : > { %v1417_v60 = vpop.f32.mrb[62].mxu1  ;;  %v1706_v63 = vpop.f32.mrb[62].mxu0 }
 0x195   : > { %v1704_v61 = vadd.f32 %v1703_v57, %v1415_v56  ;;  %v1418_v62 = vadd.f32 %v2937_v15, %v1417_v60  ;;  %v1419_v0 = vpop.f32.mrb[63].mxu1  ;;  %v1708_v1 = vpop.f32.mrb[63].mxu0 }
 0x197   : > { %v1868_v2 = vmax.f32 %v1704_v61, 0.0  ;;  %v1707_v3 = vadd.f32 %v1706_v63, %v1418_v62 }
 0x199   : > { %1932 = vst [vmem:[%s2949_s21 + $0xf0] sm:$0xff] %v1868_v2  ;;  %v1869_v4 = vmax.f32 %v1707_v3, 0.0 }
 0x19a   : > { %v1422_v5 = vpop.f32.mrb[64].mxu1  ;;  %v1711_v7 = vpop.f32.mrb[64].mxu0 }
 0x19b   : > { %1933 = vst [vmem:[%s2949_s21 + $0xf8] sm:$0xff] %v1869_v4  ;;  %v1423_v6 = vadd.f32 %v2937_v15, %v1422_v5  ;;  %v1424_v8 = vpop.f32.mrb[65].mxu1  ;;  %v1713_v9 = vpop.f32.mrb[65].mxu0 }
 0x19c   : > { %v1425_v10 = vpop.f32.mrb[66].mxu1  ;;  %v1714_v13 = vpop.f32.mrb[66].mxu0 }
 0x19d   : > { %v1712_v11 = vadd.f32 %v1711_v7, %v1423_v6  ;;  %v1426_v12 = vadd.f32 %v2937_v15, %v1425_v10  ;;  %v1427_v14 = vpop.f32.mrb[67].mxu1  ;;  %v1716_v16 = vpop.f32.mrb[67].mxu0 }
 0x19f   : > { %v1870_v17 = vmax.f32 %v1712_v11, 0.0  ;;  %v1715_v18 = vadd.f32 %v1714_v13, %v1426_v12 }
 0x1a1   : > { %1934 = vst [vmem:[%s2949_s21 + $0x100] sm:$0xff] %v1870_v17  ;;  %v1871_v19 = vmax.f32 %v1715_v18, 0.0 }
 0x1a2   : > { %v1430_v20 = vpop.f32.mrb[68].mxu1  ;;  %v1719_v22 = vpop.f32.mrb[68].mxu0 }
 0x1a3   : > { %1935 = vst [vmem:[%s2949_s21 + $0x108] sm:$0xff] %v1871_v19  ;;  %v1431_v21 = vadd.f32 %v2937_v15, %v1430_v20  ;;  %v1432_v23 = vpop.f32.mrb[69].mxu1  ;;  %v1721_v24 = vpop.f32.mrb[69].mxu0 }
 0x1a4   : > { %v1433_v25 = vpop.f32.mrb[70].mxu1  ;;  %v1722_v28 = vpop.f32.mrb[70].mxu0 }
 0x1a5   : > { %v1720_v26 = vadd.f32 %v1719_v22, %v1431_v21  ;;  %v1434_v27 = vadd.f32 %v2937_v15, %v1433_v25  ;;  %v1435_v29 = vpop.f32.mrb[71].mxu1  ;;  %v1724_v30 = vpop.f32.mrb[71].mxu0 }
 0x1a7   : > { %v1872_v31 = vmax.f32 %v1720_v26, 0.0  ;;  %v1723_v32 = vadd.f32 %v1722_v28, %v1434_v27 }
 0x1a9   : > { %1936 = vst [vmem:[%s2949_s21 + $0x110] sm:$0xff] %v1872_v31  ;;  %v1873_v33 = vmax.f32 %v1723_v32, 0.0 }
 0x1aa   : > { %v1438_v34 = vpop.f32.mrb[72].mxu1  ;;  %v1727_v36 = vpop.f32.mrb[72].mxu0 }
 0x1ab   : > { %1937 = vst [vmem:[%s2949_s21 + $0x118] sm:$0xff] %v1873_v33  ;;  %v1439_v35 = vadd.f32 %v2937_v15, %v1438_v34  ;;  %v1440_v37 = vpop.f32.mrb[73].mxu1  ;;  %v1729_v38 = vpop.f32.mrb[73].mxu0 }
 0x1ac   : > { %v1441_v39 = vpop.f32.mrb[74].mxu1  ;;  %v1730_v42 = vpop.f32.mrb[74].mxu0 }
 0x1ad   : > { %v1728_v40 = vadd.f32 %v1727_v36, %v1439_v35  ;;  %v1442_v41 = vadd.f32 %v2937_v15, %v1441_v39  ;;  %v1443_v43 = vpop.f32.mrb[75].mxu1  ;;  %v1732_v44 = vpop.f32.mrb[75].mxu0 }
 0x1af   : > { %v1874_v45 = vmax.f32 %v1728_v40, 0.0  ;;  %v1731_v46 = vadd.f32 %v1730_v42, %v1442_v41 }
 0x1b1   : > { %1938 = vst [vmem:[%s2949_s21 + $0x120] sm:$0xff] %v1874_v45  ;;  %v1875_v47 = vmax.f32 %v1731_v46, 0.0 }
 0x1b2   : > { %v1446_v48 = vpop.f32.mrb[76].mxu1  ;;  %v1735_v50 = vpop.f32.mrb[76].mxu0 }
 0x1b3   : > { %1939 = vst [vmem:[%s2949_s21 + $0x128] sm:$0xff] %v1875_v47  ;;  %v1447_v49 = vadd.f32 %v2937_v15, %v1446_v48  ;;  %v1448_v51 = vpop.f32.mrb[77].mxu1  ;;  %v1737_v52 = vpop.f32.mrb[77].mxu0 }
 0x1b4   : > { %v1449_v53 = vpop.f32.mrb[78].mxu1  ;;  %v1738_v56 = vpop.f32.mrb[78].mxu0 }
 0x1b5   : > { %v1736_v54 = vadd.f32 %v1735_v50, %v1447_v49  ;;  %v1450_v55 = vadd.f32 %v2937_v15, %v1449_v53  ;;  %v1451_v57 = vpop.f32.mrb[79].mxu1  ;;  %v1740_v58 = vpop.f32.mrb[79].mxu0 }
 0x1b7   : > { %v1876_v59 = vmax.f32 %v1736_v54, 0.0  ;;  %v1739_v60 = vadd.f32 %v1738_v56, %v1450_v55 }
 0x1b9   : > { %1940 = vst [vmem:[%s2949_s21 + $0x130] sm:$0xff] %v1876_v59  ;;  %v1877_v61 = vmax.f32 %v1739_v60, 0.0 }
 0x1ba   : > { %v1454_v62 = vpop.f32.mrb[80].mxu1  ;;  %v1743_v0 = vpop.f32.mrb[80].mxu0 }
 0x1bb   : > { %1941 = vst [vmem:[%s2949_s21 + $0x138] sm:$0xff] %v1877_v61  ;;  %v1455_v63 = vadd.f32 %v2937_v15, %v1454_v62  ;;  %v1456_v1 = vpop.f32.mrb[81].mxu1  ;;  %v1745_v2 = vpop.f32.mrb[81].mxu0 }
 0x1bc   : > { %v1457_v3 = vpop.f32.mrb[82].mxu1  ;;  %v1746_v6 = vpop.f32.mrb[82].mxu0 }
 0x1bd   : > { %v1744_v4 = vadd.f32 %v1743_v0, %v1455_v63  ;;  %v1458_v5 = vadd.f32 %v2937_v15, %v1457_v3  ;;  %v1459_v7 = vpop.f32.mrb[83].mxu1  ;;  %v1748_v8 = vpop.f32.mrb[83].mxu0 }
 0x1bf   : > { %v1878_v9 = vmax.f32 %v1744_v4, 0.0  ;;  %v1747_v10 = vadd.f32 %v1746_v6, %v1458_v5 }
 0x1c1   : > { %1942 = vst [vmem:[%s2949_s21 + $0x140] sm:$0xff] %v1878_v9  ;;  %v1879_v11 = vmax.f32 %v1747_v10, 0.0 }
 0x1c2   : > { %v1462_v12 = vpop.f32.mrb[84].mxu1  ;;  %v1751_v14 = vpop.f32.mrb[84].mxu0 }
 0x1c3   : > { %1943 = vst [vmem:[%s2949_s21 + $0x148] sm:$0xff] %v1879_v11  ;;  %v1463_v13 = vadd.f32 %v2937_v15, %v1462_v12  ;;  %v1464_v16 = vpop.f32.mrb[85].mxu1  ;;  %v1753_v17 = vpop.f32.mrb[85].mxu0 }
 0x1c4   : > { %v1465_v18 = vpop.f32.mrb[86].mxu1  ;;  %v1754_v21 = vpop.f32.mrb[86].mxu0 }
 0x1c5   : > { %v1752_v19 = vadd.f32 %v1751_v14, %v1463_v13  ;;  %v1466_v20 = vadd.f32 %v2937_v15, %v1465_v18  ;;  %v1467_v22 = vpop.f32.mrb[87].mxu1  ;;  %v1756_v23 = vpop.f32.mrb[87].mxu0 }
 0x1c7   : > { %v1880_v24 = vmax.f32 %v1752_v19, 0.0  ;;  %v1755_v25 = vadd.f32 %v1754_v21, %v1466_v20 }
 0x1c9   : > { %1944 = vst [vmem:[%s2949_s21 + $0x150] sm:$0xff] %v1880_v24  ;;  %v1881_v26 = vmax.f32 %v1755_v25, 0.0 }
 0x1ca   : > { %v1470_v27 = vpop.f32.mrb[88].mxu1  ;;  %v1759_v29 = vpop.f32.mrb[88].mxu0 }
 0x1cb   : > { %1945 = vst [vmem:[%s2949_s21 + $0x158] sm:$0xff] %v1881_v26  ;;  %v1471_v28 = vadd.f32 %v2937_v15, %v1470_v27  ;;  %v1472_v30 = vpop.f32.mrb[89].mxu1  ;;  %v1761_v31 = vpop.f32.mrb[89].mxu0 }
 0x1cc   : > { %v1473_v32 = vpop.f32.mrb[90].mxu1  ;;  %v1762_v35 = vpop.f32.mrb[90].mxu0 }
 0x1cd   : > { %v1760_v33 = vadd.f32 %v1759_v29, %v1471_v28  ;;  %v1474_v34 = vadd.f32 %v2937_v15, %v1473_v32  ;;  %v1475_v36 = vpop.f32.mrb[91].mxu1  ;;  %v1764_v37 = vpop.f32.mrb[91].mxu0 }
 0x1cf   : > { %v1882_v38 = vmax.f32 %v1760_v33, 0.0  ;;  %v1763_v39 = vadd.f32 %v1762_v35, %v1474_v34 }
 0x1d1   : > { %1946 = vst [vmem:[%s2949_s21 + $0x160] sm:$0xff] %v1882_v38  ;;  %v1883_v40 = vmax.f32 %v1763_v39, 0.0 }
 0x1d2   : > { %v1478_v41 = vpop.f32.mrb[92].mxu1  ;;  %v1767_v43 = vpop.f32.mrb[92].mxu0 }
 0x1d3   : > { %1947 = vst [vmem:[%s2949_s21 + $0x168] sm:$0xff] %v1883_v40  ;;  %v1479_v42 = vadd.f32 %v2937_v15, %v1478_v41  ;;  %v1480_v44 = vpop.f32.mrb[93].mxu1  ;;  %v1769_v45 = vpop.f32.mrb[93].mxu0 }
 0x1d4   : > { %v1481_v46 = vpop.f32.mrb[94].mxu1  ;;  %v1770_v49 = vpop.f32.mrb[94].mxu0 }
 0x1d5   : > { %v1768_v47 = vadd.f32 %v1767_v43, %v1479_v42  ;;  %v1482_v48 = vadd.f32 %v2937_v15, %v1481_v46  ;;  %v1483_v50 = vpop.f32.mrb[95].mxu1  ;;  %v1772_v51 = vpop.f32.mrb[95].mxu0 }
 0x1d7   : > { %v1884_v52 = vmax.f32 %v1768_v47, 0.0  ;;  %v1771_v53 = vadd.f32 %v1770_v49, %v1482_v48 }
 0x1d9   : > { %1948 = vst [vmem:[%s2949_s21 + $0x170] sm:$0xff] %v1884_v52  ;;  %v1885_v54 = vmax.f32 %v1771_v53, 0.0 }
 0x1da   : > { %v1486_v55 = vpop.f32.mrb[96].mxu1  ;;  %v1775_v57 = vpop.f32.mrb[96].mxu0 }
 0x1db   : > { %1949 = vst [vmem:[%s2949_s21 + $0x178] sm:$0xff] %v1885_v54  ;;  %v1487_v56 = vadd.f32 %v2937_v15, %v1486_v55  ;;  %v1488_v58 = vpop.f32.mrb[97].mxu1  ;;  %v1777_v59 = vpop.f32.mrb[97].mxu0 }
 0x1dc   : > { %v1489_v60 = vpop.f32.mrb[98].mxu1  ;;  %v1778_v63 = vpop.f32.mrb[98].mxu0 }
 0x1dd   : > { %v1776_v61 = vadd.f32 %v1775_v57, %v1487_v56  ;;  %v1490_v62 = vadd.f32 %v2937_v15, %v1489_v60  ;;  %v1491_v0 = vpop.f32.mrb[99].mxu1  ;;  %v1780_v1 = vpop.f32.mrb[99].mxu0 }
 0x1df   : > { %v1886_v2 = vmax.f32 %v1776_v61, 0.0  ;;  %v1779_v3 = vadd.f32 %v1778_v63, %v1490_v62 }
 0x1e1   : > { %1950 = vst [vmem:[%s2949_s21 + $0x180] sm:$0xff] %v1886_v2  ;;  %v1887_v4 = vmax.f32 %v1779_v3, 0.0 }
 0x1e2   : > { %v1494_v5 = vpop.f32.mrb[100].mxu1  ;;  %v1783_v7 = vpop.f32.mrb[100].mxu0 }
 0x1e3   : > { %1951 = vst [vmem:[%s2949_s21 + $0x188] sm:$0xff] %v1887_v4  ;;  %v1495_v6 = vadd.f32 %v2937_v15, %v1494_v5  ;;  %v1496_v8 = vpop.f32.mrb[101].mxu1  ;;  %v1785_v9 = vpop.f32.mrb[101].mxu0  ;;  %v2621_v5 = vld [vmem:[%s3100_s2] ss:$0 sm:$0xff] }
 0x1e4   : > { %v1497_v10 = vpop.f32.mrb[102].mxu1  ;;  %v1786_v13 = vpop.f32.mrb[102].mxu0 }
 0x1e5   : > { %v1784_v11 = vadd.f32 %v1783_v7, %v1495_v6  ;;  %v1498_v12 = vadd.f32 %v2937_v15, %v1497_v10  ;;  %v1499_v14 = vpop.f32.mrb[103].mxu1  ;;  %v1788_v16 = vpop.f32.mrb[103].mxu0 }
 0x1e7   : > { %v1888_v17 = vmax.f32 %v1784_v11, 0.0  ;;  %v1787_v18 = vadd.f32 %v1786_v13, %v1498_v12 }
 0x1e9   : > { %1952 = vst [vmem:[%s2949_s21 + $0x190] sm:$0xff] %v1888_v17  ;;  %v1889_v19 = vmax.f32 %v1787_v18, 0.0 }
 0x1ea   : > { %v1502_v20 = vpop.f32.mrb[104].mxu1  ;;  %v1791_v22 = vpop.f32.mrb[104].mxu0 }
 0x1eb   : > { %1953 = vst [vmem:[%s2949_s21 + $0x198] sm:$0xff] %v1889_v19  ;;  %v1503_v21 = vadd.f32 %v2937_v15, %v1502_v20  ;;  %v1504_v23 = vpop.f32.mrb[105].mxu1  ;;  %v1793_v24 = vpop.f32.mrb[105].mxu0 }
 0x1ec   : > { %v1505_v25 = vpop.f32.mrb[106].mxu1  ;;  %v1794_v28 = vpop.f32.mrb[106].mxu0 }
 0x1ed   : > { %v1792_v26 = vadd.f32 %v1791_v22, %v1503_v21  ;;  %v1506_v27 = vadd.f32 %v2937_v15, %v1505_v25  ;;  %v1507_v29 = vpop.f32.mrb[107].mxu1  ;;  %v1796_v30 = vpop.f32.mrb[107].mxu0 }
 0x1ef   : > { %v1890_v31 = vmax.f32 %v1792_v26, 0.0  ;;  %v1795_v32 = vadd.f32 %v1794_v28, %v1506_v27 }
 0x1f1   : > { %1954 = vst [vmem:[%s2949_s21 + $0x1a0] sm:$0xff] %v1890_v31  ;;  %v1891_v33 = vmax.f32 %v1795_v32, 0.0 }
 0x1f2   : > { %v1510_v34 = vpop.f32.mrb[108].mxu1  ;;  %v1799_v36 = vpop.f32.mrb[108].mxu0 }
 0x1f3   : > { %1955 = vst [vmem:[%s2949_s21 + $0x1a8] sm:$0xff] %v1891_v33  ;;  %v1511_v35 = vadd.f32 %v2937_v15, %v1510_v34  ;;  %v1512_v37 = vpop.f32.mrb[109].mxu1  ;;  %v1801_v38 = vpop.f32.mrb[109].mxu0 }
 0x1f4   : > { %v1513_v39 = vpop.f32.mrb[110].mxu1  ;;  %v1802_v42 = vpop.f32.mrb[110].mxu0 }
 0x1f5   : > { %v1800_v40 = vadd.f32 %v1799_v36, %v1511_v35  ;;  %v1514_v41 = vadd.f32 %v2937_v15, %v1513_v39  ;;  %v1515_v43 = vpop.f32.mrb[111].mxu1  ;;  %v1804_v44 = vpop.f32.mrb[111].mxu0 }
 0x1f7   : > { %v1892_v45 = vmax.f32 %v1800_v40, 0.0  ;;  %v1803_v46 = vadd.f32 %v1802_v42, %v1514_v41 }
 0x1f9   : > { %1956 = vst [vmem:[%s2949_s21 + $0x1b0] sm:$0xff] %v1892_v45  ;;  %v1893_v47 = vmax.f32 %v1803_v46, 0.0 }
 0x1fa   : > { %v1518_v48 = vpop.f32.mrb[112].mxu1  ;;  %v1807_v50 = vpop.f32.mrb[112].mxu0 }
 0x1fb   : > { %1957 = vst [vmem:[%s2949_s21 + $0x1b8] sm:$0xff] %v1893_v47  ;;  %v1519_v49 = vadd.f32 %v2937_v15, %v1518_v48  ;;  %v1520_v51 = vpop.f32.mrb[113].mxu1  ;;  %v1809_v52 = vpop.f32.mrb[113].mxu0 }
 0x1fc   : > { %v1521_v53 = vpop.f32.mrb[114].mxu1  ;;  %v1810_v56 = vpop.f32.mrb[114].mxu0 }
 0x1fd   : > { %v1808_v54 = vadd.f32 %v1807_v50, %v1519_v49  ;;  %v1522_v55 = vadd.f32 %v2937_v15, %v1521_v53  ;;  %v1523_v57 = vpop.f32.mrb[115].mxu1  ;;  %v1812_v58 = vpop.f32.mrb[115].mxu0 }
 0x1ff   : > { %v1894_v59 = vmax.f32 %v1808_v54, 0.0  ;;  %v1811_v60 = vadd.f32 %v1810_v56, %v1522_v55 }
 0x201   : > { %1958 = vst [vmem:[%s2949_s21 + $0x1c0] sm:$0xff] %v1894_v59  ;;  %v1895_v61 = vmax.f32 %v1811_v60, 0.0 }
 0x202   : > { %v1526_v62 = vpop.f32.mrb[116].mxu1  ;;  %v1815_v0 = vpop.f32.mrb[116].mxu0 }
 0x203   : > { %1959 = vst [vmem:[%s2949_s21 + $0x1c8] sm:$0xff] %v1895_v61  ;;  %v1527_v63 = vadd.f32 %v2937_v15, %v1526_v62  ;;  %v1528_v1 = vpop.f32.mrb[117].mxu1  ;;  %v1817_v2 = vpop.f32.mrb[117].mxu0 }
 0x204   : > { %v1529_v3 = vpop.f32.mrb[118].mxu1  ;;  %v1818_v7 = vpop.f32.mrb[118].mxu0 }
 0x205   : > { %v1816_v4 = vadd.f32 %v1815_v0, %v1527_v63  ;;  %v1530_v6 = vadd.f32 %v2621_v5, %v1529_v3  ;;  %v1531_v8 = vpop.f32.mrb[119].mxu1  ;;  %v1820_v9 = vpop.f32.mrb[119].mxu0 }
 0x207   : > { %v1896_v10 = vmax.f32 %v1816_v4, 0.0  ;;  %v1819_v11 = vadd.f32 %v1818_v7, %v1530_v6 }
 0x209   : > { %1960 = vst [vmem:[%s2949_s21 + $0x1d0] sm:$0xff] %v1896_v10  ;;  %v1897_v12 = vmax.f32 %v1819_v11, 0.0 }
 0x20a   : > { %v1534_v15 = vpop.f32.mrb[120].mxu1  ;;  %v1823_v14 = vpop.f32.mrb[120].mxu0 }
 0x20b   : > { %1961 = vst [vmem:[%s2949_s21 + $0x1d8] sm:$0xff] %v1897_v12  ;;  %v1535_v13 = vadd.f32 %v2621_v5, %v1534_v15  ;;  %v1536_v16 = vpop.f32.mrb[121].mxu1  ;;  %v1825_v17 = vpop.f32.mrb[121].mxu0 }
 0x20c   : > { %v1537_v18 = vpop.f32.mrb[122].mxu1  ;;  %v1826_v21 = vpop.f32.mrb[122].mxu0 }
 0x20d   : > { %v1824_v19 = vadd.f32 %v1823_v14, %v1535_v13  ;;  %v1538_v20 = vadd.f32 %v2621_v5, %v1537_v18  ;;  %v1539_v22 = vpop.f32.mrb[123].mxu1  ;;  %v1828_v23 = vpop.f32.mrb[123].mxu0 }
 0x20f   : > { %v1898_v24 = vmax.f32 %v1824_v19, 0.0  ;;  %v1827_v25 = vadd.f32 %v1826_v21, %v1538_v20 }
 0x211   : > { %1962 = vst [vmem:[%s2949_s21 + $0x1e0] sm:$0xff] %v1898_v24  ;;  %v1899_v26 = vmax.f32 %v1827_v25, 0.0 }
 0x212   : > { %v1542_v27 = vpop.f32.mrb[124].mxu1  ;;  %v1831_v29 = vpop.f32.mrb[124].mxu0 }
 0x213   : > { %1963 = vst [vmem:[%s2949_s21 + $0x1e8] sm:$0xff] %v1899_v26  ;;  %v1543_v28 = vadd.f32 %v2621_v5, %v1542_v27  ;;  %v1544_v30 = vpop.f32.mrb[125].mxu1  ;;  %v1833_v31 = vpop.f32.mrb[125].mxu0 }
 0x214   : > { %v1545_v32 = vpop.f32.mrb[126].mxu1  ;;  %v1834_v35 = vpop.f32.mrb[126].mxu0 }
 0x215   : > { %v1832_v33 = vadd.f32 %v1831_v29, %v1543_v28  ;;  %v1546_v34 = vadd.f32 %v2621_v5, %v1545_v32  ;;  %v1547_v36 = vpop.f32.mrb[127].mxu1  ;;  %v1836_v37 = vpop.f32.mrb[127].mxu0 }
 0x217   : > { %v1900_v38 = vmax.f32 %v1832_v33, 0.0  ;;  %v1835_v39 = vadd.f32 %v1834_v35, %v1546_v34 }
 0x219   : > { %1964 = vst [vmem:[%s2949_s21 + $0x1f0] sm:$0xff] %v1900_v38  ;;  %v1901_v40 = vmax.f32 %v1835_v39, 0.0 }
 0x21b   : > { %1965 = vst [vmem:[%s2949_s21 + $0x1f8] sm:$0xff] %v1901_v40 }
 0x21c PF: > { %s13_s14 = sadd.s32 1, %s2644_s14   ;;  %s3102_s12 = smov %s2640_s13 }
 0x21d   : > { %p10_p5 = scmp.ge.s32.totalorder %s13_s14, 5   ;;  %s3103_s13 = smov %s3105_s15 }
 0x21f   :  { %12 = sbr.rel (!%p10_p5) target bundleno = 2 (0x2), region = 68 }

// kernel: alexnet_forward.14
= control target key start
LH: loop header
LB: loop body
LE: loop exit
PB: predicated region body
PF: predicated region fallthrough
CT: control target
= control target key end

     0   :  { %s454_s0 = inlined_call_operand.vmem [shape: f32[9,24,384], index: 0, kind: input, shape index: {}]   ;;  %s455_s1 = inlined_call_operand.vmem [shape: f32[24,384], index: 1, kind: output, shape index: {}]  }
   0x1   :  { %v8_v0 = vld [vmem:[%s454_s0] sm:$0xff]  ;;  %v17_v1 = vld [vmem:[%s454_s0 + $0x48] sm:$0xff]  ;;  %v26_v2 = vld [vmem:[%s454_s0 + $0x90] sm:$0xff] }
   0x2   :  { %v89_v3 = vmax.f32 %v8_v0, %v17_v1  ;;  %v35_v4 = vld [vmem:[%s454_s0 + $0xd8] sm:$0xff]  ;;  %v9_v6 = vld [vmem:[%s454_s0 + $0x8] sm:$0xff]  ;;  %v18_v7 = vld [vmem:[%s454_s0 + $0x50] sm:$0xff] }
   0x3   :  { %v27_v8 = vld [vmem:[%s454_s0 + $0x98] sm:$0xff]  ;;  %v44_v9 = vld [vmem:[%s454_s0 + $0x120] sm:$0xff]  ;;  %v97_v10 = vmax.f32 %v9_v6, %v18_v7  ;;  %v53_v11 = vld [vmem:[%s454_s0 + $0x168] sm:$0xff] }
   0x4   :  { %v90_v5 = vmax.f32 %v89_v3, %v26_v2  ;;  %v36_v13 = vld [vmem:[%s454_s0 + $0xe0] sm:$0xff]  ;;  %v10_v15 = vld [vmem:[%s454_s0 + $0x10] sm:$0xff]  ;;  %v19_v16 = vld [vmem:[%s454_s0 + $0x58] sm:$0xff] }
   0x5   :  { %v98_v14 = vmax.f32 %v97_v10, %v27_v8  ;;  %v28_v17 = vld [vmem:[%s454_s0 + $0xa0] sm:$0xff]  ;;  %v45_v19 = vld [vmem:[%s454_s0 + $0x128] sm:$0xff]  ;;  %v105_v20 = vmax.f32 %v10_v15, %v19_v16  ;;  %v62_v21 = vld [vmem:[%s454_s0 + $0x1b0] sm:$0xff] }
   0x6   :  { %v91_v12 = vmax.f32 %v90_v5, %v35_v4  ;;  %v54_v22 = vld [vmem:[%s454_s0 + $0x170] sm:$0xff]  ;;  %v37_v24 = vld [vmem:[%s454_s0 + $0xe8] sm:$0xff]  ;;  %v11_v27 = vld [vmem:[%s454_s0 + $0x18] sm:$0xff] }
   0x7   :  { %v99_v23 = vmax.f32 %v98_v14, %v36_v13  ;;  %v106_v26 = vmax.f32 %v105_v20, %v28_v17  ;;  %v20_v28 = vld [vmem:[%s454_s0 + $0x60] sm:$0xff]  ;;  %v29_v29 = vld [vmem:[%s454_s0 + $0xa8] sm:$0xff]  ;;  %v71_v30 = vld [vmem:[%s454_s0 + $0x1f8] sm:$0xff] }
   0x8   :  { %v92_v18 = vmax.f32 %v91_v12, %v44_v9  ;;  %v80_v31 = vld [vmem:[%s454_s0 + $0x240] sm:$0xff]  ;;  %v46_v33 = vld [vmem:[%s454_s0 + $0x130] sm:$0xff]  ;;  %v113_v34 = vmax.f32 %v11_v27, %v20_v28  ;;  %v63_v36 = vld [vmem:[%s454_s0 + $0x1b8] sm:$0xff] }
   0x9   :  { %v100_v32 = vmax.f32 %v99_v23, %v45_v19  ;;  %v55_v37 = vld [vmem:[%s454_s0 + $0x178] sm:$0xff]  ;;  %v107_v38 = vmax.f32 %v106_v26, %v37_v24  ;;  %v38_v39 = vld [vmem:[%s454_s0 + $0xf0] sm:$0xff]  ;;  %v12_v42 = vld [vmem:[%s454_s0 + $0x20] sm:$0xff] }
   0xa   :  { %v93_v25 = vmax.f32 %v92_v18, %v53_v11  ;;  %v114_v41 = vmax.f32 %v113_v34, %v29_v29  ;;  %v21_v43 = vld [vmem:[%s454_s0 + $0x68] sm:$0xff]  ;;  %v30_v44 = vld [vmem:[%s454_s0 + $0xb0] sm:$0xff]  ;;  %v72_v46 = vld [vmem:[%s454_s0 + $0x200] sm:$0xff] }
   0xb   :  { %v101_v40 = vmax.f32 %v100_v32, %v54_v22  ;;  %v81_v47 = vld [vmem:[%s454_s0 + $0x248] sm:$0xff]  ;;  %v108_v48 = vmax.f32 %v107_v38, %v46_v33  ;;  %v47_v49 = vld [vmem:[%s454_s0 + $0x138] sm:$0xff]  ;;  %v121_v50 = vmax.f32 %v12_v42, %v21_v43  ;;  %v64_v52 = vld [vmem:[%s454_s0 + $0x1c0] sm:$0xff] }
   0xc   :  { %v94_v35 = vmax.f32 %v93_v25, %v62_v21  ;;  %v56_v53 = vld [vmem:[%s454_s0 + $0x180] sm:$0xff]  ;;  %v115_v54 = vmax.f32 %v114_v41, %v38_v39  ;;  %v39_v55 = vld [vmem:[%s454_s0 + $0xf8] sm:$0xff]  ;;  %v13_v59 = vld [vmem:[%s454_s0 + $0x28] sm:$0xff] }
   0xd   :  { %v102_v51 = vmax.f32 %v101_v40, %v63_v36  ;;  %v109_v57 = vmax.f32 %v108_v48, %v55_v37  ;;  %v122_v58 = vmax.f32 %v121_v50, %v30_v44  ;;  %v22_v60 = vld [vmem:[%s454_s0 + $0x70] sm:$0xff]  ;;  %v31_v61 = vld [vmem:[%s454_s0 + $0xb8] sm:$0xff]  ;;  %v73_v63 = vld [vmem:[%s454_s0 + $0x208] sm:$0xff] }
   0xe   :  { %v95_v45 = vmax.f32 %v94_v35, %v71_v30  ;;  %v82_v0 = vld [vmem:[%s454_s0 + $0x250] sm:$0xff]  ;;  %v116_v1 = vmax.f32 %v115_v54, %v47_v49  ;;  %v48_v2 = vld [vmem:[%s454_s0 + $0x140] sm:$0xff]  ;;  %v129_v3 = vmax.f32 %v13_v59, %v22_v60  ;;  %v65_v5 = vld [vmem:[%s454_s0 + $0x1c8] sm:$0xff] }
   0xf   :  { %v103_v62 = vmax.f32 %v102_v51, %v72_v46  ;;  %v110_v4 = vmax.f32 %v109_v57, %v64_v52  ;;  %v57_v6 = vld [vmem:[%s454_s0 + $0x188] sm:$0xff]  ;;  %v123_v7 = vmax.f32 %v122_v58, %v39_v55  ;;  %v40_v8 = vld [vmem:[%s454_s0 + $0x100] sm:$0xff]  ;;  %v14_v12 = vld [vmem:[%s454_s0 + $0x30] sm:$0xff] }
  0x10   :  { %v96_v56 = vmax.f32 %v95_v45, %v80_v31  ;;  %v117_v10 = vmax.f32 %v116_v1, %v56_v53  ;;  %v130_v11 = vmax.f32 %v129_v3, %v31_v61  ;;  %v23_v13 = vld [vmem:[%s454_s0 + $0x78] sm:$0xff]  ;;  %v32_v14 = vld [vmem:[%s454_s0 + $0xc0] sm:$0xff]  ;;  %v74_v16 = vld [vmem:[%s454_s0 + $0x210] sm:$0xff] }
  0x11   :  { %v104_v9 = vmax.f32 %v103_v62, %v81_v47  ;;  %v111_v15 = vmax.f32 %v110_v4, %v73_v63  ;;  %v83_v17 = vld [vmem:[%s454_s0 + $0x258] sm:$0xff]  ;;  %v124_v18 = vmax.f32 %v123_v7, %v48_v2  ;;  %v49_v19 = vld [vmem:[%s454_s0 + $0x148] sm:$0xff]  ;;  %v137_v20 = vmax.f32 %v14_v12, %v23_v13  ;;  %v66_v22 = vld [vmem:[%s454_s0 + $0x1d0] sm:$0xff] }
  0x12   :  { %161 = vst [vmem:[%s455_s1] sm:$0xff] %v96_v56  ;;  %v118_v21 = vmax.f32 %v117_v10, %v65_v5  ;;  %v58_v23 = vld [vmem:[%s454_s0 + $0x190] sm:$0xff]  ;;  %v131_v24 = vmax.f32 %v130_v11, %v40_v8  ;;  %v41_v25 = vld [vmem:[%s454_s0 + $0x108] sm:$0xff]  ;;  %v15_v29 = vld [vmem:[%s454_s0 + $0x38] sm:$0xff] }
  0x13   :  { %162 = vst [vmem:[%s455_s1 + $0x8] sm:$0xff] %v104_v9  ;;  %v112_v26 = vmax.f32 %v111_v15, %v82_v0  ;;  %v125_v27 = vmax.f32 %v124_v18, %v57_v6  ;;  %v138_v28 = vmax.f32 %v137_v20, %v32_v14  ;;  %v24_v30 = vld [vmem:[%s454_s0 + $0x80] sm:$0xff]  ;;  %v33_v31 = vld [vmem:[%s454_s0 + $0xc8] sm:$0xff]  ;;  %v75_v33 = vld [vmem:[%s454_s0 + $0x218] sm:$0xff] }
  0x14   :  { %v119_v32 = vmax.f32 %v118_v21, %v74_v16  ;;  %v84_v34 = vld [vmem:[%s454_s0 + $0x260] sm:$0xff]  ;;  %v132_v35 = vmax.f32 %v131_v24, %v49_v19  ;;  %v50_v36 = vld [vmem:[%s454_s0 + $0x150] sm:$0xff]  ;;  %v145_v37 = vmax.f32 %v15_v29, %v24_v30  ;;  %v67_v39 = vld [vmem:[%s454_s0 + $0x1d8] sm:$0xff] }
  0x15   :  { %163 = vst [vmem:[%s455_s1 + $0x10] sm:$0xff] %v112_v26  ;;  %v126_v38 = vmax.f32 %v125_v27, %v66_v22  ;;  %v59_v40 = vld [vmem:[%s454_s0 + $0x198] sm:$0xff]  ;;  %v139_v41 = vmax.f32 %v138_v28, %v41_v25  ;;  %v42_v42 = vld [vmem:[%s454_s0 + $0x110] sm:$0xff]  ;;  %v16_v46 = vld [vmem:[%s454_s0 + $0x40] sm:$0xff] }
  0x16   :  { %v120_v43 = vmax.f32 %v119_v32, %v83_v17  ;;  %v133_v44 = vmax.f32 %v132_v35, %v58_v23  ;;  %v146_v45 = vmax.f32 %v145_v37, %v33_v31  ;;  %v25_v47 = vld [vmem:[%s454_s0 + $0x88] sm:$0xff]  ;;  %v34_v48 = vld [vmem:[%s454_s0 + $0xd0] sm:$0xff]  ;;  %v76_v50 = vld [vmem:[%s454_s0 + $0x220] sm:$0xff] }
  0x17   :  { %v127_v49 = vmax.f32 %v126_v38, %v75_v33  ;;  %v140_v51 = vmax.f32 %v139_v41, %v50_v36  ;;  %v51_v52 = vld [vmem:[%s454_s0 + $0x158] sm:$0xff]  ;;  %v153_v53 = vmax.f32 %v16_v46, %v25_v47  ;;  %v68_v55 = vld [vmem:[%s454_s0 + $0x1e0] sm:$0xff]  ;;  %v85_v59 = vld [vmem:[%s454_s0 + $0x268] sm:$0xff] }
  0x18   :  { %164 = vst [vmem:[%s455_s1 + $0x18] sm:$0xff] %v120_v43  ;;  %v134_v54 = vmax.f32 %v133_v44, %v67_v39  ;;  %v147_v56 = vmax.f32 %v146_v45, %v42_v42  ;;  %v43_v57 = vld [vmem:[%s454_s0 + $0x118] sm:$0xff]  ;;  %v60_v61 = vld [vmem:[%s454_s0 + $0x1a0] sm:$0xff]  ;;  %v77_v0 = vld [vmem:[%s454_s0 + $0x228] sm:$0xff] }
  0x19   :  { %v128_v58 = vmax.f32 %v127_v49, %v84_v34  ;;  %v141_v60 = vmax.f32 %v140_v51, %v59_v40  ;;  %v154_v62 = vmax.f32 %v153_v53, %v34_v48  ;;  %v52_v2 = vld [vmem:[%s454_s0 + $0x160] sm:$0xff]  ;;  %v69_v4 = vld [vmem:[%s454_s0 + $0x1e8] sm:$0xff]  ;;  %v86_v7 = vld [vmem:[%s454_s0 + $0x270] sm:$0xff] }
  0x1a   :  { %v135_v63 = vmax.f32 %v134_v54, %v76_v50  ;;  %v148_v1 = vmax.f32 %v147_v56, %v51_v52  ;;  %v61_v9 = vld [vmem:[%s454_s0 + $0x1a8] sm:$0xff]  ;;  %v78_v11 = vld [vmem:[%s454_s0 + $0x230] sm:$0xff]  ;;  %v87_v16 = vld [vmem:[%s454_s0 + $0x278] sm:$0xff] }
  0x1b   :  { %165 = vst [vmem:[%s455_s1 + $0x20] sm:$0xff] %v128_v58  ;;  %v142_v3 = vmax.f32 %v141_v60, %v68_v55  ;;  %v155_v5 = vmax.f32 %v154_v62, %v43_v57  ;;  %v70_v14 = vld [vmem:[%s454_s0 + $0x1f0] sm:$0xff]  ;;  %v79_v19 = vld [vmem:[%s454_s0 + $0x238] sm:$0xff]  ;;  %v88_v22 = vld [vmem:[%s454_s0 + $0x280] sm:$0xff] }
  0x1c   :  { %v136_v6 = vmax.f32 %v135_v63, %v85_v59  ;;  %v149_v8 = vmax.f32 %v148_v1, %v60_v61 }
  0x1d   :  { %v143_v10 = vmax.f32 %v142_v3, %v77_v0  ;;  %v156_v12 = vmax.f32 %v155_v5, %v52_v2 }
  0x1e   :  { %166 = vst [vmem:[%s455_s1 + $0x28] sm:$0xff] %v136_v6  ;;  %v150_v13 = vmax.f32 %v149_v8, %v69_v4 }
  0x1f   :  { %v144_v15 = vmax.f32 %v143_v10, %v86_v7  ;;  %v157_v17 = vmax.f32 %v156_v12, %v61_v9 }
  0x20   :  { %v151_v18 = vmax.f32 %v150_v13, %v78_v11 }
  0x21   :  { %167 = vst [vmem:[%s455_s1 + $0x30] sm:$0xff] %v144_v15  ;;  %v158_v20 = vmax.f32 %v157_v17, %v70_v14 }
  0x22   :  { %v152_v21 = vmax.f32 %v151_v18, %v87_v16 }
  0x23   :  { %v159_v23 = vmax.f32 %v158_v20, %v79_v19 }
  0x24   :  { %168 = vst [vmem:[%s455_s1 + $0x38] sm:$0xff] %v152_v21 }
  0x25   :  { %v160_v24 = vmax.f32 %v159_v23, %v88_v22 }
  0x27   :  { %169 = vst [vmem:[%s455_s1 + $0x40] sm:$0xff] %v160_v24 }

// kernel: alexnet_forward.15
= control target key start
LH: loop header
LB: loop body
LE: loop exit
PB: predicated region body
PF: predicated region fallthrough
CT: control target
= control target key end

     0   :  { %v1290_v0 = vmov 0   ;;  %s1756_s1 = inlined_call_operand.vmem [shape: bf16[384,128], index: 1, kind: input, shape index: {}]   ;;  %s1757_s0 = inlined_call_operand.vmem [shape: bf16[288,384], index: 0, kind: input, shape index: {}]   ;;  %s1758_s2 = inlined_call_operand.vmem [shape: f32[1,128], index: 2, kind: input, shape index: {}]   ;;  %s1759_s3 = inlined_call_operand.vmem [shape: f32[288,128], index: 3, kind: output, shape index: {}]  }
   0x1   :  { %574 = vmatprep.subr.bf16.mxu0 %v1290_v0  ;;  %1161 = vmatprep.subr.bf16.mxu1 %v1290_v0  ;;  %v1194_v1 = vld [vmem:[%s1756_s1] sm:$0xff]   ;;  %v1195_v2 = vld [vmem:[%s1756_s1 + $0x8] sm:$0xff]   ;;  %v1196_v3 = vld [vmem:[%s1756_s1 + $0x10] sm:$0xff]  }
   0x2   :  { %575 = vmatpush1.bf16.msra.mxu0 %v1194_v1  ;;  %1177 = vmatpush1.bf16.msra.mxu1 %v1194_v1  ;;  %v1197_v4 = vld [vmem:[%s1756_s1 + $0x18] sm:$0xff]   ;;  %v1198_v5 = vld [vmem:[%s1756_s1 + $0x20] sm:$0xff]   ;;  %v1199_v7 = vld [vmem:[%s1756_s1 + $0x28] sm:$0xff]  }
   0x3   :  { %576 = vmatprep.subr.bf16.mxu0 %v1290_v0  ;;  %1162 = vmatprep.subr.bf16.mxu1 %v1290_v0  ;;  %v1212_v6 = vld [vmem:[%s1757_s0 + $0x4] ss:$12 sps:$4 sm:$0xff]   ;;  %v1215_v8 = vld [vmem:[%s1757_s0 + $0x154] ss:$12 sps:$4 sm:$0xff]   ;;  %v1201_v10 = vld [vmem:[%s1756_s1 + $0x38] sm:$0xff]  }
   0x4   :  { %606 = vmatprep.mubr.bf16.mxu0 %v1212_v6  ;;  %718 = vmatprep.mubr.bf16.mxu1 %v1215_v8  ;;  %v1200_v9 = vld [vmem:[%s1756_s1 + $0x30] sm:$0xff]   ;;  %v1202_v11 = vld [vmem:[%s1756_s1 + $0x40] sm:$0xff]   ;;  %v1203_v12 = vld [vmem:[%s1756_s1 + $0x48] sm:$0xff]  }
   0x5   :  { %v1204_v13 = vld [vmem:[%s1756_s1 + $0x50] sm:$0xff]   ;;  %v1205_v14 = vld [vmem:[%s1756_s1 + $0x58] sm:$0xff]   ;;  %v1206_v15 = vld [vmem:[%s1756_s1 + $0x60] sm:$0xff]  }
   0x6   :  { %577 = vmatpush1.bf16.msra.mxu0 %v1195_v2  ;;  %1178 = vmatpush1.bf16.msra.mxu1 %v1195_v2  ;;  %v1207_v16 = vld [vmem:[%s1756_s1 + $0x68] sm:$0xff]   ;;  %v1208_v17 = vld [vmem:[%s1756_s1 + $0x70] sm:$0xff]   ;;  %v1209_v18 = vld [vmem:[%s1756_s1 + $0x78] sm:$0xff]  }
   0x7   :  { %578 = vmatprep.subr.bf16.mxu0 %v1290_v0  ;;  %1163 = vmatprep.subr.bf16.mxu1 %v1290_v0  ;;  %v1216_v19 = vld [vmem:[%s1756_s1 + $0x80] sm:$0xff]   ;;  %v1213_v21 = vld [vmem:[%s1757_s0 + $0x150] ss:$12 sps:$4 sm:$0xff]   ;;  %v1217_v23 = vld [vmem:[%s1756_s1 + $0x88] sm:$0xff]  }
   0x8   :  { %v1210_v20 = vld [vmem:[%s1757_s0] ss:$12 sps:$4 sm:$0xff]   ;;  %v1218_v22 = vld [vmem:[%s1757_s0 + $0x1c] ss:$12 sps:$4 sm:$0xff]   ;;  %v1224_v25 = vld [vmem:[%s1756_s1 + $0x90] sm:$0xff]  }
   0x9   :  { %v1220_v24 = vld [vmem:[%s1757_s0 + $0x16c] ss:$12 sps:$4 sm:$0xff]   ;;  %v1223_v27 = vld [vmem:[%s1757_s0 + $0x168] ss:$12 sps:$4 sm:$0xff]   ;;  %v1228_v30 = vld [vmem:[%s1757_s0 + $0x184] ss:$12 sps:$4 sm:$0xff]  }
   0xa   :  { %579 = vmatpush1.bf16.msra.mxu0 %v1196_v3  ;;  %1179 = vmatpush1.bf16.msra.mxu1 %v1196_v3  ;;  %v1222_v26 = vld [vmem:[%s1757_s0 + $0x18] ss:$12 sps:$4 sm:$0xff]   ;;  %v1226_v28 = vld [vmem:[%s1757_s0 + $0x34] ss:$12 sps:$4 sm:$0xff]   ;;  %v1230_v32 = vld [vmem:[%s1757_s0 + $0x30] ss:$12 sps:$4 sm:$0xff]  }
   0xb   :  { %580 = vmatprep.subr.bf16.mxu0 %v1290_v0  ;;  %1164 = vmatprep.subr.bf16.mxu1 %v1290_v0  ;;  %v1225_v29 = vld [vmem:[%s1756_s1 + $0x98] sm:$0xff]   ;;  %v1232_v31 = vld [vmem:[%s1756_s1 + $0xa0] sm:$0xff]   ;;  %v1233_v35 = vld [vmem:[%s1756_s1 + $0xa8] sm:$0xff]  }
   0xc   :  { %v1231_v33 = vld [vmem:[%s1757_s0 + $0x180] ss:$12 sps:$4 sm:$0xff]   ;;  %v1236_v36 = vld [vmem:[%s1757_s0 + $0x19c] ss:$12 sps:$4 sm:$0xff]   ;;  %v1240_v37 = vld [vmem:[%s1756_s1 + $0xb0] sm:$0xff]  }
   0xd   :  { %v1234_v34 = vld [vmem:[%s1757_s0 + $0x4c] ss:$12 sps:$4 sm:$0xff]   ;;  %v1238_v38 = vld [vmem:[%s1757_s0 + $0x48] ss:$12 sps:$4 sm:$0xff]   ;;  %v1242_v40 = vld [vmem:[%s1757_s0 + $0x64] ss:$12 sps:$4 sm:$0xff]  }
   0xe   :  { %581 = vmatpush1.bf16.msra.mxu0 %v1197_v4  ;;  %1180 = vmatpush1.bf16.msra.mxu1 %v1197_v4  ;;  %v1239_v39 = vld [vmem:[%s1757_s0 + $0x198] ss:$12 sps:$4 sm:$0xff]   ;;  %v1244_v42 = vld [vmem:[%s1757_s0 + $0x8] ss:$12 sps:$4 sm:$0xff]   ;;  %v1245_v43 = vld [vmem:[%s1757_s0 + $0x60] ss:$12 sps:$4 sm:$0xff]  }
   0xf   :  { %582 = vmatprep.subr.bf16.mxu0 %v1290_v0  ;;  %1165 = vmatprep.subr.bf16.mxu1 %v1290_v0  ;;  %v1241_v41 = vld [vmem:[%s1756_s1 + $0xb8] sm:$0xff]   ;;  %v1246_v44 = vld [vmem:[%s1757_s0 + $0x20] ss:$12 sps:$4 sm:$0xff]   ;;  %v1254_v50 = vld [vmem:[%s1757_s0 + $0x68] ss:$12 sps:$4 sm:$0xff]  }
  0x10   :  { %v1247_v45 = vld [vmem:[%s1757_s0 + $0x7c] ss:$12 sps:$4 sm:$0xff]   ;;  %v1249_v46 = vld [vmem:[%s1757_s0 + $0x38] ss:$12 sps:$4 sm:$0xff]   ;;  %v1252_v49 = vld [vmem:[%s1757_s0 + $0x94] ss:$12 sps:$4 sm:$0xff]  }
  0x11   :  { %v1250_v47 = vld [vmem:[%s1757_s0 + $0x78] ss:$12 sps:$4 sm:$0xff]   ;;  %v1251_v48 = vld [vmem:[%s1757_s0 + $0x50] ss:$12 sps:$4 sm:$0xff]   ;;  %v1256_v52 = vld [vmem:[%s1757_s0 + $0x80] ss:$12 sps:$4 sm:$0xff]  }
  0x12   :  { %583 = vmatpush1.bf16.msra.mxu0 %v1198_v5  ;;  %1181 = vmatpush1.bf16.msra.mxu1 %v1198_v5  ;;  %v1255_v51 = vld [vmem:[%s1757_s0 + $0x90] ss:$12 sps:$4 sm:$0xff]   ;;  %v1257_v53 = vld [vmem:[%s1757_s0 + $0xac] ss:$12 sps:$4 sm:$0xff]   ;;  %v1260_v55 = vld [vmem:[%s1757_s0 + $0xa8] ss:$12 sps:$4 sm:$0xff]  }
  0x13   :  { %584 = vmatprep.subr.bf16.mxu0 %v1290_v0  ;;  %1166 = vmatprep.subr.bf16.mxu1 %v1290_v0  ;;  %v1259_v54 = vld [vmem:[%s1757_s0 + $0x98] ss:$12 sps:$4 sm:$0xff]   ;;  %v1261_v56 = vld [vmem:[%s1757_s0 + $0xb0] ss:$12 sps:$4 sm:$0xff]   ;;  %v1264_v58 = vld [vmem:[%s1757_s0 + $0xc8] ss:$12 sps:$4 sm:$0xff]  }
  0x14   :  { %v1262_v57 = vld [vmem:[%s1757_s0 + $0xc4] ss:$12 sps:$4 sm:$0xff]   ;;  %v1265_v59 = vld [vmem:[%s1757_s0 + $0xc0] ss:$12 sps:$4 sm:$0xff]   ;;  %v1267_v61 = vld [vmem:[%s1757_s0 + $0xdc] ss:$12 sps:$4 sm:$0xff]  }
  0x15   :  { %v1266_v60 = vld [vmem:[%s1757_s0 + $0xe0] ss:$12 sps:$4 sm:$0xff]   ;;  %v1269_v62 = vld [vmem:[%s1757_s0 + $0xf8] ss:$12 sps:$4 sm:$0xff]   ;;  %v1274_v2 = vld [vmem:[%s1757_s0 + $0x128] ss:$12 sps:$4 sm:$0xff]  }
  0x16   :  { %585 = vmatpush1.bf16.msra.mxu0 %v1199_v7  ;;  %1182 = vmatpush1.bf16.msra.mxu1 %v1199_v7  ;;  %v1270_v63 = vld [vmem:[%s1757_s0 + $0xd8] ss:$12 sps:$4 sm:$0xff]   ;;  %v1272_v1 = vld [vmem:[%s1757_s0 + $0xf4] ss:$12 sps:$4 sm:$0xff]   ;;  %v1275_v3 = vld [vmem:[%s1757_s0 + $0xf0] ss:$12 sps:$4 sm:$0xff]  }
  0x17   :  { %586 = vmatprep.subr.bf16.mxu0 %v1290_v0  ;;  %1167 = vmatprep.subr.bf16.mxu1 %v1290_v0  ;;  %v1276_v4 = vld [vmem:[%s1757_s0 + $0x140] ss:$12 sps:$4 sm:$0xff]   ;;  %v1279_v6 = vld [vmem:[%s1757_s0 + $0x158] ss:$12 sps:$4 sm:$0xff]   ;;  %v1280_v7 = vld [vmem:[%s1757_s0 + $0x108] ss:$12 sps:$4 sm:$0xff]  }
  0x18   :  { %v1277_v5 = vld [vmem:[%s1757_s0 + $0x10c] ss:$12 sps:$4 sm:$0xff]   ;;  %v1281_v8 = vld [vmem:[%s1757_s0 + $0x170] ss:$12 sps:$4 sm:$0xff]  }
  0x1a   :  { %587 = vmatpush1.bf16.msra.mxu0 %v1200_v9  ;;  %1183 = vmatpush1.bf16.msra.mxu1 %v1200_v9  ;;  %v1282_v9 = vld [vmem:[%s1757_s0 + $0x124] ss:$12 sps:$4 sm:$0xff]  }
  0x1b   :  { %588 = vmatprep.subr.bf16.mxu0 %v1290_v0  ;;  %1168 = vmatprep.subr.bf16.mxu1 %v1290_v0 }
  0x1e   :  { %589 = vmatpush1.bf16.msra.mxu0 %v1201_v10  ;;  %1184 = vmatpush1.bf16.msra.mxu1 %v1201_v10  ;;  %v1284_v10 = vld [vmem:[%s1757_s0 + $0x188] ss:$12 sps:$4 sm:$0xff]  }
  0x1f   :  { %590 = vmatprep.subr.bf16.mxu0 %v1290_v0  ;;  %1169 = vmatprep.subr.bf16.mxu1 %v1290_v0 }
  0x22   :  { %591 = vmatpush1.bf16.msra.mxu0 %v1202_v11  ;;  %1185 = vmatpush1.bf16.msra.mxu1 %v1202_v11  ;;  %v1285_v11 = vld [vmem:[%s1757_s0 + $0x120] ss:$12 sps:$4 sm:$0xff]  }
  0x23   :  { %592 = vmatprep.subr.bf16.mxu0 %v1290_v0  ;;  %1170 = vmatprep.subr.bf16.mxu1 %v1290_v0 }
  0x26   :  { %593 = vmatpush1.bf16.msra.mxu0 %v1203_v12  ;;  %1186 = vmatpush1.bf16.msra.mxu1 %v1203_v12  ;;  %v1286_v12 = vld [vmem:[%s1757_s0 + $0x1a0] ss:$12 sps:$4 sm:$0xff]  }
  0x27   :  { %594 = vmatprep.subr.bf16.mxu0 %v1290_v0  ;;  %1171 = vmatprep.subr.bf16.mxu1 %v1290_v0 }
  0x2a   :  { %595 = vmatpush1.bf16.msra.mxu0 %v1204_v13  ;;  %1187 = vmatpush1.bf16.msra.mxu1 %v1204_v13  ;;  %v1287_v13 = vld [vmem:[%s1757_s0 + $0x13c] ss:$12 sps:$4 sm:$0xff]  }
  0x2b   :  { %596 = vmatprep.subr.bf16.mxu0 %v1290_v0  ;;  %1172 = vmatprep.subr.bf16.mxu1 %v1290_v0 }
  0x2e   :  { %597 = vmatpush1.bf16.msra.mxu0 %v1205_v14  ;;  %1188 = vmatpush1.bf16.msra.mxu1 %v1205_v14  ;;  %v1289_v14 = vld [vmem:[%s1757_s0 + $0x138] ss:$12 sps:$4 sm:$0xff]  }
  0x2f   :  { %598 = vmatprep.subr.bf16.mxu0 %v1290_v0  ;;  %1173 = vmatprep.subr.bf16.mxu1 %v1290_v0 }
  0x32   :  { %599 = vmatpush1.bf16.msra.mxu0 %v1206_v15  ;;  %1189 = vmatpush1.bf16.msra.mxu1 %v1206_v15 }
  0x33   :  { %600 = vmatprep.subr.bf16.mxu0 %v1290_v0  ;;  %1174 = vmatprep.subr.bf16.mxu1 %v1290_v0 }
  0x36   :  { %601 = vmatpush1.bf16.msra.mxu0 %v1207_v16  ;;  %1190 = vmatpush1.bf16.msra.mxu1 %v1207_v16 }
  0x37   :  { %602 = vmatprep.subr.bf16.mxu0 %v1290_v0  ;;  %1175 = vmatprep.subr.bf16.mxu1 %v1290_v0 }
  0x3a   :  { %603 = vmatpush1.bf16.msra.mxu0 %v1208_v17  ;;  %1191 = vmatpush1.bf16.msra.mxu1 %v1208_v17 }
  0x3b   :  { %604 = vmatprep.subr.bf16.mxu0 %v1290_v0  ;;  %1176 = vmatprep.subr.bf16.mxu1 %v1290_v0  ;;  %v1271_v0 = vld [vmem:[%s1757_s0 + $0x110] ss:$12 sps:$4 sm:$0xff]  }
  0x3e   :  { %605 = vmatpush1.bf16.msra.mxu0 %v1209_v18  ;;  %1192 = vmatpush1.bf16.msra.mxu1 %v1209_v18 }
  0x3f   :  { %1109 = vmatprep.subr.bf16.mxu1 %v1216_v19 }
  0x41   :  { %607 = vmatmul.mubr.bf16.vlgmr.msra.gmra.mrb[0].mxu0 %v1210_v20  ;;  %719 = vmatmul.mubr.bf16.vlgmr.msra.gmra.mrb[0].mxu1 %v1213_v21 }
  0x42   :  { %1110 = vmatpush3.bf16.msra.mxu1 %v1216_v19  ;;  %614 = vmatprep.mubr.bf16.mxu0 %v1218_v22 }
  0x43   :  { %1111 = vmatprep.subr.bf16.mxu1 %v1217_v23  ;;  %726 = vmatprep.mubr.bf16.mxu1 %v1220_v24 }
  0x46   :  { %1112 = vmatpush3.bf16.msra.mxu1 %v1217_v23 }
  0x47   :  { %1113 = vmatprep.subr.bf16.mxu1 %v1224_v25 }
  0x49   :  { %615 = vmatmul.mubr.bf16.gmra.mrb[4].mxu0 %v1222_v26  ;;  %727 = vmatmul.mubr.bf16.gmra.mrb[4].mxu1 %v1223_v27 }
  0x4a   :  { %1114 = vmatpush3.bf16.msra.mxu1 %v1224_v25  ;;  %622 = vmatprep.mubr.bf16.mxu0 %v1226_v28 }
  0x4b   :  { %1115 = vmatprep.subr.bf16.mxu1 %v1225_v29  ;;  %734 = vmatprep.mubr.bf16.mxu1 %v1228_v30 }
  0x4e   :  { %1116 = vmatpush3.bf16.msra.mxu1 %v1225_v29 }
  0x4f   :  { %1117 = vmatprep.subr.bf16.mxu1 %v1232_v31 }
  0x51   :  { %623 = vmatmul.mubr.bf16.gmra.mrb[8].mxu0 %v1230_v32  ;;  %735 = vmatmul.mubr.bf16.gmra.mrb[8].mxu1 %v1231_v33 }
  0x52   :  { %1118 = vmatpush3.bf16.msra.mxu1 %v1232_v31  ;;  %630 = vmatprep.mubr.bf16.mxu0 %v1234_v34 }
  0x53   :  { %1119 = vmatprep.subr.bf16.mxu1 %v1233_v35  ;;  %742 = vmatprep.mubr.bf16.mxu1 %v1236_v36 }
  0x56   :  { %1120 = vmatpush3.bf16.msra.mxu1 %v1233_v35 }
  0x57   :  { %1121 = vmatprep.subr.bf16.mxu1 %v1240_v37 }
  0x59   :  { %631 = vmatmul.mubr.bf16.gmra.mrb[12].mxu0 %v1238_v38  ;;  %743 = vmatmul.mubr.bf16.gmra.mrb[12].mxu1 %v1239_v39 }
  0x5a   :  { %1122 = vmatpush3.bf16.msra.mxu1 %v1240_v37  ;;  %638 = vmatprep.mubr.bf16.mxu0 %v1242_v40 }
  0x5b   :  { %1123 = vmatprep.subr.bf16.mxu1 %v1241_v41  ;;  %1125 = vmatprep.mubr.bf16.mxu1 %v1244_v42 }
  0x5e   :  { %1124 = vmatpush3.bf16.msra.mxu1 %v1241_v41 }
  0x61   :  { %639 = vmatmul.mubr.bf16.gmra.mrb[16].mxu0 %v1245_v43  ;;  %1126 = vmatmul.mubr.bf16.vlgmr.msra.gmra.mrb[16].mxu1 %v1246_v44 }
  0x62   :  { %646 = vmatprep.mubr.bf16.mxu0 %v1247_v45  ;;  %1129 = vmatprep.mubr.bf16.mxu1 %v1249_v46 }
  0x69   :  { %647 = vmatmul.mubr.bf16.gmra.mrb[20].mxu0 %v1250_v47  ;;  %1130 = vmatmul.mubr.bf16.gmra.mrb[20].mxu1 %v1251_v48  ;;  %v1596_v47 = vld [vmem:[%s1758_s2] ss:$0 sm:$0xff] }
  0x6a   :  { %654 = vmatprep.mubr.bf16.mxu0 %v1252_v49  ;;  %1133 = vmatprep.mubr.bf16.mxu1 %v1254_v50 }
  0x71   :  { %655 = vmatmul.mubr.bf16.gmra.mrb[24].mxu0 %v1255_v51  ;;  %1134 = vmatmul.mubr.bf16.gmra.mrb[24].mxu1 %v1256_v52 }
  0x72   :  { %662 = vmatprep.mubr.bf16.mxu0 %v1257_v53  ;;  %1137 = vmatprep.mubr.bf16.mxu1 %v1259_v54 }
  0x79   :  { %663 = vmatmul.mubr.bf16.gmra.mrb[28].mxu0 %v1260_v55  ;;  %1138 = vmatmul.mubr.bf16.gmra.mrb[28].mxu1 %v1261_v56 }
  0x7a   :  { %670 = vmatprep.mubr.bf16.mxu0 %v1262_v57  ;;  %1141 = vmatprep.mubr.bf16.mxu1 %v1264_v58 }
  0x81   :  { %671 = vmatmul.mubr.bf16.gmra.mrb[32].mxu0 %v1265_v59  ;;  %1142 = vmatmul.mubr.bf16.gmra.mrb[32].mxu1 %v1266_v60 }
  0x82   :  { %678 = vmatprep.mubr.bf16.mxu0 %v1267_v61  ;;  %1145 = vmatprep.mubr.bf16.mxu1 %v1269_v62 }
  0x89   :  { %679 = vmatmul.mubr.bf16.gmra.mrb[36].mxu0 %v1270_v63  ;;  %1146 = vmatmul.mubr.bf16.gmra.mrb[36].mxu1 %v1271_v0 }
  0x8a   :  { %686 = vmatprep.mubr.bf16.mxu0 %v1272_v1  ;;  %1149 = vmatprep.mubr.bf16.mxu1 %v1274_v2 }
  0x91   :  { %687 = vmatmul.mubr.bf16.gmra.mrb[40].mxu0 %v1275_v3  ;;  %1150 = vmatmul.mubr.bf16.gmra.mrb[40].mxu1 %v1276_v4 }
  0x92   :  { %694 = vmatprep.mubr.bf16.mxu0 %v1277_v5  ;;  %1153 = vmatprep.mubr.bf16.mxu1 %v1279_v6 }
  0x99   :  { %695 = vmatmul.mubr.bf16.gmra.mrb[44].mxu0 %v1280_v7  ;;  %1154 = vmatmul.mubr.bf16.gmra.mrb[44].mxu1 %v1281_v8 }
  0x9a   :  { %702 = vmatprep.mubr.bf16.mxu0 %v1282_v9  ;;  %1157 = vmatprep.mubr.bf16.mxu1 %v1284_v10 }
  0xa1   :  { %703 = vmatmul.mubr.bf16.gmra.mrb[48].mxu0 %v1285_v11  ;;  %1158 = vmatmul.mubr.bf16.gmra.mrb[48].mxu1 %v1286_v12 }
  0xa2   :  { %710 = vmatprep.mubr.bf16.mxu0 %v1287_v13 }
  0xa9   :  { %711 = vmatmul.mubr.bf16.gmra.mrb[52].mxu0 %v1289_v14 }
 0x114   :  { %v608_v15 = vpop.f32.mrb[0].mxu0  ;;  %v1577_v16 = vpop.f32.mrb[0].mxu1 }
 0x115   :  { %v610_v17 = vpop.f32.mrb[1].mxu0  ;;  %v722_v18 = vpop.f32.mrb[1].mxu1  ;;  %v609_v49 = vadd.f32 %v1596_v47, %v608_v15 }
 0x116   :  { %v611_v19 = vpop.f32.mrb[2].mxu0  ;;  %v1579_v20 = vpop.f32.mrb[2].mxu1 }
 0x117   :  { %v613_v21 = vpop.f32.mrb[3].mxu0  ;;  %v725_v22 = vpop.f32.mrb[3].mxu1  ;;  %v612_v56 = vadd.f32 %v1596_v47, %v611_v19 }
 0x11c   :  { %v616_v23 = vpop.f32.mrb[4].mxu0  ;;  %v1581_v24 = vpop.f32.mrb[4].mxu1 }
 0x11d   :  { %v618_v25 = vpop.f32.mrb[5].mxu0  ;;  %v730_v26 = vpop.f32.mrb[5].mxu1  ;;  %v617_v48 = vadd.f32 %v1596_v47, %v616_v23 }
 0x11e   :  { %v619_v27 = vpop.f32.mrb[6].mxu0  ;;  %v1583_v28 = vpop.f32.mrb[6].mxu1 }
 0x11f   :  { %v621_v29 = vpop.f32.mrb[7].mxu0  ;;  %v733_v30 = vpop.f32.mrb[7].mxu1  ;;  %v620_v52 = vadd.f32 %v1596_v47, %v619_v27 }
 0x124   :  { %v624_v31 = vpop.f32.mrb[8].mxu0  ;;  %v1585_v32 = vpop.f32.mrb[8].mxu1 }
 0x125   :  { %v626_v33 = vpop.f32.mrb[9].mxu0  ;;  %v738_v34 = vpop.f32.mrb[9].mxu1  ;;  %v625_v5 = vadd.f32 %v1596_v47, %v624_v31 }
 0x126   :  { %v627_v35 = vpop.f32.mrb[10].mxu0  ;;  %v1587_v36 = vpop.f32.mrb[10].mxu1 }
 0x127   :  { %v629_v37 = vpop.f32.mrb[11].mxu0  ;;  %v741_v38 = vpop.f32.mrb[11].mxu1  ;;  %v628_v12 = vadd.f32 %v1596_v47, %v627_v35 }
 0x12c   :  { %v632_v39 = vpop.f32.mrb[12].mxu0  ;;  %v1589_v40 = vpop.f32.mrb[12].mxu1 }
 0x12d   :  { %v634_v41 = vpop.f32.mrb[13].mxu0  ;;  %v746_v42 = vpop.f32.mrb[13].mxu1  ;;  %v633_v4 = vadd.f32 %v1596_v47, %v632_v39 }
 0x12e   :  { %v635_v43 = vpop.f32.mrb[14].mxu0  ;;  %v1591_v44 = vpop.f32.mrb[14].mxu1 }
 0x12f   :  { %v637_v45 = vpop.f32.mrb[15].mxu0  ;;  %v749_v46 = vpop.f32.mrb[15].mxu1  ;;  %v636_v8 = vadd.f32 %v1596_v47, %v635_v43 }
 0x134   :  { %v640_v50 = vpop.f32.mrb[16].mxu0  ;;  %v1127_v51 = vpop.f32.mrb[16].mxu1 }
 0x135   :  { %v794_v53 = vadd.f32 %v1127_v51, %v617_v48  ;;  %v642_v54 = vpop.f32.mrb[17].mxu0  ;;  %v785_v55 = vpop.f32.mrb[17].mxu1  ;;  %v641_v29 = vadd.f32 %v1596_v47, %v640_v50 }
 0x136   :  { %v786_v57 = vadd.f32 %v785_v55, %v609_v49  ;;  %v643_v58 = vpop.f32.mrb[18].mxu0  ;;  %v1128_v59 = vpop.f32.mrb[18].mxu1 }
 0x137   :  { %v930_v60 = vmax.f32 %v794_v53, 0.0  ;;  %v797_v61 = vadd.f32 %v1128_v59, %v620_v52  ;;  %v645_v62 = vpop.f32.mrb[19].mxu0  ;;  %v788_v63 = vpop.f32.mrb[19].mxu1  ;;  %v644_v38 = vadd.f32 %v1596_v47, %v643_v58 }
 0x138   :  { %v928_v0 = vmax.f32 %v786_v57, 0.0  ;;  %v789_v1 = vadd.f32 %v788_v63, %v612_v56 }
 0x139   :  { %966 = vst [vmem:[%s1759_s3 + $0x10] sm:$0xff] %v930_v60  ;;  %v931_v2 = vmax.f32 %v797_v61, 0.0 }
 0x13a   :  { %964 = vst [vmem:[%s1759_s3] sm:$0xff] %v928_v0  ;;  %v929_v3 = vmax.f32 %v789_v1, 0.0 }
 0x13b   :  { %967 = vst [vmem:[%s1759_s3 + $0x18] sm:$0xff] %v931_v2 }
 0x13c   :  { %965 = vst [vmem:[%s1759_s3 + $0x8] sm:$0xff] %v929_v3  ;;  %v648_v6 = vpop.f32.mrb[20].mxu0  ;;  %v1131_v7 = vpop.f32.mrb[20].mxu1 }
 0x13d   :  { %v810_v9 = vadd.f32 %v1131_v7, %v633_v4  ;;  %v650_v10 = vpop.f32.mrb[21].mxu0  ;;  %v801_v11 = vpop.f32.mrb[21].mxu1  ;;  %v649_v27 = vadd.f32 %v1596_v47, %v648_v6 }
 0x13e   :  { %v802_v13 = vadd.f32 %v801_v11, %v625_v5  ;;  %v651_v14 = vpop.f32.mrb[22].mxu0  ;;  %v1132_v15 = vpop.f32.mrb[22].mxu1 }
 0x13f   :  { %v934_v17 = vmax.f32 %v810_v9, 0.0  ;;  %v813_v18 = vadd.f32 %v1132_v15, %v636_v8  ;;  %v653_v19 = vpop.f32.mrb[23].mxu0  ;;  %v804_v21 = vpop.f32.mrb[23].mxu1  ;;  %v652_v33 = vadd.f32 %v1596_v47, %v651_v14 }
 0x140   :  { %v932_v22 = vmax.f32 %v802_v13, 0.0  ;;  %v805_v23 = vadd.f32 %v804_v21, %v628_v12 }
 0x141   :  { %970 = vst [vmem:[%s1759_s3 + $0x30] sm:$0xff] %v934_v17  ;;  %v935_v25 = vmax.f32 %v813_v18, 0.0 }
 0x142   :  { %968 = vst [vmem:[%s1759_s3 + $0x20] sm:$0xff] %v932_v22  ;;  %v933_v26 = vmax.f32 %v805_v23, 0.0 }
 0x143   :  { %971 = vst [vmem:[%s1759_s3 + $0x38] sm:$0xff] %v935_v25 }
 0x144   :  { %969 = vst [vmem:[%s1759_s3 + $0x28] sm:$0xff] %v933_v26  ;;  %v656_v30 = vpop.f32.mrb[24].mxu0  ;;  %v1135_v31 = vpop.f32.mrb[24].mxu1 }
 0x145   :  { %v826_v34 = vadd.f32 %v1135_v31, %v649_v27  ;;  %v658_v35 = vpop.f32.mrb[25].mxu0  ;;  %v817_v37 = vpop.f32.mrb[25].mxu1  ;;  %v657_v53 = vadd.f32 %v1596_v47, %v656_v30 }
 0x146   :  { %v818_v39 = vadd.f32 %v817_v37, %v641_v29  ;;  %v659_v41 = vpop.f32.mrb[26].mxu0  ;;  %v1136_v42 = vpop.f32.mrb[26].mxu1 }
 0x147   :  { %v938_v43 = vmax.f32 %v826_v34, 0.0  ;;  %v829_v45 = vadd.f32 %v1136_v42, %v652_v33  ;;  %v661_v46 = vpop.f32.mrb[27].mxu0  ;;  %v820_v48 = vpop.f32.mrb[27].mxu1  ;;  %v660_v59 = vadd.f32 %v1596_v47, %v659_v41 }
 0x148   :  { %v936_v49 = vmax.f32 %v818_v39, 0.0  ;;  %v821_v50 = vadd.f32 %v820_v48, %v644_v38 }
 0x149   :  { %974 = vst [vmem:[%s1759_s3 + $0x50] sm:$0xff] %v938_v43  ;;  %v939_v51 = vmax.f32 %v829_v45, 0.0 }
 0x14a   :  { %972 = vst [vmem:[%s1759_s3 + $0x40] sm:$0xff] %v936_v49  ;;  %v937_v52 = vmax.f32 %v821_v50, 0.0 }
 0x14b   :  { %975 = vst [vmem:[%s1759_s3 + $0x58] sm:$0xff] %v939_v51 }
 0x14c   :  { %973 = vst [vmem:[%s1759_s3 + $0x48] sm:$0xff] %v937_v52  ;;  %v664_v54 = vpop.f32.mrb[28].mxu0  ;;  %v1139_v55 = vpop.f32.mrb[28].mxu1 }
 0x14d   :  { %v665_v56 = vadd.f32 %v1596_v47, %v664_v54  ;;  %v666_v57 = vpop.f32.mrb[29].mxu0  ;;  %v833_v58 = vpop.f32.mrb[29].mxu1 }
 0x14e   :  { %v834_v60 = vadd.f32 %v833_v58, %v657_v53  ;;  %v667_v61 = vpop.f32.mrb[30].mxu0  ;;  %v1140_v62 = vpop.f32.mrb[30].mxu1 }
 0x14f   :  { %v842_v63 = vadd.f32 %v1139_v55, %v665_v56  ;;  %v668_v0 = vadd.f32 %v1596_v47, %v667_v61  ;;  %v669_v1 = vpop.f32.mrb[31].mxu0  ;;  %v836_v2 = vpop.f32.mrb[31].mxu1  ;;  %v721_v61 = vadd.f32 %v1596_v47, %v1577_v16 }
 0x150   :  { %v940_v3 = vmax.f32 %v834_v60, 0.0  ;;  %v837_v4 = vadd.f32 %v836_v2, %v660_v59  ;;  %v729_v59 = vadd.f32 %v1596_v47, %v1581_v24 }
 0x151   :  { %v942_v5 = vmax.f32 %v842_v63, 0.0  ;;  %v845_v6 = vadd.f32 %v1140_v62, %v668_v0  ;;  %v732_v0 = vadd.f32 %v1596_v47, %v1583_v28 }
 0x152   :  { %976 = vst [vmem:[%s1759_s3 + $0x60] sm:$0xff] %v940_v3  ;;  %v941_v7 = vmax.f32 %v837_v4, 0.0  ;;  %v724_v4 = vadd.f32 %v1596_v47, %v1579_v20 }
 0x153   :  { %978 = vst [vmem:[%s1759_s3 + $0x70] sm:$0xff] %v942_v5  ;;  %v943_v8 = vmax.f32 %v845_v6, 0.0 }
 0x154   :  { %977 = vst [vmem:[%s1759_s3 + $0x68] sm:$0xff] %v941_v7  ;;  %v672_v9 = vpop.f32.mrb[32].mxu0  ;;  %v1143_v10 = vpop.f32.mrb[32].mxu1 }
 0x155   :  { %979 = vst [vmem:[%s1759_s3 + $0x78] sm:$0xff] %v943_v8  ;;  %v673_v11 = vadd.f32 %v1596_v47, %v672_v9  ;;  %v674_v12 = vpop.f32.mrb[33].mxu0  ;;  %v849_v13 = vpop.f32.mrb[33].mxu1 }
 0x156   :  { %v675_v14 = vpop.f32.mrb[34].mxu0  ;;  %v1144_v15 = vpop.f32.mrb[34].mxu1 }
 0x157   :  { %v676_v17 = vadd.f32 %v1596_v47, %v675_v14  ;;  %v850_v18 = vadd.f32 %v849_v13, %v673_v11  ;;  %v677_v19 = vpop.f32.mrb[35].mxu0  ;;  %v852_v21 = vpop.f32.mrb[35].mxu1 }
 0x159   :  { %v944_v22 = vmax.f32 %v850_v18, 0.0  ;;  %v853_v23 = vadd.f32 %v852_v21, %v676_v17  ;;  %v745_v18 = vadd.f32 %v1596_v47, %v1589_v40  ;;  %v737_v21 = vadd.f32 %v1596_v47, %v1585_v32 }
 0x15a   :  { %v748_v40 = vadd.f32 %v1596_v47, %v1591_v44  ;;  %v740_v32 = vadd.f32 %v1596_v47, %v1587_v36 }
 0x15b   :  { %980 = vst [vmem:[%s1759_s3 + $0x80] sm:$0xff] %v944_v22  ;;  %v945_v25 = vmax.f32 %v853_v23, 0.0 }
 0x15c   :  { %v680_v26 = vpop.f32.mrb[36].mxu0  ;;  %v1147_v27 = vpop.f32.mrb[36].mxu1 }
 0x15d   :  { %981 = vst [vmem:[%s1759_s3 + $0x88] sm:$0xff] %v945_v25  ;;  %v681_v29 = vadd.f32 %v1596_v47, %v680_v26  ;;  %v682_v30 = vpop.f32.mrb[37].mxu0  ;;  %v865_v31 = vpop.f32.mrb[37].mxu1 }
 0x15e   :  { %v683_v33 = vpop.f32.mrb[38].mxu0  ;;  %v1148_v34 = vpop.f32.mrb[38].mxu1 }
 0x15f   :  { %v858_v35 = vadd.f32 %v1143_v10, %v681_v29  ;;  %v684_v37 = vadd.f32 %v1596_v47, %v683_v33  ;;  %v685_v38 = vpop.f32.mrb[39].mxu0  ;;  %v868_v39 = vpop.f32.mrb[39].mxu1 }
 0x161   :  { %v946_v41 = vmax.f32 %v858_v35, 0.0  ;;  %v861_v42 = vadd.f32 %v1144_v15, %v684_v37 }
 0x163   :  { %982 = vst [vmem:[%s1759_s3 + $0x90] sm:$0xff] %v946_v41  ;;  %v947_v43 = vmax.f32 %v861_v42, 0.0 }
 0x164   :  { %v688_v45 = vpop.f32.mrb[40].mxu0  ;;  %v1675_v46 = vpop.f32.mrb[40].mxu1 }
 0x165   :  { %983 = vst [vmem:[%s1759_s3 + $0x98] sm:$0xff] %v947_v43  ;;  %v689_v48 = vadd.f32 %v1596_v47, %v688_v45  ;;  %v690_v49 = vpop.f32.mrb[41].mxu0  ;;  %v881_v50 = vpop.f32.mrb[41].mxu1 }
 0x166   :  { %v691_v51 = vpop.f32.mrb[42].mxu0  ;;  %v1681_v52 = vpop.f32.mrb[42].mxu1 }
 0x167   :  { %v866_v53 = vadd.f32 %v865_v31, %v689_v48  ;;  %v692_v54 = vadd.f32 %v1596_v47, %v691_v51  ;;  %v693_v55 = vpop.f32.mrb[43].mxu0  ;;  %v884_v56 = vpop.f32.mrb[43].mxu1 }
 0x169   :  { %v948_v57 = vmax.f32 %v866_v53, 0.0  ;;  %v869_v58 = vadd.f32 %v868_v39, %v692_v54 }
 0x16b   :  { %984 = vst [vmem:[%s1759_s3 + $0xa0] sm:$0xff] %v948_v57  ;;  %v949_v60 = vmax.f32 %v869_v58, 0.0 }
 0x16c   :  { %v696_v62 = vpop.f32.mrb[44].mxu0  ;;  %v1155_v63 = vpop.f32.mrb[44].mxu1 }
 0x16d   :  { %985 = vst [vmem:[%s1759_s3 + $0xa8] sm:$0xff] %v949_v60  ;;  %v697_v1 = vadd.f32 %v1596_v47, %v696_v62  ;;  %v906_v24 = vadd.f32 %v1155_v63, %v729_v59  ;;  %v698_v2 = vpop.f32.mrb[45].mxu0  ;;  %v897_v3 = vpop.f32.mrb[45].mxu1 }
 0x16e   :  { %v898_v5 = vadd.f32 %v897_v3, %v721_v61  ;;  %v699_v6 = vpop.f32.mrb[46].mxu0  ;;  %v1156_v16 = vpop.f32.mrb[46].mxu1 }
 0x16f   :  { %v874_v7 = vadd.f32 %v1147_v27, %v697_v1  ;;  %v958_v8 = vmax.f32 %v906_v24, 0.0  ;;  %v700_v9 = vadd.f32 %v1596_v47, %v699_v6  ;;  %v909_v28 = vadd.f32 %v1156_v16, %v732_v0  ;;  %v701_v10 = vpop.f32.mrb[47].mxu0  ;;  %v900_v11 = vpop.f32.mrb[47].mxu1 }
 0x170   :  { %v956_v12 = vmax.f32 %v898_v5, 0.0  ;;  %v901_v13 = vadd.f32 %v900_v11, %v724_v4 }
 0x171   :  { %v950_v14 = vmax.f32 %v874_v7, 0.0  ;;  %994 = vst [vmem:[%s1759_s3 + $0xf0] sm:$0xff] %v958_v8  ;;  %v877_v15 = vadd.f32 %v1148_v34, %v700_v9  ;;  %v959_v17 = vmax.f32 %v909_v28, 0.0 }
 0x172   :  { %992 = vst [vmem:[%s1759_s3 + $0xe0] sm:$0xff] %v956_v12  ;;  %v957_v20 = vmax.f32 %v901_v13, 0.0 }
 0x173   :  { %986 = vst [vmem:[%s1759_s3 + $0xb0] sm:$0xff] %v950_v14  ;;  %v951_v19 = vmax.f32 %v877_v15, 0.0  ;;  %995 = vst [vmem:[%s1759_s3 + $0xf8] sm:$0xff] %v959_v17 }
 0x174   :  { %993 = vst [vmem:[%s1759_s3 + $0xe8] sm:$0xff] %v957_v20  ;;  %v704_v22 = vpop.f32.mrb[48].mxu0  ;;  %v1159_v23 = vpop.f32.mrb[48].mxu1 }
 0x175   :  { %987 = vst [vmem:[%s1759_s3 + $0xb8] sm:$0xff] %v951_v19  ;;  %v705_v25 = vadd.f32 %v1596_v47, %v704_v22  ;;  %v922_v26 = vadd.f32 %v1159_v23, %v745_v18  ;;  %v706_v27 = vpop.f32.mrb[49].mxu0  ;;  %v913_v29 = vpop.f32.mrb[49].mxu1 }
 0x176   :  { %v914_v30 = vadd.f32 %v913_v29, %v737_v21  ;;  %v707_v31 = vpop.f32.mrb[50].mxu0  ;;  %v1160_v33 = vpop.f32.mrb[50].mxu1 }
 0x177   :  { %v882_v34 = vadd.f32 %v881_v50, %v705_v25  ;;  %v962_v35 = vmax.f32 %v922_v26, 0.0  ;;  %v708_v37 = vadd.f32 %v1596_v47, %v707_v31  ;;  %v925_v44 = vadd.f32 %v1160_v33, %v748_v40  ;;  %v709_v38 = vpop.f32.mrb[51].mxu0  ;;  %v916_v39 = vpop.f32.mrb[51].mxu1 }
 0x178   :  { %v960_v41 = vmax.f32 %v914_v30, 0.0  ;;  %v917_v42 = vadd.f32 %v916_v39, %v740_v32 }
 0x179   :  { %v952_v43 = vmax.f32 %v882_v34, 0.0  ;;  %998 = vst [vmem:[%s1759_s3 + $0x110] sm:$0xff] %v962_v35  ;;  %v885_v45 = vadd.f32 %v884_v56, %v708_v37  ;;  %v963_v48 = vmax.f32 %v925_v44, 0.0 }
 0x17a   :  { %996 = vst [vmem:[%s1759_s3 + $0x100] sm:$0xff] %v960_v41  ;;  %v961_v36 = vmax.f32 %v917_v42, 0.0 }
 0x17b   :  { %988 = vst [vmem:[%s1759_s3 + $0xc0] sm:$0xff] %v952_v43  ;;  %v953_v49 = vmax.f32 %v885_v45, 0.0  ;;  %999 = vst [vmem:[%s1759_s3 + $0x118] sm:$0xff] %v963_v48 }
 0x17c   :  { %997 = vst [vmem:[%s1759_s3 + $0x108] sm:$0xff] %v961_v36  ;;  %v712_v50 = vpop.f32.mrb[52].mxu0 }
 0x17d   :  { %989 = vst [vmem:[%s1759_s3 + $0xc8] sm:$0xff] %v953_v49  ;;  %v713_v51 = vadd.f32 %v1596_v47, %v712_v50  ;;  %v714_v53 = vpop.f32.mrb[53].mxu0 }
 0x17e   :  { %v715_v54 = vpop.f32.mrb[54].mxu0 }
 0x17f   :  { %v890_v55 = vadd.f32 %v1675_v46, %v713_v51  ;;  %v716_v56 = vadd.f32 %v1596_v47, %v715_v54  ;;  %v717_v57 = vpop.f32.mrb[55].mxu0 }
 0x181   :  { %v954_v58 = vmax.f32 %v890_v55, 0.0  ;;  %v893_v59 = vadd.f32 %v1681_v52, %v716_v56 }
 0x183   :  { %990 = vst [vmem:[%s1759_s3 + $0xd0] sm:$0xff] %v954_v58  ;;  %v955_v60 = vmax.f32 %v893_v59, 0.0 }
 0x185   :  { %991 = vst [vmem:[%s1759_s3 + $0xd8] sm:$0xff] %v955_v60 }

// kernel: alexnet_forward.16
= control target key start
LH: loop header
LB: loop body
LE: loop exit
PB: predicated region body
PF: predicated region fallthrough
CT: control target
= control target key end

     0   :  { %v2015_v0 = vmov 0   ;;  %s2846_s1 = inlined_call_operand.vmem [shape: bf16[640,128], index: 1, kind: input, shape index: {}]   ;;  %s2847_s0 = inlined_call_operand.vmem [shape: bf16[288,640], index: 0, kind: input, shape index: {}]   ;;  %s2848_s2 = inlined_call_operand.vmem [shape: f32[1,128], index: 2, kind: input, shape index: {}]   ;;  %s2849_s3 = inlined_call_operand.vmem [shape: f32[288,128], index: 3, kind: output, shape index: {}]  }
   0x1   :  { %918 = vmatprep.subr.bf16.mxu0 %v2015_v0  ;;  %1734 = vmatprep.subr.bf16.mxu1 %v2015_v0  ;;  %v1849_v1 = vld [vmem:[%s2846_s1] sm:$0xff]   ;;  %v1851_v3 = vld [vmem:[%s2846_s1 + $0x8] sm:$0xff]   ;;  %v1853_v5 = vld [vmem:[%s2846_s1 + $0x10] sm:$0xff]  }
   0x2   :  { %v2044_v2 = vld [vmem:[%s2846_s1 + $0x80] sm:$0xff]   ;;  %919 = vmatpush1.bf16.msra.mxu0 %v1849_v1  ;;  %v2054_v4 = vld [vmem:[%s2846_s1 + $0x88] sm:$0xff]   ;;  %v2065_v6 = vld [vmem:[%s2846_s1 + $0x90] sm:$0xff]  }
   0x3   :  { %1750 = vmatpush1.bf16.msra.mxu1 %v2044_v2  ;;  %920 = vmatprep.subr.bf16.mxu0 %v2015_v0  ;;  %v1855_v7 = vld [vmem:[%s2846_s1 + $0x18] sm:$0xff]   ;;  %v1857_v9 = vld [vmem:[%s2846_s1 + $0x20] sm:$0xff]   ;;  %v1859_v11 = vld [vmem:[%s2846_s1 + $0x28] sm:$0xff]  }
   0x4   :  { %1735 = vmatprep.subr.bf16.mxu1 %v2015_v0  ;;  %v2076_v8 = vld [vmem:[%s2846_s1 + $0x98] sm:$0xff]   ;;  %v2087_v10 = vld [vmem:[%s2846_s1 + $0xa0] sm:$0xff]   ;;  %v2098_v12 = vld [vmem:[%s2846_s1 + $0xa8] sm:$0xff]  }
   0x5   :  { %v1861_v13 = vld [vmem:[%s2846_s1 + $0x30] sm:$0xff]   ;;  %v1863_v15 = vld [vmem:[%s2846_s1 + $0x38] sm:$0xff]   ;;  %v1865_v17 = vld [vmem:[%s2846_s1 + $0x40] sm:$0xff]  }
   0x6   :  { %921 = vmatpush1.bf16.msra.mxu0 %v1851_v3  ;;  %v2109_v14 = vld [vmem:[%s2846_s1 + $0xb0] sm:$0xff]   ;;  %v2120_v16 = vld [vmem:[%s2846_s1 + $0xb8] sm:$0xff]   ;;  %v2131_v18 = vld [vmem:[%s2846_s1 + $0xc0] sm:$0xff]  }
   0x7   :  { %1751 = vmatpush1.bf16.msra.mxu1 %v2054_v4  ;;  %922 = vmatprep.subr.bf16.mxu0 %v2015_v0  ;;  %v1883_v19 = vld [vmem:[%s2847_s0 + $0x4] ss:$20 sps:$4 sm:$0xff]   ;;  %v1867_v20 = vld [vmem:[%s2846_s1 + $0x48] sm:$0xff]   ;;  %v1869_v23 = vld [vmem:[%s2846_s1 + $0x50] sm:$0xff]  }
   0x8   :  { %1736 = vmatprep.subr.bf16.mxu1 %v2015_v0  ;;  %v1886_v21 = vld [vmem:[%s2847_s0 + $0xd4] ss:$20 sps:$4 sm:$0xff]   ;;  %950 = vmatprep.mubr.bf16.mxu0 %v1883_v19  ;;  %v1871_v25 = vld [vmem:[%s2846_s1 + $0x58] sm:$0xff]   ;;  %v1873_v27 = vld [vmem:[%s2846_s1 + $0x60] sm:$0xff]  }
   0x9   :  { %v2148_v22 = vld [vmem:[%s2846_s1 + $0xc8] sm:$0xff]   ;;  %1167 = vmatprep.mubr.bf16.mxu1 %v1886_v21  ;;  %v2159_v24 = vld [vmem:[%s2846_s1 + $0xd0] sm:$0xff]   ;;  %v2170_v26 = vld [vmem:[%s2846_s1 + $0xd8] sm:$0xff]  }
   0xa   :  { %923 = vmatpush1.bf16.msra.mxu0 %v1853_v5  ;;  %v2181_v28 = vld [vmem:[%s2846_s1 + $0xe0] sm:$0xff]   ;;  %v1875_v29 = vld [vmem:[%s2846_s1 + $0x68] sm:$0xff]   ;;  %v1877_v31 = vld [vmem:[%s2846_s1 + $0x70] sm:$0xff]  }
   0xb   :  { %1752 = vmatpush1.bf16.msra.mxu1 %v2065_v6  ;;  %924 = vmatprep.subr.bf16.mxu0 %v2015_v0  ;;  %v2192_v30 = vld [vmem:[%s2846_s1 + $0xe8] sm:$0xff]   ;;  %v2203_v32 = vld [vmem:[%s2846_s1 + $0xf0] sm:$0xff]   ;;  %v1879_v33 = vld [vmem:[%s2846_s1 + $0x78] sm:$0xff]  }
   0xc   :  { %1737 = vmatprep.subr.bf16.mxu1 %v2015_v0  ;;  %v2214_v34 = vld [vmem:[%s2846_s1 + $0xf8] sm:$0xff]   ;;  %v1893_v35 = vld [vmem:[%s2846_s1 + $0x100] sm:$0xff]   ;;  %v1900_v40 = vld [vmem:[%s2846_s1 + $0x108] sm:$0xff]  }
   0xd   :  { %v1881_v36 = vld [vmem:[%s2847_s0] ss:$20 sps:$4 sm:$0xff]   ;;  %v1884_v37 = vld [vmem:[%s2847_s0 + $0xd0] ss:$20 sps:$4 sm:$0xff]   ;;  %v1891_v41 = vld [vmem:[%s2847_s0 + $0x28] ss:$20 sps:$4 sm:$0xff]  }
   0xe   :  { %925 = vmatpush1.bf16.msra.mxu0 %v1855_v7  ;;  %v1887_v38 = vld [vmem:[%s2847_s0 + $0x2c] ss:$20 sps:$4 sm:$0xff]   ;;  %v1889_v39 = vld [vmem:[%s2847_s0 + $0xfc] ss:$20 sps:$4 sm:$0xff]   ;;  %v1894_v44 = vld [vmem:[%s2847_s0 + $0x54] ss:$20 sps:$4 sm:$0xff]  }
   0xf   :  { %1753 = vmatpush1.bf16.msra.mxu1 %v2076_v8  ;;  %926 = vmatprep.subr.bf16.mxu0 %v2015_v0  ;;  %v1913_v42 = vld [vmem:[%s2846_s1 + $0x110] sm:$0xff]   ;;  %v1892_v43 = vld [vmem:[%s2847_s0 + $0xf8] ss:$20 sps:$4 sm:$0xff]   ;;  %v1933_v49 = vld [vmem:[%s2846_s1 + $0x120] sm:$0xff]  }
  0x10   :  { %1738 = vmatprep.subr.bf16.mxu1 %v2015_v0  ;;  %v1896_v45 = vld [vmem:[%s2847_s0 + $0x124] ss:$20 sps:$4 sm:$0xff]   ;;  %v1899_v48 = vld [vmem:[%s2847_s0 + $0x120] ss:$20 sps:$4 sm:$0xff]   ;;  %v1901_v50 = vld [vmem:[%s2847_s0 + $0x7c] ss:$20 sps:$4 sm:$0xff]  }
  0x11   :  { %v1926_v46 = vld [vmem:[%s2846_s1 + $0x118] sm:$0xff]   ;;  %v1898_v47 = vld [vmem:[%s2847_s0 + $0x50] ss:$20 sps:$4 sm:$0xff]   ;;  %v1903_v51 = vld [vmem:[%s2847_s0 + $0x14c] ss:$20 sps:$4 sm:$0xff]  }
  0x12   :  { %927 = vmatpush1.bf16.msra.mxu0 %v1857_v9  ;;  %v1946_v52 = vld [vmem:[%s2846_s1 + $0x128] sm:$0xff]   ;;  %v1957_v54 = vld [vmem:[%s2846_s1 + $0x130] sm:$0xff]   ;;  %v1907_v56 = vld [vmem:[%s2847_s0 + $0xa4] ss:$20 sps:$4 sm:$0xff]  }
  0x13   :  { %1754 = vmatpush1.bf16.msra.mxu1 %v2087_v10  ;;  %928 = vmatprep.subr.bf16.mxu0 %v2015_v0  ;;  %v1905_v53 = vld [vmem:[%s2847_s0 + $0x78] ss:$20 sps:$4 sm:$0xff]   ;;  %v1906_v55 = vld [vmem:[%s2847_s0 + $0x148] ss:$20 sps:$4 sm:$0xff]   ;;  %v1911_v59 = vld [vmem:[%s2847_s0 + $0xa0] ss:$20 sps:$4 sm:$0xff]  }
  0x14   :  { %1739 = vmatprep.subr.bf16.mxu1 %v2015_v0  ;;  %v1909_v57 = vld [vmem:[%s2847_s0 + $0x174] ss:$20 sps:$4 sm:$0xff]   ;;  %v1966_v58 = vld [vmem:[%s2846_s1 + $0x138] sm:$0xff]   ;;  %v1912_v60 = vld [vmem:[%s2847_s0 + $0x170] ss:$20 sps:$4 sm:$0xff]  }
  0x15   :  { %v1914_v61 = vld [vmem:[%s2847_s0 + $0xcc] ss:$20 sps:$4 sm:$0xff]   ;;  %v1916_v62 = vld [vmem:[%s2847_s0 + $0x19c] ss:$20 sps:$4 sm:$0xff]   ;;  %v1922_v3 = vld [vmem:[%s2847_s0 + $0x1c4] ss:$20 sps:$4 sm:$0xff]  }
  0x16   :  { %929 = vmatpush1.bf16.msra.mxu0 %v1859_v11  ;;  %v1918_v63 = vld [vmem:[%s2847_s0 + $0xc8] ss:$20 sps:$4 sm:$0xff]   ;;  %v1919_v1 = vld [vmem:[%s2847_s0 + $0x198] ss:$20 sps:$4 sm:$0xff]   ;;  %v1925_v5 = vld [vmem:[%s2847_s0 + $0x1c0] ss:$20 sps:$4 sm:$0xff]  }
  0x17   :  { %1755 = vmatpush1.bf16.msra.mxu1 %v2098_v12  ;;  %930 = vmatprep.subr.bf16.mxu0 %v2015_v0  ;;  %v1929_v7 = vld [vmem:[%s2847_s0 + $0x1ec] ss:$20 sps:$4 sm:$0xff]   ;;  %v1932_v9 = vld [vmem:[%s2847_s0 + $0x1e8] ss:$20 sps:$4 sm:$0xff]   ;;  %v1951_v19 = vld [vmem:[%s2847_s0 + $0x190] ss:$20 sps:$4 sm:$0xff]  }
  0x18   :  { %1740 = vmatprep.subr.bf16.mxu1 %v2015_v0  ;;  %v1936_v11 = vld [vmem:[%s2847_s0 + $0x214] ss:$20 sps:$4 sm:$0xff]   ;;  %v1953_v21 = vld [vmem:[%s2847_s0 + $0x1bc] ss:$20 sps:$4 sm:$0xff]  }
  0x1a   :  { %931 = vmatpush1.bf16.msra.mxu0 %v1861_v13  ;;  %v1939_v13 = vld [vmem:[%s2847_s0 + $0x210] ss:$20 sps:$4 sm:$0xff]  }
  0x1b   :  { %1756 = vmatpush1.bf16.msra.mxu1 %v2109_v14  ;;  %932 = vmatprep.subr.bf16.mxu0 %v2015_v0 }
  0x1c   :  { %1741 = vmatprep.subr.bf16.mxu1 %v2015_v0 }
  0x1e   :  { %933 = vmatpush1.bf16.msra.mxu0 %v1863_v15  ;;  %v1942_v15 = vld [vmem:[%s2847_s0 + $0x23c] ss:$20 sps:$4 sm:$0xff]  }
  0x1f   :  { %1757 = vmatpush1.bf16.msra.mxu1 %v2120_v16  ;;  %934 = vmatprep.subr.bf16.mxu0 %v2015_v0 }
  0x20   :  { %1742 = vmatprep.subr.bf16.mxu1 %v2015_v0 }
  0x22   :  { %935 = vmatpush1.bf16.msra.mxu0 %v1865_v17  ;;  %v1947_v17 = vld [vmem:[%s2847_s0 + $0x194] ss:$20 sps:$4 sm:$0xff]  }
  0x23   :  { %1758 = vmatpush1.bf16.msra.mxu1 %v2131_v18  ;;  %936 = vmatprep.subr.bf16.mxu0 %v2015_v0 }
  0x24   :  { %1743 = vmatprep.subr.bf16.mxu1 %v2015_v0 }
  0x26   :  { %937 = vmatpush1.bf16.msra.mxu0 %v1867_v20  ;;  %v1952_v20 = vld [vmem:[%s2847_s0 + $0x260] ss:$20 sps:$4 sm:$0xff]  }
  0x27   :  { %1759 = vmatpush1.bf16.msra.mxu1 %v2148_v22  ;;  %938 = vmatprep.subr.bf16.mxu0 %v2015_v0 }
  0x28   :  { %1744 = vmatprep.subr.bf16.mxu1 %v2015_v0 }
  0x2a   :  { %939 = vmatpush1.bf16.msra.mxu0 %v1869_v23  ;;  %v1958_v23 = vld [vmem:[%s2847_s0 + $0x1b8] ss:$20 sps:$4 sm:$0xff]  }
  0x2b   :  { %1760 = vmatpush1.bf16.msra.mxu1 %v2159_v24  ;;  %940 = vmatprep.subr.bf16.mxu0 %v2015_v0 }
  0x2c   :  { %1745 = vmatprep.subr.bf16.mxu1 %v2015_v0 }
  0x2e   :  { %941 = vmatpush1.bf16.msra.mxu0 %v1871_v25  ;;  %v1960_v25 = vld [vmem:[%s2847_s0 + $0x1e4] ss:$20 sps:$4 sm:$0xff]  }
  0x2f   :  { %1761 = vmatpush1.bf16.msra.mxu1 %v2170_v26  ;;  %942 = vmatprep.subr.bf16.mxu0 %v2015_v0 }
  0x30   :  { %1746 = vmatprep.subr.bf16.mxu1 %v2015_v0 }
  0x32   :  { %943 = vmatpush1.bf16.msra.mxu0 %v1873_v27  ;;  %v1964_v27 = vld [vmem:[%s2847_s0 + $0x1e0] ss:$20 sps:$4 sm:$0xff]  }
  0x33   :  { %1762 = vmatpush1.bf16.msra.mxu1 %v2181_v28  ;;  %944 = vmatprep.subr.bf16.mxu0 %v2015_v0 }
  0x34   :  { %1747 = vmatprep.subr.bf16.mxu1 %v2015_v0 }
  0x36   :  { %945 = vmatpush1.bf16.msra.mxu0 %v1875_v29  ;;  %v1967_v29 = vld [vmem:[%s2847_s0 + $0x20c] ss:$20 sps:$4 sm:$0xff]  }
  0x37   :  { %1763 = vmatpush1.bf16.msra.mxu1 %v2192_v30  ;;  %946 = vmatprep.subr.bf16.mxu0 %v2015_v0 }
  0x38   :  { %1748 = vmatprep.subr.bf16.mxu1 %v2015_v0 }
  0x3a   :  { %947 = vmatpush1.bf16.msra.mxu0 %v1877_v31  ;;  %v1970_v31 = vld [vmem:[%s2847_s0 + $0x208] ss:$20 sps:$4 sm:$0xff]  }
  0x3b   :  { %1764 = vmatpush1.bf16.msra.mxu1 %v2203_v32  ;;  %948 = vmatprep.subr.bf16.mxu0 %v2015_v0 }
  0x3c   :  { %1749 = vmatprep.subr.bf16.mxu1 %v2015_v0 }
  0x3e   :  { %949 = vmatpush1.bf16.msra.mxu0 %v1879_v33  ;;  %v1972_v33 = vld [vmem:[%s2847_s0 + $0x234] ss:$20 sps:$4 sm:$0xff]  }
  0x3f   :  { %1765 = vmatpush1.bf16.msra.mxu1 %v2214_v34  ;;  %1095 = vmatprep.subr.bf16.mxu0 %v2015_v0 }
  0x40   :  { %1682 = vmatprep.subr.bf16.mxu1 %v1893_v35 }
  0x41   :  { %951 = vmatmul.mubr.bf16.vlgmr.msra.gmra.mrb[0].mxu0 %v1881_v36  ;;  %v1976_v36 = vld [vmem:[%s2847_s0 + $0x88] ss:$20 sps:$4 sm:$0xff]  }
  0x42   :  { %1168 = vmatmul.mubr.bf16.vlgmr.msra.gmra.mrb[0].mxu1 %v1884_v37  ;;  %1096 = vmatpush1.bf16.msra.mxu0 %v2044_v2  ;;  %v1920_v2 = vld [vmem:[%s2847_s0 + $0xf4] ss:$20 sps:$4 sm:$0xff]   ;;  %v1977_v37 = vld [vmem:[%s2847_s0 + $0x25c] ss:$20 sps:$4 sm:$0xff]  }
  0x43   :  { %958 = vmatprep.mubr.bf16.mxu0 %v1887_v38  ;;  %1175 = vmatprep.mubr.bf16.mxu1 %v1889_v39  ;;  %v1979_v38 = vld [vmem:[%s2847_s0 + $0xb0] ss:$20 sps:$4 sm:$0xff]   ;;  %v1980_v39 = vld [vmem:[%s2847_s0 + $0x258] ss:$20 sps:$4 sm:$0xff]  }
  0x44   :  { %1097 = vmatprep.subr.bf16.mxu0 %v2015_v0  ;;  %1683 = vmatpush3.bf16.msra.mxu1 %v1893_v35  ;;  %v1975_v35 = vld [vmem:[%s2847_s0 + $0x230] ss:$20 sps:$4 sm:$0xff]  }
  0x45   :  { %1684 = vmatprep.subr.bf16.mxu1 %v1900_v40 }
  0x46   :  { %1098 = vmatpush1.bf16.msra.mxu0 %v2054_v4  ;;  %v1924_v4 = vld [vmem:[%s2847_s0 + $0xf0] ss:$20 sps:$4 sm:$0xff]  }
  0x47   :  { %1099 = vmatprep.subr.bf16.mxu0 %v2015_v0 }
  0x48   :  { %1685 = vmatpush3.bf16.msra.mxu1 %v1900_v40  ;;  %v1981_v40 = vld [vmem:[%s2847_s0 + $0xd8] ss:$20 sps:$4 sm:$0xff]  }
  0x49   :  { %959 = vmatmul.mubr.bf16.gmra.mrb[4].mxu0 %v1891_v41  ;;  %1686 = vmatprep.subr.bf16.mxu1 %v1913_v42  ;;  %v1982_v41 = vld [vmem:[%s2847_s0 + $0x284] ss:$20 sps:$4 sm:$0xff]  }
  0x4a   :  { %1176 = vmatmul.mubr.bf16.gmra.mrb[4].mxu1 %v1892_v43  ;;  %966 = vmatprep.mubr.bf16.mxu0 %v1894_v44  ;;  %v1985_v43 = vld [vmem:[%s2847_s0 + $0x280] ss:$20 sps:$4 sm:$0xff]   ;;  %v1986_v44 = vld [vmem:[%s2847_s0 + $0x128] ss:$20 sps:$4 sm:$0xff]  }
  0x4b   :  { %1183 = vmatprep.mubr.bf16.mxu1 %v1896_v45  ;;  %1100 = vmatpush1.bf16.msra.mxu0 %v2065_v6  ;;  %v1927_v6 = vld [vmem:[%s2847_s0 + $0x11c] ss:$20 sps:$4 sm:$0xff]   ;;  %v1987_v45 = vld [vmem:[%s2847_s0 + $0x2ac] ss:$20 sps:$4 sm:$0xff]  }
  0x4c   :  { %1101 = vmatprep.subr.bf16.mxu0 %v2015_v0  ;;  %1687 = vmatpush3.bf16.msra.mxu1 %v1913_v42  ;;  %v1984_v42 = vld [vmem:[%s2847_s0 + $0x100] ss:$20 sps:$4 sm:$0xff]  }
  0x4d   :  { %1688 = vmatprep.subr.bf16.mxu1 %v1926_v46 }
  0x4f   :  { %1102 = vmatpush1.bf16.msra.mxu0 %v2076_v8  ;;  %v1931_v8 = vld [vmem:[%s2847_s0 + $0x118] ss:$20 sps:$4 sm:$0xff]  }
  0x50   :  { %1103 = vmatprep.subr.bf16.mxu0 %v2015_v0  ;;  %1689 = vmatpush3.bf16.msra.mxu1 %v1926_v46  ;;  %v1989_v46 = vld [vmem:[%s2847_s0 + $0x150] ss:$20 sps:$4 sm:$0xff]  }
  0x51   :  { %967 = vmatmul.mubr.bf16.gmra.mrb[8].mxu0 %v1898_v47  ;;  %1690 = vmatprep.subr.bf16.mxu1 %v1933_v49  ;;  %v1990_v47 = vld [vmem:[%s2847_s0 + $0x2a8] ss:$20 sps:$4 sm:$0xff]  }
  0x52   :  { %1184 = vmatmul.mubr.bf16.gmra.mrb[8].mxu1 %v1899_v48  ;;  %974 = vmatprep.mubr.bf16.mxu0 %v1901_v50  ;;  %v1991_v48 = vld [vmem:[%s2847_s0 + $0x178] ss:$20 sps:$4 sm:$0xff]   ;;  %v1995_v50 = vld [vmem:[%s2847_s0 + $0x1a0] ss:$20 sps:$4 sm:$0xff]  }
  0x53   :  { %1191 = vmatprep.mubr.bf16.mxu1 %v1903_v51  ;;  %1104 = vmatpush1.bf16.msra.mxu0 %v2087_v10  ;;  %v1934_v10 = vld [vmem:[%s2847_s0 + $0x144] ss:$20 sps:$4 sm:$0xff]   ;;  %v1992_v51 = vld [vmem:[%s2847_s0 + $0x8] ss:$20 sps:$4 sm:$0xff]  }
  0x54   :  { %1105 = vmatprep.subr.bf16.mxu0 %v2015_v0  ;;  %1691 = vmatpush3.bf16.msra.mxu1 %v1933_v49  ;;  %v1994_v49 = vld [vmem:[%s2847_s0 + $0xc] ss:$20 sps:$4 sm:$0xff]  }
  0x55   :  { %1692 = vmatprep.subr.bf16.mxu1 %v1946_v52 }
  0x57   :  { %1106 = vmatpush1.bf16.msra.mxu0 %v2098_v12  ;;  %v1938_v12 = vld [vmem:[%s2847_s0 + $0x140] ss:$20 sps:$4 sm:$0xff]  }
  0x58   :  { %1107 = vmatprep.subr.bf16.mxu0 %v2015_v0  ;;  %1693 = vmatpush3.bf16.msra.mxu1 %v1946_v52  ;;  %v1996_v52 = vld [vmem:[%s2847_s0 + $0x1c8] ss:$20 sps:$4 sm:$0xff]  }
  0x59   :  { %975 = vmatmul.mubr.bf16.gmra.mrb[12].mxu0 %v1905_v53  ;;  %1694 = vmatprep.subr.bf16.mxu1 %v1957_v54  ;;  %v1997_v53 = vld [vmem:[%s2847_s0 + $0x34] ss:$20 sps:$4 sm:$0xff]  }
  0x5a   :  { %1192 = vmatmul.mubr.bf16.gmra.mrb[12].mxu1 %v1906_v55  ;;  %982 = vmatprep.mubr.bf16.mxu0 %v1907_v56  ;;  %v2000_v55 = vld [vmem:[%s2847_s0 + $0x30] ss:$20 sps:$4 sm:$0xff]   ;;  %v2001_v56 = vld [vmem:[%s2847_s0 + $0x218] ss:$20 sps:$4 sm:$0xff]  }
  0x5b   :  { %1199 = vmatprep.mubr.bf16.mxu1 %v1909_v57  ;;  %1108 = vmatpush1.bf16.msra.mxu0 %v2109_v14  ;;  %v1940_v14 = vld [vmem:[%s2847_s0 + $0x16c] ss:$20 sps:$4 sm:$0xff]   ;;  %v2002_v57 = vld [vmem:[%s2847_s0 + $0x5c] ss:$20 sps:$4 sm:$0xff]  }
  0x5c   :  { %1109 = vmatprep.subr.bf16.mxu0 %v2015_v0  ;;  %1695 = vmatpush3.bf16.msra.mxu1 %v1957_v54  ;;  %v1999_v54 = vld [vmem:[%s2847_s0 + $0x1f0] ss:$20 sps:$4 sm:$0xff]  }
  0x5d   :  { %1696 = vmatprep.subr.bf16.mxu1 %v1966_v58 }
  0x5f   :  { %1110 = vmatpush1.bf16.msra.mxu0 %v2120_v16  ;;  %v1945_v16 = vld [vmem:[%s2847_s0 + $0x238] ss:$20 sps:$4 sm:$0xff]  }
  0x60   :  { %1111 = vmatprep.subr.bf16.mxu0 %v2015_v0  ;;  %1697 = vmatpush3.bf16.msra.mxu1 %v1966_v58  ;;  %v2004_v58 = vld [vmem:[%s2847_s0 + $0x240] ss:$20 sps:$4 sm:$0xff]  }
  0x61   :  { %983 = vmatmul.mubr.bf16.gmra.mrb[16].mxu0 %v1911_v59  ;;  %v2005_v59 = vld [vmem:[%s2847_s0 + $0x58] ss:$20 sps:$4 sm:$0xff]  }
  0x62   :  { %1200 = vmatmul.mubr.bf16.gmra.mrb[16].mxu1 %v1912_v60  ;;  %990 = vmatprep.mubr.bf16.mxu0 %v1914_v61  ;;  %v2006_v60 = vld [vmem:[%s2847_s0 + $0x268] ss:$20 sps:$4 sm:$0xff]   ;;  %v2007_v61 = vld [vmem:[%s2847_s0 + $0x84] ss:$20 sps:$4 sm:$0xff]  }
  0x63   :  { %1207 = vmatprep.mubr.bf16.mxu1 %v1916_v62  ;;  %1112 = vmatpush1.bf16.msra.mxu0 %v2131_v18  ;;  %v1949_v18 = vld [vmem:[%s2847_s0 + $0x264] ss:$20 sps:$4 sm:$0xff]  }
  0x64   :  { %1113 = vmatprep.subr.bf16.mxu0 %v2015_v0  ;;  %v2009_v62 = vld [vmem:[%s2847_s0 + $0x290] ss:$20 sps:$4 sm:$0xff]  }
  0x67   :  { %1114 = vmatpush1.bf16.msra.mxu0 %v2148_v22  ;;  %v1955_v22 = vld [vmem:[%s2847_s0 + $0x28c] ss:$20 sps:$4 sm:$0xff]  }
  0x68   :  { %1115 = vmatprep.subr.bf16.mxu0 %v2015_v0 }
  0x69   :  { %991 = vmatmul.mubr.bf16.gmra.mrb[20].mxu0 %v1918_v63  ;;  %v2010_v63 = vld [vmem:[%s2847_s0 + $0x80] ss:$20 sps:$4 sm:$0xff]  }
  0x6a   :  { %1208 = vmatmul.mubr.bf16.gmra.mrb[20].mxu1 %v1919_v1  ;;  %998 = vmatprep.mubr.bf16.mxu0 %v1920_v2  ;;  %v2011_v1 = vld [vmem:[%s2847_s0 + $0x2b8] ss:$20 sps:$4 sm:$0xff]  }
  0x6b   :  { %1215 = vmatprep.mubr.bf16.mxu1 %v1922_v3  ;;  %1116 = vmatpush1.bf16.msra.mxu0 %v2159_v24  ;;  %v1959_v24 = vld [vmem:[%s2847_s0 + $0x288] ss:$20 sps:$4 sm:$0xff]   ;;  %v2012_v2 = vld [vmem:[%s2847_s0 + $0xac] ss:$20 sps:$4 sm:$0xff]  }
  0x6c   :  { %1117 = vmatprep.subr.bf16.mxu0 %v2015_v0  ;;  %v2014_v3 = vld [vmem:[%s2847_s0 + $0xa8] ss:$20 sps:$4 sm:$0xff]  }
  0x6f   :  { %1118 = vmatpush1.bf16.msra.mxu0 %v2170_v26  ;;  %v1962_v26 = vld [vmem:[%s2847_s0 + $0x2b4] ss:$20 sps:$4 sm:$0xff]  }
  0x70   :  { %1119 = vmatprep.subr.bf16.mxu0 %v2015_v0 }
  0x71   :  { %999 = vmatmul.mubr.bf16.gmra.mrb[24].mxu0 %v1924_v4 }
  0x72   :  { %1216 = vmatmul.mubr.bf16.gmra.mrb[24].mxu1 %v1925_v5  ;;  %1006 = vmatprep.mubr.bf16.mxu0 %v1927_v6 }
  0x73   :  { %1223 = vmatprep.mubr.bf16.mxu1 %v1929_v7  ;;  %1120 = vmatpush1.bf16.msra.mxu0 %v2181_v28  ;;  %v1965_v28 = vld [vmem:[%s2847_s0 + $0x2b0] ss:$20 sps:$4 sm:$0xff]  }
  0x74   :  { %1121 = vmatprep.subr.bf16.mxu0 %v2015_v0 }
  0x77   :  { %1122 = vmatpush1.bf16.msra.mxu0 %v2192_v30  ;;  %v1969_v30 = vld [vmem:[%s2847_s0 + $0x10] ss:$20 sps:$4 sm:$0xff]  }
  0x78   :  { %1123 = vmatprep.subr.bf16.mxu0 %v2015_v0 }
  0x79   :  { %1007 = vmatmul.mubr.bf16.gmra.mrb[28].mxu0 %v1931_v8 }
  0x7a   :  { %1224 = vmatmul.mubr.bf16.gmra.mrb[28].mxu1 %v1932_v9  ;;  %1014 = vmatprep.mubr.bf16.mxu0 %v1934_v10 }
  0x7b   :  { %1231 = vmatprep.mubr.bf16.mxu1 %v1936_v11  ;;  %1124 = vmatpush1.bf16.msra.mxu0 %v2203_v32  ;;  %v1971_v32 = vld [vmem:[%s2847_s0 + $0x38] ss:$20 sps:$4 sm:$0xff]  }
  0x7c   :  { %1125 = vmatprep.subr.bf16.mxu0 %v2015_v0  ;;  %v1944_v0 = vld [vmem:[%s2847_s0 + $0x168] ss:$20 sps:$4 sm:$0xff]  }
  0x7f   :  { %1126 = vmatpush1.bf16.msra.mxu0 %v2214_v34  ;;  %v1974_v34 = vld [vmem:[%s2847_s0 + $0x60] ss:$20 sps:$4 sm:$0xff]  }
  0x81   :  { %1015 = vmatmul.mubr.bf16.gmra.mrb[32].mxu0 %v1938_v12 }
  0x82   :  { %1232 = vmatmul.mubr.bf16.gmra.mrb[32].mxu1 %v1939_v13  ;;  %1022 = vmatprep.mubr.bf16.mxu0 %v1940_v14 }
  0x83   :  { %1239 = vmatprep.mubr.bf16.mxu1 %v1942_v15 }
  0x89   :  { %1023 = vmatmul.mubr.bf16.gmra.mrb[36].mxu0 %v1944_v0 }
  0x8a   :  { %1240 = vmatmul.mubr.bf16.gmra.mrb[36].mxu1 %v1945_v16  ;;  %1030 = vmatprep.mubr.bf16.mxu0 %v1947_v17 }
  0x8b   :  { %1247 = vmatprep.mubr.bf16.mxu1 %v1949_v18 }
  0x91   :  { %1031 = vmatmul.mubr.bf16.gmra.mrb[40].mxu0 %v1951_v19 }
  0x92   :  { %1248 = vmatmul.mubr.bf16.gmra.mrb[40].mxu1 %v1952_v20  ;;  %1038 = vmatprep.mubr.bf16.mxu0 %v1953_v21 }
  0x93   :  { %1255 = vmatprep.mubr.bf16.mxu1 %v1955_v22 }
  0x99   :  { %1039 = vmatmul.mubr.bf16.gmra.mrb[44].mxu0 %v1958_v23  ;;  %v2543_v23 = vld [vmem:[%s2848_s2] ss:$0 sm:$0xff] }
  0x9a   :  { %1256 = vmatmul.mubr.bf16.gmra.mrb[44].mxu1 %v1959_v24  ;;  %1046 = vmatprep.mubr.bf16.mxu0 %v1960_v25 }
  0x9b   :  { %1263 = vmatprep.mubr.bf16.mxu1 %v1962_v26 }
  0xa1   :  { %1047 = vmatmul.mubr.bf16.gmra.mrb[48].mxu0 %v1964_v27 }
  0xa2   :  { %1264 = vmatmul.mubr.bf16.gmra.mrb[48].mxu1 %v1965_v28  ;;  %1054 = vmatprep.mubr.bf16.mxu0 %v1967_v29 }
  0xa3   :  { %1698 = vmatprep.mubr.bf16.mxu1 %v1969_v30 }
  0xa9   :  { %1055 = vmatmul.mubr.bf16.gmra.mrb[52].mxu0 %v1970_v31 }
  0xaa   :  { %1699 = vmatmul.mubr.bf16.vlgmr.msra.gmra.mrb[52].mxu1 %v1971_v32  ;;  %1062 = vmatprep.mubr.bf16.mxu0 %v1972_v33 }
  0xab   :  { %1702 = vmatprep.mubr.bf16.mxu1 %v1974_v34 }
  0xb1   :  { %1063 = vmatmul.mubr.bf16.gmra.mrb[56].mxu0 %v1975_v35 }
  0xb2   :  { %1703 = vmatmul.mubr.bf16.gmra.mrb[56].mxu1 %v1976_v36  ;;  %1070 = vmatprep.mubr.bf16.mxu0 %v1977_v37 }
  0xb3   :  { %1706 = vmatprep.mubr.bf16.mxu1 %v1979_v38 }
  0xb9   :  { %1071 = vmatmul.mubr.bf16.gmra.mrb[60].mxu0 %v1980_v39 }
  0xba   :  { %1707 = vmatmul.mubr.bf16.gmra.mrb[60].mxu1 %v1981_v40  ;;  %1078 = vmatprep.mubr.bf16.mxu0 %v1982_v41 }
  0xbb   :  { %1710 = vmatprep.mubr.bf16.mxu1 %v1984_v42 }
  0xc1   :  { %1079 = vmatmul.mubr.bf16.gmra.mrb[64].mxu0 %v1985_v43 }
  0xc2   :  { %1711 = vmatmul.mubr.bf16.gmra.mrb[64].mxu1 %v1986_v44  ;;  %1086 = vmatprep.mubr.bf16.mxu0 %v1987_v45 }
  0xc3   :  { %1714 = vmatprep.mubr.bf16.mxu1 %v1989_v46 }
  0xc9   :  { %1087 = vmatmul.mubr.bf16.gmra.mrb[68].mxu0 %v1990_v47 }
  0xca   :  { %1715 = vmatmul.mubr.bf16.gmra.mrb[68].mxu1 %v1991_v48  ;;  %1127 = vmatprep.mubr.bf16.mxu0 %v1994_v49 }
  0xcb   :  { %1718 = vmatprep.mubr.bf16.mxu1 %v1995_v50 }
  0xd1   :  { %1128 = vmatmul.mubr.bf16.vlgmr.msra.gmra.mrb[0].mxu0 %v1992_v51 }
  0xd2   :  { %1719 = vmatmul.mubr.bf16.gmra.mrb[72].mxu1 %v1996_v52  ;;  %1135 = vmatprep.mubr.bf16.mxu0 %v1997_v53 }
  0xd3   :  { %1722 = vmatprep.mubr.bf16.mxu1 %v1999_v54 }
  0xd9   :  { %1136 = vmatmul.mubr.bf16.gmra.mrb[4].mxu0 %v2000_v55 }
  0xda   :  { %1723 = vmatmul.mubr.bf16.gmra.mrb[76].mxu1 %v2001_v56  ;;  %1143 = vmatprep.mubr.bf16.mxu0 %v2002_v57 }
  0xdb   :  { %1726 = vmatprep.mubr.bf16.mxu1 %v2004_v58 }
  0xe1   :  { %1144 = vmatmul.mubr.bf16.gmra.mrb[8].mxu0 %v2005_v59 }
  0xe2   :  { %1727 = vmatmul.mubr.bf16.gmra.mrb[80].mxu1 %v2006_v60  ;;  %1151 = vmatprep.mubr.bf16.mxu0 %v2007_v61 }
  0xe3   :  { %1730 = vmatprep.mubr.bf16.mxu1 %v2009_v62 }
  0xe9   :  { %1152 = vmatmul.mubr.bf16.gmra.mrb[12].mxu0 %v2010_v63 }
  0xea   :  { %1731 = vmatmul.mubr.bf16.gmra.mrb[84].mxu1 %v2011_v1  ;;  %1159 = vmatprep.mubr.bf16.mxu0 %v2012_v2 }
  0xf1   :  { %1160 = vmatmul.mubr.bf16.gmra.mrb[16].mxu0 %v2014_v3 }
 0x115   :  { %v1169_v4 = vpop.f32.mrb[0].mxu1 }
 0x116   :  { %v1171_v5 = vpop.f32.mrb[1].mxu1 }
 0x117   :  { %v1172_v6 = vpop.f32.mrb[2].mxu1 }
 0x118   :  { %v1174_v7 = vpop.f32.mrb[3].mxu1 }
 0x11d   :  { %v1177_v8 = vpop.f32.mrb[4].mxu1 }
 0x11e   :  { %v1179_v9 = vpop.f32.mrb[5].mxu1 }
 0x11f   :  { %v1180_v10 = vpop.f32.mrb[6].mxu1 }
 0x120   :  { %v1182_v11 = vpop.f32.mrb[7].mxu1 }
 0x125   :  { %v1185_v12 = vpop.f32.mrb[8].mxu1 }
 0x126   :  { %v1187_v13 = vpop.f32.mrb[9].mxu1 }
 0x127   :  { %v1188_v14 = vpop.f32.mrb[10].mxu1 }
 0x128   :  { %v1190_v15 = vpop.f32.mrb[11].mxu1 }
 0x12d   :  { %v1193_v0 = vpop.f32.mrb[12].mxu1 }
 0x12e   :  { %v1195_v16 = vpop.f32.mrb[13].mxu1 }
 0x12f   :  { %v1196_v17 = vpop.f32.mrb[14].mxu1 }
 0x130   :  { %v1198_v18 = vpop.f32.mrb[15].mxu1 }
 0x135   :  { %v2538_v19 = vpop.f32.mrb[16].mxu1 }
 0x136   :  { %v1203_v20 = vpop.f32.mrb[17].mxu1 }
 0x137   :  { %v1204_v21 = vpop.f32.mrb[18].mxu1 }
 0x138   :  { %v1206_v22 = vpop.f32.mrb[19].mxu1 }
 0x13c   :  { %v992_v24 = vpop.f32.mrb[20].mxu0 }
 0x13d   :  { %v993_v25 = vadd.f32 %v2543_v23, %v992_v24  ;;  %v994_v26 = vpop.f32.mrb[21].mxu0  ;;  %v2546_v27 = vpop.f32.mrb[20].mxu1 }
 0x13e   :  { %v995_v28 = vpop.f32.mrb[22].mxu0  ;;  %v1211_v29 = vpop.f32.mrb[21].mxu1 }
 0x13f   :  { %v996_v30 = vadd.f32 %v2543_v23, %v995_v28  ;;  %v997_v31 = vpop.f32.mrb[23].mxu0  ;;  %v2549_v32 = vpop.f32.mrb[22].mxu1  ;;  %v2551_v33 = vadd.f32 %v1169_v4, %v993_v25 }
 0x140   :  { %v1214_v34 = vpop.f32.mrb[23].mxu1 }
 0x141   :  { %v2553_v35 = vadd.f32 %v1172_v6, %v996_v30 }
 0x144   :  { %v1000_v36 = vpop.f32.mrb[24].mxu0 }
 0x145   :  { %v1001_v37 = vadd.f32 %v2543_v23, %v1000_v36  ;;  %v1002_v38 = vpop.f32.mrb[25].mxu0  ;;  %v2556_v39 = vpop.f32.mrb[24].mxu1 }
 0x146   :  { %v1003_v40 = vpop.f32.mrb[26].mxu0  ;;  %v1219_v41 = vpop.f32.mrb[25].mxu1 }
 0x147   :  { %v1004_v42 = vadd.f32 %v2543_v23, %v1003_v40  ;;  %v1005_v43 = vpop.f32.mrb[27].mxu0  ;;  %v2559_v44 = vpop.f32.mrb[26].mxu1  ;;  %v2561_v45 = vadd.f32 %v1177_v8, %v1001_v37 }
 0x148   :  { %v1222_v46 = vpop.f32.mrb[27].mxu1 }
 0x149   :  { %v2563_v47 = vadd.f32 %v1180_v10, %v1004_v42 }
 0x14c   :  { %v1008_v48 = vpop.f32.mrb[28].mxu0 }
 0x14d   :  { %v1009_v49 = vadd.f32 %v2543_v23, %v1008_v48  ;;  %v1010_v50 = vpop.f32.mrb[29].mxu0  ;;  %v2566_v51 = vpop.f32.mrb[28].mxu1 }
 0x14e   :  { %v1011_v52 = vpop.f32.mrb[30].mxu0  ;;  %v1227_v53 = vpop.f32.mrb[29].mxu1 }
 0x14f   :  { %v1012_v54 = vadd.f32 %v2543_v23, %v1011_v52  ;;  %v1013_v55 = vpop.f32.mrb[31].mxu0  ;;  %v2569_v56 = vpop.f32.mrb[30].mxu1  ;;  %v2571_v57 = vadd.f32 %v1185_v12, %v1009_v49 }
 0x150   :  { %v1230_v58 = vpop.f32.mrb[31].mxu1 }
 0x151   :  { %v2573_v59 = vadd.f32 %v1188_v14, %v1012_v54 }
 0x154   :  { %v1016_v60 = vpop.f32.mrb[32].mxu0 }
 0x155   :  { %v1017_v61 = vadd.f32 %v2543_v23, %v1016_v60  ;;  %v1018_v62 = vpop.f32.mrb[33].mxu0  ;;  %v2576_v63 = vpop.f32.mrb[32].mxu1 }
 0x156   :  { %v1019_v1 = vpop.f32.mrb[34].mxu0  ;;  %v1235_v2 = vpop.f32.mrb[33].mxu1 }
 0x157   :  { %v1020_v3 = vadd.f32 %v2543_v23, %v1019_v1  ;;  %v1021_v4 = vpop.f32.mrb[35].mxu0  ;;  %v2579_v5 = vpop.f32.mrb[34].mxu1  ;;  %v2581_v6 = vadd.f32 %v1193_v0, %v1017_v61 }
 0x158   :  { %v1238_v7 = vpop.f32.mrb[35].mxu1 }
 0x159   :  { %v2583_v8 = vadd.f32 %v1196_v17, %v1020_v3 }
 0x15c   :  { %v1024_v9 = vpop.f32.mrb[36].mxu0 }
 0x15d   :  { %v1025_v10 = vadd.f32 %v2543_v23, %v1024_v9  ;;  %v1026_v11 = vpop.f32.mrb[37].mxu0  ;;  %v2586_v12 = vpop.f32.mrb[36].mxu1 }
 0x15e   :  { %v1027_v13 = vpop.f32.mrb[38].mxu0  ;;  %v1243_v14 = vpop.f32.mrb[37].mxu1 }
 0x15f   :  { %v1028_v15 = vadd.f32 %v2543_v23, %v1027_v13  ;;  %v1029_v16 = vpop.f32.mrb[39].mxu0  ;;  %v2589_v18 = vpop.f32.mrb[38].mxu1  ;;  %v2592_v20 = vadd.f32 %v2538_v19, %v1025_v10 }
 0x160   :  { %v1246_v0 = vpop.f32.mrb[39].mxu1 }
 0x161   :  { %v2594_v22 = vadd.f32 %v1204_v21, %v1028_v15 }
 0x164   :  { %v1032_v17 = vpop.f32.mrb[40].mxu0 }
 0x165   :  { %v1033_v24 = vadd.f32 %v2543_v23, %v1032_v17  ;;  %v1034_v25 = vpop.f32.mrb[41].mxu0  ;;  %v2597_v26 = vpop.f32.mrb[40].mxu1 }
 0x166   :  { %v1035_v28 = vpop.f32.mrb[42].mxu0  ;;  %v1251_v29 = vpop.f32.mrb[41].mxu1 }
 0x167   :  { %v1036_v30 = vadd.f32 %v2543_v23, %v1035_v28  ;;  %v1037_v31 = vpop.f32.mrb[43].mxu0  ;;  %v2600_v34 = vpop.f32.mrb[42].mxu1  ;;  %v2603_v36 = vadd.f32 %v2546_v27, %v1033_v24 }
 0x168   :  { %v1254_v19 = vpop.f32.mrb[43].mxu1 }
 0x169   :  { %v2606_v21 = vadd.f32 %v2549_v32, %v1036_v30 }
 0x16c   :  { %v1040_v37 = vpop.f32.mrb[44].mxu0 }
 0x16d   :  { %v1041_v38 = vadd.f32 %v2543_v23, %v1040_v37  ;;  %v1042_v40 = vpop.f32.mrb[45].mxu0  ;;  %v2609_v41 = vpop.f32.mrb[44].mxu1 }
 0x16e   :  { %v1043_v42 = vpop.f32.mrb[46].mxu0  ;;  %v1259_v43 = vpop.f32.mrb[45].mxu1 }
 0x16f   :  { %v1044_v46 = vadd.f32 %v2543_v23, %v1043_v42  ;;  %v1045_v48 = vpop.f32.mrb[47].mxu0  ;;  %v2612_v49 = vpop.f32.mrb[46].mxu1  ;;  %v2615_v27 = vadd.f32 %v2556_v39, %v1041_v38 }
 0x170   :  { %v1262_v50 = vpop.f32.mrb[47].mxu1 }
 0x171   :  { %v2618_v32 = vadd.f32 %v2559_v44, %v1044_v46 }
 0x174   :  { %v1048_v52 = vpop.f32.mrb[48].mxu0 }
 0x175   :  { %v1049_v53 = vadd.f32 %v2543_v23, %v1048_v52  ;;  %v1050_v54 = vpop.f32.mrb[49].mxu0  ;;  %v2621_v55 = vpop.f32.mrb[48].mxu1 }
 0x176   :  { %v1051_v58 = vpop.f32.mrb[50].mxu0  ;;  %v1267_v60 = vpop.f32.mrb[49].mxu1 }
 0x177   :  { %v1052_v61 = vadd.f32 %v2543_v23, %v1051_v58  ;;  %v1053_v62 = vpop.f32.mrb[51].mxu0  ;;  %v2624_v1 = vpop.f32.mrb[50].mxu1  ;;  %v2627_v39 = vadd.f32 %v2566_v51, %v1049_v53 }
 0x178   :  { %v1270_v2 = vpop.f32.mrb[51].mxu1 }
 0x179   :  { %v2630_v44 = vadd.f32 %v2569_v56, %v1052_v61 }
 0x17c   :  { %v1056_v3 = vpop.f32.mrb[52].mxu0 }
 0x17d   :  { %v1057_v4 = vadd.f32 %v2543_v23, %v1056_v3  ;;  %v1058_v7 = vpop.f32.mrb[53].mxu0  ;;  %v2633_v9 = vpop.f32.mrb[52].mxu1 }
 0x17e   :  { %v1059_v10 = vpop.f32.mrb[54].mxu0  ;;  %v2635_v11 = vpop.f32.mrb[53].mxu1 }
 0x17f   :  { %v1060_v13 = vadd.f32 %v2543_v23, %v1059_v10  ;;  %v1061_v14 = vpop.f32.mrb[55].mxu0  ;;  %v2638_v15 = vpop.f32.mrb[54].mxu1  ;;  %v2641_v51 = vadd.f32 %v2576_v63, %v1057_v4 }
 0x180   :  { %v2643_v16 = vpop.f32.mrb[55].mxu1 }
 0x181   :  { %v2646_v56 = vadd.f32 %v2579_v5, %v1060_v13 }
 0x184   :  { %v1064_v0 = vpop.f32.mrb[56].mxu0 }
 0x185   :  { %v1065_v17 = vadd.f32 %v2543_v23, %v1064_v0  ;;  %v1066_v24 = vpop.f32.mrb[57].mxu0  ;;  %v2649_v25 = vpop.f32.mrb[56].mxu1 }
 0x186   :  { %v1067_v28 = vpop.f32.mrb[58].mxu0  ;;  %v2651_v29 = vpop.f32.mrb[57].mxu1 }
 0x187   :  { %v1068_v30 = vadd.f32 %v2543_v23, %v1067_v28  ;;  %v1069_v31 = vpop.f32.mrb[59].mxu0  ;;  %v2654_v19 = vpop.f32.mrb[58].mxu1  ;;  %v2657_v63 = vadd.f32 %v2586_v12, %v1065_v17 }
 0x188   :  { %v2659_v37 = vpop.f32.mrb[59].mxu1 }
 0x189   :  { %v2662_v5 = vadd.f32 %v2589_v18, %v1068_v30 }
 0x18c   :  { %v1072_v38 = vpop.f32.mrb[60].mxu0 }
 0x18d   :  { %v1073_v40 = vadd.f32 %v2543_v23, %v1072_v38  ;;  %v1708_v42 = vpop.f32.mrb[60].mxu1  ;;  %v1074_v43 = vpop.f32.mrb[61].mxu0 }
 0x18e   :  { %v1347_v46 = vadd.f32 %v1708_v42, %v2551_v33  ;;  %v2666_v48 = vpop.f32.mrb[61].mxu1  ;;  %v1075_v50 = vpop.f32.mrb[62].mxu0 }
 0x18f   :  { %v1076_v52 = vadd.f32 %v2543_v23, %v1075_v50  ;;  %v1709_v53 = vpop.f32.mrb[62].mxu1  ;;  %v1077_v12 = vpop.f32.mrb[63].mxu0  ;;  %v2670_v54 = vadd.f32 %v2597_v26, %v1073_v40 }
 0x190   :  { %v1459_v58 = vmax.f32 %v1347_v46, 0.0  ;;  %v1350_v18 = vadd.f32 %v1709_v53, %v2553_v35  ;;  %v2673_v60 = vpop.f32.mrb[63].mxu1 }
 0x191   :  { %v2676_v61 = vadd.f32 %v2600_v34, %v1076_v52 }
 0x192   :  { %1495 = vst [vmem:[%s2849_s3 + $0x50] sm:$0xff] %v1459_v58  ;;  %v1460_v33 = vmax.f32 %v1350_v18, 0.0 }
 0x194   :  { %1496 = vst [vmem:[%s2849_s3 + $0x58] sm:$0xff] %v1460_v33  ;;  %v1080_v62 = vpop.f32.mrb[64].mxu0 }
 0x195   :  { %v1081_v26 = vadd.f32 %v2543_v23, %v1080_v62  ;;  %v1712_v2 = vpop.f32.mrb[64].mxu1  ;;  %v1082_v3 = vpop.f32.mrb[65].mxu0 }
 0x196   :  { %v1363_v35 = vadd.f32 %v1712_v2, %v2571_v57  ;;  %v1354_v4 = vpop.f32.mrb[65].mxu1  ;;  %v1083_v7 = vpop.f32.mrb[66].mxu0 }
 0x197   :  { %v1355_v34 = vadd.f32 %v1354_v4, %v2561_v45  ;;  %v1084_v10 = vadd.f32 %v2543_v23, %v1083_v7  ;;  %v1713_v13 = vpop.f32.mrb[66].mxu1  ;;  %v1085_v14 = vpop.f32.mrb[67].mxu0  ;;  %v2689_v0 = vadd.f32 %v2609_v41, %v1081_v26 }
 0x198   :  { %v1463_v17 = vmax.f32 %v1363_v35, 0.0  ;;  %v1366_v24 = vadd.f32 %v1713_v13, %v2573_v59  ;;  %v1357_v28 = vpop.f32.mrb[67].mxu1 }
 0x199   :  { %v1461_v30 = vmax.f32 %v1355_v34, 0.0  ;;  %v1358_v31 = vadd.f32 %v1357_v28, %v2563_v47  ;;  %v2694_v57 = vadd.f32 %v2612_v49, %v1084_v10 }
 0x19a   :  { %1499 = vst [vmem:[%s2849_s3 + $0x70] sm:$0xff] %v1463_v17  ;;  %v1464_v45 = vmax.f32 %v1366_v24, 0.0 }
 0x19b   :  { %1497 = vst [vmem:[%s2849_s3 + $0x60] sm:$0xff] %v1461_v30  ;;  %v1462_v41 = vmax.f32 %v1358_v31, 0.0 }
 0x19c   :  { %1500 = vst [vmem:[%s2849_s3 + $0x78] sm:$0xff] %v1464_v45  ;;  %v1088_v59 = vpop.f32.mrb[68].mxu0 }
 0x19d   :  { %1498 = vst [vmem:[%s2849_s3 + $0x68] sm:$0xff] %v1462_v41  ;;  %v1089_v47 = vadd.f32 %v2543_v23, %v1088_v59  ;;  %v1716_v49 = vpop.f32.mrb[68].mxu1  ;;  %v1090_v38 = vpop.f32.mrb[69].mxu0 }
 0x19e   :  { %v1379_v40 = vadd.f32 %v1716_v49, %v2592_v20  ;;  %v1370_v42 = vpop.f32.mrb[69].mxu1  ;;  %v1091_v43 = vpop.f32.mrb[70].mxu0 }
 0x19f   :  { %v1371_v46 = vadd.f32 %v1370_v42, %v2581_v6  ;;  %v1092_v50 = vadd.f32 %v2543_v23, %v1091_v43  ;;  %v1717_v52 = vpop.f32.mrb[70].mxu1  ;;  %v1093_v53 = vpop.f32.mrb[71].mxu0  ;;  %v2713_v12 = vadd.f32 %v2621_v55, %v1089_v47 }
 0x1a0   :  { %v1467_v58 = vmax.f32 %v1379_v40, 0.0  ;;  %v1382_v18 = vadd.f32 %v1717_v52, %v2594_v22  ;;  %v1373_v33 = vpop.f32.mrb[71].mxu1 }
 0x1a1   :  { %v1465_v62 = vmax.f32 %v1371_v46, 0.0  ;;  %v1374_v26 = vadd.f32 %v1373_v33, %v2583_v8  ;;  %v2718_v20 = vadd.f32 %v2624_v1, %v1092_v50 }
 0x1a2   :  { %1503 = vst [vmem:[%s2849_s3 + $0x90] sm:$0xff] %v1467_v58  ;;  %v1468_v6 = vmax.f32 %v1382_v18, 0.0 }
 0x1a3   :  { %1501 = vst [vmem:[%s2849_s3 + $0x80] sm:$0xff] %v1465_v62  ;;  %v1466_v55 = vmax.f32 %v1374_v26, 0.0 }
 0x1a4   :  { %1504 = vst [vmem:[%s2849_s3 + $0x98] sm:$0xff] %v1468_v6  ;;  %v1129_v22 = vpop.f32.mrb[0].mxu0 }
 0x1a5   :  { %1502 = vst [vmem:[%s2849_s3 + $0x88] sm:$0xff] %v1466_v55  ;;  %v1766_v8 = vadd.f32 %v2543_v23, %v1129_v22  ;;  %v1720_v1 = vpop.f32.mrb[72].mxu1  ;;  %v1131_v2 = vpop.f32.mrb[1].mxu0 }
 0x1a6   :  { %v1395_v3 = vadd.f32 %v1720_v1, %v2615_v27  ;;  %v1386_v35 = vpop.f32.mrb[73].mxu1  ;;  %v1132_v4 = vpop.f32.mrb[2].mxu0 }
 0x1a7   :  { %v1307_v7 = vadd.f32 %v1766_v8, %v2635_v11  ;;  %v1387_v34 = vadd.f32 %v1386_v35, %v2603_v36  ;;  %v1767_v10 = vadd.f32 %v2543_v23, %v1132_v4  ;;  %v1721_v13 = vpop.f32.mrb[74].mxu1  ;;  %v1134_v14 = vpop.f32.mrb[3].mxu0 }
 0x1a8   :  { %v1471_v17 = vmax.f32 %v1395_v3, 0.0  ;;  %v1398_v24 = vadd.f32 %v1721_v13, %v2618_v32  ;;  %v1389_v28 = vpop.f32.mrb[75].mxu1 }
 0x1a9   :  { %v1449_v30 = vmax.f32 %v1307_v7, 0.0  ;;  %v1469_v31 = vmax.f32 %v1387_v34, 0.0  ;;  %v1310_v45 = vadd.f32 %v1767_v10, %v2643_v16  ;;  %v1390_v27 = vadd.f32 %v1389_v28, %v2606_v21 }
 0x1aa   :  { %1507 = vst [vmem:[%s2849_s3 + $0xb0] sm:$0xff] %v1471_v17  ;;  %v1472_v11 = vmax.f32 %v1398_v24, 0.0 }
 0x1ab   :  { %1485 = vst [vmem:[%s2849_s3] sm:$0xff] %v1449_v30  ;;  %1505 = vst [vmem:[%s2849_s3 + $0xa0] sm:$0xff] %v1469_v31  ;;  %v1450_v36 = vmax.f32 %v1310_v45, 0.0  ;;  %v1470_v32 = vmax.f32 %v1390_v27, 0.0 }
 0x1ac   :  { %1508 = vst [vmem:[%s2849_s3 + $0xb8] sm:$0xff] %v1472_v11  ;;  %v1137_v21 = vpop.f32.mrb[4].mxu0 }
 0x1ad   :  { %1486 = vst [vmem:[%s2849_s3 + $0x8] sm:$0xff] %v1450_v36  ;;  %1506 = vst [vmem:[%s2849_s3 + $0xa8] sm:$0xff] %v1470_v32  ;;  %v1768_v16 = vadd.f32 %v2543_v23, %v1137_v21  ;;  %v1724_v41 = vpop.f32.mrb[76].mxu1  ;;  %v1139_v59 = vpop.f32.mrb[5].mxu0 }
 0x1ae   :  { %v1411_v47 = vadd.f32 %v1724_v41, %v2641_v51  ;;  %v1402_v49 = vpop.f32.mrb[77].mxu1  ;;  %v1140_v38 = vpop.f32.mrb[6].mxu0 }
 0x1af   :  { %v1315_v40 = vadd.f32 %v1768_v16, %v2633_v9  ;;  %v1403_v42 = vadd.f32 %v1402_v49, %v2627_v39  ;;  %v1769_v43 = vadd.f32 %v2543_v23, %v1140_v38  ;;  %v1725_v46 = vpop.f32.mrb[78].mxu1  ;;  %v1142_v50 = vpop.f32.mrb[7].mxu0 }
 0x1b0   :  { %v1475_v52 = vmax.f32 %v1411_v47, 0.0  ;;  %v1414_v53 = vadd.f32 %v1725_v46, %v2646_v56  ;;  %v1405_v58 = vpop.f32.mrb[79].mxu1 }
 0x1b1   :  { %v1451_v18 = vmax.f32 %v1315_v40, 0.0  ;;  %v1473_v33 = vmax.f32 %v1403_v42, 0.0  ;;  %v1318_v62 = vadd.f32 %v1769_v43, %v2638_v15  ;;  %v1406_v51 = vadd.f32 %v1405_v58, %v2630_v44 }
 0x1b2   :  { %1511 = vst [vmem:[%s2849_s3 + $0xd0] sm:$0xff] %v1475_v52  ;;  %v1476_v9 = vmax.f32 %v1414_v53, 0.0 }
 0x1b3   :  { %1487 = vst [vmem:[%s2849_s3 + $0x10] sm:$0xff] %v1451_v18  ;;  %1509 = vst [vmem:[%s2849_s3 + $0xc0] sm:$0xff] %v1473_v33  ;;  %v1452_v39 = vmax.f32 %v1318_v62, 0.0  ;;  %v1474_v56 = vmax.f32 %v1406_v51, 0.0 }
 0x1b4   :  { %1512 = vst [vmem:[%s2849_s3 + $0xd8] sm:$0xff] %v1476_v9  ;;  %v1145_v44 = vpop.f32.mrb[8].mxu0 }
 0x1b5   :  { %1488 = vst [vmem:[%s2849_s3 + $0x18] sm:$0xff] %v1452_v39  ;;  %1510 = vst [vmem:[%s2849_s3 + $0xc8] sm:$0xff] %v1474_v56  ;;  %v1770_v15 = vadd.f32 %v2543_v23, %v1145_v44  ;;  %v1728_v26 = vpop.f32.mrb[80].mxu1  ;;  %v1147_v6 = vpop.f32.mrb[9].mxu0 }
 0x1b6   :  { %v1427_v55 = vadd.f32 %v1728_v26, %v2670_v54  ;;  %v1418_v22 = vpop.f32.mrb[81].mxu1  ;;  %v1148_v8 = vpop.f32.mrb[10].mxu0 }
 0x1b7   :  { %v1323_v1 = vadd.f32 %v1770_v15, %v2651_v29  ;;  %v1419_v2 = vadd.f32 %v1418_v22, %v2657_v63  ;;  %v1771_v3 = vadd.f32 %v2543_v23, %v1148_v8  ;;  %v1729_v35 = vpop.f32.mrb[82].mxu1  ;;  %v1150_v4 = vpop.f32.mrb[11].mxu0 }
 0x1b8   :  { %v1479_v7 = vmax.f32 %v1427_v55, 0.0  ;;  %v1430_v34 = vadd.f32 %v1729_v35, %v2676_v61  ;;  %v1421_v10 = vpop.f32.mrb[83].mxu1 }
 0x1b9   :  { %v1453_v13 = vmax.f32 %v1323_v1, 0.0  ;;  %v1477_v14 = vmax.f32 %v1419_v2, 0.0  ;;  %v1326_v17 = vadd.f32 %v1771_v3, %v2659_v37  ;;  %v1422_v54 = vadd.f32 %v1421_v10, %v2662_v5 }
 0x1ba   :  { %1515 = vst [vmem:[%s2849_s3 + $0xf0] sm:$0xff] %v1479_v7  ;;  %v1480_v29 = vmax.f32 %v1430_v34, 0.0 }
 0x1bb   :  { %1489 = vst [vmem:[%s2849_s3 + $0x20] sm:$0xff] %v1453_v13  ;;  %1513 = vst [vmem:[%s2849_s3 + $0xe0] sm:$0xff] %v1477_v14  ;;  %v1454_v63 = vmax.f32 %v1326_v17, 0.0  ;;  %v1478_v61 = vmax.f32 %v1422_v54, 0.0 }
 0x1bc   :  { %1516 = vst [vmem:[%s2849_s3 + $0xf8] sm:$0xff] %v1480_v29  ;;  %v1153_v37 = vpop.f32.mrb[12].mxu0 }
 0x1bd   :  { %1490 = vst [vmem:[%s2849_s3 + $0x28] sm:$0xff] %v1454_v63  ;;  %1514 = vst [vmem:[%s2849_s3 + $0xe8] sm:$0xff] %v1478_v61  ;;  %v1772_v5 = vadd.f32 %v2543_v23, %v1153_v37  ;;  %v1732_v24 = vpop.f32.mrb[84].mxu1  ;;  %v1155_v28 = vpop.f32.mrb[13].mxu0 }
 0x1be   :  { %v1443_v30 = vadd.f32 %v1732_v24, %v2713_v12  ;;  %v1434_v31 = vpop.f32.mrb[85].mxu1  ;;  %v1156_v45 = vpop.f32.mrb[14].mxu0 }
 0x1bf   :  { %v1331_v27 = vadd.f32 %v1772_v5, %v2649_v25  ;;  %v1435_v11 = vadd.f32 %v1434_v31, %v2689_v0  ;;  %v1773_v36 = vadd.f32 %v2543_v23, %v1156_v45  ;;  %v1733_v32 = vpop.f32.mrb[86].mxu1  ;;  %v1158_v21 = vpop.f32.mrb[15].mxu0 }
 0x1c0   :  { %v1483_v16 = vmax.f32 %v1443_v30, 0.0  ;;  %v1446_v41 = vadd.f32 %v1733_v32, %v2718_v20  ;;  %v1437_v59 = vpop.f32.mrb[87].mxu1 }
 0x1c1   :  { %v1455_v47 = vmax.f32 %v1331_v27, 0.0  ;;  %v1481_v49 = vmax.f32 %v1435_v11, 0.0  ;;  %v1334_v38 = vadd.f32 %v1773_v36, %v2654_v19  ;;  %v1438_v12 = vadd.f32 %v1437_v59, %v2694_v57 }
 0x1c2   :  { %1519 = vst [vmem:[%s2849_s3 + $0x110] sm:$0xff] %v1483_v16  ;;  %v1484_v25 = vmax.f32 %v1446_v41, 0.0 }
 0x1c3   :  { %1491 = vst [vmem:[%s2849_s3 + $0x30] sm:$0xff] %v1455_v47  ;;  %1517 = vst [vmem:[%s2849_s3 + $0x100] sm:$0xff] %v1481_v49  ;;  %v1456_v0 = vmax.f32 %v1334_v38, 0.0  ;;  %v1482_v20 = vmax.f32 %v1438_v12, 0.0 }
 0x1c4   :  { %1520 = vst [vmem:[%s2849_s3 + $0x118] sm:$0xff] %v1484_v25  ;;  %v1161_v19 = vpop.f32.mrb[16].mxu0 }
 0x1c5   :  { %1492 = vst [vmem:[%s2849_s3 + $0x38] sm:$0xff] %v1456_v0  ;;  %1518 = vst [vmem:[%s2849_s3 + $0x108] sm:$0xff] %v1482_v20  ;;  %v1774_v57 = vadd.f32 %v2543_v23, %v1161_v19  ;;  %v1163_v40 = vpop.f32.mrb[17].mxu0 }
 0x1c6   :  { %v1164_v42 = vpop.f32.mrb[18].mxu0 }
 0x1c7   :  { %v1339_v43 = vadd.f32 %v1774_v57, %v2666_v48  ;;  %v1775_v46 = vadd.f32 %v2543_v23, %v1164_v42  ;;  %v1166_v50 = vpop.f32.mrb[19].mxu0 }
 0x1c9   :  { %v1457_v52 = vmax.f32 %v1339_v43, 0.0  ;;  %v1342_v53 = vadd.f32 %v1775_v46, %v2673_v60 }
 0x1cb   :  { %1493 = vst [vmem:[%s2849_s3 + $0x40] sm:$0xff] %v1457_v52  ;;  %v1458_v58 = vmax.f32 %v1342_v53, 0.0 }
 0x1cd   :  { %1494 = vst [vmem:[%s2849_s3 + $0x48] sm:$0xff] %v1458_v58 }

// kernel: alexnet_forward.17
= control target key start
LH: loop header
LB: loop body
LE: loop exit
PB: predicated region body
PF: predicated region fallthrough
CT: control target
= control target key end

     0   :  { %v3409_v0 = vmov 0   ;;  %s4705_s1 = inlined_call_operand.vmem [shape: bf16[1152,128], index: 1, kind: input, shape index: {}]   ;;  %s4706_s0 = inlined_call_operand.vmem [shape: bf16[288,1152], index: 0, kind: input, shape index: {}]   ;;  %s4707_s2 = inlined_call_operand.vmem [shape: f32[1,128], index: 2, kind: input, shape index: {}]   ;;  %s4708_s3 = inlined_call_operand.vmem [shape: f32[288,128], index: 3, kind: output, shape index: {}]  }
   0x1   :  { %1606 = vmatprep.subr.bf16.mxu1 %v3409_v0  ;;  %1783 = vmatprep.subr.bf16.mxu0 %v3409_v0  ;;  %v3103_v1 = vld [vmem:[%s4705_s1] sm:$0xff]   ;;  %v3105_v3 = vld [vmem:[%s4705_s1 + $0x8] sm:$0xff]   ;;  %v3107_v5 = vld [vmem:[%s4705_s1 + $0x10] sm:$0xff]  }
   0x2   :  { %v3104_v2 = vld [vmem:[%s4705_s1 + $0x80] sm:$0xff]   ;;  %1607 = vmatpush1.bf16.msra.mxu1 %v3103_v1  ;;  %v3106_v4 = vld [vmem:[%s4705_s1 + $0x88] sm:$0xff]   ;;  %v3108_v6 = vld [vmem:[%s4705_s1 + $0x90] sm:$0xff]  }
   0x3   :  { %1784 = vmatpush1.bf16.msra.mxu0 %v3104_v2  ;;  %1608 = vmatprep.subr.bf16.mxu1 %v3409_v0  ;;  %v3109_v7 = vld [vmem:[%s4705_s1 + $0x18] sm:$0xff]   ;;  %v3111_v9 = vld [vmem:[%s4705_s1 + $0x20] sm:$0xff]   ;;  %v3113_v11 = vld [vmem:[%s4705_s1 + $0x28] sm:$0xff]  }
   0x4   :  { %1785 = vmatprep.subr.bf16.mxu0 %v3409_v0  ;;  %v3110_v8 = vld [vmem:[%s4705_s1 + $0x98] sm:$0xff]   ;;  %v3112_v10 = vld [vmem:[%s4705_s1 + $0xa0] sm:$0xff]   ;;  %v3114_v12 = vld [vmem:[%s4705_s1 + $0xa8] sm:$0xff]  }
   0x5   :  { %v3115_v13 = vld [vmem:[%s4705_s1 + $0x30] sm:$0xff]   ;;  %v3117_v15 = vld [vmem:[%s4705_s1 + $0x38] sm:$0xff]   ;;  %v3119_v17 = vld [vmem:[%s4705_s1 + $0x40] sm:$0xff]  }
   0x6   :  { %1609 = vmatpush1.bf16.msra.mxu1 %v3105_v3  ;;  %v3116_v14 = vld [vmem:[%s4705_s1 + $0xb0] sm:$0xff]   ;;  %v3118_v16 = vld [vmem:[%s4705_s1 + $0xb8] sm:$0xff]   ;;  %v3120_v18 = vld [vmem:[%s4705_s1 + $0xc0] sm:$0xff]  }
   0x7   :  { %1786 = vmatpush1.bf16.msra.mxu0 %v3106_v4  ;;  %1610 = vmatprep.subr.bf16.mxu1 %v3409_v0  ;;  %v3137_v19 = vld [vmem:[%s4706_s0 + $0x4] ss:$36 sps:$4 sm:$0xff]   ;;  %v3140_v21 = vld [vmem:[%s4706_s0 + $0xc] ss:$36 sps:$4 sm:$0xff]   ;;  %v3125_v25 = vld [vmem:[%s4705_s1 + $0x58] sm:$0xff]  }
   0x8   :  { %1787 = vmatprep.subr.bf16.mxu0 %v3409_v0  ;;  %v3121_v20 = vld [vmem:[%s4705_s1 + $0x48] sm:$0xff]   ;;  %1638 = vmatprep.mubr.bf16.mxu1 %v3137_v19  ;;  %v3123_v23 = vld [vmem:[%s4705_s1 + $0x50] sm:$0xff]   ;;  %v3126_v26 = vld [vmem:[%s4705_s1 + $0xd8] sm:$0xff]  }
   0x9   :  { %v3122_v22 = vld [vmem:[%s4705_s1 + $0xc8] sm:$0xff]   ;;  %1815 = vmatprep.mubr.bf16.mxu0 %v3140_v21  ;;  %v3124_v24 = vld [vmem:[%s4705_s1 + $0xd0] sm:$0xff]   ;;  %v3127_v27 = vld [vmem:[%s4705_s1 + $0x60] sm:$0xff]  }
   0xa   :  { %1611 = vmatpush1.bf16.msra.mxu1 %v3107_v5  ;;  %v3128_v28 = vld [vmem:[%s4705_s1 + $0xe0] sm:$0xff]   ;;  %v3129_v29 = vld [vmem:[%s4705_s1 + $0x68] sm:$0xff]   ;;  %v3131_v31 = vld [vmem:[%s4705_s1 + $0x70] sm:$0xff]  }
   0xb   :  { %1788 = vmatpush1.bf16.msra.mxu0 %v3108_v6  ;;  %1612 = vmatprep.subr.bf16.mxu1 %v3409_v0  ;;  %v3130_v30 = vld [vmem:[%s4705_s1 + $0xe8] sm:$0xff]   ;;  %v3132_v32 = vld [vmem:[%s4705_s1 + $0xf0] sm:$0xff]   ;;  %v3133_v33 = vld [vmem:[%s4705_s1 + $0x78] sm:$0xff]  }
   0xc   :  { %1789 = vmatprep.subr.bf16.mxu0 %v3409_v0  ;;  %v3134_v34 = vld [vmem:[%s4705_s1 + $0xf8] sm:$0xff]   ;;  %v3135_v35 = vld [vmem:[%s4706_s0] ss:$36 sps:$4 sm:$0xff]   ;;  %v3138_v36 = vld [vmem:[%s4706_s0 + $0x8] ss:$36 sps:$4 sm:$0xff]  }
   0xd   :  { %v3141_v37 = vld [vmem:[%s4705_s1 + $0x100] sm:$0xff]   ;;  %v3142_v38 = vld [vmem:[%s4706_s0 + $0x4c] ss:$36 sps:$4 sm:$0xff]   ;;  %v3144_v39 = vld [vmem:[%s4706_s0 + $0x54] ss:$36 sps:$4 sm:$0xff]  }
   0xe   :  { %1613 = vmatpush1.bf16.msra.mxu1 %v3109_v7  ;;  %v3584_v40 = vld [vmem:[%s4705_s1 + $0x180] sm:$0xff]   ;;  %v3148_v41 = vld [vmem:[%s4705_s1 + $0x108] sm:$0xff]   ;;  %v3147_v43 = vld [vmem:[%s4706_s0 + $0x50] ss:$36 sps:$4 sm:$0xff]  }
   0xf   :  { %1790 = vmatpush1.bf16.msra.mxu0 %v3110_v8  ;;  %1614 = vmatprep.subr.bf16.mxu1 %v3409_v0  ;;  %v3146_v42 = vld [vmem:[%s4706_s0 + $0x48] ss:$36 sps:$4 sm:$0xff]   ;;  %v3150_v45 = vld [vmem:[%s4706_s0 + $0x94] ss:$36 sps:$4 sm:$0xff]   ;;  %v3152_v46 = vld [vmem:[%s4706_s0 + $0x9c] ss:$36 sps:$4 sm:$0xff]  }
  0x10   :  { %1791 = vmatprep.subr.bf16.mxu0 %v3409_v0  ;;  %v3600_v44 = vld [vmem:[%s4705_s1 + $0x188] sm:$0xff]   ;;  %v3156_v47 = vld [vmem:[%s4705_s1 + $0x110] sm:$0xff]   ;;  %v3164_v50 = vld [vmem:[%s4705_s1 + $0x118] sm:$0xff]  }
  0x11   :  { %v3617_v48 = vld [vmem:[%s4705_s1 + $0x190] sm:$0xff]   ;;  %v3631_v51 = vld [vmem:[%s4705_s1 + $0x198] sm:$0xff]   ;;  %v3160_v54 = vld [vmem:[%s4706_s0 + $0xe4] ss:$36 sps:$4 sm:$0xff]  }
  0x12   :  { %1615 = vmatpush1.bf16.msra.mxu1 %v3111_v9  ;;  %v3154_v49 = vld [vmem:[%s4706_s0 + $0x90] ss:$36 sps:$4 sm:$0xff]   ;;  %v3155_v52 = vld [vmem:[%s4706_s0 + $0x98] ss:$36 sps:$4 sm:$0xff]   ;;  %v3172_v55 = vld [vmem:[%s4705_s1 + $0x120] sm:$0xff]  }
  0x13   :  { %1792 = vmatpush1.bf16.msra.mxu0 %v3112_v10  ;;  %1616 = vmatprep.subr.bf16.mxu1 %v3409_v0  ;;  %v3158_v53 = vld [vmem:[%s4706_s0 + $0xdc] ss:$36 sps:$4 sm:$0xff]   ;;  %v3180_v58 = vld [vmem:[%s4705_s1 + $0x128] sm:$0xff]   ;;  %v3192_v63 = vld [vmem:[%s4705_s1 + $0x130] sm:$0xff]  }
  0x14   :  { %1793 = vmatprep.subr.bf16.mxu0 %v3409_v0  ;;  %v3651_v56 = vld [vmem:[%s4705_s1 + $0x1a0] sm:$0xff]   ;;  %v3162_v57 = vld [vmem:[%s4706_s0 + $0xd8] ss:$36 sps:$4 sm:$0xff]   ;;  %v3665_v59 = vld [vmem:[%s4705_s1 + $0x1a8] sm:$0xff]  }
  0x15   :  { %v3163_v60 = vld [vmem:[%s4706_s0 + $0xe0] ss:$36 sps:$4 sm:$0xff]   ;;  %v3168_v62 = vld [vmem:[%s4706_s0 + $0x12c] ss:$36 sps:$4 sm:$0xff]   ;;  %v3202_v3 = vld [vmem:[%s4705_s1 + $0x138] sm:$0xff]  }
  0x16   :  { %1617 = vmatpush1.bf16.msra.mxu1 %v3113_v11  ;;  %v3166_v61 = vld [vmem:[%s4706_s0 + $0x124] ss:$36 sps:$4 sm:$0xff]   ;;  %v3685_v1 = vld [vmem:[%s4705_s1 + $0x1b0] sm:$0xff]   ;;  %v3702_v5 = vld [vmem:[%s4705_s1 + $0x1b8] sm:$0xff]  }
  0x17   :  { %1794 = vmatpush1.bf16.msra.mxu0 %v3114_v12  ;;  %1618 = vmatprep.subr.bf16.mxu1 %v3409_v0  ;;  %v3170_v2 = vld [vmem:[%s4706_s0 + $0x120] ss:$36 sps:$4 sm:$0xff]   ;;  %v3171_v4 = vld [vmem:[%s4706_s0 + $0x128] ss:$36 sps:$4 sm:$0xff]   ;;  %v3176_v7 = vld [vmem:[%s4706_s0 + $0x174] ss:$36 sps:$4 sm:$0xff]  }
  0x18   :  { %1795 = vmatprep.subr.bf16.mxu0 %v3409_v0  ;;  %v3174_v6 = vld [vmem:[%s4706_s0 + $0x16c] ss:$36 sps:$4 sm:$0xff]   ;;  %v3210_v8 = vld [vmem:[%s4705_s1 + $0x140] sm:$0xff]   ;;  %v3770_v21 = vld [vmem:[%s4705_s1 + $0x1d8] sm:$0xff]  }
  0x19   :  { %v3719_v9 = vld [vmem:[%s4705_s1 + $0x1c0] sm:$0xff]   ;;  %v3178_v10 = vld [vmem:[%s4706_s0 + $0x168] ss:$36 sps:$4 sm:$0xff]   ;;  %v3186_v19 = vld [vmem:[%s4706_s0 + $0x1b0] ss:$36 sps:$4 sm:$0xff]  }
  0x1a   :  { %1619 = vmatpush1.bf16.msra.mxu1 %v3115_v13  ;;  %v3218_v11 = vld [vmem:[%s4705_s1 + $0x148] sm:$0xff]   ;;  %v3179_v13 = vld [vmem:[%s4706_s0 + $0x170] ss:$36 sps:$4 sm:$0xff]  }
  0x1b   :  { %1796 = vmatpush1.bf16.msra.mxu0 %v3116_v14  ;;  %1620 = vmatprep.subr.bf16.mxu1 %v3409_v0  ;;  %v3733_v12 = vld [vmem:[%s4705_s1 + $0x1c8] sm:$0xff]   ;;  %v3182_v14 = vld [vmem:[%s4706_s0 + $0x1b4] ss:$36 sps:$4 sm:$0xff]  }
  0x1c   :  { %1797 = vmatprep.subr.bf16.mxu0 %v3409_v0 }
  0x1e   :  { %1621 = vmatpush1.bf16.msra.mxu1 %v3117_v15  ;;  %v3184_v15 = vld [vmem:[%s4706_s0 + $0x1bc] ss:$36 sps:$4 sm:$0xff]  }
  0x1f   :  { %1798 = vmatpush1.bf16.msra.mxu0 %v3118_v16  ;;  %1622 = vmatprep.subr.bf16.mxu1 %v3409_v0  ;;  %v3226_v16 = vld [vmem:[%s4705_s1 + $0x150] sm:$0xff]  }
  0x20   :  { %1799 = vmatprep.subr.bf16.mxu0 %v3409_v0 }
  0x22   :  { %1623 = vmatpush1.bf16.msra.mxu1 %v3119_v17  ;;  %v3753_v17 = vld [vmem:[%s4705_s1 + $0x1d0] sm:$0xff]  }
  0x23   :  { %1800 = vmatpush1.bf16.msra.mxu0 %v3120_v18  ;;  %1624 = vmatprep.subr.bf16.mxu1 %v3409_v0  ;;  %v3234_v18 = vld [vmem:[%s4705_s1 + $0x158] sm:$0xff]  }
  0x24   :  { %1801 = vmatprep.subr.bf16.mxu0 %v3409_v0 }
  0x26   :  { %1625 = vmatpush1.bf16.msra.mxu1 %v3121_v20  ;;  %v3187_v20 = vld [vmem:[%s4706_s0 + $0x1b8] ss:$36 sps:$4 sm:$0xff]  }
  0x27   :  { %1802 = vmatpush1.bf16.msra.mxu0 %v3122_v22  ;;  %1626 = vmatprep.subr.bf16.mxu1 %v3409_v0  ;;  %v3188_v22 = vld [vmem:[%s4706_s0 + $0x1fc] ss:$36 sps:$4 sm:$0xff]  }
  0x28   :  { %1803 = vmatprep.subr.bf16.mxu0 %v3409_v0 }
  0x2a   :  { %1627 = vmatpush1.bf16.msra.mxu1 %v3123_v23  ;;  %v3190_v23 = vld [vmem:[%s4706_s0 + $0x204] ss:$36 sps:$4 sm:$0xff]  }
  0x2b   :  { %1804 = vmatpush1.bf16.msra.mxu0 %v3124_v24  ;;  %1628 = vmatprep.subr.bf16.mxu1 %v3409_v0  ;;  %v3242_v24 = vld [vmem:[%s4705_s1 + $0x160] sm:$0xff]  }
  0x2c   :  { %1805 = vmatprep.subr.bf16.mxu0 %v3409_v0 }
  0x2e   :  { %1629 = vmatpush1.bf16.msra.mxu1 %v3125_v25  ;;  %v3787_v25 = vld [vmem:[%s4705_s1 + $0x1e0] sm:$0xff]  }
  0x2f   :  { %1806 = vmatpush1.bf16.msra.mxu0 %v3126_v26  ;;  %1630 = vmatprep.subr.bf16.mxu1 %v3409_v0  ;;  %v3194_v26 = vld [vmem:[%s4706_s0 + $0x1f8] ss:$36 sps:$4 sm:$0xff]  }
  0x30   :  { %1807 = vmatprep.subr.bf16.mxu0 %v3409_v0 }
  0x32   :  { %1631 = vmatpush1.bf16.msra.mxu1 %v3127_v27  ;;  %v3250_v27 = vld [vmem:[%s4705_s1 + $0x168] sm:$0xff]  }
  0x33   :  { %1808 = vmatpush1.bf16.msra.mxu0 %v3128_v28  ;;  %1632 = vmatprep.subr.bf16.mxu1 %v3409_v0  ;;  %v3195_v28 = vld [vmem:[%s4706_s0 + $0x200] ss:$36 sps:$4 sm:$0xff]  }
  0x34   :  { %1809 = vmatprep.subr.bf16.mxu0 %v3409_v0 }
  0x36   :  { %1633 = vmatpush1.bf16.msra.mxu1 %v3129_v29  ;;  %v3804_v29 = vld [vmem:[%s4705_s1 + $0x1e8] sm:$0xff]  }
  0x37   :  { %1810 = vmatpush1.bf16.msra.mxu0 %v3130_v30  ;;  %1634 = vmatprep.subr.bf16.mxu1 %v3409_v0  ;;  %v3196_v30 = vld [vmem:[%s4706_s0 + $0x244] ss:$36 sps:$4 sm:$0xff]  }
  0x38   :  { %1811 = vmatprep.subr.bf16.mxu0 %v3409_v0 }
  0x3a   :  { %1635 = vmatpush1.bf16.msra.mxu1 %v3131_v31  ;;  %v3198_v31 = vld [vmem:[%s4706_s0 + $0x24c] ss:$36 sps:$4 sm:$0xff]  }
  0x3b   :  { %1812 = vmatpush1.bf16.msra.mxu0 %v3132_v32  ;;  %1636 = vmatprep.subr.bf16.mxu1 %v3409_v0  ;;  %v3262_v32 = vld [vmem:[%s4705_s1 + $0x170] sm:$0xff]  }
  0x3c   :  { %1813 = vmatprep.subr.bf16.mxu0 %v3409_v0 }
  0x3e   :  { %1637 = vmatpush1.bf16.msra.mxu1 %v3133_v33  ;;  %v3821_v33 = vld [vmem:[%s4705_s1 + $0x1f0] sm:$0xff]  }
  0x3f   :  { %1814 = vmatpush1.bf16.msra.mxu0 %v3134_v34  ;;  %2880 = vmatprep.subr.bf16.mxu1 %v3409_v0  ;;  %v3272_v34 = vld [vmem:[%s4705_s1 + $0x178] sm:$0xff]  }
  0x40   :  { %1960 = vmatprep.subr.bf16.mxu0 %v3409_v0 }
  0x41   :  { %1639 = vmatmul.mubr.bf16.vlgmr.msra.gmra.mrb[0].mxu1 %v3135_v35  ;;  %v3200_v35 = vld [vmem:[%s4706_s0 + $0x240] ss:$36 sps:$4 sm:$0xff]  }
  0x42   :  { %1816 = vmatmul.mubr.bf16.vlgmr.msra.gmra.mrb[0].mxu0 %v3138_v36  ;;  %1646 = vmatprep.mubr.bf16.mxu1 %v3142_v38  ;;  %v3835_v36 = vld [vmem:[%s4705_s1 + $0x1f8] sm:$0xff]   ;;  %v3201_v38 = vld [vmem:[%s4706_s0 + $0x248] ss:$36 sps:$4 sm:$0xff]  }
  0x43   :  { %1961 = vmatpush1.bf16.msra.mxu0 %v3141_v37  ;;  %1823 = vmatprep.mubr.bf16.mxu0 %v3144_v39  ;;  %v3841_v37 = vld [vmem:[%s4705_s1 + $0x200] sm:$0xff]   ;;  %v3204_v39 = vld [vmem:[%s4706_s0 + $0x28c] ss:$36 sps:$4 sm:$0xff]  }
  0x44   :  { %1962 = vmatprep.subr.bf16.mxu0 %v3409_v0  ;;  %2896 = vmatpush1.bf16.msra.mxu1 %v3584_v40 }
  0x45   :  { %2881 = vmatprep.subr.bf16.mxu1 %v3409_v0 }
  0x47   :  { %1963 = vmatpush1.bf16.msra.mxu0 %v3148_v41  ;;  %v3206_v41 = vld [vmem:[%s4706_s0 + $0x294] ss:$36 sps:$4 sm:$0xff]  }
  0x48   :  { %1964 = vmatprep.subr.bf16.mxu0 %v3409_v0  ;;  %2897 = vmatpush1.bf16.msra.mxu1 %v3600_v44 }
  0x49   :  { %1647 = vmatmul.mubr.bf16.gmra.mrb[4].mxu1 %v3146_v42  ;;  %2882 = vmatprep.subr.bf16.mxu1 %v3409_v0  ;;  %v3208_v42 = vld [vmem:[%s4706_s0 + $0x288] ss:$36 sps:$4 sm:$0xff]  }
  0x4a   :  { %1824 = vmatmul.mubr.bf16.gmra.mrb[4].mxu0 %v3147_v43  ;;  %1654 = vmatprep.mubr.bf16.mxu1 %v3150_v45  ;;  %v3209_v43 = vld [vmem:[%s4706_s0 + $0x290] ss:$36 sps:$4 sm:$0xff]  }
  0x4b   :  { %1831 = vmatprep.mubr.bf16.mxu0 %v3152_v46  ;;  %1965 = vmatpush1.bf16.msra.mxu0 %v3156_v47  ;;  %v3212_v45 = vld [vmem:[%s4706_s0 + $0x2d4] ss:$36 sps:$4 sm:$0xff]   ;;  %v3214_v46 = vld [vmem:[%s4706_s0 + $0x2dc] ss:$36 sps:$4 sm:$0xff]  }
  0x4c   :  { %1966 = vmatprep.subr.bf16.mxu0 %v3409_v0  ;;  %2898 = vmatpush1.bf16.msra.mxu1 %v3617_v48  ;;  %v3216_v47 = vld [vmem:[%s4706_s0 + $0x2d0] ss:$36 sps:$4 sm:$0xff]  }
  0x4d   :  { %2883 = vmatprep.subr.bf16.mxu1 %v3409_v0 }
  0x4f   :  { %1967 = vmatpush1.bf16.msra.mxu0 %v3164_v50  ;;  %v3220_v50 = vld [vmem:[%s4706_s0 + $0x31c] ss:$36 sps:$4 sm:$0xff]  }
  0x50   :  { %1968 = vmatprep.subr.bf16.mxu0 %v3409_v0  ;;  %2899 = vmatpush1.bf16.msra.mxu1 %v3631_v51 }
  0x51   :  { %1655 = vmatmul.mubr.bf16.gmra.mrb[8].mxu1 %v3154_v49  ;;  %2884 = vmatprep.subr.bf16.mxu1 %v3409_v0  ;;  %v3217_v49 = vld [vmem:[%s4706_s0 + $0x2d8] ss:$36 sps:$4 sm:$0xff]  }
  0x52   :  { %1832 = vmatmul.mubr.bf16.gmra.mrb[8].mxu0 %v3155_v52  ;;  %1662 = vmatprep.mubr.bf16.mxu1 %v3158_v53  ;;  %v3222_v52 = vld [vmem:[%s4706_s0 + $0x324] ss:$36 sps:$4 sm:$0xff]   ;;  %v3224_v53 = vld [vmem:[%s4706_s0 + $0x318] ss:$36 sps:$4 sm:$0xff]  }
  0x53   :  { %1839 = vmatprep.mubr.bf16.mxu0 %v3160_v54  ;;  %1969 = vmatpush1.bf16.msra.mxu0 %v3172_v55  ;;  %v3225_v54 = vld [vmem:[%s4706_s0 + $0x320] ss:$36 sps:$4 sm:$0xff]  }
  0x54   :  { %1970 = vmatprep.subr.bf16.mxu0 %v3409_v0  ;;  %2900 = vmatpush1.bf16.msra.mxu1 %v3651_v56  ;;  %v3228_v55 = vld [vmem:[%s4706_s0 + $0x364] ss:$36 sps:$4 sm:$0xff]  }
  0x55   :  { %2885 = vmatprep.subr.bf16.mxu1 %v3409_v0 }
  0x57   :  { %1971 = vmatpush1.bf16.msra.mxu0 %v3180_v58  ;;  %v3232_v58 = vld [vmem:[%s4706_s0 + $0x360] ss:$36 sps:$4 sm:$0xff]  }
  0x58   :  { %1972 = vmatprep.subr.bf16.mxu0 %v3409_v0  ;;  %2901 = vmatpush1.bf16.msra.mxu1 %v3665_v59 }
  0x59   :  { %1663 = vmatmul.mubr.bf16.gmra.mrb[12].mxu1 %v3162_v57  ;;  %2886 = vmatprep.subr.bf16.mxu1 %v3409_v0  ;;  %v3230_v57 = vld [vmem:[%s4706_s0 + $0x36c] ss:$36 sps:$4 sm:$0xff]  }
  0x5a   :  { %1840 = vmatmul.mubr.bf16.gmra.mrb[12].mxu0 %v3163_v60  ;;  %1670 = vmatprep.mubr.bf16.mxu1 %v3166_v61  ;;  %v3233_v60 = vld [vmem:[%s4706_s0 + $0x368] ss:$36 sps:$4 sm:$0xff]  }
  0x5b   :  { %1847 = vmatprep.mubr.bf16.mxu0 %v3168_v62  ;;  %1973 = vmatpush1.bf16.msra.mxu0 %v3192_v63  ;;  %v3236_v61 = vld [vmem:[%s4706_s0 + $0x3ac] ss:$36 sps:$4 sm:$0xff]   ;;  %v3238_v62 = vld [vmem:[%s4706_s0 + $0x3b4] ss:$36 sps:$4 sm:$0xff]  }
  0x5c   :  { %1974 = vmatprep.subr.bf16.mxu0 %v3409_v0  ;;  %2902 = vmatpush1.bf16.msra.mxu1 %v3685_v1  ;;  %v3240_v63 = vld [vmem:[%s4706_s0 + $0x3a8] ss:$36 sps:$4 sm:$0xff]  }
  0x5d   :  { %2887 = vmatprep.subr.bf16.mxu1 %v3409_v0 }
  0x5f   :  { %1975 = vmatpush1.bf16.msra.mxu0 %v3202_v3  ;;  %v3244_v3 = vld [vmem:[%s4706_s0 + $0x3f4] ss:$36 sps:$4 sm:$0xff]  }
  0x60   :  { %1976 = vmatprep.subr.bf16.mxu0 %v3409_v0  ;;  %2903 = vmatpush1.bf16.msra.mxu1 %v3702_v5 }
  0x61   :  { %1671 = vmatmul.mubr.bf16.gmra.mrb[16].mxu1 %v3170_v2  ;;  %2888 = vmatprep.subr.bf16.mxu1 %v3409_v0  ;;  %v3241_v2 = vld [vmem:[%s4706_s0 + $0x3b0] ss:$36 sps:$4 sm:$0xff]  }
  0x62   :  { %1848 = vmatmul.mubr.bf16.gmra.mrb[16].mxu0 %v3171_v4  ;;  %1678 = vmatprep.mubr.bf16.mxu1 %v3174_v6  ;;  %v3246_v4 = vld [vmem:[%s4706_s0 + $0x3fc] ss:$36 sps:$4 sm:$0xff]   ;;  %v3248_v6 = vld [vmem:[%s4706_s0 + $0x3f0] ss:$36 sps:$4 sm:$0xff]  }
  0x63   :  { %1855 = vmatprep.mubr.bf16.mxu0 %v3176_v7  ;;  %1977 = vmatpush1.bf16.msra.mxu0 %v3210_v8  ;;  %v3249_v7 = vld [vmem:[%s4706_s0 + $0x3f8] ss:$36 sps:$4 sm:$0xff]  }
  0x64   :  { %1978 = vmatprep.subr.bf16.mxu0 %v3409_v0  ;;  %2904 = vmatpush1.bf16.msra.mxu1 %v3719_v9  ;;  %v3252_v8 = vld [vmem:[%s4706_s0 + $0x43c] ss:$36 sps:$4 sm:$0xff]  }
  0x65   :  { %2889 = vmatprep.subr.bf16.mxu1 %v3409_v0 }
  0x67   :  { %1979 = vmatpush1.bf16.msra.mxu0 %v3218_v11  ;;  %v3256_v11 = vld [vmem:[%s4706_s0 + $0x438] ss:$36 sps:$4 sm:$0xff]  }
  0x68   :  { %1980 = vmatprep.subr.bf16.mxu0 %v3409_v0  ;;  %2905 = vmatpush1.bf16.msra.mxu1 %v3733_v12 }
  0x69   :  { %1679 = vmatmul.mubr.bf16.gmra.mrb[20].mxu1 %v3178_v10  ;;  %2890 = vmatprep.subr.bf16.mxu1 %v3409_v0  ;;  %v3254_v10 = vld [vmem:[%s4706_s0 + $0x444] ss:$36 sps:$4 sm:$0xff]  }
  0x6a   :  { %1856 = vmatmul.mubr.bf16.gmra.mrb[20].mxu0 %v3179_v13  ;;  %1686 = vmatprep.mubr.bf16.mxu1 %v3182_v14  ;;  %v3257_v13 = vld [vmem:[%s4706_s0 + $0x440] ss:$36 sps:$4 sm:$0xff]  }
  0x6b   :  { %1863 = vmatprep.mubr.bf16.mxu0 %v3184_v15  ;;  %1981 = vmatpush1.bf16.msra.mxu0 %v3226_v16  ;;  %v3258_v14 = vld [vmem:[%s4706_s0 + $0x484] ss:$36 sps:$4 sm:$0xff]   ;;  %v3260_v15 = vld [vmem:[%s4706_s0 + $0x48c] ss:$36 sps:$4 sm:$0xff]  }
  0x6c   :  { %1982 = vmatprep.subr.bf16.mxu0 %v3409_v0  ;;  %2906 = vmatpush1.bf16.msra.mxu1 %v3753_v17  ;;  %v3264_v16 = vld [vmem:[%s4706_s0 + $0x480] ss:$36 sps:$4 sm:$0xff]  }
  0x6d   :  { %2891 = vmatprep.subr.bf16.mxu1 %v3409_v0 }
  0x6f   :  { %1983 = vmatpush1.bf16.msra.mxu0 %v3234_v18  ;;  %v3265_v18 = vld [vmem:[%s4706_s0 + $0x488] ss:$36 sps:$4 sm:$0xff]  }
  0x70   :  { %1984 = vmatprep.subr.bf16.mxu0 %v3409_v0  ;;  %2907 = vmatpush1.bf16.msra.mxu1 %v3770_v21 }
  0x71   :  { %1687 = vmatmul.mubr.bf16.gmra.mrb[24].mxu1 %v3186_v19  ;;  %2892 = vmatprep.subr.bf16.mxu1 %v3409_v0  ;;  %v3266_v19 = vld [vmem:[%s4706_s0 + $0x4cc] ss:$36 sps:$4 sm:$0xff]  }
  0x72   :  { %1864 = vmatmul.mubr.bf16.gmra.mrb[24].mxu0 %v3187_v20  ;;  %1694 = vmatprep.mubr.bf16.mxu1 %v3188_v22  ;;  %v3268_v20 = vld [vmem:[%s4706_s0 + $0x4d4] ss:$36 sps:$4 sm:$0xff]   ;;  %v3270_v22 = vld [vmem:[%s4706_s0 + $0x4c8] ss:$36 sps:$4 sm:$0xff]  }
  0x73   :  { %1871 = vmatprep.mubr.bf16.mxu0 %v3190_v23  ;;  %1985 = vmatpush1.bf16.msra.mxu0 %v3242_v24  ;;  %v3271_v23 = vld [vmem:[%s4706_s0 + $0x4d0] ss:$36 sps:$4 sm:$0xff]   ;;  %v3280_v24 = vld [vmem:[%s4706_s0 + $0x184] ss:$36 sps:$4 sm:$0xff]  }
  0x74   :  { %1986 = vmatprep.subr.bf16.mxu0 %v3409_v0  ;;  %2908 = vmatpush1.bf16.msra.mxu1 %v3787_v25 }
  0x75   :  { %2893 = vmatprep.subr.bf16.mxu1 %v3409_v0 }
  0x77   :  { %1987 = vmatpush1.bf16.msra.mxu0 %v3250_v27  ;;  %v3278_v27 = vld [vmem:[%s4706_s0 + $0x180] ss:$36 sps:$4 sm:$0xff]  }
  0x78   :  { %1988 = vmatprep.subr.bf16.mxu0 %v3409_v0  ;;  %2909 = vmatpush1.bf16.msra.mxu1 %v3804_v29 }
  0x79   :  { %1695 = vmatmul.mubr.bf16.gmra.mrb[28].mxu1 %v3194_v26  ;;  %2894 = vmatprep.subr.bf16.mxu1 %v3409_v0  ;;  %v3277_v26 = vld [vmem:[%s4706_s0 + $0x14] ss:$36 sps:$4 sm:$0xff]  }
  0x7a   :  { %1872 = vmatmul.mubr.bf16.gmra.mrb[28].mxu0 %v3195_v28  ;;  %1702 = vmatprep.mubr.bf16.mxu1 %v3196_v30  ;;  %v3275_v28 = vld [vmem:[%s4706_s0 + $0x10] ss:$36 sps:$4 sm:$0xff]  }
  0x7b   :  { %1879 = vmatprep.mubr.bf16.mxu0 %v3198_v31  ;;  %1989 = vmatpush1.bf16.msra.mxu0 %v3262_v32  ;;  %v3283_v30 = vld [vmem:[%s4706_s0 + $0x1cc] ss:$36 sps:$4 sm:$0xff]   ;;  %v3281_v31 = vld [vmem:[%s4706_s0 + $0x5c] ss:$36 sps:$4 sm:$0xff]  }
  0x7c   :  { %1990 = vmatprep.subr.bf16.mxu0 %v3409_v0  ;;  %2910 = vmatpush1.bf16.msra.mxu1 %v3821_v33  ;;  %v3294_v32 = vld [vmem:[%s4705_s1 + $0x208] sm:$0xff]  }
  0x7d   :  { %2895 = vmatprep.subr.bf16.mxu1 %v3409_v0 }
  0x7f   :  { %1991 = vmatpush1.bf16.msra.mxu0 %v3272_v34  ;;  %v3286_v34 = vld [vmem:[%s4706_s0 + $0x1c8] ss:$36 sps:$4 sm:$0xff]  }
  0x80   :  { %2911 = vmatpush1.bf16.msra.mxu1 %v3835_v36  ;;  %2137 = vmatprep.subr.bf16.mxu0 %v3409_v0 }
  0x81   :  { %1703 = vmatmul.mubr.bf16.gmra.mrb[32].mxu1 %v3200_v35  ;;  %2828 = vmatprep.subr.bf16.mxu1 %v3841_v37  ;;  %v3307_v35 = vld [vmem:[%s4705_s1 + $0x210] sm:$0xff]  }
  0x82   :  { %1880 = vmatmul.mubr.bf16.gmra.mrb[32].mxu0 %v3201_v38  ;;  %1710 = vmatprep.mubr.bf16.mxu1 %v3204_v39  ;;  %v3285_v38 = vld [vmem:[%s4706_s0 + $0x58] ss:$36 sps:$4 sm:$0xff]  }
  0x83   :  { %1887 = vmatprep.mubr.bf16.mxu0 %v3206_v41  ;;  %v3320_v39 = vld [vmem:[%s4705_s1 + $0x218] sm:$0xff]   ;;  %v3327_v41 = vld [vmem:[%s4705_s1 + $0x220] sm:$0xff]  }
  0x89   :  { %1711 = vmatmul.mubr.bf16.gmra.mrb[36].mxu1 %v3208_v42  ;;  %v3292_v42 = vld [vmem:[%s4706_s0 + $0xa0] ss:$36 sps:$4 sm:$0xff]  }
  0x8a   :  { %1888 = vmatmul.mubr.bf16.gmra.mrb[36].mxu0 %v3209_v43  ;;  %1718 = vmatprep.mubr.bf16.mxu1 %v3212_v45  ;;  %v3295_v43 = vld [vmem:[%s4706_s0 + $0xec] ss:$36 sps:$4 sm:$0xff]  }
  0x8b   :  { %1895 = vmatprep.mubr.bf16.mxu0 %v3214_v46  ;;  %v3340_v45 = vld [vmem:[%s4705_s1 + $0x228] sm:$0xff]   ;;  %v3351_v46 = vld [vmem:[%s4705_s1 + $0x230] sm:$0xff]  }
  0x91   :  { %1719 = vmatmul.mubr.bf16.gmra.mrb[40].mxu1 %v3216_v47  ;;  %v3299_v47 = vld [vmem:[%s4706_s0 + $0xe8] ss:$36 sps:$4 sm:$0xff]  }
  0x92   :  { %1896 = vmatmul.mubr.bf16.gmra.mrb[40].mxu0 %v3217_v49  ;;  %1726 = vmatprep.mubr.bf16.mxu1 %v3220_v50  ;;  %v3301_v49 = vld [vmem:[%s4706_s0 + $0x134] ss:$36 sps:$4 sm:$0xff]  }
  0x93   :  { %1903 = vmatprep.mubr.bf16.mxu0 %v3222_v52  ;;  %v3360_v50 = vld [vmem:[%s4705_s1 + $0x238] sm:$0xff]   ;;  %v3305_v52 = vld [vmem:[%s4706_s0 + $0x130] ss:$36 sps:$4 sm:$0xff]  }
  0x99   :  { %1727 = vmatmul.mubr.bf16.gmra.mrb[44].mxu1 %v3224_v53  ;;  %v3310_v53 = vld [vmem:[%s4706_s0 + $0x2ec] ss:$36 sps:$4 sm:$0xff]  }
  0x9a   :  { %1904 = vmatmul.mubr.bf16.gmra.mrb[44].mxu0 %v3225_v54  ;;  %1734 = vmatprep.mubr.bf16.mxu1 %v3228_v55  ;;  %v3313_v54 = vld [vmem:[%s4706_s0 + $0x2e8] ss:$36 sps:$4 sm:$0xff]   ;;  %v3312_v55 = vld [vmem:[%s4706_s0 + $0x178] ss:$36 sps:$4 sm:$0xff]  }
  0x9b   :  { %1911 = vmatprep.mubr.bf16.mxu0 %v3230_v57  ;;  %v3314_v57 = vld [vmem:[%s4706_s0 + $0x1c4] ss:$36 sps:$4 sm:$0xff]  }
  0xa1   :  { %1735 = vmatmul.mubr.bf16.gmra.mrb[48].mxu1 %v3232_v58  ;;  %v3318_v58 = vld [vmem:[%s4706_s0 + $0x1c0] ss:$36 sps:$4 sm:$0xff]  }
  0xa2   :  { %1912 = vmatmul.mubr.bf16.gmra.mrb[48].mxu0 %v3233_v60  ;;  %1742 = vmatprep.mubr.bf16.mxu1 %v3236_v61  ;;  %v3321_v60 = vld [vmem:[%s4706_s0 + $0x20c] ss:$36 sps:$4 sm:$0xff]  }
  0xa3   :  { %1919 = vmatprep.mubr.bf16.mxu0 %v3238_v62  ;;  %v3325_v61 = vld [vmem:[%s4706_s0 + $0x208] ss:$36 sps:$4 sm:$0xff]   ;;  %v3328_v62 = vld [vmem:[%s4706_s0 + $0x254] ss:$36 sps:$4 sm:$0xff]  }
  0xa9   :  { %1743 = vmatmul.mubr.bf16.gmra.mrb[52].mxu1 %v3240_v63  ;;  %v3332_v63 = vld [vmem:[%s4706_s0 + $0x250] ss:$36 sps:$4 sm:$0xff]  }
  0xaa   :  { %1920 = vmatmul.mubr.bf16.gmra.mrb[52].mxu0 %v3241_v2  ;;  %1750 = vmatprep.mubr.bf16.mxu1 %v3244_v3  ;;  %v3334_v2 = vld [vmem:[%s4706_s0 + $0x29c] ss:$36 sps:$4 sm:$0xff]  }
  0xab   :  { %1927 = vmatprep.mubr.bf16.mxu0 %v3246_v4  ;;  %v3338_v4 = vld [vmem:[%s4706_s0 + $0x298] ss:$36 sps:$4 sm:$0xff]  }
  0xb1   :  { %1751 = vmatmul.mubr.bf16.gmra.mrb[56].mxu1 %v3248_v6 }
  0xb2   :  { %1928 = vmatmul.mubr.bf16.gmra.mrb[56].mxu0 %v3249_v7  ;;  %1758 = vmatprep.mubr.bf16.mxu1 %v3252_v8  ;;  %v3341_v8 = vld [vmem:[%s4706_s0 + $0x2e4] ss:$36 sps:$4 sm:$0xff]  }
  0xb3   :  { %1935 = vmatprep.mubr.bf16.mxu0 %v3254_v10 }
  0xb9   :  { %1759 = vmatmul.mubr.bf16.gmra.mrb[60].mxu1 %v3256_v11  ;;  %v3346_v11 = vld [vmem:[%s4706_s0 + $0x450] ss:$36 sps:$4 sm:$0xff]  }
  0xba   :  { %1936 = vmatmul.mubr.bf16.gmra.mrb[60].mxu0 %v3257_v13  ;;  %1766 = vmatprep.mubr.bf16.mxu1 %v3258_v14  ;;  %v3345_v14 = vld [vmem:[%s4706_s0 + $0x2e0] ss:$36 sps:$4 sm:$0xff]  }
  0xbb   :  { %1943 = vmatprep.mubr.bf16.mxu0 %v3260_v15 }
  0xc1   :  { %1767 = vmatmul.mubr.bf16.gmra.mrb[64].mxu1 %v3264_v16  ;;  %v3349_v16 = vld [vmem:[%s4706_s0 + $0x49c] ss:$36 sps:$4 sm:$0xff]  }
  0xc2   :  { %1944 = vmatmul.mubr.bf16.gmra.mrb[64].mxu0 %v3265_v18  ;;  %1774 = vmatprep.mubr.bf16.mxu1 %v3266_v19  ;;  %v3347_v19 = vld [vmem:[%s4706_s0 + $0x32c] ss:$36 sps:$4 sm:$0xff]  }
  0xc3   :  { %1951 = vmatprep.mubr.bf16.mxu0 %v3268_v20 }
  0xc9   :  { %1775 = vmatmul.mubr.bf16.gmra.mrb[68].mxu1 %v3270_v22  ;;  %v3353_v22 = vld [vmem:[%s4706_s0 + $0x498] ss:$36 sps:$4 sm:$0xff]  }
  0xca   :  { %1952 = vmatmul.mubr.bf16.gmra.mrb[68].mxu0 %v3271_v23  ;;  %2209 = vmatprep.mubr.bf16.mxu1 %v3280_v24  ;;  %v3352_v24 = vld [vmem:[%s4706_s0 + $0x328] ss:$36 sps:$4 sm:$0xff]  }
  0xcb   :  { %1992 = vmatprep.mubr.bf16.mxu0 %v3277_v26 }
  0xd1   :  { %2210 = vmatmul.mubr.bf16.vlgmr.msra.gmra.mrb[72].mxu1 %v3278_v27  ;;  %v3356_v27 = vld [vmem:[%s4706_s0 + $0x4e4] ss:$36 sps:$4 sm:$0xff]  }
  0xd2   :  { %1993 = vmatmul.mubr.bf16.vlgmr.msra.gmra.mrb[0].mxu0 %v3275_v28  ;;  %2217 = vmatprep.mubr.bf16.mxu1 %v3283_v30  ;;  %v3354_v30 = vld [vmem:[%s4706_s0 + $0x374] ss:$36 sps:$4 sm:$0xff]  }
  0xd3   :  { %2138 = vmatpush1.bf16.msra.mxu0 %v3584_v40  ;;  %2000 = vmatprep.mubr.bf16.mxu0 %v3281_v31  ;;  %v3290_v40 = vld [vmem:[%s4706_s0 + $0x214] ss:$36 sps:$4 sm:$0xff]  }
  0xd4   :  { %2139 = vmatprep.subr.bf16.mxu0 %v3409_v0  ;;  %2829 = vmatpush3.bf16.msra.mxu1 %v3841_v37  ;;  %v3288_v37 = vld [vmem:[%s4706_s0 + $0xa4] ss:$36 sps:$4 sm:$0xff]  }
  0xd5   :  { %2830 = vmatprep.subr.bf16.mxu1 %v3294_v32 }
  0xd7   :  { %2140 = vmatpush1.bf16.msra.mxu0 %v3600_v44  ;;  %v3293_v44 = vld [vmem:[%s4706_s0 + $0x210] ss:$36 sps:$4 sm:$0xff]  }
  0xd8   :  { %2141 = vmatprep.subr.bf16.mxu0 %v3409_v0  ;;  %2831 = vmatpush3.bf16.msra.mxu1 %v3294_v32  ;;  %v3359_v32 = vld [vmem:[%s4706_s0 + $0x4e0] ss:$36 sps:$4 sm:$0xff]  }
  0xd9   :  { %2218 = vmatmul.mubr.bf16.gmra.mrb[76].mxu1 %v3286_v34  ;;  %2832 = vmatprep.subr.bf16.mxu1 %v3307_v35 }
  0xda   :  { %2001 = vmatmul.mubr.bf16.gmra.mrb[4].mxu0 %v3285_v38  ;;  %2225 = vmatprep.mubr.bf16.mxu1 %v3290_v40  ;;  %v3363_v40 = vld [vmem:[%s4706_s0 + $0x20] ss:$36 sps:$4 sm:$0xff]  }
  0xdb   :  { %2008 = vmatprep.mubr.bf16.mxu0 %v3288_v37  ;;  %2142 = vmatpush1.bf16.msra.mxu0 %v3617_v48  ;;  %v3297_v48 = vld [vmem:[%s4706_s0 + $0x25c] ss:$36 sps:$4 sm:$0xff]  }
  0xdc   :  { %2143 = vmatprep.subr.bf16.mxu0 %v3409_v0  ;;  %2833 = vmatpush3.bf16.msra.mxu1 %v3307_v35  ;;  %v3358_v35 = vld [vmem:[%s4706_s0 + $0x370] ss:$36 sps:$4 sm:$0xff]  }
  0xdd   :  { %2834 = vmatprep.subr.bf16.mxu1 %v3320_v39 }
  0xdf   :  { %2144 = vmatpush1.bf16.msra.mxu0 %v3631_v51  ;;  %v3300_v51 = vld [vmem:[%s4706_s0 + $0x258] ss:$36 sps:$4 sm:$0xff]  }
  0xe0   :  { %2145 = vmatprep.subr.bf16.mxu0 %v3409_v0  ;;  %2835 = vmatpush3.bf16.msra.mxu1 %v3320_v39  ;;  %v3361_v39 = vld [vmem:[%s4706_s0 + $0x3bc] ss:$36 sps:$4 sm:$0xff]  }
  0xe1   :  { %2226 = vmatmul.mubr.bf16.gmra.mrb[80].mxu1 %v3293_v44  ;;  %2836 = vmatprep.subr.bf16.mxu1 %v3327_v41 }
  0xe2   :  { %2009 = vmatmul.mubr.bf16.gmra.mrb[8].mxu0 %v3292_v42  ;;  %2233 = vmatprep.mubr.bf16.mxu1 %v3297_v48  ;;  %v3364_v48 = vld [vmem:[%s4706_s0 + $0x3b8] ss:$36 sps:$4 sm:$0xff]  }
  0xe3   :  { %2016 = vmatprep.mubr.bf16.mxu0 %v3295_v43  ;;  %2146 = vmatpush1.bf16.msra.mxu0 %v3651_v56  ;;  %v3303_v56 = vld [vmem:[%s4706_s0 + $0x2a4] ss:$36 sps:$4 sm:$0xff]  }
  0xe4   :  { %2147 = vmatprep.subr.bf16.mxu0 %v3409_v0  ;;  %2837 = vmatpush3.bf16.msra.mxu1 %v3327_v41  ;;  %v3365_v41 = vld [vmem:[%s4706_s0 + $0x68] ss:$36 sps:$4 sm:$0xff]  }
  0xe5   :  { %2838 = vmatprep.subr.bf16.mxu1 %v3340_v45 }
  0xe7   :  { %2148 = vmatpush1.bf16.msra.mxu0 %v3665_v59  ;;  %v3306_v59 = vld [vmem:[%s4706_s0 + $0x2a0] ss:$36 sps:$4 sm:$0xff]  }
  0xe8   :  { %2149 = vmatprep.subr.bf16.mxu0 %v3409_v0  ;;  %2839 = vmatpush3.bf16.msra.mxu1 %v3340_v45  ;;  %v3368_v45 = vld [vmem:[%s4706_s0 + $0xb0] ss:$36 sps:$4 sm:$0xff]  }
  0xe9   :  { %2234 = vmatmul.mubr.bf16.gmra.mrb[84].mxu1 %v3300_v51  ;;  %2840 = vmatprep.subr.bf16.mxu1 %v3351_v46 }
  0xea   :  { %2017 = vmatmul.mubr.bf16.gmra.mrb[12].mxu0 %v3299_v47  ;;  %2241 = vmatprep.mubr.bf16.mxu1 %v3303_v56  ;;  %v3370_v56 = vld [vmem:[%s4706_s0 + $0xf8] ss:$36 sps:$4 sm:$0xff]  }
  0xeb   :  { %2024 = vmatprep.mubr.bf16.mxu0 %v3301_v49  ;;  %2150 = vmatpush1.bf16.msra.mxu0 %v3685_v1  ;;  %v3308_v1 = vld [vmem:[%s4706_s0 + $0x17c] ss:$36 sps:$4 sm:$0xff]  }
  0xec   :  { %2151 = vmatprep.subr.bf16.mxu0 %v3409_v0  ;;  %2841 = vmatpush3.bf16.msra.mxu1 %v3351_v46  ;;  %v3366_v46 = vld [vmem:[%s4706_s0 + $0x404] ss:$36 sps:$4 sm:$0xff]  }
  0xed   :  { %2842 = vmatprep.subr.bf16.mxu1 %v3360_v50 }
  0xef   :  { %2152 = vmatpush1.bf16.msra.mxu0 %v3702_v5  ;;  %v3316_v5 = vld [vmem:[%s4706_s0 + $0x334] ss:$36 sps:$4 sm:$0xff]  }
  0xf0   :  { %2153 = vmatprep.subr.bf16.mxu0 %v3409_v0  ;;  %2843 = vmatpush3.bf16.msra.mxu1 %v3360_v50  ;;  %v3369_v50 = vld [vmem:[%s4706_s0 + $0x400] ss:$36 sps:$4 sm:$0xff]  }
  0xf1   :  { %2242 = vmatmul.mubr.bf16.gmra.mrb[88].mxu1 %v3306_v59 }
  0xf2   :  { %2025 = vmatmul.mubr.bf16.gmra.mrb[16].mxu0 %v3305_v52  ;;  %2249 = vmatprep.mubr.bf16.mxu1 %v3310_v53  ;;  %v3373_v52 = vld [vmem:[%s4706_s0 + $0x140] ss:$36 sps:$4 sm:$0xff]  }
  0xf3   :  { %2032 = vmatprep.mubr.bf16.mxu0 %v3308_v1  ;;  %2154 = vmatpush1.bf16.msra.mxu0 %v3719_v9  ;;  %v3319_v9 = vld [vmem:[%s4706_s0 + $0x330] ss:$36 sps:$4 sm:$0xff]  }
  0xf4   :  { %2155 = vmatprep.subr.bf16.mxu0 %v3409_v0  ;;  %v3371_v1 = vld [vmem:[%s4706_s0 + $0x44c] ss:$36 sps:$4 sm:$0xff]  }
  0xf7   :  { %2156 = vmatpush1.bf16.msra.mxu0 %v3733_v12  ;;  %v3323_v12 = vld [vmem:[%s4706_s0 + $0x37c] ss:$36 sps:$4 sm:$0xff]  }
  0xf8   :  { %2157 = vmatprep.subr.bf16.mxu0 %v3409_v0 }
  0xf9   :  { %2250 = vmatmul.mubr.bf16.gmra.mrb[92].mxu1 %v3313_v54 }
  0xfa   :  { %2033 = vmatmul.mubr.bf16.gmra.mrb[20].mxu0 %v3312_v55  ;;  %2257 = vmatprep.mubr.bf16.mxu1 %v3316_v5  ;;  %v3375_v55 = vld [vmem:[%s4706_s0 + $0x188] ss:$36 sps:$4 sm:$0xff]  }
  0xfb   :  { %2040 = vmatprep.mubr.bf16.mxu0 %v3314_v57  ;;  %2158 = vmatpush1.bf16.msra.mxu0 %v3753_v17  ;;  %v3326_v17 = vld [vmem:[%s4706_s0 + $0x378] ss:$36 sps:$4 sm:$0xff]   ;;  %v3374_v57 = vld [vmem:[%s4706_s0 + $0x448] ss:$36 sps:$4 sm:$0xff]  }
  0xfc   :  { %2159 = vmatprep.subr.bf16.mxu0 %v3409_v0 }
  0xff   :  { %2160 = vmatpush1.bf16.msra.mxu0 %v3770_v21  ;;  %v3330_v21 = vld [vmem:[%s4706_s0 + $0x3c4] ss:$36 sps:$4 sm:$0xff]  }
 0x100   :  { %2161 = vmatprep.subr.bf16.mxu0 %v3409_v0 }
 0x101   :  { %2258 = vmatmul.mubr.bf16.gmra.mrb[96].mxu1 %v3319_v9 }
 0x102   :  { %2041 = vmatmul.mubr.bf16.gmra.mrb[24].mxu0 %v3318_v58  ;;  %2265 = vmatprep.mubr.bf16.mxu1 %v3323_v12  ;;  %v3378_v58 = vld [vmem:[%s4706_s0 + $0x1d0] ss:$36 sps:$4 sm:$0xff]  }
 0x103   :  { %2048 = vmatprep.mubr.bf16.mxu0 %v3321_v60  ;;  %2162 = vmatpush1.bf16.msra.mxu0 %v3787_v25  ;;  %v3333_v25 = vld [vmem:[%s4706_s0 + $0x3c0] ss:$36 sps:$4 sm:$0xff]   ;;  %v3376_v60 = vld [vmem:[%s4706_s0 + $0x494] ss:$36 sps:$4 sm:$0xff]  }
 0x104   :  { %2163 = vmatprep.subr.bf16.mxu0 %v3409_v0 }
 0x107   :  { %2164 = vmatpush1.bf16.msra.mxu0 %v3804_v29  ;;  %v3336_v29 = vld [vmem:[%s4706_s0 + $0x40c] ss:$36 sps:$4 sm:$0xff]  }
 0x108   :  { %2165 = vmatprep.subr.bf16.mxu0 %v3409_v0 }
 0x109   :  { %2266 = vmatmul.mubr.bf16.gmra.mrb[100].mxu1 %v3326_v17 }
 0x10a   :  { %2049 = vmatmul.mubr.bf16.gmra.mrb[28].mxu0 %v3325_v61  ;;  %2273 = vmatprep.mubr.bf16.mxu1 %v3330_v21  ;;  %v3380_v61 = vld [vmem:[%s4706_s0 + $0x218] ss:$36 sps:$4 sm:$0xff]  }
 0x10b   :  { %2056 = vmatprep.mubr.bf16.mxu0 %v3328_v62  ;;  %2166 = vmatpush1.bf16.msra.mxu0 %v3821_v33  ;;  %v3339_v33 = vld [vmem:[%s4706_s0 + $0x408] ss:$36 sps:$4 sm:$0xff]   ;;  %v3379_v62 = vld [vmem:[%s4706_s0 + $0x490] ss:$36 sps:$4 sm:$0xff]  }
 0x10c   :  { %2167 = vmatprep.subr.bf16.mxu0 %v3409_v0 }
 0x10f   :  { %2168 = vmatpush1.bf16.msra.mxu0 %v3835_v36  ;;  %v3343_v36 = vld [vmem:[%s4706_s0 + $0x454] ss:$36 sps:$4 sm:$0xff]  }
 0x111   :  { %2274 = vmatmul.mubr.bf16.gmra.mrb[104].mxu1 %v3333_v25 }
 0x112   :  { %2057 = vmatmul.mubr.bf16.gmra.mrb[32].mxu0 %v3332_v63  ;;  %2281 = vmatprep.mubr.bf16.mxu1 %v3336_v29  ;;  %v3383_v63 = vld [vmem:[%s4706_s0 + $0x260] ss:$36 sps:$4 sm:$0xff]  }
 0x113   :  { %2064 = vmatprep.mubr.bf16.mxu0 %v3334_v2  ;;  %v3381_v2 = vld [vmem:[%s4706_s0 + $0x4dc] ss:$36 sps:$4 sm:$0xff]  }
 0x114   :  { %v4124_v0 = vpop.f32.mrb[0].mxu1 }
 0x115   :  { %v1642_v3 = vpop.f32.mrb[1].mxu1 }
 0x116   :  { %v4132_v6 = vpop.f32.mrb[2].mxu1  ;;  %v3385_v3 = vld [vmem:[%s4706_s0 + $0x2a8] ss:$36 sps:$4 sm:$0xff]  }
 0x117   :  { %v1645_v7 = vpop.f32.mrb[3].mxu1 }
 0x119   :  { %2282 = vmatmul.mubr.bf16.gmra.mrb[108].mxu1 %v3339_v33 }
 0x11a   :  { %2065 = vmatmul.mubr.bf16.gmra.mrb[36].mxu0 %v3338_v4  ;;  %2289 = vmatprep.mubr.bf16.mxu1 %v3343_v36  ;;  %v3384_v36 = vld [vmem:[%s4706_s0 + $0x4d8] ss:$36 sps:$4 sm:$0xff]  }
 0x11b   :  { %2072 = vmatprep.mubr.bf16.mxu0 %v3341_v8  ;;  %v3389_v8 = vld [vmem:[%s4706_s0 + $0x2f0] ss:$36 sps:$4 sm:$0xff]  }
 0x11c   :  { %v4140_v10 = vpop.f32.mrb[4].mxu1 }
 0x11d   :  { %v1650_v13 = vpop.f32.mrb[5].mxu1 }
 0x11e   :  { %v4148_v15 = vpop.f32.mrb[6].mxu1  ;;  %v3388_v13 = vld [vmem:[%s4706_s0 + $0x1c] ss:$36 sps:$4 sm:$0xff]  }
 0x11f   :  { %v1653_v18 = vpop.f32.mrb[7].mxu1 }
 0x121   :  { %2290 = vmatmul.mubr.bf16.gmra.mrb[112].mxu1 %v3346_v11 }
 0x122   :  { %2073 = vmatmul.mubr.bf16.gmra.mrb[40].mxu0 %v3345_v14  ;;  %2297 = vmatprep.mubr.bf16.mxu1 %v3349_v16  ;;  %v3390_v16 = vld [vmem:[%s4706_s0 + $0x338] ss:$36 sps:$4 sm:$0xff]  }
 0x123   :  { %2080 = vmatprep.mubr.bf16.mxu0 %v3347_v19  ;;  %v3386_v19 = vld [vmem:[%s4706_s0 + $0x18] ss:$36 sps:$4 sm:$0xff]  }
 0x124   :  { %v4156_v20 = vpop.f32.mrb[8].mxu1 }
 0x125   :  { %v1658_v23 = vpop.f32.mrb[9].mxu1 }
 0x126   :  { %v4164_v26 = vpop.f32.mrb[10].mxu1  ;;  %v3393_v23 = vld [vmem:[%s4706_s0 + $0x380] ss:$36 sps:$4 sm:$0xff]  }
 0x127   :  { %v1661_v28 = vpop.f32.mrb[11].mxu1 }
 0x129   :  { %2298 = vmatmul.mubr.bf16.gmra.mrb[116].mxu1 %v3353_v22 }
 0x12a   :  { %2081 = vmatmul.mubr.bf16.gmra.mrb[44].mxu0 %v3352_v24  ;;  %2305 = vmatprep.mubr.bf16.mxu1 %v3356_v27  ;;  %v3391_v27 = vld [vmem:[%s4706_s0 + $0x64] ss:$36 sps:$4 sm:$0xff]  }
 0x12b   :  { %2088 = vmatprep.mubr.bf16.mxu0 %v3354_v30  ;;  %v3395_v30 = vld [vmem:[%s4706_s0 + $0x3c8] ss:$36 sps:$4 sm:$0xff]  }
 0x12c   :  { %v4172_v31 = vpop.f32.mrb[12].mxu1 }
 0x12d   :  { %v1666_v34 = vpop.f32.mrb[13].mxu1 }
 0x12e   :  { %v4180_v38 = vpop.f32.mrb[14].mxu1  ;;  %v3394_v34 = vld [vmem:[%s4706_s0 + $0x60] ss:$36 sps:$4 sm:$0xff]  }
 0x12f   :  { %v1669_v37 = vpop.f32.mrb[15].mxu1 }
 0x131   :  { %2306 = vmatmul.mubr.bf16.gmra.mrb[120].mxu1 %v3359_v32 }
 0x132   :  { %2089 = vmatmul.mubr.bf16.gmra.mrb[48].mxu0 %v3358_v35  ;;  %2844 = vmatprep.mubr.bf16.mxu1 %v3363_v40  ;;  %v3398_v40 = vld [vmem:[%s4706_s0 + $0x410] ss:$36 sps:$4 sm:$0xff]  }
 0x133   :  { %2096 = vmatprep.mubr.bf16.mxu0 %v3361_v39  ;;  %v3396_v39 = vld [vmem:[%s4706_s0 + $0xac] ss:$36 sps:$4 sm:$0xff]  }
 0x134   :  { %v4188_v44 = vpop.f32.mrb[16].mxu1 }
 0x135   :  { %4709 = vst [vmem:[#allocation2_spill] sm:$0xff] %v4188_v44  ;;  %v1674_v42 = vpop.f32.mrb[17].mxu1 }
 0x136   :  { %v4196_v43 = vpop.f32.mrb[18].mxu1  ;;  %v3400_v42 = vld [vmem:[%s4706_s0 + $0x458] ss:$36 sps:$4 sm:$0xff]  }
 0x137   :  { %4710 = vst [vmem:[#allocation3_spill] sm:$0xff] %v4196_v43  ;;  %v1677_v51 = vpop.f32.mrb[19].mxu1 }
 0x139   :  { %2845 = vmatmul.mubr.bf16.vlgmr.msra.gmra.mrb[124].mxu1 %v3365_v41 }
 0x13a   :  { %2097 = vmatmul.mubr.bf16.gmra.mrb[52].mxu0 %v3364_v48  ;;  %2848 = vmatprep.mubr.bf16.mxu1 %v3368_v45  ;;  %v3399_v45 = vld [vmem:[%s4706_s0 + $0xa8] ss:$36 sps:$4 sm:$0xff]  }
 0x13b   :  { %2104 = vmatprep.mubr.bf16.mxu0 %v3366_v46  ;;  %v3403_v46 = vld [vmem:[%s4706_s0 + $0x4a0] ss:$36 sps:$4 sm:$0xff]  }
 0x13c   :  { %v4204_v47 = vpop.f32.mrb[20].mxu1 }
 0x13d   :  { %v1682_v49 = vpop.f32.mrb[21].mxu1 }
 0x13e   :  { %v4212_v59 = vpop.f32.mrb[22].mxu1  ;;  %v3401_v49 = vld [vmem:[%s4706_s0 + $0xf4] ss:$36 sps:$4 sm:$0xff]  }
 0x13f   :  { %v1685_v53 = vpop.f32.mrb[23].mxu1 }
 0x141   :  { %2849 = vmatmul.mubr.bf16.gmra.mrb[128].mxu1 %v3370_v56 }
 0x142   :  { %2105 = vmatmul.mubr.bf16.gmra.mrb[56].mxu0 %v3369_v50  ;;  %2852 = vmatprep.mubr.bf16.mxu1 %v3373_v52  ;;  %v3405_v52 = vld [vmem:[%s4706_s0 + $0x4e8] ss:$36 sps:$4 sm:$0xff]  }
 0x143   :  { %2112 = vmatprep.mubr.bf16.mxu0 %v3371_v1  ;;  %v3404_v1 = vld [vmem:[%s4706_s0 + $0xf0] ss:$36 sps:$4 sm:$0xff]  }
 0x144   :  { %v4220_v54 = vpop.f32.mrb[24].mxu1 }
 0x145   :  { %v1690_v5 = vpop.f32.mrb[25].mxu1 }
 0x146   :  { %v4228_v9 = vpop.f32.mrb[26].mxu1 }
 0x147   :  { %v1693_v12 = vpop.f32.mrb[27].mxu1 }
 0x149   :  { %2853 = vmatmul.mubr.bf16.gmra.mrb[132].mxu1 %v3375_v55 }
 0x14a   :  { %2113 = vmatmul.mubr.bf16.gmra.mrb[60].mxu0 %v3374_v57  ;;  %2856 = vmatprep.mubr.bf16.mxu1 %v3378_v58  ;;  %v3406_v57 = vld [vmem:[%s4706_s0 + $0x13c] ss:$36 sps:$4 sm:$0xff]  }
 0x14b   :  { %2120 = vmatprep.mubr.bf16.mxu0 %v3376_v60  ;;  %v3408_v60 = vld [vmem:[%s4706_s0 + $0x138] ss:$36 sps:$4 sm:$0xff]  }
 0x14c   :  { %v4236_v17 = vpop.f32.mrb[28].mxu1 }
 0x14d   :  { %v1698_v21 = vpop.f32.mrb[29].mxu1 }
 0x14e   :  { %v4244_v25 = vpop.f32.mrb[30].mxu1 }
 0x14f   :  { %v1701_v29 = vpop.f32.mrb[31].mxu1 }
 0x151   :  { %2857 = vmatmul.mubr.bf16.gmra.mrb[136].mxu1 %v3380_v61 }
 0x152   :  { %2121 = vmatmul.mubr.bf16.gmra.mrb[64].mxu0 %v3379_v62  ;;  %2860 = vmatprep.mubr.bf16.mxu1 %v3383_v63 }
 0x153   :  { %2128 = vmatprep.mubr.bf16.mxu0 %v3381_v2 }
 0x154   :  { %v4252_v33 = vpop.f32.mrb[32].mxu1 }
 0x155   :  { %v1706_v4 = vpop.f32.mrb[33].mxu1 }
 0x156   :  { %v4260_v7 = vpop.f32.mrb[34].mxu1 }
 0x157   :  { %v1709_v11 = vpop.f32.mrb[35].mxu1 }
 0x159   :  { %2861 = vmatmul.mubr.bf16.gmra.mrb[140].mxu1 %v3385_v3 }
 0x15a   :  { %2129 = vmatmul.mubr.bf16.gmra.mrb[68].mxu0 %v3384_v36  ;;  %2864 = vmatprep.mubr.bf16.mxu1 %v3389_v8 }
 0x15b   :  { %2169 = vmatprep.mubr.bf16.mxu0 %v3388_v13 }
 0x15c   :  { %v4268_v14 = vpop.f32.mrb[36].mxu1 }
 0x15d   :  { %v1714_v18 = vpop.f32.mrb[37].mxu1 }
 0x15e   :  { %v4276_v22 = vpop.f32.mrb[38].mxu1 }
 0x15f   :  { %v1717_v24 = vpop.f32.mrb[39].mxu1 }
 0x161   :  { %2865 = vmatmul.mubr.bf16.gmra.mrb[144].mxu1 %v3390_v16 }
 0x162   :  { %2170 = vmatmul.mubr.bf16.vlgmr.msra.gmra.mrb[0].mxu0 %v3386_v19  ;;  %2868 = vmatprep.mubr.bf16.mxu1 %v3393_v23 }
 0x163   :  { %2177 = vmatprep.mubr.bf16.mxu0 %v3391_v27 }
 0x164   :  { %v4284_v28 = vpop.f32.mrb[40].mxu1 }
 0x165   :  { %v1722_v32 = vpop.f32.mrb[41].mxu1 }
 0x166   :  { %v4292_v35 = vpop.f32.mrb[42].mxu1 }
 0x167   :  { %v1725_v37 = vpop.f32.mrb[43].mxu1 }
 0x169   :  { %2869 = vmatmul.mubr.bf16.gmra.mrb[148].mxu1 %v3395_v30 }
 0x16a   :  { %2178 = vmatmul.mubr.bf16.gmra.mrb[4].mxu0 %v3394_v34  ;;  %2872 = vmatprep.mubr.bf16.mxu1 %v3398_v40 }
 0x16b   :  { %2185 = vmatprep.mubr.bf16.mxu0 %v3396_v39 }
 0x16c   :  { %v4300_v41 = vpop.f32.mrb[44].mxu1 }
 0x16d   :  { %v1730_v48 = vpop.f32.mrb[45].mxu1 }
 0x16e   :  { %v4308_v51 = vpop.f32.mrb[46].mxu1 }
 0x16f   :  { %v1733_v56 = vpop.f32.mrb[47].mxu1 }
 0x171   :  { %2873 = vmatmul.mubr.bf16.gmra.mrb[152].mxu1 %v3400_v42 }
 0x172   :  { %2186 = vmatmul.mubr.bf16.gmra.mrb[8].mxu0 %v3399_v45  ;;  %2876 = vmatprep.mubr.bf16.mxu1 %v3403_v46 }
 0x173   :  { %2193 = vmatprep.mubr.bf16.mxu0 %v3401_v49 }
 0x174   :  { %v4316_v50 = vpop.f32.mrb[48].mxu1 }
 0x175   :  { %v1738_v53 = vpop.f32.mrb[49].mxu1 }
 0x176   :  { %v4324_v55 = vpop.f32.mrb[50].mxu1 }
 0x177   :  { %v1741_v5 = vpop.f32.mrb[51].mxu1 }
 0x179   :  { %2877 = vmatmul.mubr.bf16.gmra.mrb[156].mxu1 %v3405_v52 }
 0x17a   :  { %2194 = vmatmul.mubr.bf16.gmra.mrb[12].mxu0 %v3404_v1 }
 0x17b   :  { %2201 = vmatprep.mubr.bf16.mxu0 %v3406_v57 }
 0x17c   :  { %v4329_v58 = vpop.f32.mrb[52].mxu1 }
 0x17d   :  { %v1746_v12 = vpop.f32.mrb[53].mxu1 }
 0x17e   :  { %v4334_v61 = vpop.f32.mrb[54].mxu1 }
 0x17f   :  { %v1749_v21 = vpop.f32.mrb[55].mxu1 }
 0x182   :  { %2202 = vmatmul.mubr.bf16.gmra.mrb[16].mxu0 %v3408_v60 }
 0x184   :  { %v4336_v62 = vpop.f32.mrb[56].mxu1 }
 0x185   :  { %v1754_v63 = vpop.f32.mrb[57].mxu1 }
 0x186   :  { %v4338_v29 = vpop.f32.mrb[58].mxu1  ;;  %v4363_v63 = vld [vmem:[%s4707_s2] ss:$0 sm:$0xff] }
 0x187   :  { %v1757_v2 = vpop.f32.mrb[59].mxu1 }
 0x188   :  { %v1681_v2 = vadd.f32 %v4363_v63, %v4204_v47  ;;  %v1689_v47 = vadd.f32 %v4363_v63, %v4220_v54  ;;  %v1697_v54 = vadd.f32 %v4363_v63, %v4236_v17  ;;  %v1705_v17 = vadd.f32 %v4363_v63, %v4252_v33 }
 0x18c   :  { %v4340_v3 = vpop.f32.mrb[60].mxu1 }
 0x18d   :  { %v1762_v4 = vpop.f32.mrb[61].mxu1 }
 0x18e   :  { %v4342_v36 = vpop.f32.mrb[62].mxu1 }
 0x18f   :  { %v1765_v8 = vpop.f32.mrb[63].mxu1 }
 0x194   :  { %v4344_v11 = vpop.f32.mrb[64].mxu1 }
 0x195   :  { %v1770_v13 = vpop.f32.mrb[65].mxu1 }
 0x196   :  { %v4346_v16 = vpop.f32.mrb[66].mxu1 }
 0x197   :  { %v1773_v18 = vpop.f32.mrb[67].mxu1 }
 0x198   :  { %v1684_v18 = vadd.f32 %v4363_v63, %v4212_v59  ;;  %v1692_v59 = vadd.f32 %v4363_v63, %v4228_v9  ;;  %v1700_v9 = vadd.f32 %v4363_v63, %v4244_v25  ;;  %v1708_v25 = vadd.f32 %v4363_v63, %v4260_v7 }
 0x19c   :  { %v4348_v19 = vpop.f32.mrb[68].mxu1 }
 0x19d   :  { %v1778_v23 = vpop.f32.mrb[69].mxu1 }
 0x19e   :  { %v4350_v24 = vpop.f32.mrb[70].mxu1 }
 0x19f   :  { %v1781_v27 = vpop.f32.mrb[71].mxu1 }
 0x1a4   :  { %v2211_v30 = vpop.f32.mrb[72].mxu1 }
 0x1a5   :  { %v2213_v32 = vpop.f32.mrb[73].mxu1 }
 0x1a6   :  { %v2214_v34 = vpop.f32.mrb[74].mxu1 }
 0x1a7   :  { %v2216_v40 = vpop.f32.mrb[75].mxu1 }
 0x1ac   :  { %v2219_v37 = vpop.f32.mrb[76].mxu1 }
 0x1ad   :  { %v2221_v39 = vpop.f32.mrb[77].mxu1 }
 0x1ae   :  { %v2222_v42 = vpop.f32.mrb[78].mxu1 }
 0x1af   :  { %v2224_v48 = vpop.f32.mrb[79].mxu1 }
 0x1b4   :  { %v2227_v45 = vpop.f32.mrb[80].mxu1 }
 0x1b5   :  { %v2229_v46 = vpop.f32.mrb[81].mxu1 }
 0x1b6   :  { %v2230_v56 = vpop.f32.mrb[82].mxu1 }
 0x1b7   :  { %v2232_v49 = vpop.f32.mrb[83].mxu1 }
 0x1bc   :  { %v4352_v52 = vpop.f32.mrb[84].mxu1 }
 0x1bd   :  { %v2237_v53 = vpop.f32.mrb[85].mxu1 }
 0x1be   :  { %v4354_v1 = vpop.f32.mrb[86].mxu1 }
 0x1bf   :  { %v2240_v5 = vpop.f32.mrb[87].mxu1 }
 0x1c4   :  { %v4356_v57 = vpop.f32.mrb[88].mxu1 }
 0x1c5   :  { %v2245_v12 = vpop.f32.mrb[89].mxu1 }
 0x1c6   :  { %v4358_v60 = vpop.f32.mrb[90].mxu1 }
 0x1c7   :  { %v2248_v21 = vpop.f32.mrb[91].mxu1 }
 0x1cc   :  { %v4367_v4 = vpop.f32.mrb[92].mxu1 }
 0x1cd   :  { %v2034_v8 = vpop.f32.mrb[20].mxu0  ;;  %v2253_v13 = vpop.f32.mrb[93].mxu1 }
 0x1ce   :  { %v2933_v23 = vadd.f32 %v2034_v8, %v1681_v2  ;;  %v2036_v27 = vpop.f32.mrb[21].mxu0  ;;  %v4371_v32 = vpop.f32.mrb[94].mxu1 }
 0x1cf   :  { %v2037_v40 = vpop.f32.mrb[22].mxu0  ;;  %v2256_v39 = vpop.f32.mrb[95].mxu1 }
 0x1d0   :  { %v2936_v48 = vadd.f32 %v2037_v40, %v1684_v18  ;;  %v2039_v46 = vpop.f32.mrb[23].mxu0  ;;  %v4373_v49 = vadd.f32 %v2933_v23, %v2211_v30 }
 0x1d2   :  { %v4375_v53 = vadd.f32 %v2936_v48, %v2214_v34 }
 0x1d4   :  { %v4379_v5 = vpop.f32.mrb[96].mxu1 }
 0x1d5   :  { %v2042_v12 = vpop.f32.mrb[24].mxu0  ;;  %v2261_v21 = vpop.f32.mrb[97].mxu1 }
 0x1d6   :  { %v2939_v2 = vadd.f32 %v2042_v12, %v1689_v47  ;;  %v2044_v8 = vpop.f32.mrb[25].mxu0  ;;  %v4383_v13 = vpop.f32.mrb[98].mxu1 }
 0x1d7   :  { %v2045_v18 = vpop.f32.mrb[26].mxu0  ;;  %v2264_v27 = vpop.f32.mrb[99].mxu1 }
 0x1d8   :  { %v2942_v30 = vadd.f32 %v2045_v18, %v1692_v59  ;;  %v2047_v23 = vpop.f32.mrb[27].mxu0  ;;  %v4385_v34 = vadd.f32 %v2939_v2, %v2219_v37 }
 0x1da   :  { %v4387_v40 = vadd.f32 %v2942_v30, %v2222_v42 }
 0x1dc   :  { %v4391_v39 = vpop.f32.mrb[100].mxu1 }
 0x1dd   :  { %v2050_v48 = vpop.f32.mrb[28].mxu0  ;;  %v2269_v46 = vpop.f32.mrb[101].mxu1 }
 0x1de   :  { %v2945_v47 = vadd.f32 %v2050_v48, %v1697_v54  ;;  %v2052_v12 = vpop.f32.mrb[29].mxu0  ;;  %v4395_v21 = vpop.f32.mrb[102].mxu1 }
 0x1df   :  { %v2053_v59 = vpop.f32.mrb[30].mxu0  ;;  %v2272_v8 = vpop.f32.mrb[103].mxu1 }
 0x1e0   :  { %v2948_v37 = vadd.f32 %v2053_v59, %v1700_v9  ;;  %v2055_v2 = vpop.f32.mrb[31].mxu0  ;;  %v4397_v42 = vadd.f32 %v2945_v47, %v2227_v45  ;;  %v1713_v59 = vadd.f32 %v4363_v63, %v4268_v14 }
 0x1e1   :  { %v1716_v2 = vadd.f32 %v4363_v63, %v4276_v22 }
 0x1e2   :  { %v4399_v18 = vadd.f32 %v2948_v37, %v2230_v56 }
 0x1e4   :  { %v4403_v27 = vpop.f32.mrb[104].mxu1 }
 0x1e5   :  { %v2058_v30 = vpop.f32.mrb[32].mxu0  ;;  %v2277_v23 = vpop.f32.mrb[105].mxu1 }
 0x1e6   :  { %v2951_v54 = vadd.f32 %v2058_v30, %v1705_v17  ;;  %v2060_v48 = vpop.f32.mrb[33].mxu0  ;;  %v4407_v46 = vpop.f32.mrb[106].mxu1 }
 0x1e7   :  { %v2061_v9 = vpop.f32.mrb[34].mxu0  ;;  %v2280_v12 = vpop.f32.mrb[107].mxu1 }
 0x1e8   :  { %v2954_v45 = vadd.f32 %v2061_v9, %v1708_v25  ;;  %v2063_v47 = vpop.f32.mrb[35].mxu0  ;;  %v4410_v56 = vadd.f32 %v2951_v54, %v4352_v52  ;;  %v1721_v9 = vadd.f32 %v4363_v63, %v4284_v28 }
 0x1e9   :  { %v1724_v47 = vadd.f32 %v4363_v63, %v4292_v35 }
 0x1ea   :  { %v4413_v33 = vadd.f32 %v2954_v45, %v4354_v1 }
 0x1ec   :  { %v4417_v8 = vpop.f32.mrb[108].mxu1 }
 0x1ed   :  { %v2066_v7 = vpop.f32.mrb[36].mxu0  ;;  %v2285_v37 = vpop.f32.mrb[109].mxu1 }
 0x1ee   :  { %v2957_v17 = vadd.f32 %v2066_v7, %v1713_v59  ;;  %v2068_v30 = vpop.f32.mrb[37].mxu0  ;;  %v4421_v23 = vpop.f32.mrb[110].mxu1 }
 0x1ef   :  { %v2069_v25 = vpop.f32.mrb[38].mxu0  ;;  %v2288_v52 = vpop.f32.mrb[111].mxu1 }
 0x1f0   :  { %v2960_v54 = vadd.f32 %v2069_v25, %v1716_v2  ;;  %v2071_v48 = vpop.f32.mrb[39].mxu0  ;;  %v4424_v1 = vadd.f32 %v2957_v17, %v4356_v57  ;;  %v1729_v25 = vadd.f32 %v4363_v63, %v4300_v41 }
 0x1f1   :  { %v1732_v48 = vadd.f32 %v4363_v63, %v4308_v51 }
 0x1f2   :  { %v4427_v14 = vadd.f32 %v2960_v54, %v4358_v60 }
 0x1f4   :  { %v4431_v12 = vpop.f32.mrb[112].mxu1 }
 0x1f5   :  { %v2074_v22 = vpop.f32.mrb[40].mxu0  ;;  %v2293_v45 = vpop.f32.mrb[113].mxu1 }
 0x1f6   :  { %v2963_v59 = vadd.f32 %v2074_v22, %v1721_v9  ;;  %v2076_v7 = vpop.f32.mrb[41].mxu0  ;;  %v4435_v37 = vpop.f32.mrb[114].mxu1 }
 0x1f7   :  { %v2077_v2 = vpop.f32.mrb[42].mxu0  ;;  %v2296_v57 = vpop.f32.mrb[115].mxu1 }
 0x1f8   :  { %v2966_v17 = vadd.f32 %v2077_v2, %v1724_v47  ;;  %v2079_v30 = vpop.f32.mrb[43].mxu0  ;;  %v4438_v60 = vadd.f32 %v2963_v59, %v4367_v4  ;;  %v1737_v2 = vadd.f32 %v4363_v63, %v4316_v50 }
 0x1f9   :  { %v1740_v30 = vadd.f32 %v4363_v63, %v4324_v55 }
 0x1fa   :  { %v4441_v28 = vadd.f32 %v2966_v17, %v4371_v32 }
 0x1fc   :  { %v4445_v52 = vpop.f32.mrb[116].mxu1 }
 0x1fd   :  { %v2082_v35 = vpop.f32.mrb[44].mxu0  ;;  %v2301_v54 = vpop.f32.mrb[117].mxu1 }
 0x1fe   :  { %v2969_v9 = vadd.f32 %v2082_v35, %v1729_v25  ;;  %v2084_v22 = vpop.f32.mrb[45].mxu0  ;;  %v4449_v45 = vpop.f32.mrb[118].mxu1 }
 0x1ff   :  { %v2085_v47 = vpop.f32.mrb[46].mxu0  ;;  %v2304_v4 = vpop.f32.mrb[119].mxu1 }
 0x200   :  { %v2972_v59 = vadd.f32 %v2085_v47, %v1732_v48  ;;  %v2087_v7 = vpop.f32.mrb[47].mxu0  ;;  %v4452_v32 = vadd.f32 %v2969_v9, %v4379_v5  ;;  %v1745_v47 = vadd.f32 %v4363_v63, %v4329_v58 }
 0x201   :  { %v1748_v7 = vadd.f32 %v4363_v63, %v4334_v61 }
 0x202   :  { %v4455_v41 = vadd.f32 %v2972_v59, %v4383_v13 }
 0x204   :  { %v4459_v57 = vpop.f32.mrb[120].mxu1 }
 0x205   :  { %v2090_v51 = vpop.f32.mrb[48].mxu0  ;;  %v2309_v17 = vpop.f32.mrb[121].mxu1 }
 0x206   :  { %v2975_v25 = vadd.f32 %v2090_v51, %v1737_v2  ;;  %v2092_v35 = vpop.f32.mrb[49].mxu0  ;;  %v4463_v54 = vpop.f32.mrb[122].mxu1 }
 0x207   :  { %v2093_v48 = vpop.f32.mrb[50].mxu0  ;;  %v2312_v5 = vpop.f32.mrb[123].mxu1 }
 0x208   :  { %v2978_v9 = vadd.f32 %v2093_v48, %v1740_v30  ;;  %v2095_v22 = vpop.f32.mrb[51].mxu0  ;;  %v4466_v13 = vadd.f32 %v2975_v25, %v4391_v39  ;;  %v1753_v48 = vadd.f32 %v4363_v63, %v4336_v62 }
 0x209   :  { %v1756_v22 = vadd.f32 %v4363_v63, %v4338_v29 }
 0x20a   :  { %v4469_v50 = vadd.f32 %v2978_v9, %v4395_v21 }
 0x20c   :  { %v4473_v4 = vpop.f32.mrb[124].mxu1 }
 0x20d   :  { %v2098_v55 = vpop.f32.mrb[52].mxu0  ;;  %v4475_v59 = vpop.f32.mrb[125].mxu1 }
 0x20e   :  { %v2981_v2 = vadd.f32 %v2098_v55, %v1745_v47  ;;  %v2100_v51 = vpop.f32.mrb[53].mxu0  ;;  %v4479_v17 = vpop.f32.mrb[126].mxu1 }
 0x20f   :  { %v2101_v39 = vpop.f32.mrb[54].mxu0  ;;  %v4481_v30 = vpop.f32.mrb[127].mxu1 }
 0x210   :  { %v2984_v21 = vadd.f32 %v2101_v39, %v1748_v7  ;;  %v2103_v25 = vpop.f32.mrb[55].mxu0  ;;  %v4484_v35 = vadd.f32 %v2981_v2, %v4403_v27 }
 0x212   :  { %v4487_v58 = vadd.f32 %v2984_v21, %v4407_v46  ;;  %v1761_v21 = vadd.f32 %v4363_v63, %v4340_v3 }
 0x214   :  { %v4491_v5 = vpop.f32.mrb[128].mxu1 }
 0x215   :  { %v2106_v61 = vpop.f32.mrb[56].mxu0  ;;  %v4493_v9 = vpop.f32.mrb[129].mxu1 }
 0x216   :  { %v2987_v47 = vadd.f32 %v2106_v61, %v1753_v48  ;;  %v2108_v55 = vpop.f32.mrb[57].mxu0  ;;  %v4497_v7 = vpop.f32.mrb[130].mxu1 }
 0x217   :  { %v2109_v27 = vpop.f32.mrb[58].mxu0  ;;  %v4499_v2 = vpop.f32.mrb[131].mxu1  ;;  %v1764_v55 = vadd.f32 %v4363_v63, %v4342_v36 }
 0x218   :  { %v2990_v46 = vadd.f32 %v2109_v27, %v1756_v22  ;;  %v2111_v51 = vpop.f32.mrb[59].mxu0  ;;  %v4502_v39 = vadd.f32 %v2987_v47, %v4417_v8 }
 0x21a   :  { %v4505_v62 = vadd.f32 %v2990_v46, %v4421_v23 }
 0x21c   :  { %v2854_v25 = vpop.f32.mrb[132].mxu1 }
 0x21d   :  { %v2114_v29 = vpop.f32.mrb[60].mxu0  ;;  %v2389_v48 = vadd.f32 %v4373_v49, %v2854_v25  ;;  %v4510_v61 = vpop.f32.mrb[133].mxu1 }
 0x21e   :  { %v2993_v22 = vadd.f32 %v2114_v29, %v1761_v21  ;;  %v2116_v27 = vpop.f32.mrb[61].mxu0  ;;  %v2855_v51 = vpop.f32.mrb[134].mxu1 }
 0x21f   :  { %v2501_v8 = vmax.f32 %v2389_v48, 0.0  ;;  %v2117_v47 = vpop.f32.mrb[62].mxu0  ;;  %v2392_v23 = vadd.f32 %v4375_v53, %v2855_v51  ;;  %v4515_v46 = vpop.f32.mrb[135].mxu1  ;;  %v1769_v53 = vadd.f32 %v4363_v63, %v4344_v11  ;;  %v1772_v48 = vadd.f32 %v4363_v63, %v4346_v16 }
 0x220   :  { %v2996_v43 = vadd.f32 %v2117_v47, %v1764_v55  ;;  %v2119_v3 = vpop.f32.mrb[63].mxu0  ;;  %v4518_v44 = vadd.f32 %v2993_v22, %v4431_v12 }
 0x221   :  { %2537 = vst [vmem:[%s4708_s3 + $0x50] sm:$0xff] %v2501_v8  ;;  %v2502_v49 = vmax.f32 %v2392_v23, 0.0 }
 0x222   :  { %v4524_v36 = vadd.f32 %v2996_v43, %v4435_v37 }
 0x223   :  { %2538 = vst [vmem:[%s4708_s3 + $0x58] sm:$0xff] %v2502_v49 }
 0x224   :  { %v2858_v21 = vpop.f32.mrb[136].mxu1 }
 0x225   :  { %v2122_v25 = vpop.f32.mrb[64].mxu0  ;;  %v2405_v12 = vadd.f32 %v4397_v42, %v2858_v21  ;;  %v2396_v29 = vpop.f32.mrb[137].mxu1 }
 0x226   :  { %v2999_v55 = vadd.f32 %v2122_v25, %v1769_v53  ;;  %v2124_v22 = vpop.f32.mrb[65].mxu0  ;;  %v2397_v43 = vadd.f32 %v4385_v34, %v2396_v29  ;;  %v2859_v37 = vpop.f32.mrb[138].mxu1 }
 0x227   :  { %v2505_v27 = vmax.f32 %v2405_v12, 0.0  ;;  %v2125_v51 = vpop.f32.mrb[66].mxu0  ;;  %v2408_v8 = vadd.f32 %v4399_v18, %v2859_v37  ;;  %v2399_v47 = vpop.f32.mrb[139].mxu1 }
 0x228   :  { %v2503_v23 = vmax.f32 %v2397_v43, 0.0  ;;  %v3002_v11 = vadd.f32 %v2125_v51, %v1772_v48  ;;  %v2127_v3 = vpop.f32.mrb[67].mxu0  ;;  %v2400_v49 = vadd.f32 %v4387_v40, %v2399_v47  ;;  %v4538_v42 = vadd.f32 %v2999_v55, %v4445_v52 }
 0x229   :  { %2541 = vst [vmem:[%s4708_s3 + $0x70] sm:$0xff] %v2505_v27  ;;  %v2506_v16 = vmax.f32 %v2408_v8, 0.0  ;;  %v1777_v40 = vadd.f32 %v4363_v63, %v4348_v19 }
 0x22a   :  { %2539 = vst [vmem:[%s4708_s3 + $0x60] sm:$0xff] %v2503_v23  ;;  %v2504_v34 = vmax.f32 %v2400_v49, 0.0  ;;  %v4547_v18 = vadd.f32 %v3002_v11, %v4449_v45  ;;  %v1780_v45 = vadd.f32 %v4363_v63, %v4350_v24 }
 0x22b   :  { %2542 = vst [vmem:[%s4708_s3 + $0x78] sm:$0xff] %v2506_v16 }
 0x22c   :  { %2540 = vst [vmem:[%s4708_s3 + $0x68] sm:$0xff] %v2504_v34  ;;  %v2862_v52 = vpop.f32.mrb[140].mxu1 }
 0x22d   :  { %v2130_v53 = vpop.f32.mrb[68].mxu0  ;;  %v2421_v21 = vadd.f32 %v4424_v1, %v2862_v52  ;;  %v2412_v25 = vpop.f32.mrb[141].mxu1 }
 0x22e   :  { %v3005_v12 = vadd.f32 %v2130_v53, %v1777_v40  ;;  %v2132_v29 = vpop.f32.mrb[69].mxu0  ;;  %v2413_v48 = vadd.f32 %v4410_v56, %v2412_v25  ;;  %v2863_v55 = vpop.f32.mrb[142].mxu1 }
 0x22f   :  { %v2509_v22 = vmax.f32 %v2421_v21, 0.0  ;;  %v2133_v43 = vpop.f32.mrb[70].mxu0  ;;  %v2424_v19 = vadd.f32 %v4427_v14, %v2863_v55  ;;  %v2415_v37 = vpop.f32.mrb[143].mxu1 }
 0x230   :  { %v2507_v27 = vmax.f32 %v2413_v48, 0.0  ;;  %v3008_v51 = vadd.f32 %v2133_v43, %v1780_v45  ;;  %v2135_v8 = vpop.f32.mrb[71].mxu0  ;;  %v2416_v47 = vadd.f32 %v4413_v33, %v2415_v37  ;;  %v4564_v1 = vadd.f32 %v3005_v12, %v4459_v57 }
 0x231   :  { %2545 = vst [vmem:[%s4708_s3 + $0x90] sm:$0xff] %v2509_v22  ;;  %v2510_v24 = vmax.f32 %v2424_v19, 0.0  ;;  %v1641_v33 = vadd.f32 %v4363_v63, %v4124_v0  ;;  %v1652_v19 = vadd.f32 %v4363_v63, %v4148_v15 }
 0x232   :  { %2543 = vst [vmem:[%s4708_s3 + $0x80] sm:$0xff] %v2507_v27  ;;  %v2508_v56 = vmax.f32 %v2416_v47, 0.0  ;;  %v4573_v14 = vadd.f32 %v3008_v51, %v4463_v54  ;;  %v1644_v54 = vadd.f32 %v4363_v63, %v4132_v6 }
 0x233   :  { %2546 = vst [vmem:[%s4708_s3 + $0x98] sm:$0xff] %v2510_v24 }
 0x234   :  { %2544 = vst [vmem:[%s4708_s3 + $0x88] sm:$0xff] %v2508_v56  ;;  %v2866_v57 = vpop.f32.mrb[144].mxu1 }
 0x235   :  { %v2171_v23 = vpop.f32.mrb[0].mxu0  ;;  %v2437_v11 = vadd.f32 %v4452_v32, %v2866_v57  ;;  %v2428_v3 = vpop.f32.mrb[145].mxu1 }
 0x236   :  { %v2913_v49 = vadd.f32 %v2171_v23, %v1641_v33  ;;  %v2173_v16 = vpop.f32.mrb[1].mxu0  ;;  %v2429_v34 = vadd.f32 %v4438_v60, %v2428_v3  ;;  %v2867_v40 = vpop.f32.mrb[146].mxu1 }
 0x237   :  { %v2513_v52 = vmax.f32 %v2437_v11, 0.0  ;;  %v2174_v53 = vpop.f32.mrb[2].mxu0  ;;  %v2440_v0 = vadd.f32 %v4455_v41, %v2867_v40  ;;  %v2431_v21 = vpop.f32.mrb[147].mxu1 }
 0x238   :  { %v2349_v25 = vadd.f32 %v2913_v49, %v4475_v59  ;;  %v2511_v45 = vmax.f32 %v2429_v34, 0.0  ;;  %v2915_v12 = vadd.f32 %v2174_v53, %v1644_v54  ;;  %v2176_v29 = vpop.f32.mrb[3].mxu0  ;;  %v2432_v32 = vadd.f32 %v4441_v28, %v2431_v21 }
 0x239   :  { %2549 = vst [vmem:[%s4708_s3 + $0xb0] sm:$0xff] %v2513_v52  ;;  %v2514_v6 = vmax.f32 %v2440_v0, 0.0  ;;  %v1649_v28 = vadd.f32 %v4363_v63, %v4140_v10  ;;  %v1660_v34 = vadd.f32 %v4363_v63, %v4164_v26 }
 0x23a   :  { %v2491_v48 = vmax.f32 %v2349_v25, 0.0  ;;  %2547 = vst [vmem:[%s4708_s3 + $0xa0] sm:$0xff] %v2511_v45  ;;  %v2352_v60 = vadd.f32 %v2915_v12, %v4481_v30  ;;  %v2512_v41 = vmax.f32 %v2432_v32, 0.0 }
 0x23b   :  { %2550 = vst [vmem:[%s4708_s3 + $0xb8] sm:$0xff] %v2514_v6 }
 0x23c   :  { %2527 = vst [vmem:[%s4708_s3] sm:$0xff] %v2491_v48  ;;  %v2492_v59 = vmax.f32 %v2352_v60, 0.0  ;;  %2548 = vst [vmem:[%s4708_s3 + $0xa8] sm:$0xff] %v2512_v41  ;;  %v2870_v55 = vpop.f32.mrb[148].mxu1 }
 0x23d   :  { %v2179_v22 = vpop.f32.mrb[4].mxu0  ;;  %v2453_v30 = vadd.f32 %v4484_v35, %v2870_v55  ;;  %v2444_v43 = vpop.f32.mrb[149].mxu1 }
 0x23e   :  { %2528 = vst [vmem:[%s4708_s3 + $0x8] sm:$0xff] %v2492_v59  ;;  %v2917_v10 = vadd.f32 %v2179_v22, %v1649_v28  ;;  %v2181_v37 = vpop.f32.mrb[5].mxu0  ;;  %v2445_v27 = vadd.f32 %v4466_v13, %v2444_v43  ;;  %v2871_v51 = vpop.f32.mrb[150].mxu1  ;;  %v1668_v59 = vadd.f32 %v4363_v63, %v4180_v38 }
 0x23f   :  { %v2517_v8 = vmax.f32 %v2453_v30, 0.0  ;;  %v2182_v47 = vpop.f32.mrb[6].mxu0  ;;  %v2456_v24 = vadd.f32 %v4487_v58, %v2871_v51  ;;  %v2447_v56 = vpop.f32.mrb[151].mxu1 }
 0x240   :  { %v2357_v35 = vadd.f32 %v2917_v10, %v4473_v4  ;;  %v2515_v33 = vmax.f32 %v2445_v27, 0.0  ;;  %v2919_v57 = vadd.f32 %v2182_v47, %v1652_v19  ;;  %v2184_v23 = vpop.f32.mrb[7].mxu0  ;;  %v2448_v15 = vadd.f32 %v4469_v50, %v2447_v56 }
 0x241   :  { %2553 = vst [vmem:[%s4708_s3 + $0xd0] sm:$0xff] %v2517_v8  ;;  %v2518_v11 = vmax.f32 %v2456_v24, 0.0  ;;  %v1657_v50 = vadd.f32 %v4363_v63, %v4156_v20 }
 0x242   :  { %v2493_v3 = vmax.f32 %v2357_v35, 0.0  ;;  %2551 = vst [vmem:[%s4708_s3 + $0xc0] sm:$0xff] %v2515_v33  ;;  %v2360_v13 = vadd.f32 %v2919_v57, %v4479_v17  ;;  %v2516_v58 = vmax.f32 %v2448_v15, 0.0  ;;  %v4712_v33 = vld [vmem:[#allocation3_spill] sm:$0xff] }
 0x243   :  { %2554 = vst [vmem:[%s4708_s3 + $0xd8] sm:$0xff] %v2518_v11 }
 0x244   :  { %2529 = vst [vmem:[%s4708_s3 + $0x10] sm:$0xff] %v2493_v3  ;;  %v2494_v4 = vmax.f32 %v2360_v13, 0.0  ;;  %2552 = vst [vmem:[%s4708_s3 + $0xc8] sm:$0xff] %v2516_v58  ;;  %v2874_v54 = vpop.f32.mrb[152].mxu1 }
 0x245   :  { %v2187_v49 = vpop.f32.mrb[8].mxu0  ;;  %v2469_v17 = vadd.f32 %v4518_v44, %v2874_v54  ;;  %v2460_v16 = vpop.f32.mrb[153].mxu1 }
 0x246   :  { %2530 = vst [vmem:[%s4708_s3 + $0x18] sm:$0xff] %v2494_v4  ;;  %v2921_v20 = vadd.f32 %v2187_v49, %v1657_v50  ;;  %v2189_v40 = vpop.f32.mrb[9].mxu0  ;;  %v2461_v52 = vadd.f32 %v4502_v39, %v2460_v16  ;;  %v2875_v53 = vpop.f32.mrb[154].mxu1 }
 0x247   :  { %v2521_v0 = vmax.f32 %v2469_v17, 0.0  ;;  %v2190_v21 = vpop.f32.mrb[10].mxu0  ;;  %v2472_v25 = vadd.f32 %v4524_v36, %v2875_v53  ;;  %v2463_v45 = vpop.f32.mrb[155].mxu1 }
 0x248   :  { %v2365_v44 = vadd.f32 %v2921_v20, %v4493_v9  ;;  %v2519_v12 = vmax.f32 %v2461_v52, 0.0  ;;  %v2923_v29 = vadd.f32 %v2190_v21, %v1660_v34  ;;  %v2192_v32 = vpop.f32.mrb[11].mxu0  ;;  %v2464_v26 = vadd.f32 %v4505_v62, %v2463_v45 }
 0x249   :  { %2557 = vst [vmem:[%s4708_s3 + $0xf0] sm:$0xff] %v2521_v0  ;;  %v2522_v6 = vmax.f32 %v2472_v25, 0.0  ;;  %v1665_v9 = vadd.f32 %v4363_v63, %v4172_v31 }
 0x24a   :  { %v2495_v48 = vmax.f32 %v2365_v44, 0.0  ;;  %2555 = vst [vmem:[%s4708_s3 + $0xe0] sm:$0xff] %v2519_v12  ;;  %v2368_v39 = vadd.f32 %v2923_v29, %v4499_v2  ;;  %v2520_v36 = vmax.f32 %v2464_v26, 0.0 }
 0x24b   :  { %2558 = vst [vmem:[%s4708_s3 + $0xf8] sm:$0xff] %v2522_v6 }
 0x24c   :  { %2531 = vst [vmem:[%s4708_s3 + $0x20] sm:$0xff] %v2495_v48  ;;  %v2496_v62 = vmax.f32 %v2368_v39, 0.0  ;;  %2556 = vst [vmem:[%s4708_s3 + $0xe8] sm:$0xff] %v2520_v36  ;;  %v2878_v60 = vpop.f32.mrb[156].mxu1 }
 0x24d   :  { %v2195_v41 = vpop.f32.mrb[12].mxu0  ;;  %v2485_v2 = vadd.f32 %v4564_v1, %v2878_v60  ;;  %v2476_v28 = vpop.f32.mrb[157].mxu1 }
 0x24e   :  { %2532 = vst [vmem:[%s4708_s3 + $0x28] sm:$0xff] %v2496_v62  ;;  %v2925_v31 = vadd.f32 %v2195_v41, %v1665_v9  ;;  %v2197_v55 = vpop.f32.mrb[13].mxu0  ;;  %v2477_v22 = vadd.f32 %v4538_v42, %v2476_v28  ;;  %v2879_v30 = vpop.f32.mrb[158].mxu1 }
 0x24f   :  { %v2525_v43 = vmax.f32 %v2485_v2, 0.0  ;;  %v2198_v19 = vpop.f32.mrb[14].mxu0  ;;  %v2488_v10 = vadd.f32 %v4573_v14, %v2879_v30  ;;  %v2479_v37 = vpop.f32.mrb[159].mxu1 }
 0x250   :  { %v2373_v1 = vadd.f32 %v2925_v31, %v4491_v5  ;;  %v2523_v27 = vmax.f32 %v2477_v22, 0.0  ;;  %v2927_v51 = vadd.f32 %v2198_v19, %v1668_v59  ;;  %v2200_v8 = vpop.f32.mrb[15].mxu0  ;;  %v2480_v38 = vadd.f32 %v4547_v18, %v2479_v37  ;;  %v4711_v5 = vld [vmem:[#allocation2_spill] sm:$0xff] }
 0x251   :  { %2561 = vst [vmem:[%s4708_s3 + $0x110] sm:$0xff] %v2525_v43  ;;  %v2526_v47 = vmax.f32 %v2488_v10, 0.0  ;;  %v1673_v18 = vadd.f32 %v4363_v63, %v4711_v5 }
 0x252   :  { %v2497_v24 = vmax.f32 %v2373_v1, 0.0  ;;  %2559 = vst [vmem:[%s4708_s3 + $0x100] sm:$0xff] %v2523_v27  ;;  %v2376_v42 = vadd.f32 %v2927_v51, %v4497_v7  ;;  %v2524_v14 = vmax.f32 %v2480_v38, 0.0  ;;  %v1676_v7 = vadd.f32 %v4363_v63, %v4712_v33 }
 0x253   :  { %2562 = vst [vmem:[%s4708_s3 + $0x118] sm:$0xff] %v2526_v47 }
 0x254   :  { %2533 = vst [vmem:[%s4708_s3 + $0x30] sm:$0xff] %v2497_v24  ;;  %v2498_v56 = vmax.f32 %v2376_v42, 0.0  ;;  %2560 = vst [vmem:[%s4708_s3 + $0x108] sm:$0xff] %v2524_v14 }
 0x255   :  { %v2203_v35 = vpop.f32.mrb[16].mxu0 }
 0x256   :  { %2534 = vst [vmem:[%s4708_s3 + $0x38] sm:$0xff] %v2498_v56  ;;  %v2929_v57 = vadd.f32 %v2203_v35, %v1673_v18  ;;  %v2205_v23 = vpop.f32.mrb[17].mxu0 }
 0x257   :  { %v2206_v15 = vpop.f32.mrb[18].mxu0 }
 0x258   :  { %v2381_v11 = vadd.f32 %v2929_v57, %v4510_v61  ;;  %v2931_v3 = vadd.f32 %v2206_v15, %v1676_v7  ;;  %v2208_v13 = vpop.f32.mrb[19].mxu0 }
 0x25a   :  { %v2499_v58 = vmax.f32 %v2381_v11, 0.0  ;;  %v2384_v50 = vadd.f32 %v2931_v3, %v4515_v46 }
 0x25c   :  { %2535 = vst [vmem:[%s4708_s3 + $0x40] sm:$0xff] %v2499_v58  ;;  %v2500_v4 = vmax.f32 %v2384_v50, 0.0 }
 0x25e   :  { %2536 = vst [vmem:[%s4708_s3 + $0x48] sm:$0xff] %v2500_v4 }

// kernel: alexnet_forward.18
= control target key start
LH: loop header
LB: loop body
LE: loop exit
PB: predicated region body
PF: predicated region fallthrough
CT: control target
= control target key end

     0   :  { %s310_s0 = inlined_call_operand.vmem [shape: f32[9,16,384], index: 0, kind: input, shape index: {}]   ;;  %s311_s1 = inlined_call_operand.vmem [shape: f32[16,384], index: 1, kind: output, shape index: {}]  }
   0x1   :  { %v8_v0 = vld [vmem:[%s310_s0] sm:$0xff]  ;;  %v14_v1 = vld [vmem:[%s310_s0 + $0x30] sm:$0xff]  ;;  %v9_v6 = vld [vmem:[%s310_s0 + $0x8] sm:$0xff] }
   0x2   :  { %v20_v2 = vld [vmem:[%s310_s0 + $0x60] sm:$0xff]  ;;  %v62_v3 = vmax.f32 %v8_v0, %v14_v1  ;;  %v26_v4 = vld [vmem:[%s310_s0 + $0x90] sm:$0xff]  ;;  %v15_v7 = vld [vmem:[%s310_s0 + $0x38] sm:$0xff] }
   0x3   :  { %v21_v8 = vld [vmem:[%s310_s0 + $0x68] sm:$0xff]  ;;  %v32_v9 = vld [vmem:[%s310_s0 + $0xc0] sm:$0xff]  ;;  %v70_v10 = vmax.f32 %v9_v6, %v15_v7  ;;  %v38_v11 = vld [vmem:[%s310_s0 + $0xf0] sm:$0xff] }
   0x4   :  { %v63_v5 = vmax.f32 %v62_v3, %v20_v2  ;;  %v27_v13 = vld [vmem:[%s310_s0 + $0x98] sm:$0xff]  ;;  %v10_v15 = vld [vmem:[%s310_s0 + $0x10] sm:$0xff]  ;;  %v16_v16 = vld [vmem:[%s310_s0 + $0x40] sm:$0xff] }
   0x5   :  { %v71_v14 = vmax.f32 %v70_v10, %v21_v8  ;;  %v22_v17 = vld [vmem:[%s310_s0 + $0x70] sm:$0xff]  ;;  %v33_v19 = vld [vmem:[%s310_s0 + $0xc8] sm:$0xff]  ;;  %v78_v20 = vmax.f32 %v10_v15, %v16_v16  ;;  %v44_v21 = vld [vmem:[%s310_s0 + $0x120] sm:$0xff] }
   0x6   :  { %v64_v12 = vmax.f32 %v63_v5, %v26_v4  ;;  %v39_v22 = vld [vmem:[%s310_s0 + $0xf8] sm:$0xff]  ;;  %v28_v24 = vld [vmem:[%s310_s0 + $0xa0] sm:$0xff]  ;;  %v17_v28 = vld [vmem:[%s310_s0 + $0x48] sm:$0xff] }
   0x7   :  { %v72_v23 = vmax.f32 %v71_v14, %v27_v13  ;;  %v79_v26 = vmax.f32 %v78_v20, %v22_v17  ;;  %v11_v27 = vld [vmem:[%s310_s0 + $0x18] sm:$0xff]  ;;  %v50_v30 = vld [vmem:[%s310_s0 + $0x150] sm:$0xff]  ;;  %v56_v31 = vld [vmem:[%s310_s0 + $0x180] sm:$0xff] }
   0x8   :  { %v65_v18 = vmax.f32 %v64_v12, %v32_v9  ;;  %v23_v29 = vld [vmem:[%s310_s0 + $0x78] sm:$0xff]  ;;  %v34_v33 = vld [vmem:[%s310_s0 + $0xd0] sm:$0xff]  ;;  %v86_v34 = vmax.f32 %v11_v27, %v17_v28  ;;  %v45_v36 = vld [vmem:[%s310_s0 + $0x128] sm:$0xff] }
   0x9   :  { %v73_v32 = vmax.f32 %v72_v23, %v33_v19  ;;  %v40_v37 = vld [vmem:[%s310_s0 + $0x100] sm:$0xff]  ;;  %v80_v38 = vmax.f32 %v79_v26, %v28_v24  ;;  %v29_v39 = vld [vmem:[%s310_s0 + $0xa8] sm:$0xff]  ;;  %v18_v43 = vld [vmem:[%s310_s0 + $0x50] sm:$0xff] }
   0xa   :  { %v66_v25 = vmax.f32 %v65_v18, %v38_v11  ;;  %v87_v41 = vmax.f32 %v86_v34, %v23_v29  ;;  %v12_v42 = vld [vmem:[%s310_s0 + $0x20] sm:$0xff]  ;;  %v51_v46 = vld [vmem:[%s310_s0 + $0x158] sm:$0xff]  ;;  %v57_v47 = vld [vmem:[%s310_s0 + $0x188] sm:$0xff] }
   0xb   :  { %v74_v40 = vmax.f32 %v73_v32, %v39_v22  ;;  %v24_v44 = vld [vmem:[%s310_s0 + $0x80] sm:$0xff]  ;;  %v81_v48 = vmax.f32 %v80_v38, %v34_v33  ;;  %v35_v49 = vld [vmem:[%s310_s0 + $0xd8] sm:$0xff]  ;;  %v94_v50 = vmax.f32 %v12_v42, %v18_v43  ;;  %v46_v52 = vld [vmem:[%s310_s0 + $0x130] sm:$0xff] }
   0xc   :  { %v67_v35 = vmax.f32 %v66_v25, %v44_v21  ;;  %v41_v53 = vld [vmem:[%s310_s0 + $0x108] sm:$0xff]  ;;  %v88_v54 = vmax.f32 %v87_v41, %v29_v39  ;;  %v30_v55 = vld [vmem:[%s310_s0 + $0xb0] sm:$0xff]  ;;  %v19_v60 = vld [vmem:[%s310_s0 + $0x58] sm:$0xff] }
   0xd   :  { %v75_v51 = vmax.f32 %v74_v40, %v45_v36  ;;  %v82_v57 = vmax.f32 %v81_v48, %v40_v37  ;;  %v95_v58 = vmax.f32 %v94_v50, %v24_v44  ;;  %v13_v59 = vld [vmem:[%s310_s0 + $0x28] sm:$0xff]  ;;  %v52_v63 = vld [vmem:[%s310_s0 + $0x160] sm:$0xff]  ;;  %v47_v4 = vld [vmem:[%s310_s0 + $0x138] sm:$0xff] }
   0xe   :  { %v68_v45 = vmax.f32 %v67_v35, %v50_v30  ;;  %v25_v61 = vld [vmem:[%s310_s0 + $0x88] sm:$0xff]  ;;  %v89_v0 = vmax.f32 %v88_v54, %v35_v49  ;;  %v36_v1 = vld [vmem:[%s310_s0 + $0xe0] sm:$0xff]  ;;  %v102_v2 = vmax.f32 %v13_v59, %v19_v60  ;;  %v31_v6 = vld [vmem:[%s310_s0 + $0xb8] sm:$0xff] }
   0xf   :  { %v76_v62 = vmax.f32 %v75_v51, %v51_v46  ;;  %v83_v3 = vmax.f32 %v82_v57, %v46_v52  ;;  %v96_v5 = vmax.f32 %v95_v58, %v30_v55  ;;  %v58_v8 = vld [vmem:[%s310_s0 + $0x190] sm:$0xff]  ;;  %v53_v13 = vld [vmem:[%s310_s0 + $0x168] sm:$0xff]  ;;  %v48_v17 = vld [vmem:[%s310_s0 + $0x140] sm:$0xff] }
  0x10   :  { %v69_v56 = vmax.f32 %v68_v45, %v56_v31  ;;  %v90_v9 = vmax.f32 %v89_v0, %v41_v53  ;;  %v42_v10 = vld [vmem:[%s310_s0 + $0x110] sm:$0xff]  ;;  %v103_v11 = vmax.f32 %v102_v2, %v25_v61  ;;  %v37_v15 = vld [vmem:[%s310_s0 + $0xe8] sm:$0xff]  ;;  %v59_v20 = vld [vmem:[%s310_s0 + $0x198] sm:$0xff] }
  0x11   :  { %v77_v7 = vmax.f32 %v76_v62, %v57_v47  ;;  %v84_v12 = vmax.f32 %v83_v3, %v52_v63  ;;  %v97_v14 = vmax.f32 %v96_v5, %v36_v1  ;;  %v43_v22 = vld [vmem:[%s310_s0 + $0x118] sm:$0xff]  ;;  %v54_v24 = vld [vmem:[%s310_s0 + $0x170] sm:$0xff]  ;;  %v49_v27 = vld [vmem:[%s310_s0 + $0x148] sm:$0xff] }
  0x12   :  { %110 = vst [vmem:[%s311_s1] sm:$0xff] %v69_v56  ;;  %v91_v16 = vmax.f32 %v90_v9, %v47_v4  ;;  %v104_v18 = vmax.f32 %v103_v11, %v31_v6  ;;  %v60_v29 = vld [vmem:[%s310_s0 + $0x1a0] sm:$0xff]  ;;  %v55_v32 = vld [vmem:[%s310_s0 + $0x178] sm:$0xff]  ;;  %v61_v35 = vld [vmem:[%s310_s0 + $0x1a8] sm:$0xff] }
  0x13   :  { %111 = vst [vmem:[%s311_s1 + $0x8] sm:$0xff] %v77_v7  ;;  %v85_v19 = vmax.f32 %v84_v12, %v58_v8  ;;  %v98_v21 = vmax.f32 %v97_v14, %v42_v10 }
  0x14   :  { %v92_v23 = vmax.f32 %v91_v16, %v53_v13  ;;  %v105_v25 = vmax.f32 %v104_v18, %v37_v15 }
  0x15   :  { %112 = vst [vmem:[%s311_s1 + $0x10] sm:$0xff] %v85_v19  ;;  %v99_v26 = vmax.f32 %v98_v21, %v48_v17 }
  0x16   :  { %v93_v28 = vmax.f32 %v92_v23, %v59_v20  ;;  %v106_v30 = vmax.f32 %v105_v25, %v43_v22 }
  0x17   :  { %v100_v31 = vmax.f32 %v99_v26, %v54_v24 }
  0x18   :  { %113 = vst [vmem:[%s311_s1 + $0x18] sm:$0xff] %v93_v28  ;;  %v107_v33 = vmax.f32 %v106_v30, %v49_v27 }
  0x19   :  { %v101_v34 = vmax.f32 %v100_v31, %v60_v29 }
  0x1a   :  { %v108_v36 = vmax.f32 %v107_v33, %v55_v32 }
  0x1b   :  { %114 = vst [vmem:[%s311_s1 + $0x20] sm:$0xff] %v101_v34 }
  0x1c   :  { %v109_v37 = vmax.f32 %v108_v36, %v61_v35 }
  0x1e   :  { %115 = vst [vmem:[%s311_s1 + $0x28] sm:$0xff] %v109_v37 }

// kernel: alexnet_forward.19
= control target key start
LH: loop header
LB: loop body
LE: loop exit
PB: predicated region body
PF: predicated region fallthrough
CT: control target
= control target key end

     0   :  { %s3568_s12 = smov 0   ;;  %s3570_s13 = smov 0   ;;  %s4317_s0 = inlined_call_operand.vmem [shape: bf16[16,1664], index: 0, kind: input, shape index: {}]   ;;  %s4318_s1 = inlined_call_operand.vmem [shape: bf16[1664,1024], index: 1, kind: input, shape index: {}]   ;;  %s4319_s2 = inlined_call_operand.vmem [shape: f32[1,1024], index: 2, kind: input, shape index: {}]   ;;  %s4320_s3 = inlined_call_operand.vmem [shape: f32[16,1024], index: 3, kind: output, shape index: {}]  }
   0x1   :  { %s3572_s14 = smov 0   ;;  %s3574_s15 = smov 0  }
   0x2   :  { %s3576_s16 = smov 0  }
   0x3 LB: > { %s22_s17 = sadd.s32 1, %s3541_s15  ;;  %s2867_s18 = sadd.s32 4294967295, %s3545_s16   ;;  %s3545_s16 = sphi %s3576_s16, %s13_s16   ;;  %s3541_s15 = sphi %s3574_s15, %s4325_s15   ;;  %s3537_s14 = sphi %s3572_s14, %s4324_s14   ;;  %s3533_s13 = sphi %s3570_s13, %s4323_s13   ;;  %s3529_s12 = sphi %s3568_s12, %s4322_s12  }
   0x4   : > { %p23_p0 = scmp.ge.s32.totalorder %s22_s17, 4  ;;  %p65_p1 = scmp.ne.s32.totalorder %s3533_s13, %s3529_s12 }
   0x5   : > { %p66_p2 = scmp.eq.s32.totalorder %s3545_s16, 0  ;;  %p123_p4 = scmp.eq.s32.totalorder %s2867_s18, 3 }
   0x6   : > { %s4327_s17 = smov (%p23_p0, %s22_s17), 0  ;;  %s58_s20 = sadd.s32 1, %s3533_s13 }
   0x7   : > { %p67_p3 = por %p66_p2, %p65_p1  ;;  %s55_s19 = ssub.s32 %s3541_s15, %s4327_s17 }
   0x8   : > { %p56_p5 = scmp.eq.s32.totalorder %s55_s19, 0  ;;  %p3603_p6 = por %p123_p4, %p65_p1 }
   0x9   : > { %p2871_p7 = scmp.ge.s32.totalorder %s3545_s16, 4 }
   0xa   : > { %s3608_s22 = scalar_select %p56_p5, %s3533_s13, %s58_s20  }
   0xb   : > { %155 = sbr.rel (%p2871_p7) target bundleno = 230 (0xe6), region = 20 }
  0x12   : > { %158 = sbr.rel (!%p67_p3) target bundleno = 230 (0xe6), region = 24  ;;  %s160_s23 = sand.u32 (%p67_p3), 1, %s3533_s13  }
  0x13   : > { %s3103_s24 = sshll.u32 (%p67_p3), %s3541_s15, 3  ;;  %s3133_s25 = smul.u32 (%p67_p3), 1664, %s160_s23 }
  0x14   : > { %s3616_s28 = scalar_lea.vmem (%p67_p3), %s4318_s1, %s3103_s24 }
  0x15   : > { %v607_v0 = vld [vmem:[%s3616_s28] sm:$0xff] (%p67_p3)  ;;  %s3624_s29 = scalar_lea.vmem (%p67_p3), [#allocation2], %s3133_s25 }
  0x16   : > { %v609_v1 = vld [vmem:[%s3616_s28 + $0x20] sm:$0xff] (%p67_p3)  ;;  %608 = vst [vmem:[%s3624_s29] sm:$0xff] (%p67_p3), %v607_v0 }
  0x17   : > { %v611_v2 = vld [vmem:[%s3616_s28 + $0x40] sm:$0xff] (%p67_p3)  ;;  %610 = vst [vmem:[%s3624_s29 + $0x8] sm:$0xff] (%p67_p3), %v609_v1 }
  0x18   : > { %v613_v3 = vld [vmem:[%s3616_s28 + $0x60] sm:$0xff] (%p67_p3)  ;;  %612 = vst [vmem:[%s3624_s29 + $0x10] sm:$0xff] (%p67_p3), %v611_v2 }
  0x19   : > { %v615_v4 = vld [vmem:[%s3616_s28 + $0x80] sm:$0xff]  ;;  %614 = vst [vmem:[%s3624_s29 + $0x18] sm:$0xff] %v613_v3 }
  0x1a   : > { %v617_v5 = vld [vmem:[%s3616_s28 + $0xa0] sm:$0xff]  ;;  %616 = vst [vmem:[%s3624_s29 + $0x20] sm:$0xff] %v615_v4 }
  0x1b   : > { %618 = vst [vmem:[%s3624_s29 + $0x28] sm:$0xff] %v617_v5  ;;  %v619_v6 = vld [vmem:[%s3616_s28 + $0xc0] sm:$0xff] }
  0x1c   : > { %v621_v7 = vld [vmem:[%s3616_s28 + $0xe0] sm:$0xff]  ;;  %620 = vst [vmem:[%s3624_s29 + $0x30] sm:$0xff] %v619_v6 }
  0x1d   : > { %v623_v8 = vld [vmem:[%s3616_s28 + $0x100] sm:$0xff]  ;;  %622 = vst [vmem:[%s3624_s29 + $0x38] sm:$0xff] %v621_v7 }
  0x1e   : > { %624 = vst [vmem:[%s3624_s29 + $0x40] sm:$0xff] %v623_v8  ;;  %v625_v9 = vld [vmem:[%s3616_s28 + $0x120] sm:$0xff] }
  0x1f   : > { %v627_v10 = vld [vmem:[%s3616_s28 + $0x140] sm:$0xff]  ;;  %626 = vst [vmem:[%s3624_s29 + $0x48] sm:$0xff] %v625_v9 }
  0x20   : > { %v629_v11 = vld [vmem:[%s3616_s28 + $0x160] sm:$0xff]  ;;  %628 = vst [vmem:[%s3624_s29 + $0x50] sm:$0xff] %v627_v10 }
  0x21   : > { %630 = vst [vmem:[%s3624_s29 + $0x58] sm:$0xff] %v629_v11  ;;  %v631_v12 = vld [vmem:[%s3616_s28 + $0x180] sm:$0xff] }
  0x22   : > { %v633_v13 = vld [vmem:[%s3616_s28 + $0x1a0] sm:$0xff]  ;;  %632 = vst [vmem:[%s3624_s29 + $0x60] sm:$0xff] %v631_v12 }
  0x23   : > { %v635_v14 = vld [vmem:[%s3616_s28 + $0x1c0] sm:$0xff]  ;;  %634 = vst [vmem:[%s3624_s29 + $0x68] sm:$0xff] %v633_v13 }
  0x24   : > { %636 = vst [vmem:[%s3624_s29 + $0x70] sm:$0xff] %v635_v14  ;;  %v637_v15 = vld [vmem:[%s3616_s28 + $0x1e0] sm:$0xff] }
  0x25   : > { %v639_v16 = vld [vmem:[%s3616_s28 + $0x200] sm:$0xff]  ;;  %638 = vst [vmem:[%s3624_s29 + $0x78] sm:$0xff] %v637_v15 }
  0x26   : > { %v641_v17 = vld [vmem:[%s3616_s28 + $0x220] sm:$0xff]  ;;  %640 = vst [vmem:[%s3624_s29 + $0x80] sm:$0xff] %v639_v16 }
  0x27   : > { %642 = vst [vmem:[%s3624_s29 + $0x88] sm:$0xff] %v641_v17  ;;  %v643_v18 = vld [vmem:[%s3616_s28 + $0x240] sm:$0xff] }
  0x28   : > { %v645_v19 = vld [vmem:[%s3616_s28 + $0x260] sm:$0xff]  ;;  %644 = vst [vmem:[%s3624_s29 + $0x90] sm:$0xff] %v643_v18 }
  0x29   : > { %v647_v20 = vld [vmem:[%s3616_s28 + $0x280] sm:$0xff]  ;;  %646 = vst [vmem:[%s3624_s29 + $0x98] sm:$0xff] %v645_v19 }
  0x2a   : > { %648 = vst [vmem:[%s3624_s29 + $0xa0] sm:$0xff] %v647_v20  ;;  %v649_v21 = vld [vmem:[%s3616_s28 + $0x2a0] sm:$0xff] }
  0x2b   : > { %v651_v22 = vld [vmem:[%s3616_s28 + $0x2c0] sm:$0xff]  ;;  %650 = vst [vmem:[%s3624_s29 + $0xa8] sm:$0xff] %v649_v21 }
  0x2c   : > { %v653_v23 = vld [vmem:[%s3616_s28 + $0x2e0] sm:$0xff]  ;;  %652 = vst [vmem:[%s3624_s29 + $0xb0] sm:$0xff] %v651_v22 }
  0x2d   : > { %654 = vst [vmem:[%s3624_s29 + $0xb8] sm:$0xff] %v653_v23  ;;  %v655_v24 = vld [vmem:[%s3616_s28 + $0x300] sm:$0xff] }
  0x2e   : > { %v657_v25 = vld [vmem:[%s3616_s28 + $0x320] sm:$0xff]  ;;  %656 = vst [vmem:[%s3624_s29 + $0xc0] sm:$0xff] %v655_v24 }
  0x2f   : > { %v659_v26 = vld [vmem:[%s3616_s28 + $0x340] sm:$0xff]  ;;  %658 = vst [vmem:[%s3624_s29 + $0xc8] sm:$0xff] %v657_v25 }
  0x30   : > { %660 = vst [vmem:[%s3624_s29 + $0xd0] sm:$0xff] %v659_v26  ;;  %v661_v27 = vld [vmem:[%s3616_s28 + $0x360] sm:$0xff] }
  0x31   : > { %v663_v28 = vld [vmem:[%s3616_s28 + $0x380] sm:$0xff]  ;;  %662 = vst [vmem:[%s3624_s29 + $0xd8] sm:$0xff] %v661_v27 }
  0x32   : > { %v665_v29 = vld [vmem:[%s3616_s28 + $0x3a0] sm:$0xff]  ;;  %664 = vst [vmem:[%s3624_s29 + $0xe0] sm:$0xff] %v663_v28 }
  0x33   : > { %666 = vst [vmem:[%s3624_s29 + $0xe8] sm:$0xff] %v665_v29  ;;  %v667_v30 = vld [vmem:[%s3616_s28 + $0x3c0] sm:$0xff] }
  0x34   : > { %v669_v31 = vld [vmem:[%s3616_s28 + $0x3e0] sm:$0xff]  ;;  %668 = vst [vmem:[%s3624_s29 + $0xf0] sm:$0xff] %v667_v30 }
  0x35   : > { %v671_v32 = vld [vmem:[%s3616_s28 + $0x400] sm:$0xff]  ;;  %670 = vst [vmem:[%s3624_s29 + $0xf8] sm:$0xff] %v669_v31 }
  0x36   : > { %672 = vst [vmem:[%s3624_s29 + $0x100] sm:$0xff] %v671_v32  ;;  %v673_v33 = vld [vmem:[%s3616_s28 + $0x420] sm:$0xff] }
  0x37   : > { %v675_v34 = vld [vmem:[%s3616_s28 + $0x440] sm:$0xff]  ;;  %674 = vst [vmem:[%s3624_s29 + $0x108] sm:$0xff] %v673_v33 }
  0x38   : > { %v677_v35 = vld [vmem:[%s3616_s28 + $0x460] sm:$0xff]  ;;  %676 = vst [vmem:[%s3624_s29 + $0x110] sm:$0xff] %v675_v34 }
  0x39   : > { %678 = vst [vmem:[%s3624_s29 + $0x118] sm:$0xff] %v677_v35  ;;  %v679_v36 = vld [vmem:[%s3616_s28 + $0x480] sm:$0xff] }
  0x3a   : > { %v681_v37 = vld [vmem:[%s3616_s28 + $0x4a0] sm:$0xff]  ;;  %680 = vst [vmem:[%s3624_s29 + $0x120] sm:$0xff] %v679_v36 }
  0x3b   : > { %v683_v38 = vld [vmem:[%s3616_s28 + $0x4c0] sm:$0xff]  ;;  %682 = vst [vmem:[%s3624_s29 + $0x128] sm:$0xff] %v681_v37 }
  0x3c   : > { %684 = vst [vmem:[%s3624_s29 + $0x130] sm:$0xff] %v683_v38  ;;  %v685_v39 = vld [vmem:[%s3616_s28 + $0x4e0] sm:$0xff] }
  0x3d   : > { %v687_v40 = vld [vmem:[%s3616_s28 + $0x500] sm:$0xff]  ;;  %686 = vst [vmem:[%s3624_s29 + $0x138] sm:$0xff] %v685_v39 }
  0x3e   : > { %v689_v41 = vld [vmem:[%s3616_s28 + $0x520] sm:$0xff]  ;;  %688 = vst [vmem:[%s3624_s29 + $0x140] sm:$0xff] %v687_v40 }
  0x3f   : > { %690 = vst [vmem:[%s3624_s29 + $0x148] sm:$0xff] %v689_v41  ;;  %v691_v42 = vld [vmem:[%s3616_s28 + $0x540] sm:$0xff] }
  0x40   : > { %v693_v43 = vld [vmem:[%s3616_s28 + $0x560] sm:$0xff]  ;;  %692 = vst [vmem:[%s3624_s29 + $0x150] sm:$0xff] %v691_v42 }
  0x41   : > { %v695_v44 = vld [vmem:[%s3616_s28 + $0x580] sm:$0xff]  ;;  %694 = vst [vmem:[%s3624_s29 + $0x158] sm:$0xff] %v693_v43 }
  0x42   : > { %696 = vst [vmem:[%s3624_s29 + $0x160] sm:$0xff] %v695_v44  ;;  %v697_v45 = vld [vmem:[%s3616_s28 + $0x5a0] sm:$0xff] }
  0x43   : > { %v699_v46 = vld [vmem:[%s3616_s28 + $0x5c0] sm:$0xff]  ;;  %698 = vst [vmem:[%s3624_s29 + $0x168] sm:$0xff] %v697_v45 }
  0x44   : > { %v701_v47 = vld [vmem:[%s3616_s28 + $0x5e0] sm:$0xff]  ;;  %700 = vst [vmem:[%s3624_s29 + $0x170] sm:$0xff] %v699_v46 }
  0x45   : > { %702 = vst [vmem:[%s3624_s29 + $0x178] sm:$0xff] %v701_v47  ;;  %v703_v48 = vld [vmem:[%s3616_s28 + $0x600] sm:$0xff] }
  0x46   : > { %v705_v49 = vld [vmem:[%s3616_s28 + $0x620] sm:$0xff]  ;;  %704 = vst [vmem:[%s3624_s29 + $0x180] sm:$0xff] %v703_v48 }
  0x47   : > { %v707_v50 = vld [vmem:[%s3616_s28 + $0x640] sm:$0xff]  ;;  %706 = vst [vmem:[%s3624_s29 + $0x188] sm:$0xff] %v705_v49 }
  0x48   : > { %708 = vst [vmem:[%s3624_s29 + $0x190] sm:$0xff] %v707_v50  ;;  %v709_v51 = vld [vmem:[%s3616_s28 + $0x660] sm:$0xff] }
  0x49   : > { %v711_v52 = vld [vmem:[%s3616_s28 + $0x680] sm:$0xff]  ;;  %710 = vst [vmem:[%s3624_s29 + $0x198] sm:$0xff] %v709_v51 }
  0x4a   : > { %v713_v53 = vld [vmem:[%s3616_s28 + $0x6a0] sm:$0xff]  ;;  %712 = vst [vmem:[%s3624_s29 + $0x1a0] sm:$0xff] %v711_v52 }
  0x4b   : > { %714 = vst [vmem:[%s3624_s29 + $0x1a8] sm:$0xff] %v713_v53  ;;  %v715_v54 = vld [vmem:[%s3616_s28 + $0x6c0] sm:$0xff] }
  0x4c   : > { %v717_v55 = vld [vmem:[%s3616_s28 + $0x6e0] sm:$0xff]  ;;  %716 = vst [vmem:[%s3624_s29 + $0x1b0] sm:$0xff] %v715_v54 }
  0x4d   : > { %v719_v56 = vld [vmem:[%s3616_s28 + $0x700] sm:$0xff]  ;;  %718 = vst [vmem:[%s3624_s29 + $0x1b8] sm:$0xff] %v717_v55 }
  0x4e   : > { %720 = vst [vmem:[%s3624_s29 + $0x1c0] sm:$0xff] %v719_v56  ;;  %v721_v57 = vld [vmem:[%s3616_s28 + $0x720] sm:$0xff] }
  0x4f   : > { %v723_v58 = vld [vmem:[%s3616_s28 + $0x740] sm:$0xff]  ;;  %722 = vst [vmem:[%s3624_s29 + $0x1c8] sm:$0xff] %v721_v57 }
  0x50   : > { %v725_v59 = vld [vmem:[%s3616_s28 + $0x760] sm:$0xff]  ;;  %724 = vst [vmem:[%s3624_s29 + $0x1d0] sm:$0xff] %v723_v58 }
  0x51   : > { %726 = vst [vmem:[%s3624_s29 + $0x1d8] sm:$0xff] %v725_v59  ;;  %v727_v60 = vld [vmem:[%s3616_s28 + $0x780] sm:$0xff] }
  0x52   : > { %v729_v61 = vld [vmem:[%s3616_s28 + $0x7a0] sm:$0xff]  ;;  %728 = vst [vmem:[%s3624_s29 + $0x1e0] sm:$0xff] %v727_v60 }
  0x53   : > { %v731_v62 = vld [vmem:[%s3616_s28 + $0x7c0] sm:$0xff]  ;;  %730 = vst [vmem:[%s3624_s29 + $0x1e8] sm:$0xff] %v729_v61 }
  0x54   : > { %732 = vst [vmem:[%s3624_s29 + $0x1f0] sm:$0xff] %v731_v62  ;;  %v733_v63 = vld [vmem:[%s3616_s28 + $0x7e0] sm:$0xff] }
  0x55   : > { %v735_v0 = vld [vmem:[%s3616_s28 + $0x800] sm:$0xff]  ;;  %734 = vst [vmem:[%s3624_s29 + $0x1f8] sm:$0xff] %v733_v63 }
  0x56   : > { %v737_v1 = vld [vmem:[%s3616_s28 + $0x820] sm:$0xff]  ;;  %736 = vst [vmem:[%s3624_s29 + $0x200] sm:$0xff] %v735_v0 }
  0x57   : > { %738 = vst [vmem:[%s3624_s29 + $0x208] sm:$0xff] %v737_v1  ;;  %v739_v2 = vld [vmem:[%s3616_s28 + $0x840] sm:$0xff] }
  0x58   : > { %v741_v3 = vld [vmem:[%s3616_s28 + $0x860] sm:$0xff]  ;;  %740 = vst [vmem:[%s3624_s29 + $0x210] sm:$0xff] %v739_v2 }
  0x59   : > { %v743_v4 = vld [vmem:[%s3616_s28 + $0x880] sm:$0xff]  ;;  %742 = vst [vmem:[%s3624_s29 + $0x218] sm:$0xff] %v741_v3 }
  0x5a   : > { %744 = vst [vmem:[%s3624_s29 + $0x220] sm:$0xff] %v743_v4  ;;  %v745_v5 = vld [vmem:[%s3616_s28 + $0x8a0] sm:$0xff] }
  0x5b   : > { %v747_v6 = vld [vmem:[%s3616_s28 + $0x8c0] sm:$0xff]  ;;  %746 = vst [vmem:[%s3624_s29 + $0x228] sm:$0xff] %v745_v5 }
  0x5c   : > { %v749_v7 = vld [vmem:[%s3616_s28 + $0x8e0] sm:$0xff]  ;;  %748 = vst [vmem:[%s3624_s29 + $0x230] sm:$0xff] %v747_v6 }
  0x5d   : > { %750 = vst [vmem:[%s3624_s29 + $0x238] sm:$0xff] %v749_v7  ;;  %v751_v8 = vld [vmem:[%s3616_s28 + $0x900] sm:$0xff] }
  0x5e   : > { %v753_v9 = vld [vmem:[%s3616_s28 + $0x920] sm:$0xff]  ;;  %752 = vst [vmem:[%s3624_s29 + $0x240] sm:$0xff] %v751_v8 }
  0x5f   : > { %v755_v10 = vld [vmem:[%s3616_s28 + $0x940] sm:$0xff]  ;;  %754 = vst [vmem:[%s3624_s29 + $0x248] sm:$0xff] %v753_v9 }
  0x60   : > { %756 = vst [vmem:[%s3624_s29 + $0x250] sm:$0xff] %v755_v10  ;;  %v757_v11 = vld [vmem:[%s3616_s28 + $0x960] sm:$0xff] }
  0x61   : > { %v759_v12 = vld [vmem:[%s3616_s28 + $0x980] sm:$0xff]  ;;  %758 = vst [vmem:[%s3624_s29 + $0x258] sm:$0xff] %v757_v11 }
  0x62   : > { %v761_v13 = vld [vmem:[%s3616_s28 + $0x9a0] sm:$0xff]  ;;  %760 = vst [vmem:[%s3624_s29 + $0x260] sm:$0xff] %v759_v12 }
  0x63   : > { %762 = vst [vmem:[%s3624_s29 + $0x268] sm:$0xff] %v761_v13  ;;  %v763_v14 = vld [vmem:[%s3616_s28 + $0x9c0] sm:$0xff] }
  0x64   : > { %v765_v15 = vld [vmem:[%s3616_s28 + $0x9e0] sm:$0xff]  ;;  %764 = vst [vmem:[%s3624_s29 + $0x270] sm:$0xff] %v763_v14 }
  0x65   : > { %v767_v16 = vld [vmem:[%s3616_s28 + $0xa00] sm:$0xff]  ;;  %766 = vst [vmem:[%s3624_s29 + $0x278] sm:$0xff] %v765_v15 }
  0x66   : > { %768 = vst [vmem:[%s3624_s29 + $0x280] sm:$0xff] %v767_v16  ;;  %v769_v17 = vld [vmem:[%s3616_s28 + $0xa20] sm:$0xff] }
  0x67   : > { %v771_v18 = vld [vmem:[%s3616_s28 + $0xa40] sm:$0xff]  ;;  %770 = vst [vmem:[%s3624_s29 + $0x288] sm:$0xff] %v769_v17 }
  0x68   : > { %v773_v19 = vld [vmem:[%s3616_s28 + $0xa60] sm:$0xff]  ;;  %772 = vst [vmem:[%s3624_s29 + $0x290] sm:$0xff] %v771_v18 }
  0x69   : > { %774 = vst [vmem:[%s3624_s29 + $0x298] sm:$0xff] %v773_v19  ;;  %v775_v20 = vld [vmem:[%s3616_s28 + $0xa80] sm:$0xff] }
  0x6a   : > { %v777_v21 = vld [vmem:[%s3616_s28 + $0xaa0] sm:$0xff]  ;;  %776 = vst [vmem:[%s3624_s29 + $0x2a0] sm:$0xff] %v775_v20 }
  0x6b   : > { %v779_v22 = vld [vmem:[%s3616_s28 + $0xac0] sm:$0xff]  ;;  %778 = vst [vmem:[%s3624_s29 + $0x2a8] sm:$0xff] %v777_v21 }
  0x6c   : > { %780 = vst [vmem:[%s3624_s29 + $0x2b0] sm:$0xff] %v779_v22  ;;  %v781_v23 = vld [vmem:[%s3616_s28 + $0xae0] sm:$0xff] }
  0x6d   : > { %v783_v24 = vld [vmem:[%s3616_s28 + $0xb00] sm:$0xff]  ;;  %782 = vst [vmem:[%s3624_s29 + $0x2b8] sm:$0xff] %v781_v23 }
  0x6e   : > { %v785_v25 = vld [vmem:[%s3616_s28 + $0xb20] sm:$0xff]  ;;  %784 = vst [vmem:[%s3624_s29 + $0x2c0] sm:$0xff] %v783_v24 }
  0x6f   : > { %786 = vst [vmem:[%s3624_s29 + $0x2c8] sm:$0xff] %v785_v25  ;;  %v787_v26 = vld [vmem:[%s3616_s28 + $0xb40] sm:$0xff] }
  0x70   : > { %v789_v27 = vld [vmem:[%s3616_s28 + $0xb60] sm:$0xff]  ;;  %788 = vst [vmem:[%s3624_s29 + $0x2d0] sm:$0xff] %v787_v26 }
  0x71   : > { %v791_v28 = vld [vmem:[%s3616_s28 + $0xb80] sm:$0xff]  ;;  %790 = vst [vmem:[%s3624_s29 + $0x2d8] sm:$0xff] %v789_v27 }
  0x72   : > { %792 = vst [vmem:[%s3624_s29 + $0x2e0] sm:$0xff] %v791_v28  ;;  %v793_v29 = vld [vmem:[%s3616_s28 + $0xba0] sm:$0xff] }
  0x73   : > { %v795_v30 = vld [vmem:[%s3616_s28 + $0xbc0] sm:$0xff]  ;;  %794 = vst [vmem:[%s3624_s29 + $0x2e8] sm:$0xff] %v793_v29 }
  0x74   : > { %v797_v31 = vld [vmem:[%s3616_s28 + $0xbe0] sm:$0xff]  ;;  %796 = vst [vmem:[%s3624_s29 + $0x2f0] sm:$0xff] %v795_v30 }
  0x75   : > { %798 = vst [vmem:[%s3624_s29 + $0x2f8] sm:$0xff] %v797_v31  ;;  %v799_v32 = vld [vmem:[%s3616_s28 + $0xc00] sm:$0xff] }
  0x76   : > { %v801_v33 = vld [vmem:[%s3616_s28 + $0xc20] sm:$0xff]  ;;  %800 = vst [vmem:[%s3624_s29 + $0x300] sm:$0xff] %v799_v32 }
  0x77   : > { %v803_v34 = vld [vmem:[%s3616_s28 + $0xc40] sm:$0xff]  ;;  %802 = vst [vmem:[%s3624_s29 + $0x308] sm:$0xff] %v801_v33 }
  0x78   : > { %804 = vst [vmem:[%s3624_s29 + $0x310] sm:$0xff] %v803_v34  ;;  %v805_v35 = vld [vmem:[%s3616_s28 + $0xc60] sm:$0xff] }
  0x79   : > { %v807_v36 = vld [vmem:[%s3616_s28 + $0xc80] sm:$0xff]  ;;  %806 = vst [vmem:[%s3624_s29 + $0x318] sm:$0xff] %v805_v35 }
  0x7a   : > { %v809_v37 = vld [vmem:[%s3616_s28 + $0xca0] sm:$0xff]  ;;  %808 = vst [vmem:[%s3624_s29 + $0x320] sm:$0xff] %v807_v36 }
  0x7b   : > { %810 = vst [vmem:[%s3624_s29 + $0x328] sm:$0xff] %v809_v37  ;;  %v811_v38 = vld [vmem:[%s3616_s28 + $0xcc0] sm:$0xff] }
  0x7c   : > { %v813_v39 = vld [vmem:[%s3616_s28 + $0xce0] sm:$0xff]  ;;  %812 = vst [vmem:[%s3624_s29 + $0x330] sm:$0xff] %v811_v38 }
  0x7d   : > { %v815_v40 = vld [vmem:[%s3616_s28 + $0xd00] sm:$0xff]  ;;  %814 = vst [vmem:[%s3624_s29 + $0x338] sm:$0xff] %v813_v39 }
  0x7e   : > { %816 = vst [vmem:[%s3624_s29 + $0x340] sm:$0xff] %v815_v40  ;;  %v817_v41 = vld [vmem:[%s3616_s28 + $0xd20] sm:$0xff] }
  0x7f   : > { %v819_v42 = vld [vmem:[%s3616_s28 + $0xd40] sm:$0xff]  ;;  %818 = vst [vmem:[%s3624_s29 + $0x348] sm:$0xff] %v817_v41 }
  0x80   : > { %v821_v43 = vld [vmem:[%s3616_s28 + $0xd60] sm:$0xff]  ;;  %820 = vst [vmem:[%s3624_s29 + $0x350] sm:$0xff] %v819_v42 }
  0x81   : > { %822 = vst [vmem:[%s3624_s29 + $0x358] sm:$0xff] %v821_v43  ;;  %v823_v44 = vld [vmem:[%s3616_s28 + $0xd80] sm:$0xff] }
  0x82   : > { %v825_v45 = vld [vmem:[%s3616_s28 + $0xda0] sm:$0xff]  ;;  %824 = vst [vmem:[%s3624_s29 + $0x360] sm:$0xff] %v823_v44 }
  0x83   : > { %v827_v46 = vld [vmem:[%s3616_s28 + $0xdc0] sm:$0xff]  ;;  %826 = vst [vmem:[%s3624_s29 + $0x368] sm:$0xff] %v825_v45 }
  0x84   : > { %828 = vst [vmem:[%s3624_s29 + $0x370] sm:$0xff] %v827_v46  ;;  %v829_v47 = vld [vmem:[%s3616_s28 + $0xde0] sm:$0xff] }
  0x85   : > { %v831_v48 = vld [vmem:[%s3616_s28 + $0xe00] sm:$0xff]  ;;  %830 = vst [vmem:[%s3624_s29 + $0x378] sm:$0xff] %v829_v47 }
  0x86   : > { %v833_v49 = vld [vmem:[%s3616_s28 + $0xe20] sm:$0xff]  ;;  %832 = vst [vmem:[%s3624_s29 + $0x380] sm:$0xff] %v831_v48 }
  0x87   : > { %834 = vst [vmem:[%s3624_s29 + $0x388] sm:$0xff] %v833_v49  ;;  %v835_v50 = vld [vmem:[%s3616_s28 + $0xe40] sm:$0xff] }
  0x88   : > { %v837_v51 = vld [vmem:[%s3616_s28 + $0xe60] sm:$0xff]  ;;  %836 = vst [vmem:[%s3624_s29 + $0x390] sm:$0xff] %v835_v50 }
  0x89   : > { %v839_v52 = vld [vmem:[%s3616_s28 + $0xe80] sm:$0xff]  ;;  %838 = vst [vmem:[%s3624_s29 + $0x398] sm:$0xff] %v837_v51 }
  0x8a   : > { %840 = vst [vmem:[%s3624_s29 + $0x3a0] sm:$0xff] %v839_v52  ;;  %v841_v53 = vld [vmem:[%s3616_s28 + $0xea0] sm:$0xff] }
  0x8b   : > { %v843_v54 = vld [vmem:[%s3616_s28 + $0xec0] sm:$0xff]  ;;  %842 = vst [vmem:[%s3624_s29 + $0x3a8] sm:$0xff] %v841_v53 }
  0x8c   : > { %v845_v55 = vld [vmem:[%s3616_s28 + $0xee0] sm:$0xff]  ;;  %844 = vst [vmem:[%s3624_s29 + $0x3b0] sm:$0xff] %v843_v54 }
  0x8d   : > { %846 = vst [vmem:[%s3624_s29 + $0x3b8] sm:$0xff] %v845_v55  ;;  %v847_v56 = vld [vmem:[%s3616_s28 + $0xf00] sm:$0xff] }
  0x8e   : > { %v849_v57 = vld [vmem:[%s3616_s28 + $0xf20] sm:$0xff]  ;;  %848 = vst [vmem:[%s3624_s29 + $0x3c0] sm:$0xff] %v847_v56 }
  0x8f   : > { %v851_v58 = vld [vmem:[%s3616_s28 + $0xf40] sm:$0xff]  ;;  %850 = vst [vmem:[%s3624_s29 + $0x3c8] sm:$0xff] %v849_v57 }
  0x90   : > { %852 = vst [vmem:[%s3624_s29 + $0x3d0] sm:$0xff] %v851_v58  ;;  %v853_v59 = vld [vmem:[%s3616_s28 + $0xf60] sm:$0xff] }
  0x91   : > { %v855_v60 = vld [vmem:[%s3616_s28 + $0xf80] sm:$0xff]  ;;  %854 = vst [vmem:[%s3624_s29 + $0x3d8] sm:$0xff] %v853_v59 }
  0x92   : > { %v857_v61 = vld [vmem:[%s3616_s28 + $0xfa0] sm:$0xff]  ;;  %856 = vst [vmem:[%s3624_s29 + $0x3e0] sm:$0xff] %v855_v60 }
  0x93   : > { %858 = vst [vmem:[%s3624_s29 + $0x3e8] sm:$0xff] %v857_v61  ;;  %v859_v62 = vld [vmem:[%s3616_s28 + $0xfc0] sm:$0xff] }
  0x94   : > { %v861_v63 = vld [vmem:[%s3616_s28 + $0xfe0] sm:$0xff]  ;;  %860 = vst [vmem:[%s3624_s29 + $0x3f0] sm:$0xff] %v859_v62 }
  0x95   : > { %v863_v0 = vld [vmem:[%s3616_s28 + $0x1000] sm:$0xff]  ;;  %862 = vst [vmem:[%s3624_s29 + $0x3f8] sm:$0xff] %v861_v63 }
  0x96   : > { %864 = vst [vmem:[%s3624_s29 + $0x400] sm:$0xff] %v863_v0  ;;  %v865_v1 = vld [vmem:[%s3616_s28 + $0x1020] sm:$0xff] }
  0x97   : > { %v867_v2 = vld [vmem:[%s3616_s28 + $0x1040] sm:$0xff]  ;;  %866 = vst [vmem:[%s3624_s29 + $0x408] sm:$0xff] %v865_v1 }
  0x98   : > { %v869_v3 = vld [vmem:[%s3616_s28 + $0x1060] sm:$0xff]  ;;  %868 = vst [vmem:[%s3624_s29 + $0x410] sm:$0xff] %v867_v2 }
  0x99   : > { %870 = vst [vmem:[%s3624_s29 + $0x418] sm:$0xff] %v869_v3  ;;  %v871_v4 = vld [vmem:[%s3616_s28 + $0x1080] sm:$0xff] }
  0x9a   : > { %v873_v5 = vld [vmem:[%s3616_s28 + $0x10a0] sm:$0xff]  ;;  %872 = vst [vmem:[%s3624_s29 + $0x420] sm:$0xff] %v871_v4 }
  0x9b   : > { %v875_v6 = vld [vmem:[%s3616_s28 + $0x10c0] sm:$0xff]  ;;  %874 = vst [vmem:[%s3624_s29 + $0x428] sm:$0xff] %v873_v5 }
  0x9c   : > { %876 = vst [vmem:[%s3624_s29 + $0x430] sm:$0xff] %v875_v6  ;;  %v877_v7 = vld [vmem:[%s3616_s28 + $0x10e0] sm:$0xff] }
  0x9d   : > { %v879_v8 = vld [vmem:[%s3616_s28 + $0x1100] sm:$0xff]  ;;  %878 = vst [vmem:[%s3624_s29 + $0x438] sm:$0xff] %v877_v7 }
  0x9e   : > { %v881_v9 = vld [vmem:[%s3616_s28 + $0x1120] sm:$0xff]  ;;  %880 = vst [vmem:[%s3624_s29 + $0x440] sm:$0xff] %v879_v8 }
  0x9f   : > { %882 = vst [vmem:[%s3624_s29 + $0x448] sm:$0xff] %v881_v9  ;;  %v883_v10 = vld [vmem:[%s3616_s28 + $0x1140] sm:$0xff] }
  0xa0   : > { %v885_v11 = vld [vmem:[%s3616_s28 + $0x1160] sm:$0xff]  ;;  %884 = vst [vmem:[%s3624_s29 + $0x450] sm:$0xff] %v883_v10 }
  0xa1   : > { %v887_v12 = vld [vmem:[%s3616_s28 + $0x1180] sm:$0xff]  ;;  %886 = vst [vmem:[%s3624_s29 + $0x458] sm:$0xff] %v885_v11 }
  0xa2   : > { %888 = vst [vmem:[%s3624_s29 + $0x460] sm:$0xff] %v887_v12  ;;  %v889_v13 = vld [vmem:[%s3616_s28 + $0x11a0] sm:$0xff] }
  0xa3   : > { %v891_v14 = vld [vmem:[%s3616_s28 + $0x11c0] sm:$0xff]  ;;  %890 = vst [vmem:[%s3624_s29 + $0x468] sm:$0xff] %v889_v13 }
  0xa4   : > { %v893_v15 = vld [vmem:[%s3616_s28 + $0x11e0] sm:$0xff]  ;;  %892 = vst [vmem:[%s3624_s29 + $0x470] sm:$0xff] %v891_v14 }
  0xa5   : > { %894 = vst [vmem:[%s3624_s29 + $0x478] sm:$0xff] %v893_v15  ;;  %v895_v16 = vld [vmem:[%s3616_s28 + $0x1200] sm:$0xff] }
  0xa6   : > { %v897_v17 = vld [vmem:[%s3616_s28 + $0x1220] sm:$0xff]  ;;  %896 = vst [vmem:[%s3624_s29 + $0x480] sm:$0xff] %v895_v16 }
  0xa7   : > { %v899_v18 = vld [vmem:[%s3616_s28 + $0x1240] sm:$0xff]  ;;  %898 = vst [vmem:[%s3624_s29 + $0x488] sm:$0xff] %v897_v17 }
  0xa8   : > { %900 = vst [vmem:[%s3624_s29 + $0x490] sm:$0xff] %v899_v18  ;;  %v901_v19 = vld [vmem:[%s3616_s28 + $0x1260] sm:$0xff] }
  0xa9   : > { %v903_v20 = vld [vmem:[%s3616_s28 + $0x1280] sm:$0xff]  ;;  %902 = vst [vmem:[%s3624_s29 + $0x498] sm:$0xff] %v901_v19 }
  0xaa   : > { %v905_v21 = vld [vmem:[%s3616_s28 + $0x12a0] sm:$0xff]  ;;  %904 = vst [vmem:[%s3624_s29 + $0x4a0] sm:$0xff] %v903_v20 }
  0xab   : > { %906 = vst [vmem:[%s3624_s29 + $0x4a8] sm:$0xff] %v905_v21  ;;  %v907_v22 = vld [vmem:[%s3616_s28 + $0x12c0] sm:$0xff] }
  0xac   : > { %v909_v23 = vld [vmem:[%s3616_s28 + $0x12e0] sm:$0xff]  ;;  %908 = vst [vmem:[%s3624_s29 + $0x4b0] sm:$0xff] %v907_v22 }
  0xad   : > { %v911_v24 = vld [vmem:[%s3616_s28 + $0x1300] sm:$0xff]  ;;  %910 = vst [vmem:[%s3624_s29 + $0x4b8] sm:$0xff] %v909_v23 }
  0xae   : > { %912 = vst [vmem:[%s3624_s29 + $0x4c0] sm:$0xff] %v911_v24  ;;  %v913_v25 = vld [vmem:[%s3616_s28 + $0x1320] sm:$0xff] }
  0xaf   : > { %v915_v26 = vld [vmem:[%s3616_s28 + $0x1340] sm:$0xff]  ;;  %914 = vst [vmem:[%s3624_s29 + $0x4c8] sm:$0xff] %v913_v25 }
  0xb0   : > { %v917_v27 = vld [vmem:[%s3616_s28 + $0x1360] sm:$0xff]  ;;  %916 = vst [vmem:[%s3624_s29 + $0x4d0] sm:$0xff] %v915_v26 }
  0xb1   : > { %918 = vst [vmem:[%s3624_s29 + $0x4d8] sm:$0xff] %v917_v27  ;;  %v919_v28 = vld [vmem:[%s3616_s28 + $0x1380] sm:$0xff] }
  0xb2   : > { %v921_v29 = vld [vmem:[%s3616_s28 + $0x13a0] sm:$0xff]  ;;  %920 = vst [vmem:[%s3624_s29 + $0x4e0] sm:$0xff] %v919_v28 }
  0xb3   : > { %v923_v30 = vld [vmem:[%s3616_s28 + $0x13c0] sm:$0xff]  ;;  %922 = vst [vmem:[%s3624_s29 + $0x4e8] sm:$0xff] %v921_v29 }
  0xb4   : > { %924 = vst [vmem:[%s3624_s29 + $0x4f0] sm:$0xff] %v923_v30  ;;  %v925_v31 = vld [vmem:[%s3616_s28 + $0x13e0] sm:$0xff] }
  0xb5   : > { %v927_v32 = vld [vmem:[%s3616_s28 + $0x1400] sm:$0xff]  ;;  %926 = vst [vmem:[%s3624_s29 + $0x4f8] sm:$0xff] %v925_v31 }
  0xb6   : > { %v929_v33 = vld [vmem:[%s3616_s28 + $0x1420] sm:$0xff]  ;;  %928 = vst [vmem:[%s3624_s29 + $0x500] sm:$0xff] %v927_v32 }
  0xb7   : > { %930 = vst [vmem:[%s3624_s29 + $0x508] sm:$0xff] %v929_v33  ;;  %v931_v34 = vld [vmem:[%s3616_s28 + $0x1440] sm:$0xff] }
  0xb8   : > { %v933_v35 = vld [vmem:[%s3616_s28 + $0x1460] sm:$0xff]  ;;  %932 = vst [vmem:[%s3624_s29 + $0x510] sm:$0xff] %v931_v34 }
  0xb9   : > { %v935_v36 = vld [vmem:[%s3616_s28 + $0x1480] sm:$0xff]  ;;  %934 = vst [vmem:[%s3624_s29 + $0x518] sm:$0xff] %v933_v35 }
  0xba   : > { %936 = vst [vmem:[%s3624_s29 + $0x520] sm:$0xff] %v935_v36  ;;  %v937_v37 = vld [vmem:[%s3616_s28 + $0x14a0] sm:$0xff] }
  0xbb   : > { %v939_v38 = vld [vmem:[%s3616_s28 + $0x14c0] sm:$0xff]  ;;  %938 = vst [vmem:[%s3624_s29 + $0x528] sm:$0xff] %v937_v37 }
  0xbc   : > { %v941_v39 = vld [vmem:[%s3616_s28 + $0x14e0] sm:$0xff]  ;;  %940 = vst [vmem:[%s3624_s29 + $0x530] sm:$0xff] %v939_v38 }
  0xbd   : > { %942 = vst [vmem:[%s3624_s29 + $0x538] sm:$0xff] %v941_v39  ;;  %v943_v40 = vld [vmem:[%s3616_s28 + $0x1500] sm:$0xff] }
  0xbe   : > { %v945_v41 = vld [vmem:[%s3616_s28 + $0x1520] sm:$0xff]  ;;  %944 = vst [vmem:[%s3624_s29 + $0x540] sm:$0xff] %v943_v40 }
  0xbf   : > { %v947_v42 = vld [vmem:[%s3616_s28 + $0x1540] sm:$0xff]  ;;  %946 = vst [vmem:[%s3624_s29 + $0x548] sm:$0xff] %v945_v41 }
  0xc0   : > { %948 = vst [vmem:[%s3624_s29 + $0x550] sm:$0xff] %v947_v42  ;;  %v949_v43 = vld [vmem:[%s3616_s28 + $0x1560] sm:$0xff] }
  0xc1   : > { %v951_v44 = vld [vmem:[%s3616_s28 + $0x1580] sm:$0xff]  ;;  %950 = vst [vmem:[%s3624_s29 + $0x558] sm:$0xff] %v949_v43 }
  0xc2   : > { %v953_v45 = vld [vmem:[%s3616_s28 + $0x15a0] sm:$0xff]  ;;  %952 = vst [vmem:[%s3624_s29 + $0x560] sm:$0xff] %v951_v44 }
  0xc3   : > { %954 = vst [vmem:[%s3624_s29 + $0x568] sm:$0xff] %v953_v45  ;;  %v955_v46 = vld [vmem:[%s3616_s28 + $0x15c0] sm:$0xff] }
  0xc4   : > { %v957_v47 = vld [vmem:[%s3616_s28 + $0x15e0] sm:$0xff]  ;;  %956 = vst [vmem:[%s3624_s29 + $0x570] sm:$0xff] %v955_v46 }
  0xc5   : > { %v959_v48 = vld [vmem:[%s3616_s28 + $0x1600] sm:$0xff]  ;;  %958 = vst [vmem:[%s3624_s29 + $0x578] sm:$0xff] %v957_v47 }
  0xc6   : > { %960 = vst [vmem:[%s3624_s29 + $0x580] sm:$0xff] %v959_v48  ;;  %v961_v49 = vld [vmem:[%s3616_s28 + $0x1620] sm:$0xff] }
  0xc7   : > { %v963_v50 = vld [vmem:[%s3616_s28 + $0x1640] sm:$0xff]  ;;  %962 = vst [vmem:[%s3624_s29 + $0x588] sm:$0xff] %v961_v49 }
  0xc8   : > { %v965_v51 = vld [vmem:[%s3616_s28 + $0x1660] sm:$0xff]  ;;  %964 = vst [vmem:[%s3624_s29 + $0x590] sm:$0xff] %v963_v50 }
  0xc9   : > { %966 = vst [vmem:[%s3624_s29 + $0x598] sm:$0xff] %v965_v51  ;;  %v967_v52 = vld [vmem:[%s3616_s28 + $0x1680] sm:$0xff] }
  0xca   : > { %v969_v53 = vld [vmem:[%s3616_s28 + $0x16a0] sm:$0xff]  ;;  %968 = vst [vmem:[%s3624_s29 + $0x5a0] sm:$0xff] %v967_v52 }
  0xcb   : > { %v971_v54 = vld [vmem:[%s3616_s28 + $0x16c0] sm:$0xff]  ;;  %970 = vst [vmem:[%s3624_s29 + $0x5a8] sm:$0xff] %v969_v53 }
  0xcc   : > { %972 = vst [vmem:[%s3624_s29 + $0x5b0] sm:$0xff] %v971_v54  ;;  %v973_v55 = vld [vmem:[%s3616_s28 + $0x16e0] sm:$0xff] }
  0xcd   : > { %v975_v56 = vld [vmem:[%s3616_s28 + $0x1700] sm:$0xff]  ;;  %974 = vst [vmem:[%s3624_s29 + $0x5b8] sm:$0xff] %v973_v55 }
  0xce   : > { %v977_v57 = vld [vmem:[%s3616_s28 + $0x1720] sm:$0xff]  ;;  %976 = vst [vmem:[%s3624_s29 + $0x5c0] sm:$0xff] %v975_v56 }
  0xcf   : > { %978 = vst [vmem:[%s3624_s29 + $0x5c8] sm:$0xff] %v977_v57  ;;  %v979_v58 = vld [vmem:[%s3616_s28 + $0x1740] sm:$0xff] }
  0xd0   : > { %v981_v59 = vld [vmem:[%s3616_s28 + $0x1760] sm:$0xff]  ;;  %980 = vst [vmem:[%s3624_s29 + $0x5d0] sm:$0xff] %v979_v58 }
  0xd1   : > { %v983_v60 = vld [vmem:[%s3616_s28 + $0x1780] sm:$0xff]  ;;  %982 = vst [vmem:[%s3624_s29 + $0x5d8] sm:$0xff] %v981_v59 }
  0xd2   : > { %984 = vst [vmem:[%s3624_s29 + $0x5e0] sm:$0xff] %v983_v60  ;;  %v985_v61 = vld [vmem:[%s3616_s28 + $0x17a0] sm:$0xff] }
  0xd3   : > { %v987_v62 = vld [vmem:[%s3616_s28 + $0x17c0] sm:$0xff]  ;;  %986 = vst [vmem:[%s3624_s29 + $0x5e8] sm:$0xff] %v985_v61 }
  0xd4   : > { %v989_v63 = vld [vmem:[%s3616_s28 + $0x17e0] sm:$0xff]  ;;  %988 = vst [vmem:[%s3624_s29 + $0x5f0] sm:$0xff] %v987_v62 }
  0xd5   : > { %990 = vst [vmem:[%s3624_s29 + $0x5f8] sm:$0xff] %v989_v63  ;;  %v991_v0 = vld [vmem:[%s3616_s28 + $0x1800] sm:$0xff] }
  0xd6   : > { %v993_v1 = vld [vmem:[%s3616_s28 + $0x1820] sm:$0xff]  ;;  %992 = vst [vmem:[%s3624_s29 + $0x600] sm:$0xff] %v991_v0 }
  0xd7   : > { %v995_v2 = vld [vmem:[%s3616_s28 + $0x1840] sm:$0xff]  ;;  %994 = vst [vmem:[%s3624_s29 + $0x608] sm:$0xff] %v993_v1 }
  0xd8   : > { %996 = vst [vmem:[%s3624_s29 + $0x610] sm:$0xff] %v995_v2  ;;  %v997_v3 = vld [vmem:[%s3616_s28 + $0x1860] sm:$0xff] }
  0xd9   : > { %v999_v4 = vld [vmem:[%s3616_s28 + $0x1880] sm:$0xff]  ;;  %998 = vst [vmem:[%s3624_s29 + $0x618] sm:$0xff] %v997_v3 }
  0xda   : > { %v1001_v5 = vld [vmem:[%s3616_s28 + $0x18a0] sm:$0xff]  ;;  %1000 = vst [vmem:[%s3624_s29 + $0x620] sm:$0xff] %v999_v4 }
  0xdb   : > { %1002 = vst [vmem:[%s3624_s29 + $0x628] sm:$0xff] %v1001_v5  ;;  %v1003_v6 = vld [vmem:[%s3616_s28 + $0x18c0] sm:$0xff] }
  0xdc   : > { %v1005_v7 = vld [vmem:[%s3616_s28 + $0x18e0] sm:$0xff]  ;;  %1004 = vst [vmem:[%s3624_s29 + $0x630] sm:$0xff] %v1003_v6 }
  0xdd   : > { %v1007_v8 = vld [vmem:[%s3616_s28 + $0x1900] sm:$0xff]  ;;  %1006 = vst [vmem:[%s3624_s29 + $0x638] sm:$0xff] %v1005_v7 }
  0xde   : > { %1008 = vst [vmem:[%s3624_s29 + $0x640] sm:$0xff] %v1007_v8  ;;  %v1009_v9 = vld [vmem:[%s3616_s28 + $0x1920] sm:$0xff] }
  0xdf   : > { %v1011_v10 = vld [vmem:[%s3616_s28 + $0x1940] sm:$0xff]  ;;  %1010 = vst [vmem:[%s3624_s29 + $0x648] sm:$0xff] %v1009_v9 }
  0xe0   : > { %v1013_v11 = vld [vmem:[%s3616_s28 + $0x1960] sm:$0xff]  ;;  %1012 = vst [vmem:[%s3624_s29 + $0x650] sm:$0xff] %v1011_v10 }
  0xe1   : > { %1014 = vst [vmem:[%s3624_s29 + $0x658] sm:$0xff] %v1013_v11  ;;  %v1015_v12 = vld [vmem:[%s3616_s28 + $0x1980] sm:$0xff] }
  0xe2   : > { %v1017_v13 = vld [vmem:[%s3616_s28 + $0x19a0] sm:$0xff]  ;;  %1016 = vst [vmem:[%s3624_s29 + $0x660] sm:$0xff] %v1015_v12 }
  0xe3   : > { %v1019_v14 = vld [vmem:[%s3616_s28 + $0x19c0] sm:$0xff]  ;;  %1018 = vst [vmem:[%s3624_s29 + $0x668] sm:$0xff] %v1017_v13 }
  0xe4   : > { %1020 = vst [vmem:[%s3624_s29 + $0x670] sm:$0xff] %v1019_v14  ;;  %v1021_v15 = vld [vmem:[%s3616_s28 + $0x19e0] sm:$0xff] }
  0xe5   : > { %1022 = vst [vmem:[%s3624_s29 + $0x678] sm:$0xff] %v1021_v15 }
  0xe6 PF: > { %p2874_p8 = scmp.ge.s32.totalorder %s3545_s16, 1  ;;  %p1035_p9 = scmp.lt.s32.totalorder %s3545_s16, 5 }
  0xe8   : > { %p1036_p10 = pnand %p2874_p8, %p1035_p9 }
  0xe9   : > { %s1042_s30 = sand.u32 (!%p1036_p10), 1, %s3529_s12   ;;  %v3274_v16 = vld [vmem:[%s4317_s0 + $0x4] ss:$52 sps:$4 sm:$0xff] (!%p1036_p10)   ;;  %v3280_v17 = vld [vmem:[%s4317_s0 + $0x1c] ss:$52 sps:$4 sm:$0xff] (!%p1036_p10)   ;;  %s2876_s23 = sshll.u32 (!%p1036_p10), %s3537_s14, 1 }
  0xea   : > { %1039 = sbr.rel (%p1036_p10) target bundleno = 692 (0x2b4), region = 66  ;;  %2462 = vmatprep.mubr.bf16.mxu1 (!%p1036_p10), %v3274_v16  ;;  %2591 = vmatprep.mubr.bf16.mxu0 (!%p1036_p10), %v3280_v17  ;;  %p1083_p11 = scmp.lt.s32.totalorder (!%p1036_p10), %s2876_s23, 7 }
  0xeb   : > { %s3134_s4 = smul.u32 (!%p1036_p10), 1664, %s1042_s30  ;;  %s2875_s26 = sshll.u32 (!%p1036_p10), %s1042_s30, 5 }
  0xec   : > { %s1073_s27 = scalar_lea.vmem (!%p1036_p10), [#allocation3], %s2875_s26 }
  0xed   : > { %s4047_s9 = scalar_lea.vmem (!%p1036_p10), [#allocation2], %s3134_s4 }
  0xee   : > { %v3176_v18 = vld [vmem:[%s4047_s9 + $0x4] ss:$8 sps:$4 sm:$0xff] (!%p1036_p10)   ;;  %v3180_v20 = vld [vmem:[%s4047_s9] ss:$8 sps:$4 sm:$0xff] (!%p1036_p10)   ;;  %v3182_v22 = vld [vmem:[%s4047_s9 + $0x14] ss:$8 sps:$4 sm:$0xff] (!%p1036_p10)  }
  0xef   : > { %v3178_v19 = vld [vmem:[%s4047_s9 + $0x304] ss:$8 sps:$4 sm:$0xff] (!%p1036_p10)   ;;  %2430 = vmatprep.subr.bf16.mxu1 (!%p1036_p10), %v3176_v18  ;;  %v3181_v21 = vld [vmem:[%s4047_s9 + $0x300] ss:$8 sps:$4 sm:$0xff] (!%p1036_p10)   ;;  %v3184_v23 = vld [vmem:[%s4047_s9 + $0x314] ss:$8 sps:$4 sm:$0xff] (!%p1036_p10)  }
  0xf0   : > { %2559 = vmatprep.subr.bf16.mxu0 (!%p1036_p10), %v3178_v19  ;;  %2431 = vmatpush1.bf16.msra.mxu1 (!%p1036_p10), %v3180_v20  ;;  %v3186_v24 = vld [vmem:[%s4047_s9 + $0x10] ss:$8 sps:$4 sm:$0xff] (!%p1036_p10)   ;;  %v3188_v26 = vld [vmem:[%s4047_s9 + $0x24] ss:$8 sps:$4 sm:$0xff] (!%p1036_p10)   ;;  %v3192_v28 = vld [vmem:[%s4047_s9 + $0x20] ss:$8 sps:$4 sm:$0xff] (!%p1036_p10)  }
  0xf1   : > { %2560 = vmatpush1.bf16.msra.mxu0 %v3181_v21  ;;  %2432 = vmatprep.subr.bf16.mxu1 %v3182_v22  ;;  %v3187_v25 = vld [vmem:[%s4047_s9 + $0x310] ss:$8 sps:$4 sm:$0xff]   ;;  %v3190_v27 = vld [vmem:[%s4047_s9 + $0x324] ss:$8 sps:$4 sm:$0xff]   ;;  %v3193_v29 = vld [vmem:[%s4047_s9 + $0x320] ss:$8 sps:$4 sm:$0xff]  }
  0xf2   : > { %2561 = vmatprep.subr.bf16.mxu0 %v3184_v23  ;;  %v3194_v30 = vld [vmem:[%s4047_s9 + $0x34] ss:$8 sps:$4 sm:$0xff]   ;;  %v3198_v32 = vld [vmem:[%s4047_s9 + $0x30] ss:$8 sps:$4 sm:$0xff]   ;;  %v3200_v34 = vld [vmem:[%s4047_s9 + $0x44] ss:$8 sps:$4 sm:$0xff]  }
  0xf3   : > { %v3196_v31 = vld [vmem:[%s4047_s9 + $0x334] ss:$8 sps:$4 sm:$0xff]   ;;  %v3199_v33 = vld [vmem:[%s4047_s9 + $0x330] ss:$8 sps:$4 sm:$0xff]   ;;  %v3202_v35 = vld [vmem:[%s4047_s9 + $0x344] ss:$8 sps:$4 sm:$0xff]  }
  0xf4   : > { %2433 = vmatpush1.bf16.msra.mxu1 %v3186_v24  ;;  %v3204_v36 = vld [vmem:[%s4047_s9 + $0x40] ss:$8 sps:$4 sm:$0xff]   ;;  %v3206_v38 = vld [vmem:[%s4047_s9 + $0x54] ss:$8 sps:$4 sm:$0xff]   ;;  %v3210_v40 = vld [vmem:[%s4047_s9 + $0x50] ss:$8 sps:$4 sm:$0xff]  }
  0xf5   : > { %2562 = vmatpush1.bf16.msra.mxu0 %v3187_v25  ;;  %2434 = vmatprep.subr.bf16.mxu1 %v3188_v26  ;;  %v3205_v37 = vld [vmem:[%s4047_s9 + $0x340] ss:$8 sps:$4 sm:$0xff]   ;;  %v3208_v39 = vld [vmem:[%s4047_s9 + $0x354] ss:$8 sps:$4 sm:$0xff]   ;;  %v3211_v41 = vld [vmem:[%s4047_s9 + $0x350] ss:$8 sps:$4 sm:$0xff]  }
  0xf6   : > { %2563 = vmatprep.subr.bf16.mxu0 %v3190_v27  ;;  %v3212_v42 = vld [vmem:[%s4047_s9 + $0x64] ss:$8 sps:$4 sm:$0xff]   ;;  %v3216_v44 = vld [vmem:[%s4047_s9 + $0x60] ss:$8 sps:$4 sm:$0xff]   ;;  %v3218_v46 = vld [vmem:[%s4047_s9 + $0x74] ss:$8 sps:$4 sm:$0xff]  }
  0xf7   : > { %v3214_v43 = vld [vmem:[%s4047_s9 + $0x364] ss:$8 sps:$4 sm:$0xff]   ;;  %v3217_v45 = vld [vmem:[%s4047_s9 + $0x360] ss:$8 sps:$4 sm:$0xff]   ;;  %v3220_v47 = vld [vmem:[%s4047_s9 + $0x374] ss:$8 sps:$4 sm:$0xff]  }
  0xf8   : > { %2435 = vmatpush1.bf16.msra.mxu1 %v3192_v28  ;;  %v3222_v48 = vld [vmem:[%s4047_s9 + $0x70] ss:$8 sps:$4 sm:$0xff]   ;;  %v3224_v50 = vld [vmem:[%s4047_s9 + $0x84] ss:$8 sps:$4 sm:$0xff]   ;;  %v3228_v52 = vld [vmem:[%s4047_s9 + $0x80] ss:$8 sps:$4 sm:$0xff]  }
  0xf9   : > { %2564 = vmatpush1.bf16.msra.mxu0 %v3193_v29  ;;  %2436 = vmatprep.subr.bf16.mxu1 %v3194_v30  ;;  %v3223_v49 = vld [vmem:[%s4047_s9 + $0x370] ss:$8 sps:$4 sm:$0xff]   ;;  %v3226_v51 = vld [vmem:[%s4047_s9 + $0x384] ss:$8 sps:$4 sm:$0xff]   ;;  %v3229_v53 = vld [vmem:[%s4047_s9 + $0x380] ss:$8 sps:$4 sm:$0xff]  }
  0xfa   : > { %2565 = vmatprep.subr.bf16.mxu0 %v3196_v31  ;;  %v3230_v54 = vld [vmem:[%s4047_s9 + $0x94] ss:$8 sps:$4 sm:$0xff]   ;;  %v3234_v56 = vld [vmem:[%s4047_s9 + $0x90] ss:$8 sps:$4 sm:$0xff]   ;;  %v3236_v58 = vld [vmem:[%s4047_s9 + $0xa4] ss:$8 sps:$4 sm:$0xff]  }
  0xfb   : > { %v3232_v55 = vld [vmem:[%s4047_s9 + $0x394] ss:$8 sps:$4 sm:$0xff]   ;;  %v3235_v57 = vld [vmem:[%s4047_s9 + $0x390] ss:$8 sps:$4 sm:$0xff]   ;;  %v3238_v59 = vld [vmem:[%s4047_s9 + $0x3a4] ss:$8 sps:$4 sm:$0xff]  }
  0xfc   : > { %2437 = vmatpush1.bf16.msra.mxu1 %v3198_v32  ;;  %v3240_v60 = vld [vmem:[%s4047_s9 + $0xa0] ss:$8 sps:$4 sm:$0xff]   ;;  %v3242_v62 = vld [vmem:[%s4047_s9 + $0xb4] ss:$8 sps:$4 sm:$0xff]   ;;  %v3246_v0 = vld [vmem:[%s4047_s9 + $0xb0] ss:$8 sps:$4 sm:$0xff]  }
  0xfd   : > { %2566 = vmatpush1.bf16.msra.mxu0 %v3199_v33  ;;  %2438 = vmatprep.subr.bf16.mxu1 %v3200_v34  ;;  %v3241_v61 = vld [vmem:[%s4047_s9 + $0x3a0] ss:$8 sps:$4 sm:$0xff]   ;;  %v3244_v63 = vld [vmem:[%s4047_s9 + $0x3b4] ss:$8 sps:$4 sm:$0xff]   ;;  %v3247_v1 = vld [vmem:[%s4047_s9 + $0x3b0] ss:$8 sps:$4 sm:$0xff]  }
  0xfe   : > { %2567 = vmatprep.subr.bf16.mxu0 %v3202_v35  ;;  %v3248_v2 = vld [vmem:[%s4047_s9 + $0xc4] ss:$8 sps:$4 sm:$0xff]   ;;  %v3252_v4 = vld [vmem:[%s4047_s9 + $0xc0] ss:$8 sps:$4 sm:$0xff]   ;;  %v3254_v6 = vld [vmem:[%s4047_s9 + $0xd4] ss:$8 sps:$4 sm:$0xff]  }
  0xff   : > { %v3250_v3 = vld [vmem:[%s4047_s9 + $0x3c4] ss:$8 sps:$4 sm:$0xff]   ;;  %v3253_v5 = vld [vmem:[%s4047_s9 + $0x3c0] ss:$8 sps:$4 sm:$0xff]   ;;  %v3256_v7 = vld [vmem:[%s4047_s9 + $0x3d4] ss:$8 sps:$4 sm:$0xff]  }
 0x100   : > { %2439 = vmatpush1.bf16.msra.mxu1 %v3204_v36  ;;  %v3258_v8 = vld [vmem:[%s4047_s9 + $0xd0] ss:$8 sps:$4 sm:$0xff]   ;;  %v3260_v10 = vld [vmem:[%s4047_s9 + $0xe4] ss:$8 sps:$4 sm:$0xff]   ;;  %v3264_v12 = vld [vmem:[%s4047_s9 + $0xe0] ss:$8 sps:$4 sm:$0xff]  }
 0x101   : > { %2568 = vmatpush1.bf16.msra.mxu0 %v3205_v37  ;;  %2440 = vmatprep.subr.bf16.mxu1 %v3206_v38  ;;  %v3259_v9 = vld [vmem:[%s4047_s9 + $0x3d0] ss:$8 sps:$4 sm:$0xff]   ;;  %v3262_v11 = vld [vmem:[%s4047_s9 + $0x3e4] ss:$8 sps:$4 sm:$0xff]   ;;  %v3265_v13 = vld [vmem:[%s4047_s9 + $0x3e0] ss:$8 sps:$4 sm:$0xff]  }
 0x102   : > { %2569 = vmatprep.subr.bf16.mxu0 %v3208_v39  ;;  %v3266_v14 = vld [vmem:[%s4047_s9 + $0xf4] ss:$8 sps:$4 sm:$0xff]   ;;  %v3270_v16 = vld [vmem:[%s4047_s9 + $0xf0] ss:$8 sps:$4 sm:$0xff]   ;;  %v3277_v18 = vld [vmem:[%s4047_s9 + $0x104] ss:$8 sps:$4 sm:$0xff]  }
 0x103   : > { %v3268_v15 = vld [vmem:[%s4047_s9 + $0x3f4] ss:$8 sps:$4 sm:$0xff]   ;;  %v3271_v17 = vld [vmem:[%s4047_s9 + $0x3f0] ss:$8 sps:$4 sm:$0xff]   ;;  %v3283_v19 = vld [vmem:[%s4047_s9 + $0x404] ss:$8 sps:$4 sm:$0xff]  }
 0x104   : > { %2441 = vmatpush1.bf16.msra.mxu1 %v3210_v40  ;;  %v3272_v20 = vld [vmem:[%s4317_s0] ss:$52 sps:$4 sm:$0xff]   ;;  %v3278_v21 = vld [vmem:[%s4317_s0 + $0x18] ss:$52 sps:$4 sm:$0xff]   ;;  %s4329_s23 = smov (!%p1083_p11, %s2876_s23), 7  ;;  %s3104_s12 = sshll.u32 (%p3603_p6), %s3537_s14, 4 }
 0x105   : > { %2570 = vmatpush1.bf16.msra.mxu0 %v3211_v41  ;;  %2442 = vmatprep.subr.bf16.mxu1 %v3212_v42  ;;  %v3275_v22 = vld [vmem:[%s4047_s9 + $0x100] ss:$8 sps:$4 sm:$0xff]   ;;  %v3286_v24 = vld [vmem:[%s4047_s9 + $0x114] ss:$8 sps:$4 sm:$0xff]   ;;  %v3284_v26 = vld [vmem:[%s4047_s9 + $0x110] ss:$8 sps:$4 sm:$0xff]   ;;  %s2751_s29 = scalar_lea.vmem (%p3603_p6), %s4320_s3, %s3104_s12 }
 0x106   : > { %2571 = vmatprep.subr.bf16.mxu0 %v3214_v43  ;;  %v3281_v23 = vld [vmem:[%s4047_s9 + $0x400] ss:$8 sps:$4 sm:$0xff]   ;;  %v3289_v25 = vld [vmem:[%s4047_s9 + $0x414] ss:$8 sps:$4 sm:$0xff]   ;;  %v3287_v27 = vld [vmem:[%s4047_s9 + $0x410] ss:$8 sps:$4 sm:$0xff]  }
 0x107   : > { %v3292_v28 = vld [vmem:[%s4047_s9 + $0x124] ss:$8 sps:$4 sm:$0xff]   ;;  %v3290_v30 = vld [vmem:[%s4047_s9 + $0x120] ss:$8 sps:$4 sm:$0xff]   ;;  %v3298_v32 = vld [vmem:[%s4047_s9 + $0x134] ss:$8 sps:$4 sm:$0xff]  }
 0x108   : > { %2443 = vmatpush1.bf16.msra.mxu1 %v3216_v44  ;;  %v3295_v29 = vld [vmem:[%s4047_s9 + $0x424] ss:$8 sps:$4 sm:$0xff]   ;;  %v3293_v31 = vld [vmem:[%s4047_s9 + $0x420] ss:$8 sps:$4 sm:$0xff]   ;;  %v3301_v33 = vld [vmem:[%s4047_s9 + $0x434] ss:$8 sps:$4 sm:$0xff]  }
 0x109   : > { %2572 = vmatpush1.bf16.msra.mxu0 %v3217_v45  ;;  %2444 = vmatprep.subr.bf16.mxu1 %v3218_v46  ;;  %v3296_v34 = vld [vmem:[%s4047_s9 + $0x130] ss:$8 sps:$4 sm:$0xff]   ;;  %v3304_v36 = vld [vmem:[%s4047_s9 + $0x144] ss:$8 sps:$4 sm:$0xff]   ;;  %v3302_v38 = vld [vmem:[%s4047_s9 + $0x140] ss:$8 sps:$4 sm:$0xff]  }
 0x10a   : > { %2573 = vmatprep.subr.bf16.mxu0 %v3220_v47  ;;  %v3299_v35 = vld [vmem:[%s4047_s9 + $0x430] ss:$8 sps:$4 sm:$0xff]   ;;  %v3307_v37 = vld [vmem:[%s4047_s9 + $0x444] ss:$8 sps:$4 sm:$0xff]   ;;  %v3305_v39 = vld [vmem:[%s4047_s9 + $0x440] ss:$8 sps:$4 sm:$0xff]  }
 0x10b   : > { %v3310_v40 = vld [vmem:[%s4047_s9 + $0x154] ss:$8 sps:$4 sm:$0xff]   ;;  %v3308_v42 = vld [vmem:[%s4047_s9 + $0x150] ss:$8 sps:$4 sm:$0xff]   ;;  %v3316_v44 = vld [vmem:[%s4047_s9 + $0x164] ss:$8 sps:$4 sm:$0xff]  }
 0x10c   : > { %2445 = vmatpush1.bf16.msra.mxu1 %v3222_v48  ;;  %v3313_v41 = vld [vmem:[%s4047_s9 + $0x454] ss:$8 sps:$4 sm:$0xff]   ;;  %v3311_v43 = vld [vmem:[%s4047_s9 + $0x450] ss:$8 sps:$4 sm:$0xff]   ;;  %v3319_v45 = vld [vmem:[%s4047_s9 + $0x464] ss:$8 sps:$4 sm:$0xff]  }
 0x10d   : > { %2574 = vmatpush1.bf16.msra.mxu0 %v3223_v49  ;;  %2446 = vmatprep.subr.bf16.mxu1 %v3224_v50  ;;  %v3376_v46 = vld [vmem:[%s4317_s0 + $0xc] ss:$52 sps:$4 sm:$0xff]   ;;  %v3382_v49 = vld [vmem:[%s4317_s0 + $0x24] ss:$52 sps:$4 sm:$0xff]   ;;  %v3322_v50 = vld [vmem:[%s4047_s9 + $0x174] ss:$8 sps:$4 sm:$0xff]  }
 0x10e   : > { %2575 = vmatprep.subr.bf16.mxu0 %v3226_v51  ;;  %v3314_v47 = vld [vmem:[%s4047_s9 + $0x160] ss:$8 sps:$4 sm:$0xff]   ;;  %v3325_v51 = vld [vmem:[%s4047_s9 + $0x474] ss:$8 sps:$4 sm:$0xff]  }
 0x10f   : > { %v3317_v48 = vld [vmem:[%s4047_s9 + $0x460] ss:$8 sps:$4 sm:$0xff]  }
 0x110   : > { %2447 = vmatpush1.bf16.msra.mxu1 %v3228_v52  ;;  %v3320_v52 = vld [vmem:[%s4047_s9 + $0x170] ss:$8 sps:$4 sm:$0xff]  }
 0x111   : > { %2576 = vmatpush1.bf16.msra.mxu0 %v3229_v53  ;;  %2448 = vmatprep.subr.bf16.mxu1 %v3230_v54  ;;  %v3323_v53 = vld [vmem:[%s4047_s9 + $0x470] ss:$8 sps:$4 sm:$0xff]   ;;  %v3328_v54 = vld [vmem:[%s4047_s9 + $0x184] ss:$8 sps:$4 sm:$0xff]  }
 0x112   : > { %2577 = vmatprep.subr.bf16.mxu0 %v3232_v55  ;;  %v3331_v55 = vld [vmem:[%s4047_s9 + $0x484] ss:$8 sps:$4 sm:$0xff]  }
 0x114   : > { %2449 = vmatpush1.bf16.msra.mxu1 %v3234_v56  ;;  %v3326_v56 = vld [vmem:[%s4047_s9 + $0x180] ss:$8 sps:$4 sm:$0xff]  }
 0x115   : > { %2578 = vmatpush1.bf16.msra.mxu0 %v3235_v57  ;;  %2450 = vmatprep.subr.bf16.mxu1 %v3236_v58  ;;  %v3329_v57 = vld [vmem:[%s4047_s9 + $0x480] ss:$8 sps:$4 sm:$0xff]   ;;  %v3334_v58 = vld [vmem:[%s4047_s9 + $0x194] ss:$8 sps:$4 sm:$0xff]  }
 0x116   : > { %2579 = vmatprep.subr.bf16.mxu0 %v3238_v59  ;;  %v3337_v59 = vld [vmem:[%s4047_s9 + $0x494] ss:$8 sps:$4 sm:$0xff]  }
 0x118   : > { %2451 = vmatpush1.bf16.msra.mxu1 %v3240_v60  ;;  %v3332_v60 = vld [vmem:[%s4047_s9 + $0x190] ss:$8 sps:$4 sm:$0xff]  }
 0x119   : > { %2580 = vmatpush1.bf16.msra.mxu0 %v3241_v61  ;;  %2452 = vmatprep.subr.bf16.mxu1 %v3242_v62  ;;  %v3335_v61 = vld [vmem:[%s4047_s9 + $0x490] ss:$8 sps:$4 sm:$0xff]   ;;  %v3340_v62 = vld [vmem:[%s4047_s9 + $0x1a4] ss:$8 sps:$4 sm:$0xff]  }
 0x11a   : > { %2581 = vmatprep.subr.bf16.mxu0 %v3244_v63  ;;  %v3343_v63 = vld [vmem:[%s4047_s9 + $0x4a4] ss:$8 sps:$4 sm:$0xff]  }
 0x11c   : > { %2453 = vmatpush1.bf16.msra.mxu1 %v3246_v0  ;;  %v3338_v0 = vld [vmem:[%s4047_s9 + $0x1a0] ss:$8 sps:$4 sm:$0xff]  }
 0x11d   : > { %2582 = vmatpush1.bf16.msra.mxu0 %v3247_v1  ;;  %2454 = vmatprep.subr.bf16.mxu1 %v3248_v2  ;;  %v3341_v1 = vld [vmem:[%s4047_s9 + $0x4a0] ss:$8 sps:$4 sm:$0xff]   ;;  %v3346_v2 = vld [vmem:[%s4047_s9 + $0x1b4] ss:$8 sps:$4 sm:$0xff]  }
 0x11e   : > { %2583 = vmatprep.subr.bf16.mxu0 %v3250_v3  ;;  %v3349_v3 = vld [vmem:[%s4047_s9 + $0x4b4] ss:$8 sps:$4 sm:$0xff]  }
 0x120   : > { %2455 = vmatpush1.bf16.msra.mxu1 %v3252_v4  ;;  %v3344_v4 = vld [vmem:[%s4047_s9 + $0x1b0] ss:$8 sps:$4 sm:$0xff]  }
 0x121   : > { %2584 = vmatpush1.bf16.msra.mxu0 %v3253_v5  ;;  %2456 = vmatprep.subr.bf16.mxu1 %v3254_v6  ;;  %v3347_v5 = vld [vmem:[%s4047_s9 + $0x4b0] ss:$8 sps:$4 sm:$0xff]   ;;  %v3352_v6 = vld [vmem:[%s4047_s9 + $0x1c4] ss:$8 sps:$4 sm:$0xff]  }
 0x122   : > { %2585 = vmatprep.subr.bf16.mxu0 %v3256_v7  ;;  %v3355_v7 = vld [vmem:[%s4047_s9 + $0x4c4] ss:$8 sps:$4 sm:$0xff]  }
 0x124   : > { %2457 = vmatpush1.bf16.msra.mxu1 %v3258_v8  ;;  %v3350_v8 = vld [vmem:[%s4047_s9 + $0x1c0] ss:$8 sps:$4 sm:$0xff]  }
 0x125   : > { %2586 = vmatpush1.bf16.msra.mxu0 %v3259_v9  ;;  %2458 = vmatprep.subr.bf16.mxu1 %v3260_v10  ;;  %v3353_v9 = vld [vmem:[%s4047_s9 + $0x4c0] ss:$8 sps:$4 sm:$0xff]   ;;  %v3358_v10 = vld [vmem:[%s4047_s9 + $0x1d4] ss:$8 sps:$4 sm:$0xff]  }
 0x126   : > { %2587 = vmatprep.subr.bf16.mxu0 %v3262_v11  ;;  %v3361_v11 = vld [vmem:[%s4047_s9 + $0x4d4] ss:$8 sps:$4 sm:$0xff]  }
 0x128   : > { %2459 = vmatpush1.bf16.msra.mxu1 %v3264_v12  ;;  %v3356_v12 = vld [vmem:[%s4047_s9 + $0x1d0] ss:$8 sps:$4 sm:$0xff]  }
 0x129   : > { %2588 = vmatpush1.bf16.msra.mxu0 %v3265_v13  ;;  %2460 = vmatprep.subr.bf16.mxu1 %v3266_v14  ;;  %v3359_v13 = vld [vmem:[%s4047_s9 + $0x4d0] ss:$8 sps:$4 sm:$0xff]   ;;  %v3364_v14 = vld [vmem:[%s4047_s9 + $0x1e4] ss:$8 sps:$4 sm:$0xff]  }
 0x12a   : > { %2589 = vmatprep.subr.bf16.mxu0 %v3268_v15  ;;  %v3367_v15 = vld [vmem:[%s4047_s9 + $0x4e4] ss:$8 sps:$4 sm:$0xff]  }
 0x12c   : > { %2461 = vmatpush1.bf16.msra.mxu1 %v3270_v16  ;;  %v3362_v16 = vld [vmem:[%s4047_s9 + $0x1e0] ss:$8 sps:$4 sm:$0xff]  }
 0x12d   : > { %2590 = vmatpush1.bf16.msra.mxu0 %v3271_v17  ;;  %2473 = vmatprep.subr.bf16.mxu1 %v3277_v18  ;;  %v3365_v17 = vld [vmem:[%s4047_s9 + $0x4e0] ss:$8 sps:$4 sm:$0xff]   ;;  %v3370_v18 = vld [vmem:[%s4047_s9 + $0x1f4] ss:$8 sps:$4 sm:$0xff]  }
 0x12e   : > { %2602 = vmatprep.subr.bf16.mxu0 %v3283_v19  ;;  %v3373_v19 = vld [vmem:[%s4047_s9 + $0x4f4] ss:$8 sps:$4 sm:$0xff]  }
 0x12f   : > { %2463 = vmatmul.mubr.bf16.vlgmr.msra.gmra.mrb[0].mxu1 %v3272_v20  ;;  %v3368_v20 = vld [vmem:[%s4047_s9 + $0x1f0] ss:$8 sps:$4 sm:$0xff]  }
 0x130   : > { %2592 = vmatmul.mubr.bf16.vlgmr.msra.gmra.mrb[0].mxu0 %v3278_v21  ;;  %2474 = vmatpush1.bf16.msra.mxu1 %v3275_v22  ;;  %v3371_v21 = vld [vmem:[%s4047_s9 + $0x4f0] ss:$8 sps:$4 sm:$0xff]   ;;  %v3379_v22 = vld [vmem:[%s4047_s9 + $0x204] ss:$8 sps:$4 sm:$0xff]  }
 0x131   : > { %2603 = vmatpush1.bf16.msra.mxu0 %v3281_v23  ;;  %2475 = vmatprep.subr.bf16.mxu1 %v3286_v24  ;;  %v3385_v23 = vld [vmem:[%s4047_s9 + $0x504] ss:$8 sps:$4 sm:$0xff]   ;;  %v3374_v24 = vld [vmem:[%s4317_s0 + $0x8] ss:$52 sps:$4 sm:$0xff]  }
 0x132   : > { %2604 = vmatprep.subr.bf16.mxu0 %v3289_v25  ;;  %2505 = vmatprep.mubr.bf16.mxu1 %v3376_v46  ;;  %v3377_v25 = vld [vmem:[%s4047_s9 + $0x200] ss:$8 sps:$4 sm:$0xff]   ;;  %v3412_v46 = vld [vmem:[%s4047_s9 + $0x254] ss:$8 sps:$4 sm:$0xff]  }
 0x133   : > { %2634 = vmatprep.mubr.bf16.mxu0 %v3382_v49  ;;  %v3413_v49 = vld [vmem:[%s4047_s9 + $0x550] ss:$8 sps:$4 sm:$0xff]  }
 0x134   : > { %2476 = vmatpush1.bf16.msra.mxu1 %v3284_v26  ;;  %v3380_v26 = vld [vmem:[%s4317_s0 + $0x20] ss:$52 sps:$4 sm:$0xff]  }
 0x135   : > { %2605 = vmatpush1.bf16.msra.mxu0 %v3287_v27  ;;  %2477 = vmatprep.subr.bf16.mxu1 %v3292_v28  ;;  %v3383_v27 = vld [vmem:[%s4047_s9 + $0x500] ss:$8 sps:$4 sm:$0xff]   ;;  %v3388_v28 = vld [vmem:[%s4047_s9 + $0x214] ss:$8 sps:$4 sm:$0xff]  }
 0x136   : > { %2606 = vmatprep.subr.bf16.mxu0 %v3295_v29  ;;  %v3391_v29 = vld [vmem:[%s4047_s9 + $0x514] ss:$8 sps:$4 sm:$0xff]  }
 0x138   : > { %2478 = vmatpush1.bf16.msra.mxu1 %v3290_v30  ;;  %v3386_v30 = vld [vmem:[%s4047_s9 + $0x210] ss:$8 sps:$4 sm:$0xff]  }
 0x139   : > { %2607 = vmatpush1.bf16.msra.mxu0 %v3293_v31  ;;  %2479 = vmatprep.subr.bf16.mxu1 %v3298_v32  ;;  %v3478_v31 = vld [vmem:[%s4317_s0 + $0x14] ss:$52 sps:$4 sm:$0xff]   ;;  %v3389_v32 = vld [vmem:[%s4047_s9 + $0x510] ss:$8 sps:$4 sm:$0xff]  }
 0x13a   : > { %2608 = vmatprep.subr.bf16.mxu0 %v3301_v33  ;;  %v3481_v33 = vld [vmem:[%s4317_s0 + $0x2c] ss:$52 sps:$4 sm:$0xff]  }
 0x13c   : > { %2480 = vmatpush1.bf16.msra.mxu1 %v3296_v34  ;;  %v3394_v34 = vld [vmem:[%s4047_s9 + $0x224] ss:$8 sps:$4 sm:$0xff]  }
 0x13d   : > { %2609 = vmatpush1.bf16.msra.mxu0 %v3299_v35  ;;  %2481 = vmatprep.subr.bf16.mxu1 %v3304_v36  ;;  %v3397_v35 = vld [vmem:[%s4047_s9 + $0x524] ss:$8 sps:$4 sm:$0xff]   ;;  %v3392_v36 = vld [vmem:[%s4047_s9 + $0x220] ss:$8 sps:$4 sm:$0xff]  }
 0x13e   : > { %2610 = vmatprep.subr.bf16.mxu0 %v3307_v37  ;;  %v3395_v37 = vld [vmem:[%s4047_s9 + $0x520] ss:$8 sps:$4 sm:$0xff]  }
 0x140   : > { %2482 = vmatpush1.bf16.msra.mxu1 %v3302_v38  ;;  %v3400_v38 = vld [vmem:[%s4047_s9 + $0x234] ss:$8 sps:$4 sm:$0xff]  }
 0x141   : > { %2611 = vmatpush1.bf16.msra.mxu0 %v3305_v39  ;;  %2483 = vmatprep.subr.bf16.mxu1 %v3310_v40  ;;  %v3403_v39 = vld [vmem:[%s4047_s9 + $0x534] ss:$8 sps:$4 sm:$0xff]   ;;  %v3398_v40 = vld [vmem:[%s4047_s9 + $0x230] ss:$8 sps:$4 sm:$0xff]  }
 0x142   : > { %2612 = vmatprep.subr.bf16.mxu0 %v3313_v41  ;;  %v3401_v41 = vld [vmem:[%s4047_s9 + $0x530] ss:$8 sps:$4 sm:$0xff]  }
 0x144   : > { %2484 = vmatpush1.bf16.msra.mxu1 %v3308_v42  ;;  %v3406_v42 = vld [vmem:[%s4047_s9 + $0x244] ss:$8 sps:$4 sm:$0xff]  }
 0x145   : > { %2613 = vmatpush1.bf16.msra.mxu0 %v3311_v43  ;;  %2485 = vmatprep.subr.bf16.mxu1 %v3316_v44  ;;  %v3409_v43 = vld [vmem:[%s4047_s9 + $0x544] ss:$8 sps:$4 sm:$0xff]   ;;  %v3404_v44 = vld [vmem:[%s4047_s9 + $0x240] ss:$8 sps:$4 sm:$0xff]  }
 0x146   : > { %2614 = vmatprep.subr.bf16.mxu0 %v3319_v45  ;;  %v3407_v45 = vld [vmem:[%s4047_s9 + $0x540] ss:$8 sps:$4 sm:$0xff]  }
 0x148   : > { %2486 = vmatpush1.bf16.msra.mxu1 %v3314_v47  ;;  %v3415_v47 = vld [vmem:[%s4047_s9 + $0x554] ss:$8 sps:$4 sm:$0xff]  }
 0x149   : > { %2615 = vmatpush1.bf16.msra.mxu0 %v3317_v48  ;;  %2487 = vmatprep.subr.bf16.mxu1 %v3322_v50  ;;  %v3410_v48 = vld [vmem:[%s4047_s9 + $0x250] ss:$8 sps:$4 sm:$0xff]   ;;  %v3418_v50 = vld [vmem:[%s4047_s9 + $0x264] ss:$8 sps:$4 sm:$0xff]  }
 0x14a   : > { %2616 = vmatprep.subr.bf16.mxu0 %v3325_v51  ;;  %v3421_v51 = vld [vmem:[%s4047_s9 + $0x564] ss:$8 sps:$4 sm:$0xff]  }
 0x14c   : > { %2488 = vmatpush1.bf16.msra.mxu1 %v3320_v52  ;;  %v3416_v52 = vld [vmem:[%s4047_s9 + $0x260] ss:$8 sps:$4 sm:$0xff]  }
 0x14d   : > { %2617 = vmatpush1.bf16.msra.mxu0 %v3323_v53  ;;  %2489 = vmatprep.subr.bf16.mxu1 %v3328_v54  ;;  %v3419_v53 = vld [vmem:[%s4047_s9 + $0x560] ss:$8 sps:$4 sm:$0xff]   ;;  %v3424_v54 = vld [vmem:[%s4047_s9 + $0x274] ss:$8 sps:$4 sm:$0xff]  }
 0x14e   : > { %2618 = vmatprep.subr.bf16.mxu0 %v3331_v55  ;;  %v3427_v55 = vld [vmem:[%s4047_s9 + $0x574] ss:$8 sps:$4 sm:$0xff]  }
 0x150   : > { %2490 = vmatpush1.bf16.msra.mxu1 %v3326_v56  ;;  %v3422_v56 = vld [vmem:[%s4047_s9 + $0x270] ss:$8 sps:$4 sm:$0xff]  }
 0x151   : > { %2619 = vmatpush1.bf16.msra.mxu0 %v3329_v57  ;;  %2491 = vmatprep.subr.bf16.mxu1 %v3334_v58  ;;  %v3425_v57 = vld [vmem:[%s4047_s9 + $0x570] ss:$8 sps:$4 sm:$0xff]   ;;  %v3430_v58 = vld [vmem:[%s4047_s9 + $0x284] ss:$8 sps:$4 sm:$0xff]  }
 0x152   : > { %2620 = vmatprep.subr.bf16.mxu0 %v3337_v59  ;;  %v3433_v59 = vld [vmem:[%s4047_s9 + $0x584] ss:$8 sps:$4 sm:$0xff]  }
 0x154   : > { %2492 = vmatpush1.bf16.msra.mxu1 %v3332_v60  ;;  %v3428_v60 = vld [vmem:[%s4047_s9 + $0x280] ss:$8 sps:$4 sm:$0xff]  }
 0x155   : > { %2621 = vmatpush1.bf16.msra.mxu0 %v3335_v61  ;;  %2493 = vmatprep.subr.bf16.mxu1 %v3340_v62  ;;  %v3431_v61 = vld [vmem:[%s4047_s9 + $0x580] ss:$8 sps:$4 sm:$0xff]   ;;  %v3436_v62 = vld [vmem:[%s4047_s9 + $0x294] ss:$8 sps:$4 sm:$0xff]  }
 0x156   : > { %2622 = vmatprep.subr.bf16.mxu0 %v3343_v63  ;;  %v3439_v63 = vld [vmem:[%s4047_s9 + $0x594] ss:$8 sps:$4 sm:$0xff]  }
 0x158   : > { %2494 = vmatpush1.bf16.msra.mxu1 %v3338_v0  ;;  %v3434_v0 = vld [vmem:[%s4047_s9 + $0x290] ss:$8 sps:$4 sm:$0xff]  }
 0x159   : > { %2623 = vmatpush1.bf16.msra.mxu0 %v3341_v1  ;;  %2495 = vmatprep.subr.bf16.mxu1 %v3346_v2  ;;  %v3437_v1 = vld [vmem:[%s4047_s9 + $0x590] ss:$8 sps:$4 sm:$0xff]   ;;  %v3442_v2 = vld [vmem:[%s4047_s9 + $0x2a4] ss:$8 sps:$4 sm:$0xff]  }
 0x15a   : > { %2624 = vmatprep.subr.bf16.mxu0 %v3349_v3  ;;  %v3445_v3 = vld [vmem:[%s4047_s9 + $0x5a4] ss:$8 sps:$4 sm:$0xff]  }
 0x15c   : > { %2496 = vmatpush1.bf16.msra.mxu1 %v3344_v4  ;;  %v3440_v4 = vld [vmem:[%s4047_s9 + $0x2a0] ss:$8 sps:$4 sm:$0xff]  }
 0x15d   : > { %2625 = vmatpush1.bf16.msra.mxu0 %v3347_v5  ;;  %2497 = vmatprep.subr.bf16.mxu1 %v3352_v6  ;;  %v3443_v5 = vld [vmem:[%s4047_s9 + $0x5a0] ss:$8 sps:$4 sm:$0xff]   ;;  %v3448_v6 = vld [vmem:[%s4047_s9 + $0x2b4] ss:$8 sps:$4 sm:$0xff]  }
 0x15e   : > { %2626 = vmatprep.subr.bf16.mxu0 %v3355_v7  ;;  %v3451_v7 = vld [vmem:[%s4047_s9 + $0x5b4] ss:$8 sps:$4 sm:$0xff]  }
 0x160   : > { %2498 = vmatpush1.bf16.msra.mxu1 %v3350_v8  ;;  %v3446_v8 = vld [vmem:[%s4047_s9 + $0x2b0] ss:$8 sps:$4 sm:$0xff]  }
 0x161   : > { %2627 = vmatpush1.bf16.msra.mxu0 %v3353_v9  ;;  %2499 = vmatprep.subr.bf16.mxu1 %v3358_v10  ;;  %v3449_v9 = vld [vmem:[%s4047_s9 + $0x5b0] ss:$8 sps:$4 sm:$0xff]   ;;  %v3454_v10 = vld [vmem:[%s4047_s9 + $0x2c4] ss:$8 sps:$4 sm:$0xff]  }
 0x162   : > { %2628 = vmatprep.subr.bf16.mxu0 %v3361_v11  ;;  %v3457_v11 = vld [vmem:[%s4047_s9 + $0x5c4] ss:$8 sps:$4 sm:$0xff]  }
 0x164   : > { %2500 = vmatpush1.bf16.msra.mxu1 %v3356_v12  ;;  %v3452_v12 = vld [vmem:[%s4047_s9 + $0x2c0] ss:$8 sps:$4 sm:$0xff]  }
 0x165   : > { %2629 = vmatpush1.bf16.msra.mxu0 %v3359_v13  ;;  %2501 = vmatprep.subr.bf16.mxu1 %v3364_v14  ;;  %v3455_v13 = vld [vmem:[%s4047_s9 + $0x5c0] ss:$8 sps:$4 sm:$0xff]   ;;  %v3460_v14 = vld [vmem:[%s4047_s9 + $0x2d4] ss:$8 sps:$4 sm:$0xff]  }
 0x166   : > { %2630 = vmatprep.subr.bf16.mxu0 %v3367_v15  ;;  %v3463_v15 = vld [vmem:[%s4047_s9 + $0x5d4] ss:$8 sps:$4 sm:$0xff]  }
 0x168   : > { %2502 = vmatpush1.bf16.msra.mxu1 %v3362_v16  ;;  %v3458_v16 = vld [vmem:[%s4047_s9 + $0x2d0] ss:$8 sps:$4 sm:$0xff]  }
 0x169   : > { %2631 = vmatpush1.bf16.msra.mxu0 %v3365_v17  ;;  %2503 = vmatprep.subr.bf16.mxu1 %v3370_v18  ;;  %v3461_v17 = vld [vmem:[%s4047_s9 + $0x5d0] ss:$8 sps:$4 sm:$0xff]   ;;  %v3466_v18 = vld [vmem:[%s4047_s9 + $0x2e4] ss:$8 sps:$4 sm:$0xff]  }
 0x16a   : > { %2632 = vmatprep.subr.bf16.mxu0 %v3373_v19  ;;  %v3469_v19 = vld [vmem:[%s4047_s9 + $0x5e4] ss:$8 sps:$4 sm:$0xff]  }
 0x16c   : > { %2504 = vmatpush1.bf16.msra.mxu1 %v3368_v20  ;;  %v3464_v20 = vld [vmem:[%s4047_s9 + $0x2e0] ss:$8 sps:$4 sm:$0xff]  }
 0x16d   : > { %2633 = vmatpush1.bf16.msra.mxu0 %v3371_v21  ;;  %2516 = vmatprep.subr.bf16.mxu1 %v3379_v22  ;;  %v3467_v21 = vld [vmem:[%s4047_s9 + $0x5e0] ss:$8 sps:$4 sm:$0xff]   ;;  %v3472_v22 = vld [vmem:[%s4047_s9 + $0x2f4] ss:$8 sps:$4 sm:$0xff]  }
 0x16e   : > { %2645 = vmatprep.subr.bf16.mxu0 %v3385_v23  ;;  %v3475_v23 = vld [vmem:[%s4047_s9 + $0x5f4] ss:$8 sps:$4 sm:$0xff]  }
 0x16f   : > { %2506 = vmatmul.mubr.bf16.vlgmr.msra.gmra.mrb[0].mxu1 %v3374_v24  ;;  %v3470_v24 = vld [vmem:[%s4047_s9 + $0x2f0] ss:$8 sps:$4 sm:$0xff]  }
 0x170   : > { %2635 = vmatmul.mubr.bf16.vlgmr.msra.gmra.mrb[0].mxu0 %v3380_v26  ;;  %2517 = vmatpush1.bf16.msra.mxu1 %v3377_v25  ;;  %v3473_v25 = vld [vmem:[%s4047_s9 + $0x5f0] ss:$8 sps:$4 sm:$0xff]   ;;  %v3484_v26 = vld [vmem:[%s4047_s9 + $0x604] ss:$8 sps:$4 sm:$0xff]  }
 0x171   : > { %2646 = vmatpush1.bf16.msra.mxu0 %v3383_v27  ;;  %2518 = vmatprep.subr.bf16.mxu1 %v3388_v28  ;;  %v3476_v27 = vld [vmem:[%s4317_s0 + $0x10] ss:$52 sps:$4 sm:$0xff]   ;;  %v3479_v28 = vld [vmem:[%s4317_s0 + $0x28] ss:$52 sps:$4 sm:$0xff]  }
 0x172   : > { %2647 = vmatprep.subr.bf16.mxu0 %v3391_v29  ;;  %2548 = vmatprep.mubr.bf16.mxu1 %v3478_v31  ;;  %v3482_v29 = vld [vmem:[%s4047_s9 + $0x600] ss:$8 sps:$4 sm:$0xff]   ;;  %v3485_v31 = vld [vmem:[%s4047_s9 + $0x610] ss:$8 sps:$4 sm:$0xff]  }
 0x173   : > { %2677 = vmatprep.mubr.bf16.mxu0 %v3481_v33  ;;  %v3490_v33 = vld [vmem:[%s4047_s9 + $0x624] ss:$8 sps:$4 sm:$0xff]  }
 0x174   : > { %2519 = vmatpush1.bf16.msra.mxu1 %v3386_v30  ;;  %v3487_v30 = vld [vmem:[%s4047_s9 + $0x614] ss:$8 sps:$4 sm:$0xff]  }
 0x175   : > { %2648 = vmatpush1.bf16.msra.mxu0 %v3389_v32  ;;  %2520 = vmatprep.subr.bf16.mxu1 %v3394_v34  ;;  %v3547_v32 = vmov 0   ;;  %v3488_v34 = vld [vmem:[%s4047_s9 + $0x620] ss:$8 sps:$4 sm:$0xff]  }
 0x176   : > { %2649 = vmatprep.subr.bf16.mxu0 %v3397_v35  ;;  %v3493_v35 = vld [vmem:[%s4047_s9 + $0x634] ss:$8 sps:$4 sm:$0xff]  }
 0x178   : > { %2521 = vmatpush1.bf16.msra.mxu1 %v3392_v36  ;;  %v3491_v36 = vld [vmem:[%s4047_s9 + $0x630] ss:$8 sps:$4 sm:$0xff]  }
 0x179   : > { %2650 = vmatpush1.bf16.msra.mxu0 %v3395_v37  ;;  %2522 = vmatprep.subr.bf16.mxu1 %v3400_v38  ;;  %v3496_v37 = vld [vmem:[%s4047_s9 + $0x644] ss:$8 sps:$4 sm:$0xff]   ;;  %v3494_v38 = vld [vmem:[%s4047_s9 + $0x640] ss:$8 sps:$4 sm:$0xff]  }
 0x17a   : > { %2651 = vmatprep.subr.bf16.mxu0 %v3403_v39  ;;  %v3499_v39 = vld [vmem:[%s4047_s9 + $0x654] ss:$8 sps:$4 sm:$0xff]  }
 0x17c   : > { %2523 = vmatpush1.bf16.msra.mxu1 %v3398_v40  ;;  %v3497_v40 = vld [vmem:[%s4047_s9 + $0x650] ss:$8 sps:$4 sm:$0xff]  }
 0x17d   : > { %2652 = vmatpush1.bf16.msra.mxu0 %v3401_v41  ;;  %2524 = vmatprep.subr.bf16.mxu1 %v3406_v42  ;;  %v3502_v41 = vld [vmem:[%s4047_s9 + $0x664] ss:$8 sps:$4 sm:$0xff]   ;;  %v3500_v42 = vld [vmem:[%s4047_s9 + $0x660] ss:$8 sps:$4 sm:$0xff]  }
 0x17e   : > { %2653 = vmatprep.subr.bf16.mxu0 %v3409_v43  ;;  %v3505_v43 = vld [vmem:[%s4047_s9 + $0x674] ss:$8 sps:$4 sm:$0xff]  }
 0x180   : > { %2525 = vmatpush1.bf16.msra.mxu1 %v3404_v44  ;;  %v3503_v44 = vld [vmem:[%s4047_s9 + $0x670] ss:$8 sps:$4 sm:$0xff]   ;;  %s1085_s9 = scalar_lea.vmem %s4319_s2, %s4329_s23 }
 0x181   : > { %2654 = vmatpush1.bf16.msra.mxu0 %v3407_v45  ;;  %2526 = vmatprep.subr.bf16.mxu1 %v3412_v46  ;;  %v3506_v45 = vld [vmem:[%s4317_s0 + $0x30] ss:$52 sps:$4 sm:$0xff]  }
 0x182   : > { %2655 = vmatprep.subr.bf16.mxu0 %v3415_v47 }
 0x184   : > { %2527 = vmatpush1.bf16.msra.mxu1 %v3410_v48 }
 0x185   : > { %2656 = vmatpush1.bf16.msra.mxu0 %v3413_v49  ;;  %2528 = vmatprep.subr.bf16.mxu1 %v3418_v50  ;;  %v1314_v50 = vlaneseq }
 0x186   : > { %2657 = vmatprep.subr.bf16.mxu0 %v3421_v51 }
 0x187   : > { %v1315_v51 = vshrl.u32 %v1314_v50, 7 }
 0x188   : > { %2529 = vmatpush1.bf16.msra.mxu1 %v3416_v52 }
 0x189   : > { %2658 = vmatpush1.bf16.msra.mxu0 %v3419_v53  ;;  %2530 = vmatprep.subr.bf16.mxu1 %v3424_v54  ;;  %v1316_v52 = vsub.s32 0, %v1315_v51  ;;  %v1312_v53 = vld [vmem:[%s1085_s9] sm:$0x3]  ;;  %v1320_v54 = vsub.s32 1, %v1315_v51 }
 0x18a   : > { %2659 = vmatprep.subr.bf16.mxu0 %v3427_v55 }
 0x18b   : > { %v1317_v55 = vrot.slane %v1312_v53, %v1316_v52 }
 0x18c   : > { %2531 = vmatpush1.bf16.msra.mxu1 %v3422_v56  ;;  %v1321_v56 = vrot.slane %v1312_v53, %v1320_v54 }
 0x18d   : > { %2660 = vmatpush1.bf16.msra.mxu0 %v3425_v57  ;;  %2532 = vmatprep.subr.bf16.mxu1 %v3430_v58 }
 0x18e   : > { %2661 = vmatprep.subr.bf16.mxu0 %v3433_v59 }
 0x190   : > { %2533 = vmatpush1.bf16.msra.mxu1 %v3428_v60 }
 0x191   : > { %2662 = vmatpush1.bf16.msra.mxu0 %v3431_v61  ;;  %2534 = vmatprep.subr.bf16.mxu1 %v3436_v62 }
 0x192   : > { %2663 = vmatprep.subr.bf16.mxu0 %v3439_v63 }
 0x194   : > { %2535 = vmatpush1.bf16.msra.mxu1 %v3434_v0 }
 0x195   : > { %2664 = vmatpush1.bf16.msra.mxu0 %v3437_v1  ;;  %2536 = vmatprep.subr.bf16.mxu1 %v3442_v2 }
 0x196   : > { %2665 = vmatprep.subr.bf16.mxu0 %v3445_v3 }
 0x198   : > { %2537 = vmatpush1.bf16.msra.mxu1 %v3440_v4 }
 0x199   : > { %2666 = vmatpush1.bf16.msra.mxu0 %v3443_v5  ;;  %2538 = vmatprep.subr.bf16.mxu1 %v3448_v6 }
 0x19a   : > { %2667 = vmatprep.subr.bf16.mxu0 %v3451_v7 }
 0x19c   : > { %2539 = vmatpush1.bf16.msra.mxu1 %v3446_v8 }
 0x19d   : > { %2668 = vmatpush1.bf16.msra.mxu0 %v3449_v9  ;;  %2540 = vmatprep.subr.bf16.mxu1 %v3454_v10 }
 0x19e   : > { %2669 = vmatprep.subr.bf16.mxu0 %v3457_v11 }
 0x1a0   : > { %2541 = vmatpush1.bf16.msra.mxu1 %v3452_v12 }
 0x1a1   : > { %2670 = vmatpush1.bf16.msra.mxu0 %v3455_v13  ;;  %2542 = vmatprep.subr.bf16.mxu1 %v3460_v14 }
 0x1a2   : > { %2671 = vmatprep.subr.bf16.mxu0 %v3463_v15 }
 0x1a4   : > { %2543 = vmatpush1.bf16.msra.mxu1 %v3458_v16 }
 0x1a5   : > { %2672 = vmatpush1.bf16.msra.mxu0 %v3461_v17  ;;  %2544 = vmatprep.subr.bf16.mxu1 %v3466_v18 }
 0x1a6   : > { %2673 = vmatprep.subr.bf16.mxu0 %v3469_v19 }
 0x1a8   : > { %2545 = vmatpush1.bf16.msra.mxu1 %v3464_v20 }
 0x1a9   : > { %2674 = vmatpush1.bf16.msra.mxu0 %v3467_v21  ;;  %2546 = vmatprep.subr.bf16.mxu1 %v3472_v22 }
 0x1aa   : > { %2675 = vmatprep.subr.bf16.mxu0 %v3475_v23 }
 0x1ac   : > { %2547 = vmatpush1.bf16.msra.mxu1 %v3470_v24 }
 0x1ad   : > { %2676 = vmatpush1.bf16.msra.mxu0 %v3473_v25 }
 0x1ae   : > { %2688 = vmatprep.subr.bf16.mxu0 %v3484_v26 }
 0x1af   : > { %2549 = vmatmul.mubr.bf16.vlgmr.msra.gmra.mrb[0].mxu1 %v3476_v27 }
 0x1b0   : > { %2678 = vmatmul.mubr.bf16.vlgmr.msra.gmra.mrb[0].mxu0 %v3479_v28 }
 0x1b1   : > { %2689 = vmatpush1.bf16.msra.mxu0 %v3482_v29  ;;  %2720 = vmatprep.mubr.bf16.mxu0 %v3547_v32 }
 0x1b2   : > { %2690 = vmatprep.subr.bf16.mxu0 %v3487_v30 }
 0x1b5   : > { %2691 = vmatpush1.bf16.msra.mxu0 %v3485_v31 }
 0x1b6   : > { %2692 = vmatprep.subr.bf16.mxu0 %v3490_v33 }
 0x1b9   : > { %2693 = vmatpush1.bf16.msra.mxu0 %v3488_v34 }
 0x1ba   : > { %2694 = vmatprep.subr.bf16.mxu0 %v3493_v35 }
 0x1bd   : > { %2695 = vmatpush1.bf16.msra.mxu0 %v3491_v36 }
 0x1be   : > { %2696 = vmatprep.subr.bf16.mxu0 %v3496_v37 }
 0x1c1   : > { %2697 = vmatpush1.bf16.msra.mxu0 %v3494_v38 }
 0x1c2   : > { %2698 = vmatprep.subr.bf16.mxu0 %v3499_v39 }
 0x1c5   : > { %2699 = vmatpush1.bf16.msra.mxu0 %v3497_v40 }
 0x1c6   : > { %2700 = vmatprep.subr.bf16.mxu0 %v3502_v41 }
 0x1c9   : > { %2701 = vmatpush1.bf16.msra.mxu0 %v3500_v42 }
 0x1ca   : > { %2702 = vmatprep.subr.bf16.mxu0 %v3505_v43 }
 0x1cd   : > { %2703 = vmatpush1.bf16.msra.mxu0 %v3503_v44 }
 0x1d0   : > { %2721 = vmatmul.mubr.bf16.vlgmr.msra.gmra.mrb[0].mxu0 %v3506_v45 }
 0x282   : > { %v2550_v46 = vpop.f32.mrb[0].mxu1 }
 0x283   : > { %v2552_v47 = vpop.f32.mrb[1].mxu1  ;;  %v3105_v57 = vadd.f32 %v2550_v46, %v1317_v55 }
 0x284   : > { %v2554_v48 = vpop.f32.mrb[2].mxu1  ;;  %v3107_v58 = vadd.f32 %v2552_v47, %v1321_v56 }
 0x285   : > { %v2556_v49 = vpop.f32.mrb[3].mxu1  ;;  %v3109_v60 = vadd.f32 %v2554_v48, %v1317_v55 }
 0x286   : > { %v3111_v63 = vadd.f32 %v2556_v49, %v1321_v56 }
 0x2a3   : > { %v2722_v59 = vpop.f32.mrb[0].mxu0 }
 0x2a4   : > { %v3106_v61 = vadd.f32 %v3105_v57, %v2722_v59  ;;  %v2724_v62 = vpop.f32.mrb[1].mxu0 }
 0x2a5   : > { %v3108_v0 = vadd.f32 %v3107_v58, %v2724_v62  ;;  %v2726_v1 = vpop.f32.mrb[2].mxu0  ;;  %2745 = sbr.rel (!%p3603_p6) target bundleno = 692 (0x2b4), region = 74 }
 0x2a6   : > { %v2731_v2 = vmax.f32 %v3106_v61, 0.0  ;;  %v3110_v3 = vadd.f32 %v3109_v60, %v2726_v1  ;;  %v2728_v4 = vpop.f32.mrb[3].mxu0 }
 0x2a7   : > { %v2732_v5 = vmax.f32 %v3108_v0, 0.0  ;;  %v3112_v6 = vadd.f32 %v3111_v63, %v2728_v4 }
 0x2a8   : > { %2735 = vst [vmem:[%s1073_s27] sm:$0xff] %v2731_v2  ;;  %v2733_v7 = vmax.f32 %v3110_v3, 0.0 }
 0x2a9   : > { %2736 = vst [vmem:[%s1073_s27 + $0x8] sm:$0xff] %v2732_v5  ;;  %v2734_v8 = vmax.f32 %v3112_v6, 0.0 }
 0x2aa   : > { %2737 = vst [vmem:[%s1073_s27 + $0x10] sm:$0xff] %v2733_v7 }
 0x2ab   : > { %2738 = vst [vmem:[%s1073_s27 + $0x18] sm:$0xff] %v2734_v8 }
 0x2af   : > { %v2764_v9 = vld [vmem:[%s1073_s27] sm:$0xff] }
 0x2b0   : > { %v2766_v10 = vld [vmem:[%s1073_s27 + $0x8] sm:$0xff]  ;;  %2765 = vst [vmem:[%s2751_s29] sm:$0xff] %v2764_v9 }
 0x2b1   : > { %v2768_v11 = vld [vmem:[%s1073_s27 + $0x10] sm:$0xff]  ;;  %2767 = vst [vmem:[%s2751_s29 + $0x8] sm:$0xff] %v2766_v10 }
 0x2b2   : > { %v2770_v12 = vld [vmem:[%s1073_s27 + $0x18] sm:$0xff]  ;;  %2769 = vst [vmem:[%s2751_s29 + $0x40] sm:$0xff] %v2768_v11 }
 0x2b3   : > { %2771 = vst [vmem:[%s2751_s29 + $0x48] sm:$0xff] %v2770_v12 }
 0x2b4 PF: > { %s13_s16 = sadd.s32 1, %s3545_s16   ;;  %s4322_s12 = smov %s3533_s13 }
 0x2b5   : > { %p10_p12 = scmp.ge.s32.totalorder %s13_s16, 6   ;;  %s4323_s13 = smov %s3608_s22 }
 0x2b6   : > { %s4324_s14 = smov %s3541_s15  ;;  %s4325_s15 = smov %s4327_s17 }
 0x2b7   :  { %12 = sbr.rel (!%p10_p12) target bundleno = 3 (0x3), region = 134 }

// kernel: alexnet_forward.20
= control target key start
LH: loop header
LB: loop body
LE: loop exit
PB: predicated region body
PF: predicated region fallthrough
CT: control target
= control target key end

     0   :  { %s2368_s12 = smov 0   ;;  %s2370_s13 = smov 0   ;;  %s2900_s0 = inlined_call_operand.vmem [shape: bf16[16,1024], index: 0, kind: input, shape index: {}]   ;;  %s2901_s1 = inlined_call_operand.vmem [shape: bf16[1024,1024], index: 1, kind: input, shape index: {}]   ;;  %s2902_s2 = inlined_call_operand.vmem [shape: f32[1,1024], index: 2, kind: input, shape index: {}]   ;;  %s2903_s3 = inlined_call_operand.vmem [shape: f32[16,1024], index: 3, kind: output, shape index: {}]  }
   0x1   :  { %s2372_s14 = smov 0   ;;  %s2374_s15 = smov 0  }
   0x2   :  { %s2376_s16 = smov 0  }
   0x3 LB: > { %s22_s17 = sadd.s32 1, %s2342_s15  ;;  %s1905_s18 = sadd.s32 4294967295, %s2346_s16   ;;  %s2346_s16 = sphi %s2376_s16, %s13_s16   ;;  %s2342_s15 = sphi %s2374_s15, %s2908_s15   ;;  %s2338_s14 = sphi %s2372_s14, %s2907_s14   ;;  %s2334_s13 = sphi %s2370_s13, %s2906_s13   ;;  %s2330_s12 = sphi %s2368_s12, %s2905_s12  }
   0x4   : > { %p23_p0 = scmp.ge.s32.totalorder %s22_s17, 4  ;;  %p65_p1 = scmp.ne.s32.totalorder %s2334_s13, %s2330_s12 }
   0x5   : > { %p66_p2 = scmp.eq.s32.totalorder %s2346_s16, 0  ;;  %p123_p4 = scmp.eq.s32.totalorder %s1905_s18, 3 }
   0x6   : > { %s2910_s17 = smov (%p23_p0, %s22_s17), 0  ;;  %s58_s20 = sadd.s32 1, %s2334_s13 }
   0x7   : > { %p67_p3 = por %p66_p2, %p65_p1  ;;  %s55_s19 = ssub.s32 %s2342_s15, %s2910_s17 }
   0x8   : > { %p56_p5 = scmp.eq.s32.totalorder %s55_s19, 0  ;;  %p2403_p6 = por %p123_p4, %p65_p1 }
   0x9   : > { %p1909_p7 = scmp.ge.s32.totalorder %s2346_s16, 4 }
   0xa   : > { %s2408_s22 = scalar_select %p56_p5, %s2334_s13, %s58_s20  }
   0xb   : > { %155 = sbr.rel (%p1909_p7) target bundleno = 150 (0x96), region = 20 }
  0x12   : > { %158 = sbr.rel (!%p67_p3) target bundleno = 150 (0x96), region = 24  ;;  %s160_s23 = sand.u32 (%p67_p3), 1, %s2334_s13  }
  0x13   : > { %s2058_s24 = sshll.u32 (%p67_p3), %s2342_s15, 3  ;;  %s1910_s25 = sshll.u32 (%p67_p3), %s160_s23, 10 }
  0x14   : > { %s2416_s28 = scalar_lea.vmem (%p67_p3), %s2901_s1, %s2058_s24  ;;  %s2421_s29 = scalar_lea.vmem (%p67_p3), [#allocation2], %s1910_s25 }
  0x15   : > { %v447_v0 = vld [vmem:[%s2416_s28] sm:$0xff] (%p67_p3) }
  0x16   : > { %v449_v1 = vld [vmem:[%s2416_s28 + $0x20] sm:$0xff] (%p67_p3)  ;;  %448 = vst [vmem:[%s2421_s29] sm:$0xff] (%p67_p3), %v447_v0 }
  0x17   : > { %v451_v2 = vld [vmem:[%s2416_s28 + $0x40] sm:$0xff] (%p67_p3)  ;;  %450 = vst [vmem:[%s2421_s29 + $0x8] sm:$0xff] (%p67_p3), %v449_v1 }
  0x18   : > { %452 = vst [vmem:[%s2421_s29 + $0x10] sm:$0xff] (%p67_p3), %v451_v2  ;;  %v453_v3 = vld [vmem:[%s2416_s28 + $0x60] sm:$0xff] (%p67_p3) }
  0x19   : > { %v455_v4 = vld [vmem:[%s2416_s28 + $0x80] sm:$0xff]  ;;  %454 = vst [vmem:[%s2421_s29 + $0x18] sm:$0xff] %v453_v3 }
  0x1a   : > { %v457_v5 = vld [vmem:[%s2416_s28 + $0xa0] sm:$0xff]  ;;  %456 = vst [vmem:[%s2421_s29 + $0x20] sm:$0xff] %v455_v4 }
  0x1b   : > { %458 = vst [vmem:[%s2421_s29 + $0x28] sm:$0xff] %v457_v5  ;;  %v459_v6 = vld [vmem:[%s2416_s28 + $0xc0] sm:$0xff] }
  0x1c   : > { %v461_v7 = vld [vmem:[%s2416_s28 + $0xe0] sm:$0xff]  ;;  %460 = vst [vmem:[%s2421_s29 + $0x30] sm:$0xff] %v459_v6 }
  0x1d   : > { %v463_v8 = vld [vmem:[%s2416_s28 + $0x100] sm:$0xff]  ;;  %462 = vst [vmem:[%s2421_s29 + $0x38] sm:$0xff] %v461_v7 }
  0x1e   : > { %464 = vst [vmem:[%s2421_s29 + $0x40] sm:$0xff] %v463_v8  ;;  %v465_v9 = vld [vmem:[%s2416_s28 + $0x120] sm:$0xff] }
  0x1f   : > { %v467_v10 = vld [vmem:[%s2416_s28 + $0x140] sm:$0xff]  ;;  %466 = vst [vmem:[%s2421_s29 + $0x48] sm:$0xff] %v465_v9 }
  0x20   : > { %v469_v11 = vld [vmem:[%s2416_s28 + $0x160] sm:$0xff]  ;;  %468 = vst [vmem:[%s2421_s29 + $0x50] sm:$0xff] %v467_v10 }
  0x21   : > { %470 = vst [vmem:[%s2421_s29 + $0x58] sm:$0xff] %v469_v11  ;;  %v471_v12 = vld [vmem:[%s2416_s28 + $0x180] sm:$0xff] }
  0x22   : > { %v473_v13 = vld [vmem:[%s2416_s28 + $0x1a0] sm:$0xff]  ;;  %472 = vst [vmem:[%s2421_s29 + $0x60] sm:$0xff] %v471_v12 }
  0x23   : > { %v475_v14 = vld [vmem:[%s2416_s28 + $0x1c0] sm:$0xff]  ;;  %474 = vst [vmem:[%s2421_s29 + $0x68] sm:$0xff] %v473_v13 }
  0x24   : > { %476 = vst [vmem:[%s2421_s29 + $0x70] sm:$0xff] %v475_v14  ;;  %v477_v15 = vld [vmem:[%s2416_s28 + $0x1e0] sm:$0xff] }
  0x25   : > { %v479_v16 = vld [vmem:[%s2416_s28 + $0x200] sm:$0xff]  ;;  %478 = vst [vmem:[%s2421_s29 + $0x78] sm:$0xff] %v477_v15 }
  0x26   : > { %v481_v17 = vld [vmem:[%s2416_s28 + $0x220] sm:$0xff]  ;;  %480 = vst [vmem:[%s2421_s29 + $0x80] sm:$0xff] %v479_v16 }
  0x27   : > { %482 = vst [vmem:[%s2421_s29 + $0x88] sm:$0xff] %v481_v17  ;;  %v483_v18 = vld [vmem:[%s2416_s28 + $0x240] sm:$0xff] }
  0x28   : > { %v485_v19 = vld [vmem:[%s2416_s28 + $0x260] sm:$0xff]  ;;  %484 = vst [vmem:[%s2421_s29 + $0x90] sm:$0xff] %v483_v18 }
  0x29   : > { %v487_v20 = vld [vmem:[%s2416_s28 + $0x280] sm:$0xff]  ;;  %486 = vst [vmem:[%s2421_s29 + $0x98] sm:$0xff] %v485_v19 }
  0x2a   : > { %488 = vst [vmem:[%s2421_s29 + $0xa0] sm:$0xff] %v487_v20  ;;  %v489_v21 = vld [vmem:[%s2416_s28 + $0x2a0] sm:$0xff] }
  0x2b   : > { %v491_v22 = vld [vmem:[%s2416_s28 + $0x2c0] sm:$0xff]  ;;  %490 = vst [vmem:[%s2421_s29 + $0xa8] sm:$0xff] %v489_v21 }
  0x2c   : > { %v493_v23 = vld [vmem:[%s2416_s28 + $0x2e0] sm:$0xff]  ;;  %492 = vst [vmem:[%s2421_s29 + $0xb0] sm:$0xff] %v491_v22 }
  0x2d   : > { %494 = vst [vmem:[%s2421_s29 + $0xb8] sm:$0xff] %v493_v23  ;;  %v495_v24 = vld [vmem:[%s2416_s28 + $0x300] sm:$0xff] }
  0x2e   : > { %v497_v25 = vld [vmem:[%s2416_s28 + $0x320] sm:$0xff]  ;;  %496 = vst [vmem:[%s2421_s29 + $0xc0] sm:$0xff] %v495_v24 }
  0x2f   : > { %v499_v26 = vld [vmem:[%s2416_s28 + $0x340] sm:$0xff]  ;;  %498 = vst [vmem:[%s2421_s29 + $0xc8] sm:$0xff] %v497_v25 }
  0x30   : > { %500 = vst [vmem:[%s2421_s29 + $0xd0] sm:$0xff] %v499_v26  ;;  %v501_v27 = vld [vmem:[%s2416_s28 + $0x360] sm:$0xff] }
  0x31   : > { %v503_v28 = vld [vmem:[%s2416_s28 + $0x380] sm:$0xff]  ;;  %502 = vst [vmem:[%s2421_s29 + $0xd8] sm:$0xff] %v501_v27 }
  0x32   : > { %v505_v29 = vld [vmem:[%s2416_s28 + $0x3a0] sm:$0xff]  ;;  %504 = vst [vmem:[%s2421_s29 + $0xe0] sm:$0xff] %v503_v28 }
  0x33   : > { %506 = vst [vmem:[%s2421_s29 + $0xe8] sm:$0xff] %v505_v29  ;;  %v507_v30 = vld [vmem:[%s2416_s28 + $0x3c0] sm:$0xff] }
  0x34   : > { %v509_v31 = vld [vmem:[%s2416_s28 + $0x3e0] sm:$0xff]  ;;  %508 = vst [vmem:[%s2421_s29 + $0xf0] sm:$0xff] %v507_v30 }
  0x35   : > { %v511_v32 = vld [vmem:[%s2416_s28 + $0x400] sm:$0xff]  ;;  %510 = vst [vmem:[%s2421_s29 + $0xf8] sm:$0xff] %v509_v31 }
  0x36   : > { %512 = vst [vmem:[%s2421_s29 + $0x100] sm:$0xff] %v511_v32  ;;  %v513_v33 = vld [vmem:[%s2416_s28 + $0x420] sm:$0xff] }
  0x37   : > { %v515_v34 = vld [vmem:[%s2416_s28 + $0x440] sm:$0xff]  ;;  %514 = vst [vmem:[%s2421_s29 + $0x108] sm:$0xff] %v513_v33 }
  0x38   : > { %v517_v35 = vld [vmem:[%s2416_s28 + $0x460] sm:$0xff]  ;;  %516 = vst [vmem:[%s2421_s29 + $0x110] sm:$0xff] %v515_v34 }
  0x39   : > { %518 = vst [vmem:[%s2421_s29 + $0x118] sm:$0xff] %v517_v35  ;;  %v519_v36 = vld [vmem:[%s2416_s28 + $0x480] sm:$0xff] }
  0x3a   : > { %v521_v37 = vld [vmem:[%s2416_s28 + $0x4a0] sm:$0xff]  ;;  %520 = vst [vmem:[%s2421_s29 + $0x120] sm:$0xff] %v519_v36 }
  0x3b   : > { %v523_v38 = vld [vmem:[%s2416_s28 + $0x4c0] sm:$0xff]  ;;  %522 = vst [vmem:[%s2421_s29 + $0x128] sm:$0xff] %v521_v37 }
  0x3c   : > { %524 = vst [vmem:[%s2421_s29 + $0x130] sm:$0xff] %v523_v38  ;;  %v525_v39 = vld [vmem:[%s2416_s28 + $0x4e0] sm:$0xff] }
  0x3d   : > { %v527_v40 = vld [vmem:[%s2416_s28 + $0x500] sm:$0xff]  ;;  %526 = vst [vmem:[%s2421_s29 + $0x138] sm:$0xff] %v525_v39 }
  0x3e   : > { %v529_v41 = vld [vmem:[%s2416_s28 + $0x520] sm:$0xff]  ;;  %528 = vst [vmem:[%s2421_s29 + $0x140] sm:$0xff] %v527_v40 }
  0x3f   : > { %530 = vst [vmem:[%s2421_s29 + $0x148] sm:$0xff] %v529_v41  ;;  %v531_v42 = vld [vmem:[%s2416_s28 + $0x540] sm:$0xff] }
  0x40   : > { %v533_v43 = vld [vmem:[%s2416_s28 + $0x560] sm:$0xff]  ;;  %532 = vst [vmem:[%s2421_s29 + $0x150] sm:$0xff] %v531_v42 }
  0x41   : > { %v535_v44 = vld [vmem:[%s2416_s28 + $0x580] sm:$0xff]  ;;  %534 = vst [vmem:[%s2421_s29 + $0x158] sm:$0xff] %v533_v43 }
  0x42   : > { %536 = vst [vmem:[%s2421_s29 + $0x160] sm:$0xff] %v535_v44  ;;  %v537_v45 = vld [vmem:[%s2416_s28 + $0x5a0] sm:$0xff] }
  0x43   : > { %v539_v46 = vld [vmem:[%s2416_s28 + $0x5c0] sm:$0xff]  ;;  %538 = vst [vmem:[%s2421_s29 + $0x168] sm:$0xff] %v537_v45 }
  0x44   : > { %v541_v47 = vld [vmem:[%s2416_s28 + $0x5e0] sm:$0xff]  ;;  %540 = vst [vmem:[%s2421_s29 + $0x170] sm:$0xff] %v539_v46 }
  0x45   : > { %542 = vst [vmem:[%s2421_s29 + $0x178] sm:$0xff] %v541_v47  ;;  %v543_v48 = vld [vmem:[%s2416_s28 + $0x600] sm:$0xff] }
  0x46   : > { %v545_v49 = vld [vmem:[%s2416_s28 + $0x620] sm:$0xff]  ;;  %544 = vst [vmem:[%s2421_s29 + $0x180] sm:$0xff] %v543_v48 }
  0x47   : > { %v547_v50 = vld [vmem:[%s2416_s28 + $0x640] sm:$0xff]  ;;  %546 = vst [vmem:[%s2421_s29 + $0x188] sm:$0xff] %v545_v49 }
  0x48   : > { %548 = vst [vmem:[%s2421_s29 + $0x190] sm:$0xff] %v547_v50  ;;  %v549_v51 = vld [vmem:[%s2416_s28 + $0x660] sm:$0xff] }
  0x49   : > { %v551_v52 = vld [vmem:[%s2416_s28 + $0x680] sm:$0xff]  ;;  %550 = vst [vmem:[%s2421_s29 + $0x198] sm:$0xff] %v549_v51 }
  0x4a   : > { %v553_v53 = vld [vmem:[%s2416_s28 + $0x6a0] sm:$0xff]  ;;  %552 = vst [vmem:[%s2421_s29 + $0x1a0] sm:$0xff] %v551_v52 }
  0x4b   : > { %554 = vst [vmem:[%s2421_s29 + $0x1a8] sm:$0xff] %v553_v53  ;;  %v555_v54 = vld [vmem:[%s2416_s28 + $0x6c0] sm:$0xff] }
  0x4c   : > { %v557_v55 = vld [vmem:[%s2416_s28 + $0x6e0] sm:$0xff]  ;;  %556 = vst [vmem:[%s2421_s29 + $0x1b0] sm:$0xff] %v555_v54 }
  0x4d   : > { %v559_v56 = vld [vmem:[%s2416_s28 + $0x700] sm:$0xff]  ;;  %558 = vst [vmem:[%s2421_s29 + $0x1b8] sm:$0xff] %v557_v55 }
  0x4e   : > { %560 = vst [vmem:[%s2421_s29 + $0x1c0] sm:$0xff] %v559_v56  ;;  %v561_v57 = vld [vmem:[%s2416_s28 + $0x720] sm:$0xff] }
  0x4f   : > { %v563_v58 = vld [vmem:[%s2416_s28 + $0x740] sm:$0xff]  ;;  %562 = vst [vmem:[%s2421_s29 + $0x1c8] sm:$0xff] %v561_v57 }
  0x50   : > { %v565_v59 = vld [vmem:[%s2416_s28 + $0x760] sm:$0xff]  ;;  %564 = vst [vmem:[%s2421_s29 + $0x1d0] sm:$0xff] %v563_v58 }
  0x51   : > { %566 = vst [vmem:[%s2421_s29 + $0x1d8] sm:$0xff] %v565_v59  ;;  %v567_v60 = vld [vmem:[%s2416_s28 + $0x780] sm:$0xff] }
  0x52   : > { %v569_v61 = vld [vmem:[%s2416_s28 + $0x7a0] sm:$0xff]  ;;  %568 = vst [vmem:[%s2421_s29 + $0x1e0] sm:$0xff] %v567_v60 }
  0x53   : > { %v571_v62 = vld [vmem:[%s2416_s28 + $0x7c0] sm:$0xff]  ;;  %570 = vst [vmem:[%s2421_s29 + $0x1e8] sm:$0xff] %v569_v61 }
  0x54   : > { %572 = vst [vmem:[%s2421_s29 + $0x1f0] sm:$0xff] %v571_v62  ;;  %v573_v63 = vld [vmem:[%s2416_s28 + $0x7e0] sm:$0xff] }
  0x55   : > { %v575_v0 = vld [vmem:[%s2416_s28 + $0x800] sm:$0xff]  ;;  %574 = vst [vmem:[%s2421_s29 + $0x1f8] sm:$0xff] %v573_v63 }
  0x56   : > { %v577_v1 = vld [vmem:[%s2416_s28 + $0x820] sm:$0xff]  ;;  %576 = vst [vmem:[%s2421_s29 + $0x200] sm:$0xff] %v575_v0 }
  0x57   : > { %578 = vst [vmem:[%s2421_s29 + $0x208] sm:$0xff] %v577_v1  ;;  %v579_v2 = vld [vmem:[%s2416_s28 + $0x840] sm:$0xff] }
  0x58   : > { %v581_v3 = vld [vmem:[%s2416_s28 + $0x860] sm:$0xff]  ;;  %580 = vst [vmem:[%s2421_s29 + $0x210] sm:$0xff] %v579_v2 }
  0x59   : > { %v583_v4 = vld [vmem:[%s2416_s28 + $0x880] sm:$0xff]  ;;  %582 = vst [vmem:[%s2421_s29 + $0x218] sm:$0xff] %v581_v3 }
  0x5a   : > { %584 = vst [vmem:[%s2421_s29 + $0x220] sm:$0xff] %v583_v4  ;;  %v585_v5 = vld [vmem:[%s2416_s28 + $0x8a0] sm:$0xff] }
  0x5b   : > { %v587_v6 = vld [vmem:[%s2416_s28 + $0x8c0] sm:$0xff]  ;;  %586 = vst [vmem:[%s2421_s29 + $0x228] sm:$0xff] %v585_v5 }
  0x5c   : > { %v589_v7 = vld [vmem:[%s2416_s28 + $0x8e0] sm:$0xff]  ;;  %588 = vst [vmem:[%s2421_s29 + $0x230] sm:$0xff] %v587_v6 }
  0x5d   : > { %590 = vst [vmem:[%s2421_s29 + $0x238] sm:$0xff] %v589_v7  ;;  %v591_v8 = vld [vmem:[%s2416_s28 + $0x900] sm:$0xff] }
  0x5e   : > { %v593_v9 = vld [vmem:[%s2416_s28 + $0x920] sm:$0xff]  ;;  %592 = vst [vmem:[%s2421_s29 + $0x240] sm:$0xff] %v591_v8 }
  0x5f   : > { %v595_v10 = vld [vmem:[%s2416_s28 + $0x940] sm:$0xff]  ;;  %594 = vst [vmem:[%s2421_s29 + $0x248] sm:$0xff] %v593_v9 }
  0x60   : > { %596 = vst [vmem:[%s2421_s29 + $0x250] sm:$0xff] %v595_v10  ;;  %v597_v11 = vld [vmem:[%s2416_s28 + $0x960] sm:$0xff] }
  0x61   : > { %v599_v12 = vld [vmem:[%s2416_s28 + $0x980] sm:$0xff]  ;;  %598 = vst [vmem:[%s2421_s29 + $0x258] sm:$0xff] %v597_v11 }
  0x62   : > { %v601_v13 = vld [vmem:[%s2416_s28 + $0x9a0] sm:$0xff]  ;;  %600 = vst [vmem:[%s2421_s29 + $0x260] sm:$0xff] %v599_v12 }
  0x63   : > { %602 = vst [vmem:[%s2421_s29 + $0x268] sm:$0xff] %v601_v13  ;;  %v603_v14 = vld [vmem:[%s2416_s28 + $0x9c0] sm:$0xff] }
  0x64   : > { %v605_v15 = vld [vmem:[%s2416_s28 + $0x9e0] sm:$0xff]  ;;  %604 = vst [vmem:[%s2421_s29 + $0x270] sm:$0xff] %v603_v14 }
  0x65   : > { %v607_v16 = vld [vmem:[%s2416_s28 + $0xa00] sm:$0xff]  ;;  %606 = vst [vmem:[%s2421_s29 + $0x278] sm:$0xff] %v605_v15 }
  0x66   : > { %608 = vst [vmem:[%s2421_s29 + $0x280] sm:$0xff] %v607_v16  ;;  %v609_v17 = vld [vmem:[%s2416_s28 + $0xa20] sm:$0xff] }
  0x67   : > { %v611_v18 = vld [vmem:[%s2416_s28 + $0xa40] sm:$0xff]  ;;  %610 = vst [vmem:[%s2421_s29 + $0x288] sm:$0xff] %v609_v17 }
  0x68   : > { %v613_v19 = vld [vmem:[%s2416_s28 + $0xa60] sm:$0xff]  ;;  %612 = vst [vmem:[%s2421_s29 + $0x290] sm:$0xff] %v611_v18 }
  0x69   : > { %614 = vst [vmem:[%s2421_s29 + $0x298] sm:$0xff] %v613_v19  ;;  %v615_v20 = vld [vmem:[%s2416_s28 + $0xa80] sm:$0xff] }
  0x6a   : > { %v617_v21 = vld [vmem:[%s2416_s28 + $0xaa0] sm:$0xff]  ;;  %616 = vst [vmem:[%s2421_s29 + $0x2a0] sm:$0xff] %v615_v20 }
  0x6b   : > { %v619_v22 = vld [vmem:[%s2416_s28 + $0xac0] sm:$0xff]  ;;  %618 = vst [vmem:[%s2421_s29 + $0x2a8] sm:$0xff] %v617_v21 }
  0x6c   : > { %620 = vst [vmem:[%s2421_s29 + $0x2b0] sm:$0xff] %v619_v22  ;;  %v621_v23 = vld [vmem:[%s2416_s28 + $0xae0] sm:$0xff] }
  0x6d   : > { %v623_v24 = vld [vmem:[%s2416_s28 + $0xb00] sm:$0xff]  ;;  %622 = vst [vmem:[%s2421_s29 + $0x2b8] sm:$0xff] %v621_v23 }
  0x6e   : > { %v625_v25 = vld [vmem:[%s2416_s28 + $0xb20] sm:$0xff]  ;;  %624 = vst [vmem:[%s2421_s29 + $0x2c0] sm:$0xff] %v623_v24 }
  0x6f   : > { %626 = vst [vmem:[%s2421_s29 + $0x2c8] sm:$0xff] %v625_v25  ;;  %v627_v26 = vld [vmem:[%s2416_s28 + $0xb40] sm:$0xff] }
  0x70   : > { %v629_v27 = vld [vmem:[%s2416_s28 + $0xb60] sm:$0xff]  ;;  %628 = vst [vmem:[%s2421_s29 + $0x2d0] sm:$0xff] %v627_v26 }
  0x71   : > { %v631_v28 = vld [vmem:[%s2416_s28 + $0xb80] sm:$0xff]  ;;  %630 = vst [vmem:[%s2421_s29 + $0x2d8] sm:$0xff] %v629_v27 }
  0x72   : > { %632 = vst [vmem:[%s2421_s29 + $0x2e0] sm:$0xff] %v631_v28  ;;  %v633_v29 = vld [vmem:[%s2416_s28 + $0xba0] sm:$0xff] }
  0x73   : > { %v635_v30 = vld [vmem:[%s2416_s28 + $0xbc0] sm:$0xff]  ;;  %634 = vst [vmem:[%s2421_s29 + $0x2e8] sm:$0xff] %v633_v29 }
  0x74   : > { %v637_v31 = vld [vmem:[%s2416_s28 + $0xbe0] sm:$0xff]  ;;  %636 = vst [vmem:[%s2421_s29 + $0x2f0] sm:$0xff] %v635_v30 }
  0x75   : > { %638 = vst [vmem:[%s2421_s29 + $0x2f8] sm:$0xff] %v637_v31  ;;  %v639_v32 = vld [vmem:[%s2416_s28 + $0xc00] sm:$0xff] }
  0x76   : > { %v641_v33 = vld [vmem:[%s2416_s28 + $0xc20] sm:$0xff]  ;;  %640 = vst [vmem:[%s2421_s29 + $0x300] sm:$0xff] %v639_v32 }
  0x77   : > { %v643_v34 = vld [vmem:[%s2416_s28 + $0xc40] sm:$0xff]  ;;  %642 = vst [vmem:[%s2421_s29 + $0x308] sm:$0xff] %v641_v33 }
  0x78   : > { %644 = vst [vmem:[%s2421_s29 + $0x310] sm:$0xff] %v643_v34  ;;  %v645_v35 = vld [vmem:[%s2416_s28 + $0xc60] sm:$0xff] }
  0x79   : > { %v647_v36 = vld [vmem:[%s2416_s28 + $0xc80] sm:$0xff]  ;;  %646 = vst [vmem:[%s2421_s29 + $0x318] sm:$0xff] %v645_v35 }
  0x7a   : > { %v649_v37 = vld [vmem:[%s2416_s28 + $0xca0] sm:$0xff]  ;;  %648 = vst [vmem:[%s2421_s29 + $0x320] sm:$0xff] %v647_v36 }
  0x7b   : > { %650 = vst [vmem:[%s2421_s29 + $0x328] sm:$0xff] %v649_v37  ;;  %v651_v38 = vld [vmem:[%s2416_s28 + $0xcc0] sm:$0xff] }
  0x7c   : > { %v653_v39 = vld [vmem:[%s2416_s28 + $0xce0] sm:$0xff]  ;;  %652 = vst [vmem:[%s2421_s29 + $0x330] sm:$0xff] %v651_v38 }
  0x7d   : > { %v655_v40 = vld [vmem:[%s2416_s28 + $0xd00] sm:$0xff]  ;;  %654 = vst [vmem:[%s2421_s29 + $0x338] sm:$0xff] %v653_v39 }
  0x7e   : > { %656 = vst [vmem:[%s2421_s29 + $0x340] sm:$0xff] %v655_v40  ;;  %v657_v41 = vld [vmem:[%s2416_s28 + $0xd20] sm:$0xff] }
  0x7f   : > { %v659_v42 = vld [vmem:[%s2416_s28 + $0xd40] sm:$0xff]  ;;  %658 = vst [vmem:[%s2421_s29 + $0x348] sm:$0xff] %v657_v41 }
  0x80   : > { %v661_v43 = vld [vmem:[%s2416_s28 + $0xd60] sm:$0xff]  ;;  %660 = vst [vmem:[%s2421_s29 + $0x350] sm:$0xff] %v659_v42 }
  0x81   : > { %662 = vst [vmem:[%s2421_s29 + $0x358] sm:$0xff] %v661_v43  ;;  %v663_v44 = vld [vmem:[%s2416_s28 + $0xd80] sm:$0xff] }
  0x82   : > { %v665_v45 = vld [vmem:[%s2416_s28 + $0xda0] sm:$0xff]  ;;  %664 = vst [vmem:[%s2421_s29 + $0x360] sm:$0xff] %v663_v44 }
  0x83   : > { %v667_v46 = vld [vmem:[%s2416_s28 + $0xdc0] sm:$0xff]  ;;  %666 = vst [vmem:[%s2421_s29 + $0x368] sm:$0xff] %v665_v45 }
  0x84   : > { %668 = vst [vmem:[%s2421_s29 + $0x370] sm:$0xff] %v667_v46  ;;  %v669_v47 = vld [vmem:[%s2416_s28 + $0xde0] sm:$0xff] }
  0x85   : > { %v671_v48 = vld [vmem:[%s2416_s28 + $0xe00] sm:$0xff]  ;;  %670 = vst [vmem:[%s2421_s29 + $0x378] sm:$0xff] %v669_v47 }
  0x86   : > { %v673_v49 = vld [vmem:[%s2416_s28 + $0xe20] sm:$0xff]  ;;  %672 = vst [vmem:[%s2421_s29 + $0x380] sm:$0xff] %v671_v48 }
  0x87   : > { %674 = vst [vmem:[%s2421_s29 + $0x388] sm:$0xff] %v673_v49  ;;  %v675_v50 = vld [vmem:[%s2416_s28 + $0xe40] sm:$0xff] }
  0x88   : > { %v677_v51 = vld [vmem:[%s2416_s28 + $0xe60] sm:$0xff]  ;;  %676 = vst [vmem:[%s2421_s29 + $0x390] sm:$0xff] %v675_v50 }
  0x89   : > { %v679_v52 = vld [vmem:[%s2416_s28 + $0xe80] sm:$0xff]  ;;  %678 = vst [vmem:[%s2421_s29 + $0x398] sm:$0xff] %v677_v51 }
  0x8a   : > { %680 = vst [vmem:[%s2421_s29 + $0x3a0] sm:$0xff] %v679_v52  ;;  %v681_v53 = vld [vmem:[%s2416_s28 + $0xea0] sm:$0xff] }
  0x8b   : > { %v683_v54 = vld [vmem:[%s2416_s28 + $0xec0] sm:$0xff]  ;;  %682 = vst [vmem:[%s2421_s29 + $0x3a8] sm:$0xff] %v681_v53 }
  0x8c   : > { %v685_v55 = vld [vmem:[%s2416_s28 + $0xee0] sm:$0xff]  ;;  %684 = vst [vmem:[%s2421_s29 + $0x3b0] sm:$0xff] %v683_v54 }
  0x8d   : > { %686 = vst [vmem:[%s2421_s29 + $0x3b8] sm:$0xff] %v685_v55  ;;  %v687_v56 = vld [vmem:[%s2416_s28 + $0xf00] sm:$0xff] }
  0x8e   : > { %v689_v57 = vld [vmem:[%s2416_s28 + $0xf20] sm:$0xff]  ;;  %688 = vst [vmem:[%s2421_s29 + $0x3c0] sm:$0xff] %v687_v56 }
  0x8f   : > { %v691_v58 = vld [vmem:[%s2416_s28 + $0xf40] sm:$0xff]  ;;  %690 = vst [vmem:[%s2421_s29 + $0x3c8] sm:$0xff] %v689_v57 }
  0x90   : > { %692 = vst [vmem:[%s2421_s29 + $0x3d0] sm:$0xff] %v691_v58  ;;  %v693_v59 = vld [vmem:[%s2416_s28 + $0xf60] sm:$0xff] }
  0x91   : > { %v695_v60 = vld [vmem:[%s2416_s28 + $0xf80] sm:$0xff]  ;;  %694 = vst [vmem:[%s2421_s29 + $0x3d8] sm:$0xff] %v693_v59 }
  0x92   : > { %v697_v61 = vld [vmem:[%s2416_s28 + $0xfa0] sm:$0xff]  ;;  %696 = vst [vmem:[%s2421_s29 + $0x3e0] sm:$0xff] %v695_v60 }
  0x93   : > { %698 = vst [vmem:[%s2421_s29 + $0x3e8] sm:$0xff] %v697_v61  ;;  %v699_v62 = vld [vmem:[%s2416_s28 + $0xfc0] sm:$0xff] }
  0x94   : > { %v701_v63 = vld [vmem:[%s2416_s28 + $0xfe0] sm:$0xff]  ;;  %700 = vst [vmem:[%s2421_s29 + $0x3f0] sm:$0xff] %v699_v62 }
  0x95   : > { %702 = vst [vmem:[%s2421_s29 + $0x3f8] sm:$0xff] %v701_v63 }
  0x96 PF: > { %p1913_p8 = scmp.ge.s32.totalorder %s2346_s16, 1  ;;  %p715_p9 = scmp.lt.s32.totalorder %s2346_s16, 5 }
  0x98   : > { %p716_p10 = pnand %p1913_p8, %p715_p9 }
  0x99   : > { %s722_s30 = sand.u32 (!%p716_p10), 1, %s2330_s12   ;;  %v2682_v0 = vld [vmem:[%s2900_s0] sm:$0xff] (!%p716_p10)  ;;  %v2692_v2 = vld [vmem:[%s2900_s0 + $0x10] sm:$0xff] (!%p716_p10)  ;;  %s1916_s4 = sshll.u32 (!%p716_p10), %s2338_s14, 1 }
  0x9a   : > { %719 = sbr.rel (%p716_p10) target bundleno = 516 (0x204), region = 66  ;;  %v2687_v1 = vld [vmem:[%s2900_s0 + $0x20] sm:$0xff] (!%p716_p10)  ;;  %s1914_s10 = sshll.u32 (!%p716_p10), %s722_s30, 10  ;;  %v2703_v5 = vld [vmem:[%s2900_s0 + $0x30] sm:$0xff] (!%p716_p10) }
  0x9b   : > { %v1917_v3 = vcombine.low (!%p716_p10), %v2682_v0, %v2687_v1  ;;  %v1918_v4 = vcombine.high (!%p716_p10), %v2682_v0, %v2687_v1  ;;  %v1921_v6 = vcombine.low (!%p716_p10), %v2692_v2, %v2703_v5  ;;  %v1922_v7 = vcombine.high (!%p716_p10), %v2692_v2, %v2703_v5  ;;  %s2709_s19 = scalar_lea.vmem (!%p716_p10), [#allocation2], %s1914_s10  ;;  %p763_p11 = scmp.lt.s32.totalorder (!%p716_p10), %s1916_s4, 7 }
  0x9c   : > { %v2116_v8 = vld [vmem:[%s2709_s19 + $0x4] ss:$8 sps:$4 sm:$0xff] (!%p716_p10)   ;;  %v2120_v10 = vld [vmem:[%s2709_s19] ss:$8 sps:$4 sm:$0xff] (!%p716_p10)   ;;  %v2122_v12 = vld [vmem:[%s2709_s19 + $0x14] ss:$8 sps:$4 sm:$0xff] (!%p716_p10)  }
  0x9d   : > { %1629 = vmatprep.mubr.bf16.mxu1 (!%p716_p10), %v1918_v4  ;;  %v2118_v9 = vld [vmem:[%s2709_s19 + $0x204] ss:$8 sps:$4 sm:$0xff] (!%p716_p10)   ;;  %1715 = vmatprep.mubr.bf16.mxu0 (!%p716_p10), %v1922_v7  ;;  %v2121_v11 = vld [vmem:[%s2709_s19 + $0x200] ss:$8 sps:$4 sm:$0xff] (!%p716_p10)   ;;  %v2124_v13 = vld [vmem:[%s2709_s19 + $0x214] ss:$8 sps:$4 sm:$0xff] (!%p716_p10)  }
  0x9e   : > { %1597 = vmatprep.subr.bf16.mxu1 (!%p716_p10), %v2116_v8  ;;  %1683 = vmatprep.subr.bf16.mxu0 (!%p716_p10), %v2118_v9  ;;  %v2126_v14 = vld [vmem:[%s2709_s19 + $0x10] ss:$8 sps:$4 sm:$0xff] (!%p716_p10)   ;;  %v2128_v16 = vld [vmem:[%s2709_s19 + $0x24] ss:$8 sps:$4 sm:$0xff] (!%p716_p10)   ;;  %v2132_v18 = vld [vmem:[%s2709_s19 + $0x20] ss:$8 sps:$4 sm:$0xff] (!%p716_p10)  }
  0x9f   : > { %1598 = vmatpush1.bf16.msra.mxu1 (!%p716_p10), %v2120_v10  ;;  %1684 = vmatpush1.bf16.msra.mxu0 (!%p716_p10), %v2121_v11  ;;  %v2127_v15 = vld [vmem:[%s2709_s19 + $0x210] ss:$8 sps:$4 sm:$0xff] (!%p716_p10)   ;;  %v2130_v17 = vld [vmem:[%s2709_s19 + $0x224] ss:$8 sps:$4 sm:$0xff] (!%p716_p10)   ;;  %v2133_v19 = vld [vmem:[%s2709_s19 + $0x220] ss:$8 sps:$4 sm:$0xff] (!%p716_p10)  }
  0xa0   : > { %1599 = vmatprep.subr.bf16.mxu1 (!%p716_p10), %v2122_v12  ;;  %1685 = vmatprep.subr.bf16.mxu0 (!%p716_p10), %v2124_v13  ;;  %v2134_v20 = vld [vmem:[%s2709_s19 + $0x34] ss:$8 sps:$4 sm:$0xff] (!%p716_p10)   ;;  %v2138_v22 = vld [vmem:[%s2709_s19 + $0x30] ss:$8 sps:$4 sm:$0xff] (!%p716_p10)   ;;  %v2140_v24 = vld [vmem:[%s2709_s19 + $0x44] ss:$8 sps:$4 sm:$0xff] (!%p716_p10)  }
  0xa1   : > { %v2136_v21 = vld [vmem:[%s2709_s19 + $0x234] ss:$8 sps:$4 sm:$0xff]   ;;  %v2139_v23 = vld [vmem:[%s2709_s19 + $0x230] ss:$8 sps:$4 sm:$0xff]   ;;  %v2142_v25 = vld [vmem:[%s2709_s19 + $0x244] ss:$8 sps:$4 sm:$0xff]  }
  0xa2   : > { %v2144_v26 = vld [vmem:[%s2709_s19 + $0x40] ss:$8 sps:$4 sm:$0xff]   ;;  %v2146_v28 = vld [vmem:[%s2709_s19 + $0x54] ss:$8 sps:$4 sm:$0xff]   ;;  %v2150_v30 = vld [vmem:[%s2709_s19 + $0x50] ss:$8 sps:$4 sm:$0xff]  }
  0xa3   : > { %1600 = vmatpush1.bf16.msra.mxu1 %v2126_v14  ;;  %1686 = vmatpush1.bf16.msra.mxu0 %v2127_v15  ;;  %v2145_v27 = vld [vmem:[%s2709_s19 + $0x240] ss:$8 sps:$4 sm:$0xff]   ;;  %v2148_v29 = vld [vmem:[%s2709_s19 + $0x254] ss:$8 sps:$4 sm:$0xff]   ;;  %v2151_v31 = vld [vmem:[%s2709_s19 + $0x250] ss:$8 sps:$4 sm:$0xff]  }
  0xa4   : > { %1601 = vmatprep.subr.bf16.mxu1 %v2128_v16  ;;  %1687 = vmatprep.subr.bf16.mxu0 %v2130_v17  ;;  %v2152_v32 = vld [vmem:[%s2709_s19 + $0x64] ss:$8 sps:$4 sm:$0xff]   ;;  %v2156_v34 = vld [vmem:[%s2709_s19 + $0x60] ss:$8 sps:$4 sm:$0xff]   ;;  %v2158_v36 = vld [vmem:[%s2709_s19 + $0x74] ss:$8 sps:$4 sm:$0xff]  }
  0xa5   : > { %v2154_v33 = vld [vmem:[%s2709_s19 + $0x264] ss:$8 sps:$4 sm:$0xff]   ;;  %v2157_v35 = vld [vmem:[%s2709_s19 + $0x260] ss:$8 sps:$4 sm:$0xff]   ;;  %v2160_v37 = vld [vmem:[%s2709_s19 + $0x274] ss:$8 sps:$4 sm:$0xff]  }
  0xa6   : > { %v2162_v38 = vld [vmem:[%s2709_s19 + $0x70] ss:$8 sps:$4 sm:$0xff]   ;;  %v2164_v40 = vld [vmem:[%s2709_s19 + $0x84] ss:$8 sps:$4 sm:$0xff]   ;;  %v2168_v42 = vld [vmem:[%s2709_s19 + $0x80] ss:$8 sps:$4 sm:$0xff]  }
  0xa7   : > { %1602 = vmatpush1.bf16.msra.mxu1 %v2132_v18  ;;  %1688 = vmatpush1.bf16.msra.mxu0 %v2133_v19  ;;  %v2163_v39 = vld [vmem:[%s2709_s19 + $0x270] ss:$8 sps:$4 sm:$0xff]   ;;  %v2166_v41 = vld [vmem:[%s2709_s19 + $0x284] ss:$8 sps:$4 sm:$0xff]   ;;  %v2169_v43 = vld [vmem:[%s2709_s19 + $0x280] ss:$8 sps:$4 sm:$0xff]  }
  0xa8   : > { %1603 = vmatprep.subr.bf16.mxu1 %v2134_v20  ;;  %1689 = vmatprep.subr.bf16.mxu0 %v2136_v21  ;;  %v2170_v44 = vld [vmem:[%s2709_s19 + $0x94] ss:$8 sps:$4 sm:$0xff]   ;;  %v2174_v46 = vld [vmem:[%s2709_s19 + $0x90] ss:$8 sps:$4 sm:$0xff]   ;;  %v2176_v48 = vld [vmem:[%s2709_s19 + $0xa4] ss:$8 sps:$4 sm:$0xff]  }
  0xa9   : > { %v2172_v45 = vld [vmem:[%s2709_s19 + $0x294] ss:$8 sps:$4 sm:$0xff]   ;;  %v2175_v47 = vld [vmem:[%s2709_s19 + $0x290] ss:$8 sps:$4 sm:$0xff]   ;;  %v2178_v49 = vld [vmem:[%s2709_s19 + $0x2a4] ss:$8 sps:$4 sm:$0xff]  }
  0xaa   : > { %v2180_v50 = vld [vmem:[%s2709_s19 + $0xa0] ss:$8 sps:$4 sm:$0xff]   ;;  %v2182_v52 = vld [vmem:[%s2709_s19 + $0xb4] ss:$8 sps:$4 sm:$0xff]   ;;  %v2186_v54 = vld [vmem:[%s2709_s19 + $0xb0] ss:$8 sps:$4 sm:$0xff]  }
  0xab   : > { %1604 = vmatpush1.bf16.msra.mxu1 %v2138_v22  ;;  %1690 = vmatpush1.bf16.msra.mxu0 %v2139_v23  ;;  %v2181_v51 = vld [vmem:[%s2709_s19 + $0x2a0] ss:$8 sps:$4 sm:$0xff]   ;;  %v2184_v53 = vld [vmem:[%s2709_s19 + $0x2b4] ss:$8 sps:$4 sm:$0xff]   ;;  %v2187_v55 = vld [vmem:[%s2709_s19 + $0x2b0] ss:$8 sps:$4 sm:$0xff]  }
  0xac   : > { %1605 = vmatprep.subr.bf16.mxu1 %v2140_v24  ;;  %1691 = vmatprep.subr.bf16.mxu0 %v2142_v25  ;;  %v2188_v56 = vld [vmem:[%s2709_s19 + $0xc4] ss:$8 sps:$4 sm:$0xff]   ;;  %v2192_v58 = vld [vmem:[%s2709_s19 + $0xc0] ss:$8 sps:$4 sm:$0xff]   ;;  %v2194_v60 = vld [vmem:[%s2709_s19 + $0xd4] ss:$8 sps:$4 sm:$0xff]  }
  0xad   : > { %v2190_v57 = vld [vmem:[%s2709_s19 + $0x2c4] ss:$8 sps:$4 sm:$0xff]   ;;  %v2193_v59 = vld [vmem:[%s2709_s19 + $0x2c0] ss:$8 sps:$4 sm:$0xff]   ;;  %v2196_v61 = vld [vmem:[%s2709_s19 + $0x2d4] ss:$8 sps:$4 sm:$0xff]  }
  0xae   : > { %v2198_v62 = vld [vmem:[%s2709_s19 + $0xd0] ss:$8 sps:$4 sm:$0xff]   ;;  %v2200_v4 = vld [vmem:[%s2709_s19 + $0xe4] ss:$8 sps:$4 sm:$0xff]   ;;  %v2204_v8 = vld [vmem:[%s2709_s19 + $0xe0] ss:$8 sps:$4 sm:$0xff]  }
  0xaf   : > { %1606 = vmatpush1.bf16.msra.mxu1 %v2144_v26  ;;  %1692 = vmatpush1.bf16.msra.mxu0 %v2145_v27  ;;  %v2199_v63 = vld [vmem:[%s2709_s19 + $0x2d0] ss:$8 sps:$4 sm:$0xff]   ;;  %v2202_v7 = vld [vmem:[%s2709_s19 + $0x2e4] ss:$8 sps:$4 sm:$0xff]   ;;  %v2205_v9 = vld [vmem:[%s2709_s19 + $0x2e0] ss:$8 sps:$4 sm:$0xff]  }
  0xb0   : > { %1607 = vmatprep.subr.bf16.mxu1 %v2146_v28  ;;  %1693 = vmatprep.subr.bf16.mxu0 %v2148_v29  ;;  %v2206_v10 = vld [vmem:[%s2709_s19 + $0xf4] ss:$8 sps:$4 sm:$0xff]   ;;  %v2210_v12 = vld [vmem:[%s2709_s19 + $0xf0] ss:$8 sps:$4 sm:$0xff]   ;;  %v2214_v14 = vld [vmem:[%s2709_s19 + $0x104] ss:$8 sps:$4 sm:$0xff]  }
  0xb1   : > { %v2208_v11 = vld [vmem:[%s2709_s19 + $0x2f4] ss:$8 sps:$4 sm:$0xff]   ;;  %v2211_v13 = vld [vmem:[%s2709_s19 + $0x2f0] ss:$8 sps:$4 sm:$0xff]   ;;  %v2217_v15 = vld [vmem:[%s2709_s19 + $0x304] ss:$8 sps:$4 sm:$0xff]  }
  0xb2   : > { %v2780_v16 = vld [vmem:[%s2900_s0 + $0x8] sm:$0xff]  ;;  %v2220_v20 = vld [vmem:[%s2709_s19 + $0x114] ss:$8 sps:$4 sm:$0xff]   ;;  %v2218_v23 = vld [vmem:[%s2709_s19 + $0x110] ss:$8 sps:$4 sm:$0xff]   ;;  %s2912_s4 = smov (!%p763_p11, %s1916_s4), 7 }
  0xb3   : > { %1608 = vmatpush1.bf16.msra.mxu1 %v2150_v30  ;;  %1694 = vmatpush1.bf16.msra.mxu0 %v2151_v31  ;;  %v2785_v17 = vld [vmem:[%s2900_s0 + $0x28] sm:$0xff]  ;;  %v2223_v21 = vld [vmem:[%s2709_s19 + $0x314] ss:$8 sps:$4 sm:$0xff]   ;;  %v2221_v24 = vld [vmem:[%s2709_s19 + $0x310] ss:$8 sps:$4 sm:$0xff]   ;;  %s765_s7 = scalar_lea.vmem %s2902_s2, %s2912_s4  ;;  %s1915_s8 = sshll.u32 %s722_s30, 5 }
  0xb4   : > { %1609 = vmatprep.subr.bf16.mxu1 %v2152_v32  ;;  %1695 = vmatprep.subr.bf16.mxu0 %v2154_v33  ;;  %v2212_v18 = vld [vmem:[%s2709_s19 + $0x100] ss:$8 sps:$4 sm:$0xff]   ;;  %v1920_v22 = vcombine.high %v2780_v16, %v2785_v17  ;;  %v2226_v25 = vld [vmem:[%s2709_s19 + $0x124] ss:$8 sps:$4 sm:$0xff]   ;;  %v2232_v2 = vld [vmem:[%s2709_s19 + $0x134] ss:$8 sps:$4 sm:$0xff]  }
  0xb5   : > { %v2215_v19 = vld [vmem:[%s2709_s19 + $0x300] ss:$8 sps:$4 sm:$0xff]   ;;  %v2229_v26 = vld [vmem:[%s2709_s19 + $0x324] ss:$8 sps:$4 sm:$0xff]   ;;  %v2230_v5 = vld [vmem:[%s2709_s19 + $0x130] ss:$8 sps:$4 sm:$0xff]  }
  0xb6   : > { %v2224_v0 = vld [vmem:[%s2709_s19 + $0x120] ss:$8 sps:$4 sm:$0xff]   ;;  %v2238_v27 = vld [vmem:[%s2709_s19 + $0x144] ss:$8 sps:$4 sm:$0xff]   ;;  %v2244_v31 = vld [vmem:[%s2709_s19 + $0x154] ss:$8 sps:$4 sm:$0xff]  }
  0xb7   : > { %1610 = vmatpush1.bf16.msra.mxu1 %v2156_v34  ;;  %1696 = vmatpush1.bf16.msra.mxu0 %v2157_v35  ;;  %v2227_v1 = vld [vmem:[%s2709_s19 + $0x320] ss:$8 sps:$4 sm:$0xff]   ;;  %v2241_v28 = vld [vmem:[%s2709_s19 + $0x344] ss:$8 sps:$4 sm:$0xff]   ;;  %v2247_v32 = vld [vmem:[%s2709_s19 + $0x354] ss:$8 sps:$4 sm:$0xff]  }
  0xb8   : > { %1611 = vmatprep.subr.bf16.mxu1 %v2158_v36  ;;  %1697 = vmatprep.subr.bf16.mxu0 %v2160_v37  ;;  %v2236_v29 = vld [vmem:[%s2709_s19 + $0x140] ss:$8 sps:$4 sm:$0xff]   ;;  %v2242_v33 = vld [vmem:[%s2709_s19 + $0x150] ss:$8 sps:$4 sm:$0xff]   ;;  %v2250_v36 = vld [vmem:[%s2709_s19 + $0x164] ss:$8 sps:$4 sm:$0xff]  }
  0xb9   : > { %v2239_v30 = vld [vmem:[%s2709_s19 + $0x340] ss:$8 sps:$4 sm:$0xff]   ;;  %v2819_v34 = vld [vmem:[%s2900_s0 + $0x18] sm:$0xff]  ;;  %v2253_v37 = vld [vmem:[%s2709_s19 + $0x364] ss:$8 sps:$4 sm:$0xff]   ;;  %s753_s9 = scalar_lea.vmem [#allocation3], %s1915_s8 }
  0xba   : > { %v2245_v35 = vld [vmem:[%s2709_s19 + $0x350] ss:$8 sps:$4 sm:$0xff]   ;;  %s2059_s12 = sshll.u32 (%p2403_p6), %s2338_s14, 4 }
  0xbb   : > { %1612 = vmatpush1.bf16.msra.mxu1 %v2162_v38  ;;  %1698 = vmatpush1.bf16.msra.mxu0 %v2163_v39  ;;  %v2827_v38 = vld [vmem:[%s2900_s0 + $0x38] sm:$0xff]  ;;  %s1789_s11 = scalar_lea.vmem (%p2403_p6), %s2903_s3, %s2059_s12 }
  0xbc   : > { %1613 = vmatprep.subr.bf16.mxu1 %v2164_v40  ;;  %1699 = vmatprep.subr.bf16.mxu0 %v2166_v41  ;;  %v1924_v39 = vcombine.high %v2819_v34, %v2827_v38  ;;  %v2248_v40 = vld [vmem:[%s2709_s19 + $0x160] ss:$8 sps:$4 sm:$0xff]  }
  0xbd   : > { %v2251_v41 = vld [vmem:[%s2709_s19 + $0x360] ss:$8 sps:$4 sm:$0xff]  }
  0xbf   : > { %1614 = vmatpush1.bf16.msra.mxu1 %v2168_v42  ;;  %1700 = vmatpush1.bf16.msra.mxu0 %v2169_v43  ;;  %v2256_v42 = vld [vmem:[%s2709_s19 + $0x174] ss:$8 sps:$4 sm:$0xff]  }
  0xc0   : > { %1615 = vmatprep.subr.bf16.mxu1 %v2170_v44  ;;  %1701 = vmatprep.subr.bf16.mxu0 %v2172_v45  ;;  %v2259_v43 = vld [vmem:[%s2709_s19 + $0x374] ss:$8 sps:$4 sm:$0xff]   ;;  %v2254_v44 = vld [vmem:[%s2709_s19 + $0x170] ss:$8 sps:$4 sm:$0xff]  }
  0xc1   : > { %v2257_v45 = vld [vmem:[%s2709_s19 + $0x370] ss:$8 sps:$4 sm:$0xff]  }
  0xc3   : > { %1616 = vmatpush1.bf16.msra.mxu1 %v2174_v46  ;;  %1702 = vmatpush1.bf16.msra.mxu0 %v2175_v47  ;;  %v2262_v46 = vld [vmem:[%s2709_s19 + $0x184] ss:$8 sps:$4 sm:$0xff]  }
  0xc4   : > { %1617 = vmatprep.subr.bf16.mxu1 %v2176_v48  ;;  %1703 = vmatprep.subr.bf16.mxu0 %v2178_v49  ;;  %v2265_v47 = vld [vmem:[%s2709_s19 + $0x384] ss:$8 sps:$4 sm:$0xff]   ;;  %v2260_v48 = vld [vmem:[%s2709_s19 + $0x180] ss:$8 sps:$4 sm:$0xff]  }
  0xc5   : > { %v2263_v49 = vld [vmem:[%s2709_s19 + $0x380] ss:$8 sps:$4 sm:$0xff]  }
  0xc7   : > { %1618 = vmatpush1.bf16.msra.mxu1 %v2180_v50  ;;  %1704 = vmatpush1.bf16.msra.mxu0 %v2181_v51  ;;  %v2268_v50 = vld [vmem:[%s2709_s19 + $0x194] ss:$8 sps:$4 sm:$0xff]  }
  0xc8   : > { %1619 = vmatprep.subr.bf16.mxu1 %v2182_v52  ;;  %1705 = vmatprep.subr.bf16.mxu0 %v2184_v53  ;;  %v2271_v51 = vld [vmem:[%s2709_s19 + $0x394] ss:$8 sps:$4 sm:$0xff]   ;;  %v2266_v52 = vld [vmem:[%s2709_s19 + $0x190] ss:$8 sps:$4 sm:$0xff]  }
  0xc9   : > { %v2269_v53 = vld [vmem:[%s2709_s19 + $0x390] ss:$8 sps:$4 sm:$0xff]  }
  0xcb   : > { %1620 = vmatpush1.bf16.msra.mxu1 %v2186_v54  ;;  %1706 = vmatpush1.bf16.msra.mxu0 %v2187_v55  ;;  %v2274_v54 = vld [vmem:[%s2709_s19 + $0x1a4] ss:$8 sps:$4 sm:$0xff]  }
  0xcc   : > { %1621 = vmatprep.subr.bf16.mxu1 %v2188_v56  ;;  %1707 = vmatprep.subr.bf16.mxu0 %v2190_v57  ;;  %v2277_v55 = vld [vmem:[%s2709_s19 + $0x3a4] ss:$8 sps:$4 sm:$0xff]   ;;  %v2272_v56 = vld [vmem:[%s2709_s19 + $0x1a0] ss:$8 sps:$4 sm:$0xff]  }
  0xcd   : > { %v2275_v57 = vld [vmem:[%s2709_s19 + $0x3a0] ss:$8 sps:$4 sm:$0xff]  }
  0xcf   : > { %1622 = vmatpush1.bf16.msra.mxu1 %v2192_v58  ;;  %1708 = vmatpush1.bf16.msra.mxu0 %v2193_v59  ;;  %v2280_v58 = vld [vmem:[%s2709_s19 + $0x1b4] ss:$8 sps:$4 sm:$0xff]  }
  0xd0   : > { %1623 = vmatprep.subr.bf16.mxu1 %v2194_v60  ;;  %1709 = vmatprep.subr.bf16.mxu0 %v2196_v61  ;;  %v2283_v59 = vld [vmem:[%s2709_s19 + $0x3b4] ss:$8 sps:$4 sm:$0xff]   ;;  %v2278_v60 = vld [vmem:[%s2709_s19 + $0x1b0] ss:$8 sps:$4 sm:$0xff]  }
  0xd1   : > { %v2281_v61 = vld [vmem:[%s2709_s19 + $0x3b0] ss:$8 sps:$4 sm:$0xff]  }
  0xd3   : > { %1624 = vmatpush1.bf16.msra.mxu1 %v2198_v62  ;;  %1710 = vmatpush1.bf16.msra.mxu0 %v2199_v63  ;;  %v2286_v62 = vld [vmem:[%s2709_s19 + $0x1c4] ss:$8 sps:$4 sm:$0xff]  }
  0xd4   : > { %1625 = vmatprep.subr.bf16.mxu1 %v2200_v4  ;;  %1711 = vmatprep.subr.bf16.mxu0 %v2202_v7  ;;  %v2289_v63 = vld [vmem:[%s2709_s19 + $0x3c4] ss:$8 sps:$4 sm:$0xff]   ;;  %v2284_v4 = vld [vmem:[%s2709_s19 + $0x1c0] ss:$8 sps:$4 sm:$0xff]  }
  0xd5   : > { %v2287_v7 = vld [vmem:[%s2709_s19 + $0x3c0] ss:$8 sps:$4 sm:$0xff]  }
  0xd7   : > { %1626 = vmatpush1.bf16.msra.mxu1 %v2204_v8  ;;  %1712 = vmatpush1.bf16.msra.mxu0 %v2205_v9  ;;  %v2292_v8 = vld [vmem:[%s2709_s19 + $0x1d4] ss:$8 sps:$4 sm:$0xff]  }
  0xd8   : > { %1627 = vmatprep.subr.bf16.mxu1 %v2206_v10  ;;  %1713 = vmatprep.subr.bf16.mxu0 %v2208_v11  ;;  %v2295_v9 = vld [vmem:[%s2709_s19 + $0x3d4] ss:$8 sps:$4 sm:$0xff]   ;;  %v2290_v10 = vld [vmem:[%s2709_s19 + $0x1d0] ss:$8 sps:$4 sm:$0xff]  }
  0xd9   : > { %v2293_v11 = vld [vmem:[%s2709_s19 + $0x3d0] ss:$8 sps:$4 sm:$0xff]  }
  0xdb   : > { %1628 = vmatpush1.bf16.msra.mxu1 %v2210_v12  ;;  %1714 = vmatpush1.bf16.msra.mxu0 %v2211_v13  ;;  %v2298_v12 = vld [vmem:[%s2709_s19 + $0x1e4] ss:$8 sps:$4 sm:$0xff]  }
  0xdc   : > { %1640 = vmatprep.subr.bf16.mxu1 %v2214_v14  ;;  %1726 = vmatprep.subr.bf16.mxu0 %v2217_v15  ;;  %v2301_v13 = vld [vmem:[%s2709_s19 + $0x3e4] ss:$8 sps:$4 sm:$0xff]   ;;  %v2296_v14 = vld [vmem:[%s2709_s19 + $0x1e0] ss:$8 sps:$4 sm:$0xff]  }
  0xdd   : > { %v2299_v15 = vld [vmem:[%s2709_s19 + $0x3e0] ss:$8 sps:$4 sm:$0xff]  }
  0xde   : > { %1630 = vmatmul.mubr.bf16.vlgmr.msra.gmra.mrb[0].mxu1 %v1917_v3  ;;  %1716 = vmatmul.mubr.bf16.vlgmr.msra.gmra.mrb[0].mxu0 %v1921_v6  ;;  %v2235_v3 = vld [vmem:[%s2709_s19 + $0x334] ss:$8 sps:$4 sm:$0xff]   ;;  %v2233_v6 = vld [vmem:[%s2709_s19 + $0x330] ss:$8 sps:$4 sm:$0xff]  }
  0xdf   : > { %1641 = vmatpush1.bf16.msra.mxu1 %v2212_v18  ;;  %1727 = vmatpush1.bf16.msra.mxu0 %v2215_v19  ;;  %v2304_v18 = vld [vmem:[%s2709_s19 + $0x1f4] ss:$8 sps:$4 sm:$0xff]  }
  0xe0   : > { %1642 = vmatprep.subr.bf16.mxu1 %v2220_v20  ;;  %1728 = vmatprep.subr.bf16.mxu0 %v2223_v21  ;;  %v2307_v19 = vld [vmem:[%s2709_s19 + $0x3f4] ss:$8 sps:$4 sm:$0xff]   ;;  %v2302_v20 = vld [vmem:[%s2709_s19 + $0x1f0] ss:$8 sps:$4 sm:$0xff]  }
  0xe1   : > { %1672 = vmatprep.mubr.bf16.mxu1 %v1920_v22  ;;  %1758 = vmatprep.mubr.bf16.mxu0 %v1924_v39  ;;  %v2305_v21 = vld [vmem:[%s2709_s19 + $0x3f0] ss:$8 sps:$4 sm:$0xff]   ;;  %v1919_v22 = vcombine.low %v2780_v16, %v2785_v17 }
  0xe3   : > { %1643 = vmatpush1.bf16.msra.mxu1 %v2218_v23  ;;  %1729 = vmatpush1.bf16.msra.mxu0 %v2221_v24  ;;  %v1923_v23 = vcombine.low %v2819_v34, %v2827_v38  ;;  %v907_v24 = vlaneseq }
  0xe4   : > { %1644 = vmatprep.subr.bf16.mxu1 %v2226_v25  ;;  %1730 = vmatprep.subr.bf16.mxu0 %v2229_v26 }
  0xe5   : > { %v908_v25 = vshrl.u32 %v907_v24, 7 }
  0xe7   : > { %1645 = vmatpush1.bf16.msra.mxu1 %v2224_v0  ;;  %1731 = vmatpush1.bf16.msra.mxu0 %v2227_v1  ;;  %v909_v26 = vsub.s32 0, %v908_v25  ;;  %v905_v0 = vld [vmem:[%s765_s7] sm:$0x3]  ;;  %v913_v16 = vsub.s32 1, %v908_v25 }
  0xe8   : > { %1646 = vmatprep.subr.bf16.mxu1 %v2232_v2  ;;  %1732 = vmatprep.subr.bf16.mxu0 %v2235_v3 }
  0xe9   : > { %v910_v17 = vrot.slane %v905_v0, %v909_v26  ;;  %v914_v1 = vrot.slane %v905_v0, %v913_v16 }
  0xeb   : > { %1647 = vmatpush1.bf16.msra.mxu1 %v2230_v5  ;;  %1733 = vmatpush1.bf16.msra.mxu0 %v2233_v6 }
  0xec   : > { %1648 = vmatprep.subr.bf16.mxu1 %v2238_v27  ;;  %1734 = vmatprep.subr.bf16.mxu0 %v2241_v28 }
  0xef   : > { %1649 = vmatpush1.bf16.msra.mxu1 %v2236_v29  ;;  %1735 = vmatpush1.bf16.msra.mxu0 %v2239_v30 }
  0xf0   : > { %1650 = vmatprep.subr.bf16.mxu1 %v2244_v31  ;;  %1736 = vmatprep.subr.bf16.mxu0 %v2247_v32 }
  0xf3   : > { %1651 = vmatpush1.bf16.msra.mxu1 %v2242_v33  ;;  %1737 = vmatpush1.bf16.msra.mxu0 %v2245_v35 }
  0xf4   : > { %1652 = vmatprep.subr.bf16.mxu1 %v2250_v36  ;;  %1738 = vmatprep.subr.bf16.mxu0 %v2253_v37 }
  0xf7   : > { %1653 = vmatpush1.bf16.msra.mxu1 %v2248_v40  ;;  %1739 = vmatpush1.bf16.msra.mxu0 %v2251_v41 }
  0xf8   : > { %1654 = vmatprep.subr.bf16.mxu1 %v2256_v42  ;;  %1740 = vmatprep.subr.bf16.mxu0 %v2259_v43 }
  0xfb   : > { %1655 = vmatpush1.bf16.msra.mxu1 %v2254_v44  ;;  %1741 = vmatpush1.bf16.msra.mxu0 %v2257_v45 }
  0xfc   : > { %1656 = vmatprep.subr.bf16.mxu1 %v2262_v46  ;;  %1742 = vmatprep.subr.bf16.mxu0 %v2265_v47 }
  0xff   : > { %1657 = vmatpush1.bf16.msra.mxu1 %v2260_v48  ;;  %1743 = vmatpush1.bf16.msra.mxu0 %v2263_v49 }
 0x100   : > { %1658 = vmatprep.subr.bf16.mxu1 %v2268_v50  ;;  %1744 = vmatprep.subr.bf16.mxu0 %v2271_v51 }
 0x103   : > { %1659 = vmatpush1.bf16.msra.mxu1 %v2266_v52  ;;  %1745 = vmatpush1.bf16.msra.mxu0 %v2269_v53 }
 0x104   : > { %1660 = vmatprep.subr.bf16.mxu1 %v2274_v54  ;;  %1746 = vmatprep.subr.bf16.mxu0 %v2277_v55 }
 0x107   : > { %1661 = vmatpush1.bf16.msra.mxu1 %v2272_v56  ;;  %1747 = vmatpush1.bf16.msra.mxu0 %v2275_v57 }
 0x108   : > { %1662 = vmatprep.subr.bf16.mxu1 %v2280_v58  ;;  %1748 = vmatprep.subr.bf16.mxu0 %v2283_v59 }
 0x10b   : > { %1663 = vmatpush1.bf16.msra.mxu1 %v2278_v60  ;;  %1749 = vmatpush1.bf16.msra.mxu0 %v2281_v61 }
 0x10c   : > { %1664 = vmatprep.subr.bf16.mxu1 %v2286_v62  ;;  %1750 = vmatprep.subr.bf16.mxu0 %v2289_v63 }
 0x10f   : > { %1665 = vmatpush1.bf16.msra.mxu1 %v2284_v4  ;;  %1751 = vmatpush1.bf16.msra.mxu0 %v2287_v7 }
 0x110   : > { %1666 = vmatprep.subr.bf16.mxu1 %v2292_v8  ;;  %1752 = vmatprep.subr.bf16.mxu0 %v2295_v9 }
 0x113   : > { %1667 = vmatpush1.bf16.msra.mxu1 %v2290_v10  ;;  %1753 = vmatpush1.bf16.msra.mxu0 %v2293_v11 }
 0x114   : > { %1668 = vmatprep.subr.bf16.mxu1 %v2298_v12  ;;  %1754 = vmatprep.subr.bf16.mxu0 %v2301_v13 }
 0x117   : > { %1669 = vmatpush1.bf16.msra.mxu1 %v2296_v14  ;;  %1755 = vmatpush1.bf16.msra.mxu0 %v2299_v15 }
 0x118   : > { %1670 = vmatprep.subr.bf16.mxu1 %v2304_v18  ;;  %1756 = vmatprep.subr.bf16.mxu0 %v2307_v19 }
 0x11b   : > { %1671 = vmatpush1.bf16.msra.mxu1 %v2302_v20  ;;  %1757 = vmatpush1.bf16.msra.mxu0 %v2305_v21 }
 0x11e   : > { %1673 = vmatmul.mubr.bf16.vlgmr.msra.gmra.mrb[0].mxu1 %v1919_v22  ;;  %1759 = vmatmul.mubr.bf16.vlgmr.msra.gmra.mrb[0].mxu0 %v1923_v23 }
 0x1f1   : > { %v1674_v2 = vpop.f32.mrb[0].mxu1  ;;  %v1760_v3 = vpop.f32.mrb[0].mxu0 }
 0x1f2   : > { %v2060_v5 = vadd.f32 %v1674_v2, %v910_v17  ;;  %v1676_v6 = vpop.f32.mrb[1].mxu1  ;;  %v1762_v27 = vpop.f32.mrb[1].mxu0 }
 0x1f3   : > { %v2062_v28 = vadd.f32 %v1676_v6, %v914_v1  ;;  %v1678_v29 = vpop.f32.mrb[2].mxu1  ;;  %v1764_v30 = vpop.f32.mrb[2].mxu0 }
 0x1f4   : > { %v2061_v31 = vadd.f32 %v2060_v5, %v1760_v3  ;;  %v2064_v32 = vadd.f32 %v1678_v29, %v910_v17  ;;  %v1680_v33 = vpop.f32.mrb[3].mxu1  ;;  %v1766_v34 = vpop.f32.mrb[3].mxu0 }
 0x1f5   : > { %v2063_v35 = vadd.f32 %v2062_v28, %v1762_v27  ;;  %v2066_v36 = vadd.f32 %v1680_v33, %v914_v1  ;;  %1783 = sbr.rel (!%p2403_p6) target bundleno = 516 (0x204), region = 74 }
 0x1f6   : > { %v1769_v37 = vmax.f32 %v2061_v31, 0.0  ;;  %v2065_v38 = vadd.f32 %v2064_v32, %v1764_v30 }
 0x1f7   : > { %v1770_v39 = vmax.f32 %v2063_v35, 0.0  ;;  %v2067_v40 = vadd.f32 %v2066_v36, %v1766_v34 }
 0x1f8   : > { %1773 = vst [vmem:[%s753_s9] sm:$0xff] %v1769_v37  ;;  %v1771_v41 = vmax.f32 %v2065_v38, 0.0 }
 0x1f9   : > { %1774 = vst [vmem:[%s753_s9 + $0x8] sm:$0xff] %v1770_v39  ;;  %v1772_v42 = vmax.f32 %v2067_v40, 0.0 }
 0x1fa   : > { %1775 = vst [vmem:[%s753_s9 + $0x10] sm:$0xff] %v1771_v41 }
 0x1fb   : > { %1776 = vst [vmem:[%s753_s9 + $0x18] sm:$0xff] %v1772_v42 }
 0x1ff   : > { %v1802_v43 = vld [vmem:[%s753_s9] sm:$0xff] }
 0x200   : > { %v1804_v44 = vld [vmem:[%s753_s9 + $0x8] sm:$0xff]  ;;  %1803 = vst [vmem:[%s1789_s11] sm:$0xff] %v1802_v43 }
 0x201   : > { %v1806_v45 = vld [vmem:[%s753_s9 + $0x10] sm:$0xff]  ;;  %1805 = vst [vmem:[%s1789_s11 + $0x8] sm:$0xff] %v1804_v44 }
 0x202   : > { %v1808_v46 = vld [vmem:[%s753_s9 + $0x18] sm:$0xff]  ;;  %1807 = vst [vmem:[%s1789_s11 + $0x40] sm:$0xff] %v1806_v45 }
 0x203   : > { %1809 = vst [vmem:[%s1789_s11 + $0x48] sm:$0xff] %v1808_v46 }
 0x204 PF: > { %s13_s16 = sadd.s32 1, %s2346_s16   ;;  %s2905_s12 = smov %s2334_s13 }
 0x205   : > { %p10_p12 = scmp.ge.s32.totalorder %s13_s16, 6   ;;  %s2906_s13 = smov %s2408_s22 }
 0x206   : > { %s2907_s14 = smov %s2342_s15  ;;  %s2908_s15 = smov %s2910_s17 }
 0x207   :  { %12 = sbr.rel (!%p10_p12) target bundleno = 3 (0x3), region = 134 }

// kernel: alexnet_forward.21
= control target key start
LH: loop header
LB: loop body
LE: loop exit
PB: predicated region body
PF: predicated region fallthrough
CT: control target
= control target key end

     0   :  { %s1222_s1 = inlined_call_operand.vmem [shape: bf16[1024,128], index: 1, kind: input, shape index: {}]   ;;  %s1223_s0 = inlined_call_operand.vmem [shape: bf16[16,1024], index: 0, kind: input, shape index: {}]   ;;  %s1224_s2 = inlined_call_operand.vmem [shape: f32[1,128], index: 2, kind: input, shape index: {}]   ;;  %s1225_s3 = inlined_call_operand.vmem [shape: f32[16,128], index: 3, kind: output, shape index: {}]  }
   0x1   :  { %v913_v0 = vld [vmem:[%s1222_s1 + $0x40] sm:$0xff]   ;;  %v917_v4 = vld [vmem:[%s1222_s1 + $0x48] sm:$0xff]   ;;  %v921_v8 = vld [vmem:[%s1222_s1 + $0x50] sm:$0xff]  }
   0x2   :  { %v914_v1 = vld [vmem:[%s1222_s1 + $0xc0] sm:$0xff]   ;;  %825 = vmatprep.subr.bf16.mxu0 %v913_v0  ;;  %v918_v5 = vld [vmem:[%s1222_s1 + $0xc8] sm:$0xff]   ;;  %v922_v9 = vld [vmem:[%s1222_s1 + $0xd0] sm:$0xff]  }
   0x3   :  { %v915_v2 = vld [vmem:[%s1222_s1] sm:$0xff]   ;;  %847 = vmatprep.subr.bf16.mxu1 %v914_v1  ;;  %v919_v6 = vld [vmem:[%s1222_s1 + $0x8] sm:$0xff]   ;;  %v923_v10 = vld [vmem:[%s1222_s1 + $0x10] sm:$0xff]  }
   0x4   :  { %v916_v3 = vld [vmem:[%s1222_s1 + $0x80] sm:$0xff]   ;;  %826 = vmatpush3.bf16.msra.mxu0 %v915_v2  ;;  %v920_v7 = vld [vmem:[%s1222_s1 + $0x88] sm:$0xff]   ;;  %v924_v11 = vld [vmem:[%s1222_s1 + $0x90] sm:$0xff]  }
   0x5   :  { %848 = vmatpush3.bf16.msra.mxu1 %v916_v3  ;;  %827 = vmatprep.subr.bf16.mxu0 %v917_v4  ;;  %v925_v12 = vld [vmem:[%s1222_s1 + $0x58] sm:$0xff]   ;;  %v929_v16 = vld [vmem:[%s1222_s1 + $0x60] sm:$0xff]   ;;  %v933_v20 = vld [vmem:[%s1222_s1 + $0x68] sm:$0xff]  }
   0x6   :  { %849 = vmatprep.subr.bf16.mxu1 %v918_v5  ;;  %v926_v13 = vld [vmem:[%s1222_s1 + $0xd8] sm:$0xff]   ;;  %v930_v17 = vld [vmem:[%s1222_s1 + $0xe0] sm:$0xff]   ;;  %v934_v21 = vld [vmem:[%s1222_s1 + $0xe8] sm:$0xff]  }
   0x7   :  { %v927_v14 = vld [vmem:[%s1222_s1 + $0x18] sm:$0xff]   ;;  %v931_v18 = vld [vmem:[%s1222_s1 + $0x20] sm:$0xff]   ;;  %v935_v22 = vld [vmem:[%s1222_s1 + $0x28] sm:$0xff]  }
   0x8   :  { %828 = vmatpush3.bf16.msra.mxu0 %v919_v6  ;;  %v928_v15 = vld [vmem:[%s1222_s1 + $0x98] sm:$0xff]   ;;  %v932_v19 = vld [vmem:[%s1222_s1 + $0xa0] sm:$0xff]   ;;  %v936_v23 = vld [vmem:[%s1222_s1 + $0xa8] sm:$0xff]  }
   0x9   :  { %850 = vmatpush3.bf16.msra.mxu1 %v920_v7  ;;  %829 = vmatprep.subr.bf16.mxu0 %v921_v8  ;;  %v937_v24 = vld [vmem:[%s1222_s1 + $0x70] sm:$0xff]   ;;  %v941_v28 = vld [vmem:[%s1222_s1 + $0x78] sm:$0xff]   ;;  %v15_v32 = vld [vmem:[%s1223_s0] sm:$0xff] }
   0xa   :  { %851 = vmatprep.subr.bf16.mxu1 %v922_v9  ;;  %v938_v25 = vld [vmem:[%s1222_s1 + $0xf0] sm:$0xff]   ;;  %v942_v29 = vld [vmem:[%s1222_s1 + $0xf8] sm:$0xff]   ;;  %v19_v33 = vld [vmem:[%s1223_s0 + $0x20] sm:$0xff] }
   0xb   :  { %v939_v26 = vld [vmem:[%s1222_s1 + $0x30] sm:$0xff]   ;;  %v943_v30 = vld [vmem:[%s1222_s1 + $0x38] sm:$0xff]   ;;  %v16_v34 = vld [vmem:[%s1223_s0 + $0x8] sm:$0xff]  ;;  %v753_v35 = vcombine.low %v15_v32, %v19_v33  ;;  %v754_v36 = vcombine.high %v15_v32, %v19_v33 }
   0xc   :  { %830 = vmatpush3.bf16.msra.mxu0 %v923_v10  ;;  %v940_v27 = vld [vmem:[%s1222_s1 + $0xb0] sm:$0xff]   ;;  %v944_v31 = vld [vmem:[%s1222_s1 + $0xb8] sm:$0xff]   ;;  %v20_v37 = vld [vmem:[%s1223_s0 + $0x28] sm:$0xff] }
   0xd   :  { %852 = vmatpush3.bf16.msra.mxu1 %v924_v11  ;;  %831 = vmatprep.subr.bf16.mxu0 %v925_v12  ;;  %v755_v38 = vcombine.low %v16_v34, %v20_v37  ;;  %v756_v39 = vcombine.high %v16_v34, %v20_v37  ;;  %v945_v40 = vld [vmem:[%s1222_s1 + $0x140] sm:$0xff]   ;;  %v949_v44 = vld [vmem:[%s1222_s1 + $0x148] sm:$0xff]   ;;  %v953_v48 = vld [vmem:[%s1222_s1 + $0x150] sm:$0xff]  }
   0xe   :  { %853 = vmatprep.subr.bf16.mxu1 %v926_v13  ;;  %614 = vmatprep.mubr.bf16.mxu0 %v754_v36  ;;  %v946_v41 = vld [vmem:[%s1222_s1 + $0x1c0] sm:$0xff]   ;;  %v950_v45 = vld [vmem:[%s1222_s1 + $0x1c8] sm:$0xff]   ;;  %v954_v49 = vld [vmem:[%s1222_s1 + $0x1d0] sm:$0xff]  }
   0xf   :  { %655 = vmatprep.mubr.bf16.mxu1 %v756_v39  ;;  %v947_v42 = vld [vmem:[%s1222_s1 + $0x100] sm:$0xff]   ;;  %v951_v46 = vld [vmem:[%s1222_s1 + $0x108] sm:$0xff]   ;;  %v955_v50 = vld [vmem:[%s1222_s1 + $0x110] sm:$0xff]  }
  0x10   :  { %832 = vmatpush3.bf16.msra.mxu0 %v927_v14  ;;  %v948_v43 = vld [vmem:[%s1222_s1 + $0x180] sm:$0xff]   ;;  %v952_v47 = vld [vmem:[%s1222_s1 + $0x188] sm:$0xff]   ;;  %v956_v51 = vld [vmem:[%s1222_s1 + $0x190] sm:$0xff]  }
  0x11   :  { %854 = vmatpush3.bf16.msra.mxu1 %v928_v15  ;;  %833 = vmatprep.subr.bf16.mxu0 %v929_v16  ;;  %v957_v52 = vld [vmem:[%s1222_s1 + $0x158] sm:$0xff]   ;;  %v961_v56 = vld [vmem:[%s1222_s1 + $0x160] sm:$0xff]   ;;  %v965_v60 = vld [vmem:[%s1222_s1 + $0x168] sm:$0xff]  }
  0x12   :  { %855 = vmatprep.subr.bf16.mxu1 %v930_v17  ;;  %v958_v53 = vld [vmem:[%s1222_s1 + $0x1d8] sm:$0xff]   ;;  %v962_v57 = vld [vmem:[%s1222_s1 + $0x1e0] sm:$0xff]   ;;  %v966_v61 = vld [vmem:[%s1222_s1 + $0x1e8] sm:$0xff]  }
  0x13   :  { %v959_v54 = vld [vmem:[%s1222_s1 + $0x118] sm:$0xff]   ;;  %v963_v58 = vld [vmem:[%s1222_s1 + $0x120] sm:$0xff]   ;;  %v967_v62 = vld [vmem:[%s1222_s1 + $0x128] sm:$0xff]  }
  0x14   :  { %834 = vmatpush3.bf16.msra.mxu0 %v931_v18  ;;  %v960_v55 = vld [vmem:[%s1222_s1 + $0x198] sm:$0xff]   ;;  %v964_v59 = vld [vmem:[%s1222_s1 + $0x1a0] sm:$0xff]   ;;  %v968_v63 = vld [vmem:[%s1222_s1 + $0x1a8] sm:$0xff]  }
  0x15   :  { %856 = vmatpush3.bf16.msra.mxu1 %v932_v19  ;;  %835 = vmatprep.subr.bf16.mxu0 %v933_v20  ;;  %v969_v0 = vld [vmem:[%s1222_s1 + $0x170] sm:$0xff]   ;;  %v973_v4 = vld [vmem:[%s1222_s1 + $0x178] sm:$0xff]   ;;  %v752_v18 = vld [vmem:[%s1224_s2] ss:$0 sm:$0xff] }
  0x16   :  { %857 = vmatprep.subr.bf16.mxu1 %v934_v21  ;;  %v970_v1 = vld [vmem:[%s1222_s1 + $0x1f0] sm:$0xff]   ;;  %v974_v5 = vld [vmem:[%s1222_s1 + $0x1f8] sm:$0xff]  }
  0x17   :  { %v971_v2 = vld [vmem:[%s1222_s1 + $0x130] sm:$0xff]   ;;  %v975_v6 = vld [vmem:[%s1222_s1 + $0x138] sm:$0xff]  }
  0x18   :  { %836 = vmatpush3.bf16.msra.mxu0 %v935_v22  ;;  %v972_v3 = vld [vmem:[%s1222_s1 + $0x1b0] sm:$0xff]   ;;  %v976_v7 = vld [vmem:[%s1222_s1 + $0x1b8] sm:$0xff]  }
  0x19   :  { %858 = vmatpush3.bf16.msra.mxu1 %v936_v23  ;;  %837 = vmatprep.subr.bf16.mxu0 %v937_v24  ;;  %v17_v8 = vld [vmem:[%s1223_s0 + $0x10] sm:$0xff]  ;;  %v18_v12 = vld [vmem:[%s1223_s0 + $0x18] sm:$0xff] }
  0x1a   :  { %859 = vmatprep.subr.bf16.mxu1 %v938_v25  ;;  %v21_v9 = vld [vmem:[%s1223_s0 + $0x30] sm:$0xff]  ;;  %v22_v13 = vld [vmem:[%s1223_s0 + $0x38] sm:$0xff] }
  0x1b   :  { %v757_v10 = vcombine.low %v17_v8, %v21_v9  ;;  %v758_v11 = vcombine.high %v17_v8, %v21_v9  ;;  %v759_v14 = vcombine.low %v18_v12, %v22_v13  ;;  %v760_v15 = vcombine.high %v18_v12, %v22_v13 }
  0x1c   :  { %838 = vmatpush3.bf16.msra.mxu0 %v939_v26 }
  0x1d   :  { %860 = vmatpush3.bf16.msra.mxu1 %v940_v27  ;;  %839 = vmatprep.subr.bf16.mxu0 %v941_v28 }
  0x1e   :  { %861 = vmatprep.subr.bf16.mxu1 %v942_v29 }
  0x20   :  { %840 = vmatpush3.bf16.msra.mxu0 %v943_v30 }
  0x21   :  { %862 = vmatpush3.bf16.msra.mxu1 %v944_v31  ;;  %869 = vmatprep.subr.bf16.mxu0 %v945_v40 }
  0x22   :  { %891 = vmatprep.subr.bf16.mxu1 %v946_v41 }
  0x23   :  { %615 = vmatmul.mubr.bf16.vlgmr.msra.gmra.mrb[0].mxu0 %v753_v35 }
  0x24   :  { %656 = vmatmul.mubr.bf16.vlgmr.msra.gmra.mrb[0].mxu1 %v755_v38  ;;  %870 = vmatpush3.bf16.msra.mxu0 %v947_v42 }
  0x25   :  { %892 = vmatpush3.bf16.msra.mxu1 %v948_v43  ;;  %871 = vmatprep.subr.bf16.mxu0 %v949_v44 }
  0x26   :  { %893 = vmatprep.subr.bf16.mxu1 %v950_v45  ;;  %696 = vmatprep.mubr.bf16.mxu0 %v758_v11 }
  0x27   :  { %737 = vmatprep.mubr.bf16.mxu1 %v760_v15 }
  0x28   :  { %872 = vmatpush3.bf16.msra.mxu0 %v951_v46 }
  0x29   :  { %894 = vmatpush3.bf16.msra.mxu1 %v952_v47  ;;  %873 = vmatprep.subr.bf16.mxu0 %v953_v48 }
  0x2a   :  { %895 = vmatprep.subr.bf16.mxu1 %v954_v49 }
  0x2c   :  { %874 = vmatpush3.bf16.msra.mxu0 %v955_v50 }
  0x2d   :  { %896 = vmatpush3.bf16.msra.mxu1 %v956_v51  ;;  %875 = vmatprep.subr.bf16.mxu0 %v957_v52 }
  0x2e   :  { %897 = vmatprep.subr.bf16.mxu1 %v958_v53 }
  0x30   :  { %876 = vmatpush3.bf16.msra.mxu0 %v959_v54 }
  0x31   :  { %898 = vmatpush3.bf16.msra.mxu1 %v960_v55  ;;  %877 = vmatprep.subr.bf16.mxu0 %v961_v56 }
  0x32   :  { %899 = vmatprep.subr.bf16.mxu1 %v962_v57 }
  0x34   :  { %878 = vmatpush3.bf16.msra.mxu0 %v963_v58 }
  0x35   :  { %900 = vmatpush3.bf16.msra.mxu1 %v964_v59  ;;  %879 = vmatprep.subr.bf16.mxu0 %v965_v60 }
  0x36   :  { %901 = vmatprep.subr.bf16.mxu1 %v966_v61 }
  0x38   :  { %880 = vmatpush3.bf16.msra.mxu0 %v967_v62 }
  0x39   :  { %902 = vmatpush3.bf16.msra.mxu1 %v968_v63  ;;  %881 = vmatprep.subr.bf16.mxu0 %v969_v0 }
  0x3a   :  { %903 = vmatprep.subr.bf16.mxu1 %v970_v1 }
  0x3c   :  { %882 = vmatpush3.bf16.msra.mxu0 %v971_v2 }
  0x3d   :  { %904 = vmatpush3.bf16.msra.mxu1 %v972_v3  ;;  %883 = vmatprep.subr.bf16.mxu0 %v973_v4 }
  0x3e   :  { %905 = vmatprep.subr.bf16.mxu1 %v974_v5 }
  0x40   :  { %884 = vmatpush3.bf16.msra.mxu0 %v975_v6 }
  0x41   :  { %906 = vmatpush3.bf16.msra.mxu1 %v976_v7 }
  0x43   :  { %697 = vmatmul.mubr.bf16.vlgmr.msra.gmra.mrb[4].mxu0 %v757_v10 }
  0x44   :  { %738 = vmatmul.mubr.bf16.vlgmr.msra.gmra.mrb[4].mxu1 %v759_v14 }
  0xf6   :  { %v841_v16 = vpop.f32.mrb[0].mxu0 }
  0xf7   :  { %v863_v17 = vpop.f32.mrb[0].mxu1  ;;  %v842_v19 = vpop.f32.mrb[1].mxu0 }
  0xf8   :  { %v843_v20 = vadd.f32 %v842_v19, %v841_v16  ;;  %v864_v21 = vpop.f32.mrb[1].mxu1  ;;  %v844_v22 = vpop.f32.mrb[2].mxu0 }
  0xf9   :  { %v865_v23 = vadd.f32 %v864_v21, %v863_v17  ;;  %v866_v24 = vpop.f32.mrb[2].mxu1  ;;  %v845_v25 = vpop.f32.mrb[3].mxu0 }
  0xfa   :  { %v617_v26 = vadd.f32 %v843_v20, %v752_v18  ;;  %v846_v27 = vadd.f32 %v845_v25, %v844_v22  ;;  %v867_v28 = vpop.f32.mrb[3].mxu1 }
  0xfb   :  { %v868_v29 = vadd.f32 %v867_v28, %v866_v24 }
  0xfc   :  { %v658_v30 = vadd.f32 %v865_v23, %v617_v26  ;;  %v620_v31 = vadd.f32 %v846_v27, %v752_v18 }
  0xfe   :  { %v661_v32 = vadd.f32 %v868_v29, %v620_v31 }
 0x116   :  { %v885_v33 = vpop.f32.mrb[4].mxu0 }
 0x117   :  { %v907_v34 = vpop.f32.mrb[4].mxu1  ;;  %v886_v35 = vpop.f32.mrb[5].mxu0 }
 0x118   :  { %v887_v36 = vadd.f32 %v886_v35, %v885_v33  ;;  %v908_v37 = vpop.f32.mrb[5].mxu1  ;;  %v888_v38 = vpop.f32.mrb[6].mxu0 }
 0x119   :  { %v909_v39 = vadd.f32 %v908_v37, %v907_v34  ;;  %v910_v40 = vpop.f32.mrb[6].mxu1  ;;  %v889_v41 = vpop.f32.mrb[7].mxu0 }
 0x11a   :  { %v699_v42 = vadd.f32 %v887_v36, %v658_v30  ;;  %v890_v43 = vadd.f32 %v889_v41, %v888_v38  ;;  %v911_v44 = vpop.f32.mrb[7].mxu1 }
 0x11b   :  { %v912_v45 = vadd.f32 %v911_v44, %v910_v40 }
 0x11c   :  { %v740_v46 = vadd.f32 %v909_v39, %v699_v42  ;;  %v702_v47 = vadd.f32 %v890_v43, %v661_v32 }
 0x11e   :  { %746 = vst [vmem:[%s1225_s3] sm:$0xff] %v740_v46  ;;  %v743_v48 = vadd.f32 %v912_v45, %v702_v47 }
 0x120   :  { %747 = vst [vmem:[%s1225_s3 + $0x8] sm:$0xff] %v743_v48 }

</bundles_post_ra>
